<compile_context>
chip_gen: v7x
topology: tpu7x:2x2x1
jax: 0.10.0
libtpu: 0.0.40
codegen_flags: <defaults>
</compile_context>

<pallas_src>
import jax
import jax.numpy as jnp
from jax.experimental import pallas as pl
from jax.experimental.pallas import tpu as pltpu

HIDDEN = 256
LANE = 128
LN_EPS = 1e-5

# Row layout of the packed vector slab (each row is a length-HIDDEN f32 vector):
#   0: b_in   1: gamma_in   2: beta_in   3: b_out (zero-padded to HIDDEN)
#   4 + 6*i + {0..5}: block i's [b1, gamma1, beta1, b2, gamma2, beta2]
_ROW_B_IN, _ROW_G_IN, _ROW_BE_IN, _ROW_B_OUT = 0, 1, 2, 3
_BLOCK_ROW0 = 4


def _layernorm(h, gamma, beta):
    # One-pass mean/variance (E[x^2] - mu^2): one fewer full-tile VPU pass than
    # the two-pass form.  Clamp guards tiny negative rounding; f32 throughout.
    mu = jnp.mean(h, axis=-1, keepdims=True)
    ex2 = jnp.mean(h * h, axis=-1, keepdims=True)
    var = jnp.maximum(ex2 - mu * mu, 0.0)
    return (h - mu) * jax.lax.rsqrt(var + LN_EPS) * gamma + beta


def policy_kernel(x_ref, w_in_ref, w_blk_ref, w_out_ref, vec_ref, o_ref):
    out_pad = o_ref.shape[-1]

    def row(r):
        # Static (1, HIDDEN) row load straight from the SLAB ref.
        return vec_ref[r:r + 1, :]

    # input_layer: Linear -> LayerNorm -> ReLU  (bf16 matmul, f32 accumulate)
    x = x_ref[...]                                           # already bf16
    h = jnp.dot(x, w_in_ref[...], preferred_element_type=jnp.float32) + row(_ROW_B_IN)
    h = jnp.maximum(_layernorm(h, row(_ROW_G_IN), row(_ROW_BE_IN)), 0.0)

    # 3 residual blocks, statically unrolled (all 6 matmuls visible to scheduler)
    n_blocks = w_blk_ref.shape[0] // 2
    for i in range(n_blocks):
        base = _BLOCK_ROW0 + 6 * i
        identity = h
        t = jnp.dot(h.astype(jnp.bfloat16), w_blk_ref[2 * i],
                    preferred_element_type=jnp.float32) + row(base + 0)
        t = jnp.maximum(_layernorm(t, row(base + 1), row(base + 2)), 0.0)
        t = jnp.dot(t.astype(jnp.bfloat16), w_blk_ref[2 * i + 1],
                    preferred_element_type=jnp.float32) + row(base + 3)
        t = _layernorm(t, row(base + 4), row(base + 5))
        h = jnp.maximum(t + identity, 0.0)

    # output_layer: Linear (output padded to a lane-dense 128-wide slab)
    out = jnp.dot(h.astype(jnp.bfloat16), w_out_ref[...],
                  preferred_element_type=jnp.float32) + row(_ROW_B_OUT)[:, :out_pad]
    o_ref[...] = out.astype(o_ref.dtype)


def init_params(key, input_size, num_tubes, n_blocks=3, hidden=HIDDEN):
    """Deterministic synthetic parameters packed for the kernel (bf16 weights)."""
    output_size = num_tubes * num_tubes
    in_pad = pl.cdiv(input_size, LANE) * LANE
    out_pad = pl.cdiv(output_size, LANE) * LANE
    assert out_pad <= hidden, "b_out packing assumes output_size <= hidden"

    ks = jax.random.split(key, 6)

    def w(k, fan_in, fan_out):
        return jax.random.normal(k, (fan_in, fan_out), jnp.float32) / jnp.sqrt(fan_in)

    # Weights (zero-padded so padding is numerically a no-op), stored bf16.
    w_in = jnp.zeros((in_pad, hidden), jnp.float32).at[:input_size, :].set(
        w(ks[0], input_size, hidden))
    w1 = jnp.stack([w(k, hidden, hidden) for k in jax.random.split(ks[1], n_blocks)])
    w2 = jnp.stack([w(k, hidden, hidden) for k in jax.random.split(ks[2], n_blocks)])
    # Interleave: [w1_0, w2_0, w1_1, w2_1, ...] -> single (2*n_blocks, H, H) slab.
    w_blk = jnp.stack([w1, w2], axis=1).reshape(2 * n_blocks, hidden, hidden)
    w_out = jnp.zeros((hidden, out_pad), jnp.float32).at[:, :output_size].set(
        w(ks[3], hidden, output_size))

    # Packed vector slab: one row per bias/gamma/beta, padded to a multiple of 8 rows.
    kio = jax.random.split(ks[4], 4)
    rows = [
        0.1 * jax.random.normal(kio[0], (hidden,), jnp.float32),          # b_in
        1.0 + 0.1 * jax.random.normal(kio[1], (hidden,), jnp.float32),    # gamma_in
        0.1 * jax.random.normal(kio[2], (hidden,), jnp.float32),          # beta_in
        jnp.zeros((hidden,), jnp.float32).at[:output_size].set(           # b_out (padded)
            0.1 * jax.random.normal(kio[3], (output_size,), jnp.float32)),
    ]
    kblk = jax.random.split(ks[5], n_blocks * 6)
    for bi in range(n_blocks):
        for vi in range(6):                       # [b1, g1, be1, b2, g2, be2]
            base = 1.0 if vi in (1, 4) else 0.0   # gammas start near 1
            rows.append(base + 0.1 * jax.random.normal(
                kblk[bi * 6 + vi], (hidden,), jnp.float32))
    n_rows = len(rows)
    n_rows_pad = pl.cdiv(n_rows, 8) * 8
    rows += [jnp.zeros((hidden,), jnp.float32)] * (n_rows_pad - n_rows)
    vec = jnp.stack(rows).astype(jnp.float32)     # (n_rows_pad, hidden)

    return dict(
        w_in=w_in.astype(jnp.bfloat16),
        w_blk=w_blk.astype(jnp.bfloat16),
        w_out=w_out.astype(jnp.bfloat16),
        vec=vec,
        input_size=input_size,
        output_size=output_size,
        n_blocks=n_blocks,
    )


def _round_up(n, m):
    return ((n + m - 1) // m) * m


def policy_forward(x, params, tb=512):
    w_in, w_blk, w_out, vec = (params["w_in"], params["w_blk"],
                               params["w_out"], params["vec"])
    in_pad = w_in.shape[0]
    out_pad = w_out.shape[1]
    out_size = params["output_size"]
    batch = x.shape[0]

    # Tile selection: big tiles (default 512 rows) amortize the ~0.35us
    # per-grid-step overhead; for batches < 2*tb split into two tiles so
    # dimension_semantics=("parallel",) gives both v7x TensorCores work.
    # Tiles are multiples of 16 rows (bf16 sublane packing).
    tb = max(16, (tb // 16) * 16)
    if batch >= 2 * tb:
        tile = tb
    else:
        tile = min(tb, max(16, _round_up(pl.cdiv(batch, 2), 16)))
    n_tiles = pl.cdiv(batch, tile)
    b_pad = n_tiles * tile

    # bf16 activations in the wrapper: halves the streamed DMA (weights are
    # resident) and removes the in-kernel cast pass.
    x_pad = jnp.pad(x.astype(jnp.bfloat16),
                    ((0, b_pad - batch), (0, in_pad - x.shape[1])))

    def resident(arr):
        # Whole array as one block with a constant index_map: the block stays
        # resident in VMEM across all grid steps (weights DMA'd exactly once).
        nd = arr.ndim
        return pl.BlockSpec(arr.shape, lambda *_: (0,) * nd)

    out = pl.pallas_call(
        policy_kernel,
        out_shape=jax.ShapeDtypeStruct((b_pad, out_pad), jnp.float32),
        grid=(n_tiles,),
        in_specs=[
            pl.BlockSpec((tile, in_pad), lambda i: (i, 0)),   # activations: pipelined
            resident(w_in),
            resident(w_blk),
            resident(w_out),
            resident(vec),
        ],
        out_specs=pl.BlockSpec((tile, out_pad), lambda i: (i, 0)),
        compiler_params=pltpu.CompilerParams(
            dimension_semantics=("parallel",),   # v7x: shard batch tiles across 2 TCs
            vmem_limit_bytes=16 << 20,           # working set ~4 MiB at tile=512
        ),
    )(x_pad, w_in, w_blk, w_out, vec)

    return out[:batch, :out_size]


def policy_forward_ref(x, params):
    """Pure-JAX reference with the identical bf16-matmul / f32-LayerNorm math."""
    w_in, w_blk, w_out, vec = (params["w_in"], params["w_blk"],
                               params["w_out"], params["vec"])
    in_pad = w_in.shape[0]
    out_pad = w_out.shape[1]
    out_size = params["output_size"]
    n_blocks = params["n_blocks"]

    def row(r):
        return vec[r:r + 1, :]

    def ln(h, g, b):
        mu = jnp.mean(h, axis=-1, keepdims=True)
        ex2 = jnp.mean(h * h, axis=-1, keepdims=True)
        var = jnp.maximum(ex2 - mu * mu, 0.0)
        return (h - mu) * jax.lax.rsqrt(var + LN_EPS) * g + b

    xp = jnp.pad(x.astype(jnp.bfloat16), ((0, 0), (0, in_pad - x.shape[1])))
    h = jnp.dot(xp, w_in, preferred_element_type=jnp.float32) + row(_ROW_B_IN)
    h = jnp.maximum(ln(h, row(_ROW_G_IN), row(_ROW_BE_IN)), 0.0)
    for i in range(n_blocks):
        base = _BLOCK_ROW0 + 6 * i
        identity = h
        t = jnp.dot(h.astype(jnp.bfloat16), w_blk[2 * i],
                    preferred_element_type=jnp.float32) + row(base + 0)
        t = jnp.maximum(ln(t, row(base + 1), row(base + 2)), 0.0)
        t = jnp.dot(t.astype(jnp.bfloat16), w_blk[2 * i + 1],
                    preferred_element_type=jnp.float32) + row(base + 3)
        t = ln(t, row(base + 4), row(base + 5))
        h = jnp.maximum(t + identity, 0.0)
    out = jnp.dot(h.astype(jnp.bfloat16), w_out,
                  preferred_element_type=jnp.float32) + row(_ROW_B_OUT)[:, :out_pad]
    return out[:, :out_size]


if __name__ == "__main__":
    key = jax.random.PRNGKey(0)
    kx, kp = jax.random.split(key)

    batch = 200           # deliberately not a multiple of the batch tile
    input_size = 64
    num_tubes = 4         # output_size = 16

    x = jax.random.normal(kx, (batch, input_size), jnp.float32)
    params = init_params(kp, input_size, num_tubes)

    out = jax.block_until_ready(policy_forward(x, params))
    ref = jax.block_until_ready(policy_forward_ref(x, params))

    assert out.shape == (batch, num_tubes * num_tubes)
    max_err = float(jnp.max(jnp.abs(out - ref)))
    # Tolerance covers bf16 matmul chains plus tiny Mosaic-vs-XLA lowering
    # differences (rsqrt / reduction order); structural errors would be O(1).
    assert jnp.allclose(out, ref, atol=2e-2, rtol=2e-2), (
        f"mismatch vs JAX reference (max abs err {max_err:.3e})")

    print("KERNEL_OK")
</pallas_src>

<mosaic_0001>
module attributes {stable_mosaic.version = 11 : i64} {
  func.func @policy_kernel(%arg0: i32, %arg1: memref<112x128xbf16, #tpu.memory_space<vmem>>, %arg2: memref<128x256xbf16, #tpu.memory_space<vmem>>, %arg3: memref<6x256x256xbf16, #tpu.memory_space<vmem>>, %arg4: memref<256x128xbf16, #tpu.memory_space<vmem>>, %arg5: memref<24x256xf32, #tpu.memory_space<vmem>>, %arg6: memref<112x128xf32, #tpu.memory_space<vmem>>) attributes {dimension_semantics = [#tpu.dimension_semantics<parallel>], iteration_bounds = array<i64: 2>, scalar_prefetch = 0 : i64, scratch_operands = 0 : i64, tpu.core_type = #tpu.core_type<tc>, window_params = [{transform_indices = @transform_0, window_bounds = array<i64: 112, 128>}, {pipeline_mode = #tpu.pipeline_mode<synchronous>, transform_indices = @transform_1, window_bounds = array<i64: 128, 256>}, {pipeline_mode = #tpu.pipeline_mode<synchronous>, transform_indices = @transform_2, window_bounds = array<i64: 6, 256, 256>}, {pipeline_mode = #tpu.pipeline_mode<synchronous>, transform_indices = @transform_3, window_bounds = array<i64: 256, 128>}, {pipeline_mode = #tpu.pipeline_mode<synchronous>, transform_indices = @transform_4, window_bounds = array<i64: 24, 256>}, {transform_indices = @transform_5, window_bounds = array<i64: 112, 128>}]} {
    %c0 = arith.constant 0 : index
    %c0_0 = arith.constant 0 : index
    %0 = vector.load %arg1[%c0, %c0_0] : memref<112x128xbf16, #tpu.memory_space<vmem>>, vector<112x128xbf16>
    %c0_1 = arith.constant 0 : index
    %c0_2 = arith.constant 0 : index
    %1 = vector.load %arg2[%c0_1, %c0_2] : memref<128x256xbf16, #tpu.memory_space<vmem>>, vector<128x256xbf16>
    %cst = arith.constant dense<0.000000e+00> : vector<112x256xf32>
    %2 = tpu.matmul %0, %1, %cst {dimension_numbers = #tpu.dot_dimension_numbers<[1], [0], [0], [1], [0, 0, 1, 1], [], []>} : vector<112x128xbf16>, vector<128x256xbf16>, vector<112x256xf32> -> vector<112x256xf32>
    %c0_3 = arith.constant 0 : index
    %c0_4 = arith.constant 0 : index
    %3 = vector.load %arg5[%c0_3, %c0_4] : memref<24x256xf32, #tpu.memory_space<vmem>>, vector<1x256xf32>
    %4 = vector.broadcast %3 : vector<1x256xf32> to vector<112x256xf32>
    %5 = arith.addf %2, %4 : vector<112x256xf32>
    %c1 = arith.constant 1 : index
    %c0_5 = arith.constant 0 : index
    %6 = vector.load %arg5[%c1, %c0_5] : memref<24x256xf32, #tpu.memory_space<vmem>>, vector<1x256xf32>
    %c2 = arith.constant 2 : index
    %c0_6 = arith.constant 0 : index
    %7 = vector.load %arg5[%c2, %c0_6] : memref<24x256xf32, #tpu.memory_space<vmem>>, vector<1x256xf32>
    %cst_7 = arith.constant dense<0.000000e+00> : vector<112xf32>
    %8 = vector.multi_reduction <add>, %5, %cst_7 [1] : vector<112x256xf32> to vector<112xf32>
    %9 = vector.shape_cast %8 : vector<112xf32> to vector<112x1xf32>
    %cst_8 = arith.constant 2.560000e+02 : f32
    %10 = vector.broadcast %cst_8 : f32 to vector<112x1xf32>
    %11 = arith.divf %9, %10 : vector<112x1xf32>
    %12 = arith.mulf %5, %5 : vector<112x256xf32>
    %cst_9 = arith.constant dense<0.000000e+00> : vector<112xf32>
    %13 = vector.multi_reduction <add>, %12, %cst_9 [1] : vector<112x256xf32> to vector<112xf32>
    %14 = vector.shape_cast %13 : vector<112xf32> to vector<112x1xf32>
    %cst_10 = arith.constant 2.560000e+02 : f32
    %15 = vector.broadcast %cst_10 : f32 to vector<112x1xf32>
    %16 = arith.divf %14, %15 : vector<112x1xf32>
    %17 = arith.mulf %11, %11 : vector<112x1xf32>
    %18 = arith.subf %16, %17 : vector<112x1xf32>
    %cst_11 = arith.constant 0.000000e+00 : f32
    %19 = vector.broadcast %cst_11 : f32 to vector<112x1xf32>
    %20 = arith.maximumf %18, %19 : vector<112x1xf32>
    %21 = vector.broadcast %11 : vector<112x1xf32> to vector<112x256xf32>
    %22 = arith.subf %5, %21 : vector<112x256xf32>
    %cst_12 = arith.constant 9.99999974E-6 : f32
    %23 = vector.broadcast %cst_12 : f32 to vector<112x1xf32>
    %24 = arith.addf %20, %23 : vector<112x1xf32>
    %25 = math.rsqrt %24 : vector<112x1xf32>
    %26 = vector.broadcast %25 : vector<112x1xf32> to vector<112x256xf32>
    %27 = arith.mulf %22, %26 : vector<112x256xf32>
    %28 = vector.broadcast %6 : vector<1x256xf32> to vector<112x256xf32>
    %29 = arith.mulf %27, %28 : vector<112x256xf32>
    %30 = vector.broadcast %7 : vector<1x256xf32> to vector<112x256xf32>
    %31 = arith.addf %29, %30 : vector<112x256xf32>
    %cst_13 = arith.constant 0.000000e+00 : f32
    %32 = vector.broadcast %cst_13 : f32 to vector<112x256xf32>
    %33 = arith.maximumf %31, %32 : vector<112x256xf32>
    %34 = arith.truncf %33 : vector<112x256xf32> to vector<112x256xbf16>
    %c0_14 = arith.constant 0 : index
    %c0_15 = arith.constant 0 : index
    %c0_16 = arith.constant 0 : index
    %35 = vector.load %arg3[%c0_14, %c0_15, %c0_16] : memref<6x256x256xbf16, #tpu.memory_space<vmem>>, vector<1x256x256xbf16>
    %36 = vector.shape_cast %35 : vector<1x256x256xbf16> to vector<256x256xbf16>
    %cst_17 = arith.constant dense<0.000000e+00> : vector<112x256xf32>
    %37 = tpu.matmul %34, %36, %cst_17 {dimension_numbers = #tpu.dot_dimension_numbers<[1], [0], [0], [1], [0, 0, 1, 1], [], []>} : vector<112x256xbf16>, vector<256x256xbf16>, vector<112x256xf32> -> vector<112x256xf32>
    %c4 = arith.constant 4 : index
    %c0_18 = arith.constant 0 : index
    %38 = vector.load %arg5[%c4, %c0_18] : memref<24x256xf32, #tpu.memory_space<vmem>>, vector<1x256xf32>
    %39 = vector.broadcast %38 : vector<1x256xf32> to vector<112x256xf32>
    %40 = arith.addf %37, %39 : vector<112x256xf32>
    %c5 = arith.constant 5 : index
    %c0_19 = arith.constant 0 : index
    %41 = vector.load %arg5[%c5, %c0_19] : memref<24x256xf32, #tpu.memory_space<vmem>>, vector<1x256xf32>
    %c6 = arith.constant 6 : index
    %c0_20 = arith.constant 0 : index
    %42 = vector.load %arg5[%c6, %c0_20] : memref<24x256xf32, #tpu.memory_space<vmem>>, vector<1x256xf32>
    %cst_21 = arith.constant dense<0.000000e+00> : vector<112xf32>
    %43 = vector.multi_reduction <add>, %40, %cst_21 [1] : vector<112x256xf32> to vector<112xf32>
    %44 = vector.shape_cast %43 : vector<112xf32> to vector<112x1xf32>
    %cst_22 = arith.constant 2.560000e+02 : f32
    %45 = vector.broadcast %cst_22 : f32 to vector<112x1xf32>
    %46 = arith.divf %44, %45 : vector<112x1xf32>
    %47 = arith.mulf %40, %40 : vector<112x256xf32>
    %cst_23 = arith.constant dense<0.000000e+00> : vector<112xf32>
    %48 = vector.multi_reduction <add>, %47, %cst_23 [1] : vector<112x256xf32> to vector<112xf32>
    %49 = vector.shape_cast %48 : vector<112xf32> to vector<112x1xf32>
    %cst_24 = arith.constant 2.560000e+02 : f32
    %50 = vector.broadcast %cst_24 : f32 to vector<112x1xf32>
    %51 = arith.divf %49, %50 : vector<112x1xf32>
    %52 = arith.mulf %46, %46 : vector<112x1xf32>
    %53 = arith.subf %51, %52 : vector<112x1xf32>
    %cst_25 = arith.constant 0.000000e+00 : f32
    %54 = vector.broadcast %cst_25 : f32 to vector<112x1xf32>
    %55 = arith.maximumf %53, %54 : vector<112x1xf32>
    %56 = vector.broadcast %46 : vector<112x1xf32> to vector<112x256xf32>
    %57 = arith.subf %40, %56 : vector<112x256xf32>
    %cst_26 = arith.constant 9.99999974E-6 : f32
    %58 = vector.broadcast %cst_26 : f32 to vector<112x1xf32>
    %59 = arith.addf %55, %58 : vector<112x1xf32>
    %60 = math.rsqrt %59 : vector<112x1xf32>
    %61 = vector.broadcast %60 : vector<112x1xf32> to vector<112x256xf32>
    %62 = arith.mulf %57, %61 : vector<112x256xf32>
    %63 = vector.broadcast %41 : vector<1x256xf32> to vector<112x256xf32>
    %64 = arith.mulf %62, %63 : vector<112x256xf32>
    %65 = vector.broadcast %42 : vector<1x256xf32> to vector<112x256xf32>
    %66 = arith.addf %64, %65 : vector<112x256xf32>
    %cst_27 = arith.constant 0.000000e+00 : f32
    %67 = vector.broadcast %cst_27 : f32 to vector<112x256xf32>
    %68 = arith.maximumf %66, %67 : vector<112x256xf32>
    %69 = arith.truncf %68 : vector<112x256xf32> to vector<112x256xbf16>
    %c1_28 = arith.constant 1 : index
    %c0_29 = arith.constant 0 : index
    %c0_30 = arith.constant 0 : index
    %70 = vector.load %arg3[%c1_28, %c0_29, %c0_30] : memref<6x256x256xbf16, #tpu.memory_space<vmem>>, vector<1x256x256xbf16>
    %71 = vector.shape_cast %70 : vector<1x256x256xbf16> to vector<256x256xbf16>
    %cst_31 = arith.constant dense<0.000000e+00> : vector<112x256xf32>
    %72 = tpu.matmul %69, %71, %cst_31 {dimension_numbers = #tpu.dot_dimension_numbers<[1], [0], [0], [1], [0, 0, 1, 1], [], []>} : vector<112x256xbf16>, vector<256x256xbf16>, vector<112x256xf32> -> vector<112x256xf32>
    %c7 = arith.constant 7 : index
    %c0_32 = arith.constant 0 : index
    %73 = vector.load %arg5[%c7, %c0_32] : memref<24x256xf32, #tpu.memory_space<vmem>>, vector<1x256xf32>
    %74 = vector.broadcast %73 : vector<1x256xf32> to vector<112x256xf32>
    %75 = arith.addf %72, %74 : vector<112x256xf32>
    %c8 = arith.constant 8 : index
    %c0_33 = arith.constant 0 : index
    %76 = vector.load %arg5[%c8, %c0_33] : memref<24x256xf32, #tpu.memory_space<vmem>>, vector<1x256xf32>
    %c9 = arith.constant 9 : index
    %c0_34 = arith.constant 0 : index
    %77 = vector.load %arg5[%c9, %c0_34] : memref<24x256xf32, #tpu.memory_space<vmem>>, vector<1x256xf32>
    %cst_35 = arith.constant dense<0.000000e+00> : vector<112xf32>
    %78 = vector.multi_reduction <add>, %75, %cst_35 [1] : vector<112x256xf32> to vector<112xf32>
    %79 = vector.shape_cast %78 : vector<112xf32> to vector<112x1xf32>
    %cst_36 = arith.constant 2.560000e+02 : f32
    %80 = vector.broadcast %cst_36 : f32 to vector<112x1xf32>
    %81 = arith.divf %79, %80 : vector<112x1xf32>
    %82 = arith.mulf %75, %75 : vector<112x256xf32>
    %cst_37 = arith.constant dense<0.000000e+00> : vector<112xf32>
    %83 = vector.multi_reduction <add>, %82, %cst_37 [1] : vector<112x256xf32> to vector<112xf32>
    %84 = vector.shape_cast %83 : vector<112xf32> to vector<112x1xf32>
    %cst_38 = arith.constant 2.560000e+02 : f32
    %85 = vector.broadcast %cst_38 : f32 to vector<112x1xf32>
    %86 = arith.divf %84, %85 : vector<112x1xf32>
    %87 = arith.mulf %81, %81 : vector<112x1xf32>
    %88 = arith.subf %86, %87 : vector<112x1xf32>
    %cst_39 = arith.constant 0.000000e+00 : f32
    %89 = vector.broadcast %cst_39 : f32 to vector<112x1xf32>
    %90 = arith.maximumf %88, %89 : vector<112x1xf32>
    %91 = vector.broadcast %81 : vector<112x1xf32> to vector<112x256xf32>
    %92 = arith.subf %75, %91 : vector<112x256xf32>
    %cst_40 = arith.constant 9.99999974E-6 : f32
    %93 = vector.broadcast %cst_40 : f32 to vector<112x1xf32>
    %94 = arith.addf %90, %93 : vector<112x1xf32>
    %95 = math.rsqrt %94 : vector<112x1xf32>
    %96 = vector.broadcast %95 : vector<112x1xf32> to vector<112x256xf32>
    %97 = arith.mulf %92, %96 : vector<112x256xf32>
    %98 = vector.broadcast %76 : vector<1x256xf32> to vector<112x256xf32>
    %99 = arith.mulf %97, %98 : vector<112x256xf32>
    %100 = vector.broadcast %77 : vector<1x256xf32> to vector<112x256xf32>
    %101 = arith.addf %99, %100 : vector<112x256xf32>
    %102 = arith.addf %101, %33 : vector<112x256xf32>
    %cst_41 = arith.constant 0.000000e+00 : f32
    %103 = vector.broadcast %cst_41 : f32 to vector<112x256xf32>
    %104 = arith.maximumf %102, %103 : vector<112x256xf32>
    %105 = arith.truncf %104 : vector<112x256xf32> to vector<112x256xbf16>
    %c2_42 = arith.constant 2 : index
    %c0_43 = arith.constant 0 : index
    %c0_44 = arith.constant 0 : index
    %106 = vector.load %arg3[%c2_42, %c0_43, %c0_44] : memref<6x256x256xbf16, #tpu.memory_space<vmem>>, vector<1x256x256xbf16>
    %107 = vector.shape_cast %106 : vector<1x256x256xbf16> to vector<256x256xbf16>
    %cst_45 = arith.constant dense<0.000000e+00> : vector<112x256xf32>
    %108 = tpu.matmul %105, %107, %cst_45 {dimension_numbers = #tpu.dot_dimension_numbers<[1], [0], [0], [1], [0, 0, 1, 1], [], []>} : vector<112x256xbf16>, vector<256x256xbf16>, vector<112x256xf32> -> vector<112x256xf32>
    %c10 = arith.constant 10 : index
    %c0_46 = arith.constant 0 : index
    %109 = vector.load %arg5[%c10, %c0_46] : memref<24x256xf32, #tpu.memory_space<vmem>>, vector<1x256xf32>
    %110 = vector.broadcast %109 : vector<1x256xf32> to vector<112x256xf32>
    %111 = arith.addf %108, %110 : vector<112x256xf32>
    %c11 = arith.constant 11 : index
    %c0_47 = arith.constant 0 : index
    %112 = vector.load %arg5[%c11, %c0_47] : memref<24x256xf32, #tpu.memory_space<vmem>>, vector<1x256xf32>
    %c12 = arith.constant 12 : index
    %c0_48 = arith.constant 0 : index
    %113 = vector.load %arg5[%c12, %c0_48] : memref<24x256xf32, #tpu.memory_space<vmem>>, vector<1x256xf32>
    %cst_49 = arith.constant dense<0.000000e+00> : vector<112xf32>
    %114 = vector.multi_reduction <add>, %111, %cst_49 [1] : vector<112x256xf32> to vector<112xf32>
    %115 = vector.shape_cast %114 : vector<112xf32> to vector<112x1xf32>
    %cst_50 = arith.constant 2.560000e+02 : f32
    %116 = vector.broadcast %cst_50 : f32 to vector<112x1xf32>
    %117 = arith.divf %115, %116 : vector<112x1xf32>
    %118 = arith.mulf %111, %111 : vector<112x256xf32>
    %cst_51 = arith.constant dense<0.000000e+00> : vector<112xf32>
    %119 = vector.multi_reduction <add>, %118, %cst_51 [1] : vector<112x256xf32> to vector<112xf32>
    %120 = vector.shape_cast %119 : vector<112xf32> to vector<112x1xf32>
    %cst_52 = arith.constant 2.560000e+02 : f32
    %121 = vector.broadcast %cst_52 : f32 to vector<112x1xf32>
    %122 = arith.divf %120, %121 : vector<112x1xf32>
    %123 = arith.mulf %117, %117 : vector<112x1xf32>
    %124 = arith.subf %122, %123 : vector<112x1xf32>
    %cst_53 = arith.constant 0.000000e+00 : f32
    %125 = vector.broadcast %cst_53 : f32 to vector<112x1xf32>
    %126 = arith.maximumf %124, %125 : vector<112x1xf32>
    %127 = vector.broadcast %117 : vector<112x1xf32> to vector<112x256xf32>
    %128 = arith.subf %111, %127 : vector<112x256xf32>
    %cst_54 = arith.constant 9.99999974E-6 : f32
    %129 = vector.broadcast %cst_54 : f32 to vector<112x1xf32>
    %130 = arith.addf %126, %129 : vector<112x1xf32>
    %131 = math.rsqrt %130 : vector<112x1xf32>
    %132 = vector.broadcast %131 : vector<112x1xf32> to vector<112x256xf32>
    %133 = arith.mulf %128, %132 : vector<112x256xf32>
    %134 = vector.broadcast %112 : vector<1x256xf32> to vector<112x256xf32>
    %135 = arith.mulf %133, %134 : vector<112x256xf32>
    %136 = vector.broadcast %113 : vector<1x256xf32> to vector<112x256xf32>
    %137 = arith.addf %135, %136 : vector<112x256xf32>
    %cst_55 = arith.constant 0.000000e+00 : f32
    %138 = vector.broadcast %cst_55 : f32 to vector<112x256xf32>
    %139 = arith.maximumf %137, %138 : vector<112x256xf32>
    %140 = arith.truncf %139 : vector<112x256xf32> to vector<112x256xbf16>
    %c3 = arith.constant 3 : index
    %c0_56 = arith.constant 0 : index
    %c0_57 = arith.constant 0 : index
    %141 = vector.load %arg3[%c3, %c0_56, %c0_57] : memref<6x256x256xbf16, #tpu.memory_space<vmem>>, vector<1x256x256xbf16>
    %142 = vector.shape_cast %141 : vector<1x256x256xbf16> to vector<256x256xbf16>
    %cst_58 = arith.constant dense<0.000000e+00> : vector<112x256xf32>
    %143 = tpu.matmul %140, %142, %cst_58 {dimension_numbers = #tpu.dot_dimension_numbers<[1], [0], [0], [1], [0, 0, 1, 1], [], []>} : vector<112x256xbf16>, vector<256x256xbf16>, vector<112x256xf32> -> vector<112x256xf32>
    %c13 = arith.constant 13 : index
    %c0_59 = arith.constant 0 : index
    %144 = vector.load %arg5[%c13, %c0_59] : memref<24x256xf32, #tpu.memory_space<vmem>>, vector<1x256xf32>
    %145 = vector.broadcast %144 : vector<1x256xf32> to vector<112x256xf32>
    %146 = arith.addf %143, %145 : vector<112x256xf32>
    %c14 = arith.constant 14 : index
    %c0_60 = arith.constant 0 : index
    %147 = vector.load %arg5[%c14, %c0_60] : memref<24x256xf32, #tpu.memory_space<vmem>>, vector<1x256xf32>
    %c15 = arith.constant 15 : index
    %c0_61 = arith.constant 0 : index
    %148 = vector.load %arg5[%c15, %c0_61] : memref<24x256xf32, #tpu.memory_space<vmem>>, vector<1x256xf32>
    %cst_62 = arith.constant dense<0.000000e+00> : vector<112xf32>
    %149 = vector.multi_reduction <add>, %146, %cst_62 [1] : vector<112x256xf32> to vector<112xf32>
    %150 = vector.shape_cast %149 : vector<112xf32> to vector<112x1xf32>
    %cst_63 = arith.constant 2.560000e+02 : f32
    %151 = vector.broadcast %cst_63 : f32 to vector<112x1xf32>
    %152 = arith.divf %150, %151 : vector<112x1xf32>
    %153 = arith.mulf %146, %146 : vector<112x256xf32>
    %cst_64 = arith.constant dense<0.000000e+00> : vector<112xf32>
    %154 = vector.multi_reduction <add>, %153, %cst_64 [1] : vector<112x256xf32> to vector<112xf32>
    %155 = vector.shape_cast %154 : vector<112xf32> to vector<112x1xf32>
    %cst_65 = arith.constant 2.560000e+02 : f32
    %156 = vector.broadcast %cst_65 : f32 to vector<112x1xf32>
    %157 = arith.divf %155, %156 : vector<112x1xf32>
    %158 = arith.mulf %152, %152 : vector<112x1xf32>
    %159 = arith.subf %157, %158 : vector<112x1xf32>
    %cst_66 = arith.constant 0.000000e+00 : f32
    %160 = vector.broadcast %cst_66 : f32 to vector<112x1xf32>
    %161 = arith.maximumf %159, %160 : vector<112x1xf32>
    %162 = vector.broadcast %152 : vector<112x1xf32> to vector<112x256xf32>
    %163 = arith.subf %146, %162 : vector<112x256xf32>
    %cst_67 = arith.constant 9.99999974E-6 : f32
    %164 = vector.broadcast %cst_67 : f32 to vector<112x1xf32>
    %165 = arith.addf %161, %164 : vector<112x1xf32>
    %166 = math.rsqrt %165 : vector<112x1xf32>
    %167 = vector.broadcast %166 : vector<112x1xf32> to vector<112x256xf32>
    %168 = arith.mulf %163, %167 : vector<112x256xf32>
    %169 = vector.broadcast %147 : vector<1x256xf32> to vector<112x256xf32>
    %170 = arith.mulf %168, %169 : vector<112x256xf32>
    %171 = vector.broadcast %148 : vector<1x256xf32> to vector<112x256xf32>
    %172 = arith.addf %170, %171 : vector<112x256xf32>
    %173 = arith.addf %172, %104 : vector<112x256xf32>
    %cst_68 = arith.constant 0.000000e+00 : f32
    %174 = vector.broadcast %cst_68 : f32 to vector<112x256xf32>
    %175 = arith.maximumf %173, %174 : vector<112x256xf32>
    %176 = arith.truncf %175 : vector<112x256xf32> to vector<112x256xbf16>
    %c4_69 = arith.constant 4 : index
    %c0_70 = arith.constant 0 : index
    %c0_71 = arith.constant 0 : index
    %177 = vector.load %arg3[%c4_69, %c0_70, %c0_71] : memref<6x256x256xbf16, #tpu.memory_space<vmem>>, vector<1x256x256xbf16>
    %178 = vector.shape_cast %177 : vector<1x256x256xbf16> to vector<256x256xbf16>
    %cst_72 = arith.constant dense<0.000000e+00> : vector<112x256xf32>
    %179 = tpu.matmul %176, %178, %cst_72 {dimension_numbers = #tpu.dot_dimension_numbers<[1], [0], [0], [1], [0, 0, 1, 1], [], []>} : vector<112x256xbf16>, vector<256x256xbf16>, vector<112x256xf32> -> vector<112x256xf32>
    %c16 = arith.constant 16 : index
    %c0_73 = arith.constant 0 : index
    %180 = vector.load %arg5[%c16, %c0_73] : memref<24x256xf32, #tpu.memory_space<vmem>>, vector<1x256xf32>
    %181 = vector.broadcast %180 : vector<1x256xf32> to vector<112x256xf32>
    %182 = arith.addf %179, %181 : vector<112x256xf32>
    %c17 = arith.constant 17 : index
    %c0_74 = arith.constant 0 : index
    %183 = vector.load %arg5[%c17, %c0_74] : memref<24x256xf32, #tpu.memory_space<vmem>>, vector<1x256xf32>
    %c18 = arith.constant 18 : index
    %c0_75 = arith.constant 0 : index
    %184 = vector.load %arg5[%c18, %c0_75] : memref<24x256xf32, #tpu.memory_space<vmem>>, vector<1x256xf32>
    %cst_76 = arith.constant dense<0.000000e+00> : vector<112xf32>
    %185 = vector.multi_reduction <add>, %182, %cst_76 [1] : vector<112x256xf32> to vector<112xf32>
    %186 = vector.shape_cast %185 : vector<112xf32> to vector<112x1xf32>
    %cst_77 = arith.constant 2.560000e+02 : f32
    %187 = vector.broadcast %cst_77 : f32 to vector<112x1xf32>
    %188 = arith.divf %186, %187 : vector<112x1xf32>
    %189 = arith.mulf %182, %182 : vector<112x256xf32>
    %cst_78 = arith.constant dense<0.000000e+00> : vector<112xf32>
    %190 = vector.multi_reduction <add>, %189, %cst_78 [1] : vector<112x256xf32> to vector<112xf32>
    %191 = vector.shape_cast %190 : vector<112xf32> to vector<112x1xf32>
    %cst_79 = arith.constant 2.560000e+02 : f32
    %192 = vector.broadcast %cst_79 : f32 to vector<112x1xf32>
    %193 = arith.divf %191, %192 : vector<112x1xf32>
    %194 = arith.mulf %188, %188 : vector<112x1xf32>
    %195 = arith.subf %193, %194 : vector<112x1xf32>
    %cst_80 = arith.constant 0.000000e+00 : f32
    %196 = vector.broadcast %cst_80 : f32 to vector<112x1xf32>
    %197 = arith.maximumf %195, %196 : vector<112x1xf32>
    %198 = vector.broadcast %188 : vector<112x1xf32> to vector<112x256xf32>
    %199 = arith.subf %182, %198 : vector<112x256xf32>
    %cst_81 = arith.constant 9.99999974E-6 : f32
    %200 = vector.broadcast %cst_81 : f32 to vector<112x1xf32>
    %201 = arith.addf %197, %200 : vector<112x1xf32>
    %202 = math.rsqrt %201 : vector<112x1xf32>
    %203 = vector.broadcast %202 : vector<112x1xf32> to vector<112x256xf32>
    %204 = arith.mulf %199, %203 : vector<112x256xf32>
    %205 = vector.broadcast %183 : vector<1x256xf32> to vector<112x256xf32>
    %206 = arith.mulf %204, %205 : vector<112x256xf32>
    %207 = vector.broadcast %184 : vector<1x256xf32> to vector<112x256xf32>
    %208 = arith.addf %206, %207 : vector<112x256xf32>
    %cst_82 = arith.constant 0.000000e+00 : f32
    %209 = vector.broadcast %cst_82 : f32 to vector<112x256xf32>
    %210 = arith.maximumf %208, %209 : vector<112x256xf32>
    %211 = arith.truncf %210 : vector<112x256xf32> to vector<112x256xbf16>
    %c5_83 = arith.constant 5 : index
    %c0_84 = arith.constant 0 : index
    %c0_85 = arith.constant 0 : index
    %212 = vector.load %arg3[%c5_83, %c0_84, %c0_85] : memref<6x256x256xbf16, #tpu.memory_space<vmem>>, vector<1x256x256xbf16>
    %213 = vector.shape_cast %212 : vector<1x256x256xbf16> to vector<256x256xbf16>
    %cst_86 = arith.constant dense<0.000000e+00> : vector<112x256xf32>
    %214 = tpu.matmul %211, %213, %cst_86 {dimension_numbers = #tpu.dot_dimension_numbers<[1], [0], [0], [1], [0, 0, 1, 1], [], []>} : vector<112x256xbf16>, vector<256x256xbf16>, vector<112x256xf32> -> vector<112x256xf32>
    %c19 = arith.constant 19 : index
    %c0_87 = arith.constant 0 : index
    %215 = vector.load %arg5[%c19, %c0_87] : memref<24x256xf32, #tpu.memory_space<vmem>>, vector<1x256xf32>
    %216 = vector.broadcast %215 : vector<1x256xf32> to vector<112x256xf32>
    %217 = arith.addf %214, %216 : vector<112x256xf32>
    %c20 = arith.constant 20 : index
    %c0_88 = arith.constant 0 : index
    %218 = vector.load %arg5[%c20, %c0_88] : memref<24x256xf32, #tpu.memory_space<vmem>>, vector<1x256xf32>
    %c21 = arith.constant 21 : index
    %c0_89 = arith.constant 0 : index
    %219 = vector.load %arg5[%c21, %c0_89] : memref<24x256xf32, #tpu.memory_space<vmem>>, vector<1x256xf32>
    %cst_90 = arith.constant dense<0.000000e+00> : vector<112xf32>
    %220 = vector.multi_reduction <add>, %217, %cst_90 [1] : vector<112x256xf32> to vector<112xf32>
    %221 = vector.shape_cast %220 : vector<112xf32> to vector<112x1xf32>
    %cst_91 = arith.constant 2.560000e+02 : f32
    %222 = vector.broadcast %cst_91 : f32 to vector<112x1xf32>
    %223 = arith.divf %221, %222 : vector<112x1xf32>
    %224 = arith.mulf %217, %217 : vector<112x256xf32>
    %cst_92 = arith.constant dense<0.000000e+00> : vector<112xf32>
    %225 = vector.multi_reduction <add>, %224, %cst_92 [1] : vector<112x256xf32> to vector<112xf32>
    %226 = vector.shape_cast %225 : vector<112xf32> to vector<112x1xf32>
    %cst_93 = arith.constant 2.560000e+02 : f32
    %227 = vector.broadcast %cst_93 : f32 to vector<112x1xf32>
    %228 = arith.divf %226, %227 : vector<112x1xf32>
    %229 = arith.mulf %223, %223 : vector<112x1xf32>
    %230 = arith.subf %228, %229 : vector<112x1xf32>
    %cst_94 = arith.constant 0.000000e+00 : f32
    %231 = vector.broadcast %cst_94 : f32 to vector<112x1xf32>
    %232 = arith.maximumf %230, %231 : vector<112x1xf32>
    %233 = vector.broadcast %223 : vector<112x1xf32> to vector<112x256xf32>
    %234 = arith.subf %217, %233 : vector<112x256xf32>
    %cst_95 = arith.constant 9.99999974E-6 : f32
    %235 = vector.broadcast %cst_95 : f32 to vector<112x1xf32>
    %236 = arith.addf %232, %235 : vector<112x1xf32>
    %237 = math.rsqrt %236 : vector<112x1xf32>
    %238 = vector.broadcast %237 : vector<112x1xf32> to vector<112x256xf32>
    %239 = arith.mulf %234, %238 : vector<112x256xf32>
    %240 = vector.broadcast %218 : vector<1x256xf32> to vector<112x256xf32>
    %241 = arith.mulf %239, %240 : vector<112x256xf32>
    %242 = vector.broadcast %219 : vector<1x256xf32> to vector<112x256xf32>
    %243 = arith.addf %241, %242 : vector<112x256xf32>
    %244 = arith.addf %243, %175 : vector<112x256xf32>
    %cst_96 = arith.constant 0.000000e+00 : f32
    %245 = vector.broadcast %cst_96 : f32 to vector<112x256xf32>
    %246 = arith.maximumf %244, %245 : vector<112x256xf32>
    %247 = arith.truncf %246 : vector<112x256xf32> to vector<112x256xbf16>
    %c0_97 = arith.constant 0 : index
    %c0_98 = arith.constant 0 : index
    %248 = vector.load %arg4[%c0_97, %c0_98] : memref<256x128xbf16, #tpu.memory_space<vmem>>, vector<256x128xbf16>
    %cst_99 = arith.constant dense<0.000000e+00> : vector<112x128xf32>
    %249 = tpu.matmul %247, %248, %cst_99 {dimension_numbers = #tpu.dot_dimension_numbers<[1], [0], [0], [1], [0, 0, 1, 1], [], []>} : vector<112x256xbf16>, vector<256x128xbf16>, vector<112x128xf32> -> vector<112x128xf32>
    %c3_100 = arith.constant 3 : index
    %c0_101 = arith.constant 0 : index
    %250 = vector.load %arg5[%c3_100, %c0_101] : memref<24x256xf32, #tpu.memory_space<vmem>>, vector<1x256xf32>
    %251 = vector.extract_strided_slice %250 {offsets = [0, 0], sizes = [1, 128], strides = [1, 1]} : vector<1x256xf32> to vector<1x128xf32>
    %252 = vector.broadcast %251 : vector<1x128xf32> to vector<112x128xf32>
    %253 = arith.addf %249, %252 : vector<112x128xf32>
    %c0_102 = arith.constant 0 : index
    %c0_103 = arith.constant 0 : index
    %254 = vector.load %arg6[%c0_102, %c0_103] : memref<112x128xf32, #tpu.memory_space<vmem>>, vector<112x128xf32>
    tpu.vector_store %arg6[%c0_102, %c0_103], %253 {strides = array<i32>} : memref<112x128xf32, #tpu.memory_space<vmem>>, vector<112x128xf32>,
    return
  }
  func.func @transform_0(%arg0: i32) -> (i32, i32) {
    %c0_i32 = arith.constant 0 : i32
    %c0_i32_0 = arith.constant 0 : i32
    return %arg0, %c0_i32 : i32, i32
  }
  func.func @transform_1(%arg0: i32) -> (i32, i32) {
    %c0_i32 = arith.constant 0 : i32
    %c0_i32_0 = arith.constant 0 : i32
    %c0_i32_1 = arith.constant 0 : i32
    return %c0_i32, %c0_i32_0 : i32, i32
  }
  func.func @transform_2(%arg0: i32) -> (i32, i32, i32) {
    %c0_i32 = arith.constant 0 : i32
    %c0_i32_0 = arith.constant 0 : i32
    %c0_i32_1 = arith.constant 0 : i32
    %c0_i32_2 = arith.constant 0 : i32
    return %c0_i32, %c0_i32_0, %c0_i32_1 : i32, i32, i32
  }
  func.func @transform_3(%arg0: i32) -> (i32, i32) {
    %c0_i32 = arith.constant 0 : i32
    %c0_i32_0 = arith.constant 0 : i32
    %c0_i32_1 = arith.constant 0 : i32
    return %c0_i32, %c0_i32_0 : i32, i32
  }
  func.func @transform_4(%arg0: i32) -> (i32, i32) {
    %c0_i32 = arith.constant 0 : i32
    %c0_i32_0 = arith.constant 0 : i32
    %c0_i32_1 = arith.constant 0 : i32
    return %c0_i32, %c0_i32_0 : i32, i32
  }
  func.func @transform_5(%arg0: i32) -> (i32, i32) {
    %c0_i32 = arith.constant 0 : i32
    %c0_i32_0 = arith.constant 0 : i32
    return %arg0, %c0_i32 : i32, i32
  }
}

</mosaic_0001>

<bundles_post_ra>
// kernel: tpu_custom_call.1
= control target key start
LH: loop header
LB: loop body
LE: loop exit
PB: predicated region body
PF: predicated region fallthrough
CT: control target
= control target key end

     0   :  { %10 = vsyncpa [#allocation3], 0  ;;  %s10262_s0 = inlined_call_operand.hbm [shape: bf16[224,128], index: 0, kind: input, shape index: {}]   ;;  %s10263_s1 = inlined_call_operand.hbm [shape: bf16[128,256], index: 1, kind: input, shape index: {}]   ;;  %s10264_s2 = inlined_call_operand.hbm [shape: bf16[6,256,256], index: 2, kind: input, shape index: {}]   ;;  %s10265_s3 = inlined_call_operand.hbm [shape: bf16[256,128], index: 3, kind: input, shape index: {}]   ;;  %s10266_s4 = inlined_call_operand.hbm [shape: f32[24,256], index: 4, kind: input, shape index: {}]   ;;  %s10267_s5 = inlined_call_operand.hbm [shape: f32[224,128], index: 5, kind: output, shape index: {}]  }
   0x1   :  { %12 = vsyncpa [#allocation3 + $0x1], 0 }
   0x2   :  { %13 = vsyncpa [#allocation6], 0 }
   0x3   :  { %14 = vsyncpa [#allocation9], 0 }
   0x4   :  { %15 = vsyncpa [#allocation4], 0 }
   0x5   :  { %17 = vsyncpa [#allocation4 + $0x1], 0  ;;  %s6819_s18 = smov 0   ;;  %s6821_s19 = smov 0  }
   0x6   :  { %s6823_s20 = smov 0   ;;  %s6825_s21 = smov 0  }
   0x7 LB: > { %s6840_s22 = sadd.s32 4294967295, %s6772_s21   ;;  %s5603_s23 = sadd.s32 4294967294, %s6772_s21   ;;  %s6772_s21 = sphi %s6825_s21, %s10667_s21   ;;  %s6768_s20 = sphi %s6823_s20, %s10666_s20   ;;  %s6764_s19 = sphi %s6821_s19, %s10665_s19   ;;  %s6760_s18 = sphi %s6819_s18, %s10664_s18  }
   0x8   : > { %p43_p0 = scmp.ne.s32.totalorder %s6764_s19, %s6760_s18  ;;  %p10268_p1 = scmp.eq.s32.totalorder %s6840_s22, 0 }
   0x9   : > { %p157_p3 = scmp.eq.s32.totalorder %s5603_s23, 1  ;;  %p5604_p5 = scmp.ge.s32.totalorder %s6772_s21, 1 }
   0xa   : > { %p6849_p4 = por %p10268_p1, %p43_p0  ;;  %p164_p7 = scmp.lt.s32.totalorder %s6772_s21, 3 }
   0xb   : > { %p6854_p6 = por %p157_p3, %p43_p0  ;;  %s6774_s27 = smov [#allocation5]  }
   0xc   : > { %s10421_s24 = scalar_select %p6849_p4, 1, 0 }
   0xd   : > { %s10422_s25 = scalar_select %p6854_p6, 1, 0 }
   0xe   : > { %p6859_p8 = pnand %p5604_p5, %p164_p7  ;;  %s176_s28 = sshll.u32 %s6774_s27, 4  ;;  %s6863_s28 = int_to_ptr.vmem [resolvable:$true] %s176_s28 }
   0xf   : > { %s6775_s30 = smov [#allocation8]   ;;  %s6556_s9 = scalar_lea.hbm %s10263_s1, 2048 }
  0x10   : > { %s10423_s26 = scalar_select %p6859_p8, 1, 0 }
  0x11   : > { %p5949_p9 = pneg %p6859_p8  ;;  %s202_s6 = sshll.u32 %s6775_s30, 4  ;;  %s6874_s6 = int_to_ptr.vmem [resolvable:$true] %s202_s6 }
  0x12   : > { %p6557_p12 = scmp.ne.s32.totalorder %s10263_s1, %s6556_s9  ;;  %p6563_p5 = scmp.lt.u32.totalorder %s6556_s9, %s10263_s1 }
  0x13   : > { %p6870_p11 = pnand %p5949_p9, %p10268_p1 }
  0x15   : > { %p6884_p13 = pneg %p6870_p11 }
  0x17   : > { %p6559_p0 = pnand %p6884_p13, %p6557_p12 }
  0x19   : > { %p6560_p3 = pneg %p6559_p0 }
  0x1b   : > { %p6565_p7 = pnand %p6563_p5, %p6560_p3 }
  0x1d   : > { %6568 = shalt.err (!%p6565_p7)
}
  0x1e   : > { %s6569_s15 = scalar_lea.vmem %s6863_s28, 2048  ;;  %p6577_p2 = scmp.lt.s32.totalorder %s6863_s28, %s6863_s28 }
  0x1f   : > { %p6570_p9 = scmp.ne.s32.totalorder %s6863_s28, %s6569_s15  ;;  %p6578_p6 = scmp.lt.s32.totalorder %s6569_s15, %s6569_s15 }
  0x21   : > { %p6572_p10 = pnand %p6570_p9, %p6884_p13  ;;  %p6579_p12 = por %p6578_p6, %p6577_p2 }
  0x23   : > { %p6573_p1 = pneg %p6572_p10 }
  0x25   : > { %p6580_p0 = pnand %p6579_p12, %p6573_p1 }
  0x27   : > { %6583 = shalt.err (!%p6580_p0)
}
  0x28   : > { %s10269_s16 = smov 128   ;;  %s6777_s17 = smov 8  }
  0x29   : > { %5952 = dma.hbm_to_vmem [thread:$0]  (!%p6870_p11), %s10263_s1, 2048, %s6863_s28, [#allocation6], %s10269_s16, %s10269_s16, %s6777_s17  }
  0x2a   : > { %s6584_s8 = scalar_lea.hbm %s10265_s3, 2048 }
  0x2b   : > { %p6585_p1 = scmp.ne.s32.totalorder %s10265_s3, %s6584_s8  ;;  %p6591_p10 = scmp.lt.u32.totalorder %s6584_s8, %s10265_s3 }
  0x2d   : > { %p6587_p2 = pnand %p6585_p1, %p6884_p13 }
  0x2f   : > { %p6588_p6 = pneg %p6587_p2 }
  0x31   : > { %p6593_p3 = pnand %p6591_p10, %p6588_p6 }
  0x33   : > { %6596 = shalt.err (!%p6593_p3)
}
  0x34   : > { %s6597_s28 = scalar_lea.vmem %s6874_s6, 2048  ;;  %p6605_p12 = scmp.lt.s32.totalorder %s6874_s6, %s6874_s6 }
  0x35   : > { %p6598_p5 = scmp.ne.s32.totalorder %s6874_s6, %s6597_s28  ;;  %p6606_p0 = scmp.lt.s32.totalorder %s6597_s28, %s6597_s28 }
  0x37   : > { %p6600_p7 = pnand %p6598_p5, %p6884_p13  ;;  %p6607_p1 = por %p6606_p0, %p6605_p12 }
  0x39   : > { %p6601_p9 = pneg %p6600_p7 }
  0x3b   : > { %p6608_p2 = pnand %p6607_p1, %p6601_p9 }
  0x3d   : > { %6611 = shalt.err (!%p6608_p2)
}
  0x3e   : > { %s10272_s14 = smov 64   ;;  %s6779_s15 = smov 4  }
  0x3f   : > { %5958 = dma.hbm_to_vmem [thread:$0]  (!%p6870_p11), %s10265_s3, 2048, %s6874_s6, [#allocation9], %s10272_s14, %s10272_s14, %s6779_s15  }
  0x40   : > { %s6780_s30 = smov [#allocation7]   ;;  %s6781_s8 = smov [#allocation10]  }
  0x41   : > { %s189_s7 = sshll.u32 %s6780_s30, 4  ;;  %s215_s9 = sshll.u32 %s6781_s8, 4  ;;  %s190_s7 = int_to_ptr.vmem [resolvable:$true] %s189_s7  ;;  %s6934_s9 = int_to_ptr.vmem [resolvable:$true] %s215_s9 }
  0x42   : > { %s6612_s13 = scalar_lea.hbm %s10264_s2, 24576 }
  0x43   : > { %p6613_p6 = scmp.ne.s32.totalorder %s10264_s2, %s6612_s13  ;;  %p6619_p5 = scmp.lt.u32.totalorder %s6612_s13, %s10264_s2 }
  0x45   : > { %p6615_p10 = pnand %p6613_p6, %p6884_p13 }
  0x47   : > { %p6616_p3 = pneg %p6615_p10 }
  0x49   : > { %p6621_p7 = pnand %p6619_p5, %p6616_p3 }
  0x4b   : > { %6624 = shalt.err (!%p6621_p7)
}
  0x4c   : > { %s6625_s27 = scalar_lea.vmem %s190_s7, 24576  ;;  %p6633_p1 = scmp.lt.s32.totalorder %s190_s7, %s190_s7 }
  0x4d   : > { %p6626_p9 = scmp.ne.s32.totalorder %s190_s7, %s6625_s27  ;;  %p6634_p2 = scmp.lt.s32.totalorder %s6625_s27, %s6625_s27 }
  0x4f   : > { %p6628_p12 = pnand %p6626_p9, %p6884_p13  ;;  %p6635_p4 = por %p6634_p2, %p6633_p1 }
  0x51   : > { %p6629_p0 = pneg %p6628_p12 }
  0x53   : > { %p6636_p8 = pnand %p6635_p4, %p6629_p0 }
  0x55   : > { %6639 = shalt.err (!%p6636_p8)
}
  0x56   : > { %s10426_s16 = smov 128   ;;  %s6640_s13 = scalar_lea.hbm %s10266_s4, 768 }
  0x57   : > { %5955 = dma.hbm_to_vmem [thread:$0]  (!%p6870_p11), %s10264_s2, 24576, %s190_s7, [#allocation6], %s10426_s16, %s10426_s16, %s6777_s17  }
  0x58   : > { %p6641_p6 = scmp.ne.s32.totalorder %s10266_s4, %s6640_s13  ;;  %p6647_p10 = scmp.lt.u32.totalorder %s6640_s13, %s10266_s4 }
  0x5a   : > { %p6643_p4 = pnand %p6641_p6, %p6884_p13 }
  0x5c   : > { %p6644_p8 = pneg %p6643_p4 }
  0x5e   : > { %p6649_p3 = pnand %p6647_p10, %p6644_p8 }
  0x60   : > { %6652 = shalt.err (!%p6649_p3)
}
  0x61   : > { %s6653_s17 = scalar_lea.vmem %s6934_s9, 768  ;;  %p6661_p12 = scmp.lt.s32.totalorder %s6934_s9, %s6934_s9 }
  0x62   : > { %p6654_p5 = scmp.ne.s32.totalorder %s6934_s9, %s6653_s17  ;;  %p6662_p0 = scmp.lt.s32.totalorder %s6653_s17, %s6653_s17 }
  0x64   : > { %p6656_p7 = pnand %p6654_p5, %p6884_p13  ;;  %p6663_p1 = por %p6662_p0, %p6661_p12 }
  0x66   : > { %p6657_p9 = pneg %p6656_p7 }
  0x68   : > { %p6664_p2 = pnand %p6663_p1, %p6657_p9 }
  0x6a   : > { %6667 = shalt.err (!%p6664_p2)
}
  0x6b   : > { %s6782_s7 = smov 256   ;;  %s6783_s12 = smov 16  }
  0x6c   : > { %5961 = dma.hbm_to_vmem [thread:$0]  (!%p6870_p11), %s10266_s4, 768, %s6934_s9, [#allocation9], %s6782_s7, %s6782_s7, %s6783_s12  }
  0x6d   : > { %s6981_s8 = sadd.s32 1, %s6772_s21   ;;  %s30_s11 = sadd.s32 1, %s6768_s20 }
  0x6e   : > { %s27_s10 = ssub.s32 %s6772_s21, %s6981_s8  ;;  %p37_p6 = scmp.ne.s32.totalorder %s6768_s20, %s6764_s19 }
  0x6f   : > { %p28_p13 = scmp.eq.s32.totalorder %s27_s10, 0  ;;  %p38_p4 = scmp.eq.s32.totalorder %s6772_s21, 0 }
  0x70   : > { %p10427_p10 = scmp.eq.s32.totalorder %s6840_s22, 1  ;;  %p5974_p5 = scmp.lt.s32.totalorder %s6772_s21, 2 }
  0x71   : > { %s6990_s13 = scalar_select %p28_p13, %s6768_s20, %s30_s11  }
  0x72   : > { %p39_p8 = por %p38_p4, %p37_p6  ;;  %p6994_p3 = por %p10427_p10, %p37_p6 }
  0x73   : > { %s229_s29 = sand.u32 1, %s6768_s20   ;;  %s5850_s9 = smul.u32 896, %s6772_s21 }
  0x74   : > { %s5926_s23 = smul.u32 56, %s229_s29  ;;  %p7001_p11 = pnand %p5974_p5, %p39_p8 }
  0x75   : > { %s7008_s7 = scalar_lea.hbm %s10262_s0, %s5850_s9  ;;  %s7012_s30 = scalar_lea.sflag [#allocation3], %s229_s29 }
  0x76   : > { %s233_s12 = scalar_lea.vmem [#allocation2], %s5926_s23  ;;  %s6668_s10 = scalar_lea.hbm %s7008_s7, 896 }
  0x77   : > { %s240_s16 = sshll.u32 %s233_s12, 4  ;;  %p6669_p7 = scmp.ne.s32.totalorder %s7008_s7, %s6668_s10  ;;  %s7010_s16 = int_to_ptr.vmem [resolvable:$true] %s240_s16 }
  0x78   : > { %p6670_p9 = pneg %p7001_p11  ;;  %s6673_s27 = scalar_lea.hbm %s10262_s0, 1792 }
  0x79   : > { %p6674_p1 = scmp.lt.u32.totalorder %s7008_s7, %s10262_s0  ;;  %p6675_p2 = scmp.lt.u32.totalorder %s6673_s27, %s6668_s10 }
  0x7a   : > { %p6671_p12 = pnand %p6670_p9, %p6669_p7  ;;  %p6677_p6 = scmp.lt.u32.totalorder %s6668_s10, %s7008_s7 }
  0x7b   : > { %p6676_p13 = por %p6675_p2, %p6674_p1 }
  0x7c   : > { %p6672_p0 = pneg %p6671_p12 }
  0x7d   : > { %p6678_p4 = por %p6677_p6, %p6676_p13 }
  0x7f   : > { %p6679_p8 = pnand %p6678_p4, %p6672_p0 }
  0x81   : > { %6682 = shalt.err (!%p6679_p8)
}
  0x82   : > { %s6683_s29 = scalar_lea.vmem %s7010_s16, 896  ;;  %s6784_s23 = smov [#allocation2]  }
  0x83   : > { %p6684_p10 = scmp.ne.s32.totalorder %s7010_s16, %s6683_s29  ;;  %s6688_s12 = sshll.u32 %s6784_s23, 4  ;;  %s6689_s12 = int_to_ptr.vmem [resolvable:$false] %s6688_s12 }
  0x84   : > { %s6690_s14 = scalar_lea.vmem %s6689_s12, 1792  ;;  %p6691_p12 = scmp.lt.s32.totalorder %s7010_s16, %s6689_s12 }
  0x85   : > { %p6686_p5 = pnand %p6684_p10, %p6670_p9  ;;  %p6692_p1 = scmp.lt.s32.totalorder %s6690_s14, %s6683_s29 }
  0x87   : > { %p6687_p7 = pneg %p6686_p5  ;;  %p6693_p2 = por %p6692_p1, %p6691_p12 }
  0x89   : > { %p6694_p13 = pnand %p6693_p2, %p6687_p7 }
  0x8b   : > { %6697 = shalt.err (!%p6694_p13)
}
  0x8c   : > { %s10430_s10 = smov 64   ;;  %p10431_p9 = scmp.ne.s32.totalorder %s10423_s26, 0 }
  0x8d   : > { %5965 = dma.hbm_to_vmem [thread:$0]  (!%p7001_p11), %s7008_s7, 896, %s7010_s16, %s7012_s30, %s10430_s10, %s10430_s10, %s6779_s15  }
  0x8e   : > { %252 = sbr.rel (%p10431_p9) target bundleno = 3286 (0xcd6), region = 40 }
  0x95   : > { %s7046_s11 = sand.u32 1, %s6764_s19   ;;  %p10432_p0 = scmp.ne.s32.totalorder %s10421_s24, 0 }
  0x96   : > { %s5927_s9 = smul.u32 56, %s7046_s11  ;;  %s255_s27 = scalar_lea.sflag [#allocation3], %s7046_s11 }
  0x98   : > { %s7050_s17 = scalar_lea.vmem [#allocation2], %s5927_s9 }
  0x99   : > { %6743 = dma.done.wait (%p10432_p0), %s255_s27, 896  }
  0x9a   : > { %6745 = vsyncadd (%p10432_p0), %s255_s27, 4294966400  ;;  %p10433_p11 = scmp.eq.s32.totalorder %s6840_s22, 0 }
  0x9c   : > { %6747 = dma.done.wait (%p10433_p11), [#allocation6], 26624   ;;  %p10434_p6 = pmov %p10433_p11 }
  0x9e   : > { %6749 = vsyncadd (%p10434_p6), [#allocation6], 4294940672  ;;  %p10435_p4 = pmov %p10434_p6 }
  0xa0   : > { %6751 = dma.done.wait (%p10435_p4), [#allocation9], 2816   ;;  %p10436_p8 = pmov %p10435_p4 }
  0xa1   : > { %v6785_v0 = vmov 0   ;;  %v6025_v1 = vld [vmem:[#allocation5 + $0x4] ss:$8 sps:$4 sm:$0xff]   ;;  %v6027_v2 = vld [vmem:[#allocation5] ss:$8 sps:$4 sm:$0xff]   ;;  %v6050_v18 = vld [vmem:[%s7050_s17 + $0x8] sm:$0xff]   ;;  %v336_v38 = vlaneseq }
  0xa2   : > { %6753 = vsyncadd (%p10436_p8), [#allocation9], 4294964480  ;;  %500 = vmatprep.mubr.bf16.mxu0 %v6785_v0  ;;  %468 = vmatprep.subr.bf16.mxu0 %v6025_v1  ;;  %v6028_v3 = vld [vmem:[#allocation5 + $0x14] ss:$8 sps:$4 sm:$0xff]   ;;  %v6030_v4 = vld [vmem:[#allocation5 + $0x10] ss:$8 sps:$4 sm:$0xff]  }
  0xa3   : > { %469 = vmatpush1.bf16.msra.mxu0 %v6027_v2  ;;  %v6031_v5 = vld [vmem:[#allocation5 + $0x24] ss:$8 sps:$4 sm:$0xff]   ;;  %v6033_v6 = vld [vmem:[#allocation5 + $0x20] ss:$8 sps:$4 sm:$0xff]   ;;  %v6034_v7 = vld [vmem:[#allocation5 + $0x34] ss:$8 sps:$4 sm:$0xff]  }
  0xa4   : > { %470 = vmatprep.subr.bf16.mxu0 %v6028_v3  ;;  %v6036_v8 = vld [vmem:[#allocation5 + $0x30] ss:$8 sps:$4 sm:$0xff]   ;;  %v6037_v9 = vld [vmem:[#allocation5 + $0x44] ss:$8 sps:$4 sm:$0xff]   ;;  %v6039_v10 = vld [vmem:[#allocation5 + $0x40] ss:$8 sps:$4 sm:$0xff]  }
  0xa5   : > { %v6040_v11 = vld [vmem:[#allocation5 + $0x54] ss:$8 sps:$4 sm:$0xff]   ;;  %v6042_v12 = vld [vmem:[#allocation5 + $0x50] ss:$8 sps:$4 sm:$0xff]   ;;  %v6043_v13 = vld [vmem:[#allocation5 + $0x64] ss:$8 sps:$4 sm:$0xff]  }
  0xa6   : > { %v6045_v14 = vld [vmem:[#allocation5 + $0x60] ss:$8 sps:$4 sm:$0xff]   ;;  %v6046_v15 = vld [vmem:[#allocation5 + $0x74] ss:$8 sps:$4 sm:$0xff]   ;;  %v6048_v16 = vld [vmem:[#allocation5 + $0x70] ss:$8 sps:$4 sm:$0xff]  }
  0xa7   : > { %471 = vmatpush1.bf16.msra.mxu0 %v6030_v4  ;;  %v6049_v17 = vld [vmem:[%s7050_s17] sm:$0xff]   ;;  %v6051_v19 = vld [vmem:[%s7050_s17 + $0x10] sm:$0xff]   ;;  %v6052_v20 = vld [vmem:[%s7050_s17 + $0x18] sm:$0xff]   ;;  %v337_v39 = vshrl.u32 %v336_v38, 7  ;;  %s5928_s24 = smul.u32 112, %s7046_s11  ;;  %s6786_s23 = smov [#allocation11]  }
  0xa8   : > { %472 = vmatprep.subr.bf16.mxu0 %v6031_v5  ;;  %v6053_v21 = vld [vmem:[%s7050_s17 + $0x20] sm:$0xff]   ;;  %v6054_v22 = vld [vmem:[%s7050_s17 + $0x28] sm:$0xff]   ;;  %v6055_v23 = vld [vmem:[%s7050_s17 + $0x30] sm:$0xff]   ;;  %s5851_s15 = smul.u32 1792, %s6840_s22  ;;  %s5479_s22 = scalar_lea.sflag [#allocation4], %s7046_s11 }
  0xa9   : > { %v6056_v24 = vld [vmem:[#allocation7 + $0x4] ss:$8 sps:$4 sm:$0xff]   ;;  %v6058_v25 = vld [vmem:[#allocation7] ss:$8 sps:$4 sm:$0xff]   ;;  %v6059_v26 = vld [vmem:[#allocation7 + $0x14] ss:$8 sps:$4 sm:$0xff]  }
  0xaa   : > { %1167 = vmatprep.subr.bf16.mxu1 %v6056_v24  ;;  %v6061_v27 = vld [vmem:[#allocation7 + $0x10] ss:$8 sps:$4 sm:$0xff]   ;;  %v6062_v28 = vld [vmem:[#allocation7 + $0x24] ss:$8 sps:$4 sm:$0xff]   ;;  %v6064_v29 = vld [vmem:[#allocation7 + $0x20] ss:$8 sps:$4 sm:$0xff]   ;;  %s10213_s30 = scalar_lea.hbm %s10267_s5, %s5851_s15 }
  0xab   : > { %473 = vmatpush1.bf16.msra.mxu0 %v6033_v6  ;;  %1168 = vmatpush1.bf16.msra.mxu1 %v6058_v25  ;;  %v6065_v30 = vld [vmem:[#allocation7 + $0x34] ss:$8 sps:$4 sm:$0xff]   ;;  %v6067_v31 = vld [vmem:[#allocation7 + $0x30] ss:$8 sps:$4 sm:$0xff]   ;;  %v6068_v32 = vld [vmem:[#allocation7 + $0x44] ss:$8 sps:$4 sm:$0xff]  }
  0xac   : > { %474 = vmatprep.subr.bf16.mxu0 %v6034_v7  ;;  %1169 = vmatprep.subr.bf16.mxu1 %v6059_v26  ;;  %v6070_v33 = vld [vmem:[#allocation7 + $0x40] ss:$8 sps:$4 sm:$0xff]   ;;  %v6071_v34 = vld [vmem:[#allocation7 + $0x54] ss:$8 sps:$4 sm:$0xff]   ;;  %v6073_v35 = vld [vmem:[#allocation7 + $0x50] ss:$8 sps:$4 sm:$0xff]  }
  0xad   : > { %v6074_v36 = vld [vmem:[#allocation7 + $0x64] ss:$8 sps:$4 sm:$0xff]   ;;  %v6076_v37 = vld [vmem:[#allocation7 + $0x60] ss:$8 sps:$4 sm:$0xff]   ;;  %v7071_v40 = vsub.s32 0, %v337_v39  ;;  %v7073_v42 = vsub.s32 1, %v337_v39 }
  0xae   : > { %v334_v41 = vld [vmem:[#allocation10] ss:$8 sm:$0x3]  ;;  %s10182_s26 = scalar_lea.vmem [#allocation11], %s5928_s24  ;;  %s6702_s12 = sshll.u32 %s6786_s23, 4  ;;  %s6703_s12 = int_to_ptr.vmem [resolvable:$false] %s6702_s12 }
  0xaf   : > { %475 = vmatpush1.bf16.msra.mxu0 %v6036_v8  ;;  %1170 = vmatpush1.bf16.msra.mxu1 %v6061_v27  ;;  %10437 = vst [vmem:[#allocation16_spill] sm:$0xff] %v7071_v40  ;;  %10438 = vst [vmem:[#allocation17_spill] sm:$0xff] %v7073_v42  ;;  %v7076_v43 = vrot.slane %v334_v41, %v7071_v40  ;;  %v7079_v44 = vrot.slane %v334_v41, %v7073_v42  ;;  %v6083_v41 = vld [vmem:[#allocation7 + $0x94] ss:$8 sps:$4 sm:$0xff]   ;;  %s5492_s6 = sshll.u32 %s10182_s26, 4  ;;  %s6704_s14 = scalar_lea.vmem %s6703_s12, 3584  ;;  %s10215_s6 = int_to_ptr.vmem [resolvable:$true] %s5492_s6 }
  0xb0   : > { %476 = vmatprep.subr.bf16.mxu0 %v6037_v9  ;;  %1171 = vmatprep.subr.bf16.mxu1 %v6062_v28  ;;  %s6698_s29 = scalar_lea.vmem %s10215_s6, 1792  ;;  %p6705_p12 = scmp.lt.s32.totalorder %s10215_s6, %s6703_s12 }
  0xb1   : > { %p6699_p10 = scmp.ne.s32.totalorder %s10215_s6, %s6698_s29  ;;  %p6706_p1 = scmp.lt.s32.totalorder %s6704_s14, %s6698_s29 }
  0xb3   : > { %477 = vmatpush1.bf16.msra.mxu0 %v6039_v10  ;;  %1172 = vmatpush1.bf16.msra.mxu1 %v6064_v29  ;;  %v6080_v29 = vld [vmem:[#allocation7 + $0x84] ss:$8 sps:$4 sm:$0xff]   ;;  %p6700_p5 = pnand %p6699_p10, %p6994_p3  ;;  %p6707_p2 = por %p6706_p1, %p6705_p12 }
  0xb4   : > { %478 = vmatprep.subr.bf16.mxu0 %v6040_v11  ;;  %1173 = vmatprep.subr.bf16.mxu1 %v6065_v30  ;;  %v6082_v30 = vld [vmem:[#allocation7 + $0x80] ss:$8 sps:$4 sm:$0xff]  }
  0xb5   : > { %p6701_p7 = pneg %p6700_p5 }
  0xb7   : > { %479 = vmatpush1.bf16.msra.mxu0 %v6042_v12  ;;  %1174 = vmatpush1.bf16.msra.mxu1 %v6067_v31  ;;  %p6708_p13 = pnand %p6707_p2, %p6701_p7 }
  0xb8   : > { %480 = vmatprep.subr.bf16.mxu0 %v6043_v13  ;;  %1175 = vmatprep.subr.bf16.mxu1 %v6068_v32 }
  0xbb   : > { %481 = vmatpush1.bf16.msra.mxu0 %v6045_v14  ;;  %1176 = vmatpush1.bf16.msra.mxu1 %v6070_v33 }
  0xbc   : > { %482 = vmatprep.subr.bf16.mxu0 %v6046_v15  ;;  %1177 = vmatprep.subr.bf16.mxu1 %v6071_v34 }
  0xbf   : > { %483 = vmatpush1.bf16.msra.mxu0 %v6048_v16  ;;  %1178 = vmatpush1.bf16.msra.mxu1 %v6073_v35 }
  0xc0   : > { %1179 = vmatprep.subr.bf16.mxu1 %v6074_v36 }
  0xc2   : > { %501 = vmatmul.mubr.bf16.vlgmr.msra.gmra.mrb[0].mxu0 %v6049_v17 }
  0xc3   : > { %510 = vmatprep.mubr.bf16.mxu0 %v6785_v0  ;;  %1180 = vmatpush1.bf16.msra.mxu1 %v6076_v37 }
  0xca   : > { %511 = vmatmul.mubr.bf16.gmra.mrb[4].mxu0 %v6050_v18  ;;  %v6077_v18 = vld [vmem:[#allocation7 + $0x74] ss:$8 sps:$4 sm:$0xff]  }
  0xcb   : > { %520 = vmatprep.mubr.bf16.mxu0 %v6785_v0  ;;  %1181 = vmatprep.subr.bf16.mxu1 %v6077_v18 }
  0xd2   : > { %521 = vmatmul.mubr.bf16.gmra.mrb[8].mxu0 %v6051_v19 }
  0xd3   : > { %530 = vmatprep.mubr.bf16.mxu0 %v6785_v0 }
  0xda   : > { %531 = vmatmul.mubr.bf16.gmra.mrb[12].mxu0 %v6052_v20 }
  0xdb   : > { %540 = vmatprep.mubr.bf16.mxu0 %v6785_v0 }
  0xe2   : > { %541 = vmatmul.mubr.bf16.gmra.mrb[16].mxu0 %v6053_v21 }
  0xe3   : > { %550 = vmatprep.mubr.bf16.mxu0 %v6785_v0 }
  0xea   : > { %551 = vmatmul.mubr.bf16.gmra.mrb[20].mxu0 %v6054_v22  ;;  %v6079_v22 = vld [vmem:[#allocation7 + $0x70] ss:$8 sps:$4 sm:$0xff]  }
  0xeb   : > { %560 = vmatprep.mubr.bf16.mxu0 %v6785_v0  ;;  %1182 = vmatpush1.bf16.msra.mxu1 %v6079_v22 }
  0xec   : > { %1183 = vmatprep.subr.bf16.mxu1 %v6080_v29 }
  0xef   : > { %1184 = vmatpush1.bf16.msra.mxu1 %v6082_v30 }
  0xf0   : > { %1185 = vmatprep.subr.bf16.mxu1 %v6083_v41  ;;  %v6097_v41 = vld [vmem:[#allocation7 + $0xd0] ss:$8 sps:$4 sm:$0xff]  }
  0xf2   : > { %561 = vmatmul.mubr.bf16.gmra.mrb[24].mxu0 %v6055_v23 }
 0x195   : > { %v502_v45 = vpop.f32.mrb[0].mxu0 }
 0x196   : > { %v7082_v46 = vadd.f32 %v502_v45, %v7076_v43  ;;  %v504_v47 = vpop.f32.mrb[1].mxu0 }
 0x197   : > { %v7085_v48 = vadd.f32 %v504_v47, %v7079_v44  ;;  %v506_v49 = vpop.f32.mrb[2].mxu0 }
 0x198   : > { %v7088_v50 = vadd.f32 %v506_v49, %v7076_v43  ;;  %v508_v51 = vpop.f32.mrb[3].mxu0  ;;  %v632_v52 = vmul.f32 %v7082_v46, %v7082_v46 }
 0x199   : > { %v7093_v53 = vadd.f32 %v508_v51, %v7079_v44  ;;  %v575_v54 = vadd.f32 %v7085_v48, %v7082_v46  ;;  %v633_v55 = vmul.f32 %v7085_v48, %v7085_v48 }
 0x19a   : > { %v634_v57 = vmul.f32 %v7088_v50, %v7088_v50 }
 0x19b   : > { %576 = vadd.xlane.f32.xlu0 %v575_v54  ;;  %v660_v56 = vadd.f32 %v633_v55, %v632_v52  ;;  %v635_v58 = vmul.f32 %v7093_v53, %v7093_v53  ;;  %v578_v60 = vadd.f32 %v7093_v53, %v7088_v50  ;;  %v6085_v52 = vld [vmem:[#allocation7 + $0x90] ss:$8 sps:$4 sm:$0xff]  }
 0x19c   : > { %1186 = vmatpush1.bf16.msra.mxu1 %v6085_v52  ;;  %v6098_v52 = vld [vmem:[#allocation7 + $0xe4] ss:$8 sps:$4 sm:$0xff]  }
 0x19d   : > { %v512_v59 = vpop.f32.mrb[4].mxu0  ;;  %661 = vadd.xlane.f32.xlu1 %v660_v56  ;;  %v663_v1 = vadd.f32 %v635_v58, %v634_v57  ;;  %v6086_v57 = vld [vmem:[#allocation7 + $0xa4] ss:$8 sps:$4 sm:$0xff]  }
 0x19e   : > { %v7106_v61 = vadd.f32 %v512_v59, %v7076_v43  ;;  %v514_v62 = vpop.f32.mrb[5].mxu0  ;;  %1187 = vmatprep.subr.bf16.mxu1 %v6086_v57 }
 0x19f   : > { %v7109_v63 = vadd.f32 %v514_v62, %v7079_v44  ;;  %v516_v0 = vpop.f32.mrb[6].mxu0  ;;  %579 = vadd.xlane.f32.xlu0 %v578_v60  ;;  %v6088_v60 = vld [vmem:[#allocation7 + $0xa0] ss:$8 sps:$4 sm:$0xff]  }
 0x1a0   : > { %v7112_v2 = vadd.f32 %v516_v0, %v7076_v43  ;;  %v518_v3 = vpop.f32.mrb[7].mxu0  ;;  %v636_v6 = vmul.f32 %v7106_v61, %v7106_v61  ;;  %1188 = vmatpush1.bf16.msra.mxu1 %v6088_v60 }
 0x1a1   : > { %v7115_v4 = vadd.f32 %v518_v3, %v7079_v44  ;;  %664 = vadd.xlane.f32.xlu1 %v663_v1  ;;  %v581_v5 = vadd.f32 %v7109_v63, %v7106_v61  ;;  %v637_v7 = vmul.f32 %v7109_v63, %v7109_v63 }
 0x1a2   : > { %v638_v9 = vmul.f32 %v7112_v2, %v7112_v2 }
 0x1a3   : > { %582 = vadd.xlane.f32.xlu0 %v581_v5  ;;  %v584_v8 = vadd.f32 %v7115_v4, %v7112_v2  ;;  %v639_v10 = vmul.f32 %v7115_v4, %v7115_v4  ;;  %v666_v12 = vadd.f32 %v637_v7, %v636_v6 }
 0x1a5   : > { %v522_v11 = vpop.f32.mrb[8].mxu0  ;;  %585 = vadd.xlane.f32.xlu1 %v584_v8  ;;  %v669_v17 = vadd.f32 %v639_v10, %v638_v9  ;;  %v6089_v8 = vld [vmem:[#allocation7 + $0xb4] ss:$8 sps:$4 sm:$0xff]  }
 0x1a6   : > { %v7130_v13 = vadd.f32 %v522_v11, %v7076_v43  ;;  %v524_v14 = vpop.f32.mrb[9].mxu0  ;;  %1189 = vmatprep.subr.bf16.mxu1 %v6089_v8 }
 0x1a7   : > { %v7133_v15 = vadd.f32 %v524_v14, %v7079_v44  ;;  %v526_v16 = vpop.f32.mrb[10].mxu0  ;;  %667 = vadd.xlane.f32.xlu0 %v666_v12  ;;  %v6091_v14 = vld [vmem:[#allocation7 + $0xb0] ss:$8 sps:$4 sm:$0xff]  }
 0x1a8   : > { %v7136_v19 = vadd.f32 %v526_v16, %v7076_v43  ;;  %v528_v20 = vpop.f32.mrb[11].mxu0  ;;  %v640_v21 = vmul.f32 %v7130_v13, %v7130_v13  ;;  %1190 = vmatpush1.bf16.msra.mxu1 %v6091_v14  ;;  %v6103_v14 = vld [vmem:[#allocation7 + $0xf0] ss:$8 sps:$4 sm:$0xff]  }
 0x1a9   : > { %v7141_v23 = vadd.f32 %v528_v20, %v7079_v44  ;;  %670 = vadd.xlane.f32.xlu1 %v669_v17  ;;  %v587_v24 = vadd.f32 %v7133_v15, %v7130_v13  ;;  %v641_v25 = vmul.f32 %v7133_v15, %v7133_v15  ;;  %v6092_v20 = vld [vmem:[#allocation7 + $0xc4] ss:$8 sps:$4 sm:$0xff]  }
 0x1aa   : > { %v642_v27 = vmul.f32 %v7136_v19, %v7136_v19  ;;  %1191 = vmatprep.subr.bf16.mxu1 %v6092_v20 }
 0x1ab   : > { %588 = vadd.xlane.f32.xlu0 %v587_v24  ;;  %v590_v26 = vadd.f32 %v7141_v23, %v7136_v19  ;;  %v643_v28 = vmul.f32 %v7141_v23, %v7141_v23  ;;  %v672_v32 = vadd.f32 %v641_v25, %v640_v21  ;;  %v6094_v24 = vld [vmem:[#allocation7 + $0xc0] ss:$8 sps:$4 sm:$0xff]  }
 0x1ac   : > { %1192 = vmatpush1.bf16.msra.mxu1 %v6094_v24 }
 0x1ad   : > { %v532_v31 = vpop.f32.mrb[12].mxu0  ;;  %591 = vadd.xlane.f32.xlu1 %v590_v26  ;;  %v675_v37 = vadd.f32 %v643_v28, %v642_v27 }
 0x1ae   : > { %v7154_v33 = vadd.f32 %v532_v31, %v7076_v43  ;;  %v534_v34 = vpop.f32.mrb[13].mxu0 }
 0x1af   : > { %v7157_v35 = vadd.f32 %v534_v34, %v7079_v44  ;;  %v536_v36 = vpop.f32.mrb[14].mxu0  ;;  %673 = vadd.xlane.f32.xlu0 %v672_v32  ;;  %v6095_v32 = vld [vmem:[#allocation7 + $0xd4] ss:$8 sps:$4 sm:$0xff]  }
 0x1b0   : > { %v7160_v38 = vadd.f32 %v536_v36, %v7076_v43  ;;  %v538_v39 = vpop.f32.mrb[15].mxu0  ;;  %v644_v49 = vmul.f32 %v7154_v33, %v7154_v33  ;;  %1193 = vmatprep.subr.bf16.mxu1 %v6095_v32 }
 0x1b1   : > { %v7163_v45 = vadd.f32 %v538_v39, %v7079_v44  ;;  %676 = vadd.xlane.f32.xlu1 %v675_v37  ;;  %v593_v47 = vadd.f32 %v7157_v35, %v7154_v33  ;;  %v645_v51 = vmul.f32 %v7157_v35, %v7157_v35  ;;  %1194 = vmatpush1.bf16.msra.mxu1 %v6097_v41 }
 0x1b2   : > { %v646_v55 = vmul.f32 %v7160_v38, %v7160_v38  ;;  %1195 = vmatprep.subr.bf16.mxu1 %v6098_v52 }
 0x1b3   : > { %594 = vadd.xlane.f32.xlu0 %v593_v47  ;;  %v596_v54 = vadd.f32 %v7163_v45, %v7160_v38  ;;  %v647_v56 = vmul.f32 %v7163_v45, %v7163_v45  ;;  %v678_v59 = vadd.f32 %v645_v51, %v644_v49 }
 0x1b5   : > { %v542_v58 = vpop.f32.mrb[16].mxu0  ;;  %597 = vadd.xlane.f32.xlu1 %v596_v54  ;;  %v681_v5 = vadd.f32 %v647_v56, %v646_v55  ;;  %v6100_v56 = vld [vmem:[#allocation7 + $0xe0] ss:$8 sps:$4 sm:$0xff]  }
 0x1b6   : > { %v7178_v62 = vadd.f32 %v542_v58, %v7076_v43  ;;  %v544_v0 = vpop.f32.mrb[17].mxu0  ;;  %1196 = vmatpush1.bf16.msra.mxu1 %v6100_v56 }
 0x1b7   : > { %v7181_v1 = vadd.f32 %v544_v0, %v7079_v44  ;;  %v546_v3 = vpop.f32.mrb[18].mxu0  ;;  %679 = vadd.xlane.f32.xlu0 %v678_v59 }
 0x1b8   : > { %v7184_v6 = vadd.f32 %v546_v3, %v7076_v43  ;;  %v548_v7 = vpop.f32.mrb[19].mxu0  ;;  %v648_v11 = vmul.f32 %v7178_v62, %v7178_v62 }
 0x1b9   : > { %v7187_v9 = vadd.f32 %v548_v7, %v7079_v44  ;;  %682 = vadd.xlane.f32.xlu1 %v681_v5  ;;  %v599_v10 = vadd.f32 %v7181_v1, %v7178_v62  ;;  %v649_v12 = vmul.f32 %v7181_v1, %v7181_v1  ;;  %v6101_v7 = vld [vmem:[#allocation7 + $0xf4] ss:$8 sps:$4 sm:$0xff]  }
 0x1ba   : > { %v650_v17 = vmul.f32 %v7184_v6, %v7184_v6  ;;  %1197 = vmatprep.subr.bf16.mxu1 %v6101_v7 }
 0x1bb   : > { %600 = vadd.xlane.f32.xlu0 %v599_v10  ;;  %v602_v16 = vadd.f32 %v7187_v9, %v7184_v6  ;;  %v651_v18 = vmul.f32 %v7187_v9, %v7187_v9  ;;  %v684_v22 = vadd.f32 %v649_v12, %v648_v11  ;;  %1198 = vmatpush1.bf16.msra.mxu1 %v6103_v14  ;;  %v572_v14 = vld [vmem:[#allocation10 + $0x1] ss:$8 sm:$0x3] }
 0x1bd   : > { %v552_v21 = vpop.f32.mrb[20].mxu0  ;;  %603 = vadd.xlane.f32.xlu1 %v602_v16  ;;  %v687_v29 = vadd.f32 %v651_v18, %v650_v17 }
 0x1be   : > { %v7202_v25 = vadd.f32 %v552_v21, %v7076_v43  ;;  %v554_v26 = vpop.f32.mrb[21].mxu0 }
 0x1bf   : > { %v7205_v27 = vadd.f32 %v554_v26, %v7079_v44  ;;  %v556_v28 = vpop.f32.mrb[22].mxu0  ;;  %685 = vadd.xlane.f32.xlu0 %v684_v22 }
 0x1c0   : > { %v7208_v30 = vadd.f32 %v556_v28, %v7076_v43  ;;  %v558_v31 = vpop.f32.mrb[23].mxu0  ;;  %v652_v37 = vmul.f32 %v7202_v25, %v7202_v25 }
 0x1c1   : > { %v7211_v34 = vadd.f32 %v558_v31, %v7079_v44  ;;  %688 = vadd.xlane.f32.xlu1 %v687_v29  ;;  %v605_v36 = vadd.f32 %v7205_v27, %v7202_v25  ;;  %v653_v39 = vmul.f32 %v7205_v27, %v7205_v27 }
 0x1c2   : > { %v654_v49 = vmul.f32 %v7208_v30, %v7208_v30 }
 0x1c3   : > { %606 = vadd.xlane.f32.xlu0 %v605_v36  ;;  %v608_v47 = vadd.f32 %v7211_v34, %v7208_v30  ;;  %v655_v51 = vmul.f32 %v7211_v34, %v7211_v34  ;;  %v690_v55 = vadd.f32 %v653_v39, %v652_v37 }
 0x1c5   : > { %v562_v54 = vpop.f32.mrb[24].mxu0  ;;  %609 = vadd.xlane.f32.xlu1 %v608_v47  ;;  %v693_v0 = vadd.f32 %v655_v51, %v654_v49 }
 0x1c6   : > { %v7226_v57 = vadd.f32 %v562_v54, %v7076_v43  ;;  %v564_v58 = vpop.f32.mrb[25].mxu0 }
 0x1c7   : > { %v7229_v59 = vadd.f32 %v564_v58, %v7079_v44  ;;  %v566_v60 = vpop.f32.mrb[26].mxu0  ;;  %691 = vadd.xlane.f32.xlu0 %v690_v55 }
 0x1c8   : > { %v7232_v3 = vadd.f32 %v566_v60, %v7076_v43  ;;  %v568_v5 = vpop.f32.mrb[27].mxu0  ;;  %v656_v11 = vmul.f32 %v7226_v57, %v7226_v57 }
 0x1c9   : > { %v7235_v8 = vadd.f32 %v568_v5, %v7079_v44  ;;  %694 = vadd.xlane.f32.xlu1 %v693_v0  ;;  %v611_v10 = vadd.f32 %v7229_v59, %v7226_v57  ;;  %v657_v12 = vmul.f32 %v7229_v59, %v7229_v59 }
 0x1ca   : > { %v658_v44 = vmul.f32 %v7232_v3, %v7232_v3 }
 0x1cb   : > { %612 = vadd.xlane.f32.xlu0 %v611_v10  ;;  %v614_v43 = vadd.f32 %v7235_v8, %v7232_v3  ;;  %v659_v16 = vmul.f32 %v7235_v8, %v7235_v8  ;;  %v696_v17 = vadd.f32 %v657_v12, %v656_v11 }
 0x1cd   : > { %615 = vadd.xlane.f32.xlu1 %v614_v43  ;;  %v699_v18 = vadd.f32 %v659_v16, %v658_v44 }
 0x1cf   : > { %697 = vadd.xlane.f32.xlu0 %v696_v17  ;;  %v574_v17 = vld [vmem:[#allocation10 + $0x2] ss:$8 sm:$0x3] }
 0x1d1   : > { %700 = vadd.xlane.f32.xlu1 %v699_v18 }
 0x228   : > { %v577_v20 = vpop.xlane.xlu0 %576 }
 0x229   : > { %v618_v21 = vmul.f32 0.00390625, %v577_v20 }
 0x22a   : > { %v662_v22 = vpop.xlane.xlu1 %661 }
 0x22b   : > { %v702_v24 = vmul.f32 0.00390625, %v662_v22  ;;  %v716_v26 = vmul.f32 %v618_v21, %v618_v21 }
 0x22c   : > { %v580_v28 = vpop.xlane.xlu0 %579 }
 0x22d   : > { %v730_v29 = vsub.f32 %v702_v24, %v716_v26  ;;  %v7249_v31 = vmul.f32 0.00390625, %v580_v28  ;;  %v7264_v24 = vrot.slane %v572_v14, %v7071_v40  ;;  %v759_v26 = vsub.f32 %v7085_v48, %v618_v21 }
 0x22e   : > { %v665_v32 = vpop.xlane.xlu1 %664 }
 0x22f   : > { %v744_v36 = vmax.f32 %v730_v29, 0.0  ;;  %v703_v37 = vmul.f32 0.00390625, %v665_v32  ;;  %v717_v39 = vmul.f32 %v7249_v31, %v7249_v31  ;;  %v7270_v32 = vrot.slane %v572_v14, %v7073_v42 }
 0x230   : > { %v583_v41 = vpop.xlane.xlu0 %582  ;;  %v760_v48 = vsub.f32 %v7088_v50, %v7249_v31 }
 0x231   : > { %v786_v47 = vadd.f32 1e-05, %v744_v36  ;;  %v7253_v49 = vmul.f32 0.00390625, %v583_v41  ;;  %v731_v51 = vsub.f32 %v703_v37, %v717_v39  ;;  %v7273_v36 = vrot.slane %v574_v17, %v7071_v40 }
 0x232   : > { %v586_v52 = vpop.xlane.xlu1 %585 }
 0x233   : > { %6360 = vrsqrt.f32 %v786_v47  ;;  %v7255_v54 = vmul.f32 0.00390625, %v586_v52  ;;  %v745_v55 = vmax.f32 %v731_v51, 0.0  ;;  %v718_v58 = vmul.f32 %v7253_v49, %v7253_v49 }
 0x234   : > { %v668_v56 = vpop.xlane.xlu0 %667  ;;  %v758_v51 = vsub.f32 %v7082_v46, %v618_v21  ;;  %v762_v46 = vsub.f32 %v7106_v61, %v7253_v49 }
 0x235   : > { %v704_v60 = vmul.f32 0.00390625, %v668_v56  ;;  %v787_v0 = vadd.f32 1e-05, %v745_v55  ;;  %v719_v10 = vmul.f32 %v7255_v54, %v7255_v54  ;;  %v7281_v56 = vrot.slane %v574_v17, %v7073_v42 }
 0x236   : > { %v671_v5 = vpop.xlane.xlu1 %670 }
 0x237   : > { %v732_v7 = vsub.f32 %v704_v60, %v718_v58  ;;  %v705_v11 = vmul.f32 0.00390625, %v671_v5  ;;  %6362 = vrsqrt.f32 %v787_v0  ;;  %v761_v5 = vsub.f32 %v7093_v53, %v7249_v31 }
 0x238   : > { %v589_v12 = vpop.xlane.xlu0 %588  ;;  %v765_v53 = vsub.f32 %v7115_v4, %v7255_v54 }
 0x239   : > { %v746_v43 = vmax.f32 %v732_v7, 0.0  ;;  %v733_v44 = vsub.f32 %v705_v11, %v719_v10  ;;  %v7261_v16 = vmul.f32 0.00390625, %v589_v12  ;;  %v763_v10 = vsub.f32 %v7109_v63, %v7253_v49 }
 0x23a   : > { %v592_v18 = vpop.xlane.xlu1 %591 }
 0x23b   : > { %v788_v20 = vadd.f32 1e-05, %v746_v43  ;;  %v747_v22 = vmax.f32 %v733_v44, 0.0  ;;  %v7267_v28 = vmul.f32 0.00390625, %v592_v18  ;;  %v720_v41 = vmul.f32 %v7261_v16, %v7261_v16 }
 0x23c   : > { %v674_v29 = vpop.xlane.xlu0 %673  ;;  %v764_v44 = vsub.f32 %v7112_v2, %v7255_v54  ;;  %v766_v61 = vsub.f32 %v7130_v13, %v7261_v16  ;;  %v767_v31 = vsub.f32 %v7133_v15, %v7261_v16 }
 0x23d   : > { %v6361_v37 = vpop.eup %6360  ;;  %6364 = vrsqrt.f32 %v788_v20  ;;  %v789_v39 = vadd.f32 1e-05, %v747_v22  ;;  %v706_v47 = vmul.f32 0.00390625, %v674_v29  ;;  %v721_v60 = vmul.f32 %v7267_v28, %v7267_v28 }
 0x23e   : > { %v677_v52 = vpop.xlane.xlu1 %676  ;;  %v815_v55 = vmul.f32 %v6361_v37, %v759_v26  ;;  %v814_v7 = vmul.f32 %v6361_v37, %v758_v51  ;;  %v768_v63 = vsub.f32 %v7136_v19, %v7267_v28  ;;  %v769_v49 = vsub.f32 %v7141_v23, %v7267_v28 }
 0x23f   : > { %6366 = vrsqrt.f32 %v789_v39  ;;  %v734_v58 = vsub.f32 %v706_v47, %v720_v41  ;;  %v707_v0 = vmul.f32 0.00390625, %v677_v52 }
 0x240   : > { %v595_v21 = vpop.xlane.xlu0 %594  ;;  %v854_v50 = vmul.f32 %v7270_v32, %v815_v55  ;;  %v853_v37 = vmul.f32 %v7264_v24, %v814_v7 }
 0x241   : > { %v748_v11 = vmax.f32 %v734_v58, 0.0  ;;  %v735_v12 = vsub.f32 %v707_v0, %v721_v60  ;;  %v7292_v14 = vmul.f32 0.00390625, %v595_v21  ;;  %v6363_v43 = vpop.eup %6362 }
 0x242   : > { %v598_v17 = vpop.xlane.xlu1 %597  ;;  %v817_v29 = vmul.f32 %v6363_v43, %v761_v5  ;;  %v7309_v4 = vadd.f32 %v7281_v56, %v854_v50  ;;  %v816_v51 = vmul.f32 %v6363_v43, %v760_v48 }
 0x243   : > { %v790_v18 = vadd.f32 1e-05, %v748_v11  ;;  %v749_v20 = vmax.f32 %v735_v12, 0.0  ;;  %v7306_v22 = vmul.f32 0.00390625, %v598_v17  ;;  %v722_v41 = vmul.f32 %v7292_v14, %v7292_v14 }
 0x244   : > { %v680_v26 = vpop.xlane.xlu0 %679  ;;  %v856_v60 = vmul.f32 %v7270_v32, %v817_v29  ;;  %v855_v50 = vmul.f32 %v7264_v24, %v816_v51  ;;  %v7326_v12 = vadd.f32 %v7273_v36, %v853_v37 }
 0x245   : > { %v791_v39 = vadd.f32 1e-05, %v749_v20  ;;  %v708_v47 = vmul.f32 0.00390625, %v680_v26  ;;  %6368 = vrsqrt.f32 %v790_v18  ;;  %v723_v55 = vmul.f32 %v7306_v22, %v7306_v22 }
 0x246   : > { %v683_v58 = vpop.xlane.xlu1 %682  ;;  %v7323_v11 = vadd.f32 %v7281_v56, %v856_v60  ;;  %v7331_v29 = vadd.f32 %v7273_v36, %v855_v50 }
 0x247   : > { %v6365_v0 = vpop.eup %6364  ;;  %6370 = vrsqrt.f32 %v791_v39  ;;  %v736_v5 = vsub.f32 %v708_v47, %v722_v41  ;;  %v709_v21 = vmul.f32 0.00390625, %v683_v58  ;;  %v10274_v47 = vmax.f32 %v7309_v4, 0.0 }
 0x248   : > { %v601_v48 = vpop.xlane.xlu0 %600  ;;  %v819_v43 = vmul.f32 %v6365_v0, %v763_v10  ;;  %v10273_v51 = vmax.f32 %v7323_v11, 0.0  ;;  %v10275_v39 = vmax.f32 %v7331_v29, 0.0 }
 0x249   : > { %v6367_v17 = vpop.eup %6366  ;;  %v750_v18 = vmax.f32 %v736_v5, 0.0  ;;  %v737_v20 = vsub.f32 %v709_v21, %v723_v55  ;;  %v7328_v26 = vmul.f32 0.00390625, %v601_v48  ;;  %v818_v5 = vmul.f32 %v6365_v0, %v762_v46 }
 0x24a   : > { %v604_v41 = vpop.xlane.xlu1 %603  ;;  %v821_v58 = vmul.f32 %v6367_v17, %v765_v53  ;;  %v858_v10 = vmul.f32 %v7270_v32, %v819_v43  ;;  %v949_v21 = vpack.c.bf16 %v10273_v51, %v10274_v47  ;;  %v10276_v48 = vmax.f32 %v7326_v12, 0.0 }
 0x24b   : > { %v792_v37 = vadd.f32 1e-05, %v750_v18  ;;  %v751_v60 = vmax.f32 %v737_v20, 0.0  ;;  %v7338_v55 = vmul.f32 0.00390625, %v604_v41  ;;  %v724_v18 = vmul.f32 %v7328_v26, %v7328_v26 }
 0x24c   : > { %v686_v50 = vpop.xlane.xlu0 %685  ;;  %v860_v46 = vmul.f32 %v7270_v32, %v821_v58  ;;  %1199 = vmatprep.mubr.bf16.mxu1 %v949_v21  ;;  %v948_v41 = vpack.c.bf16 %v10275_v39, %v10276_v48 }
 0x24d   : > { %v710_v43 = vmul.f32 0.00390625, %v686_v50  ;;  %6372 = vrsqrt.f32 %v792_v37  ;;  %v793_v0 = vadd.f32 1e-05, %v751_v60  ;;  %v725_v52 = vmul.f32 %v7338_v55, %v7338_v55 }
 0x24e   : > { %v689_v51 = vpop.xlane.xlu1 %688  ;;  %v7360_v50 = vadd.f32 %v7281_v56, %v858_v10  ;;  %1200 = vmatmul.mubr.bf16.vlgmr.msra.gmra.mrb[0].mxu1 %v948_v41  ;;  %v7365_v21 = vadd.f32 %v7281_v56, %v860_v46 }
 0x24f   : > { %v738_v47 = vsub.f32 %v710_v43, %v724_v18  ;;  %v711_v53 = vmul.f32 0.00390625, %v689_v51  ;;  %v6369_v58 = vpop.eup %6368  ;;  %v820_v18 = vmul.f32 %v6367_v17, %v764_v44  ;;  %v857_v43 = vmul.f32 %v7264_v24, %v818_v5 }
 0x250   : > { %10439 = vst [vmem:[#allocation18_spill] sm:$0xff] %v7360_v50  ;;  %v607_v60 = vpop.xlane.xlu0 %606  ;;  %10440 = vst [vmem:[#allocation19_spill] sm:$0xff] %v7365_v21  ;;  %v776_v51 = vsub.f32 %v7184_v6, %v7338_v55  ;;  %v10282_v41 = vmax.f32 %v7360_v50, 0.0  ;;  %v10277_v46 = vmax.f32 %v7365_v21, 0.0  ;;  %6374 = vrsqrt.f32 %v793_v0 }
 0x251   : > { %v6371_v39 = vpop.eup %6370  ;;  %v752_v10 = vmax.f32 %v738_v47, 0.0  ;;  %v739_v48 = vsub.f32 %v711_v53, %v725_v52  ;;  %v7373_v20 = vmul.f32 0.00390625, %v607_v60  ;;  %v859_v7 = vmul.f32 %v7264_v24, %v820_v18 }
 0x252   : > { %v610_v37 = vpop.xlane.xlu1 %609  ;;  %v7379_v2 = vadd.f32 %v7273_v36, %v857_v43  ;;  %v823_v17 = vmul.f32 %v6369_v58, %v767_v31  ;;  %v951_v47 = vpack.c.bf16 %v10277_v46, %v10282_v41  ;;  %v825_v0 = vmul.f32 %v6371_v39, %v769_v49 }
 0x253   : > { %v794_v54 = vadd.f32 1e-05, %v752_v10  ;;  %v753_v44 = vmax.f32 %v739_v48, 0.0  ;;  %v7384_v52 = vmul.f32 0.00390625, %v610_v37  ;;  %v7391_v53 = vadd.f32 %v7273_v36, %v859_v7 }
 0x254   : > { %10441 = vst [vmem:[#allocation20_spill] sm:$0xff] %v7379_v2  ;;  %v692_v5 = vpop.xlane.xlu0 %691  ;;  %v726_v15 = vmul.f32 %v7373_v20, %v7373_v20  ;;  %v777_v37 = vsub.f32 %v7187_v9, %v7338_v55  ;;  %1209 = vmatprep.mubr.bf16.mxu1 %v951_v47  ;;  %v10279_v60 = vmax.f32 %v7379_v2, 0.0  ;;  %v862_v10 = vmul.f32 %v7270_v32, %v823_v17 }
 0x255   : > { %10442 = vst [vmem:[#allocation21_spill] sm:$0xff] %v7391_v53  ;;  %6376 = vrsqrt.f32 %v794_v54  ;;  %v795_v48 = vadd.f32 1e-05, %v753_v44  ;;  %v712_v31 = vmul.f32 0.00390625, %v692_v5  ;;  %v10278_v18 = vmax.f32 %v7391_v53, 0.0 }
 0x256   : > { %v727_v7 = vmul.f32 %v7384_v52, %v7384_v52  ;;  %v695_v43 = vpop.xlane.xlu1 %694  ;;  %v864_v5 = vmul.f32 %v7270_v32, %v825_v0  ;;  %v822_v46 = vmul.f32 %v6369_v58, %v766_v61  ;;  %v779_v16 = vsub.f32 %v7205_v27, %v7373_v20 }
 0x257   : > { %6378 = vrsqrt.f32 %v795_v48  ;;  %v740_v23 = vsub.f32 %v712_v31, %v726_v15  ;;  %v713_v49 = vmul.f32 0.00390625, %v695_v43  ;;  %v6373_v54 = vpop.eup %6372  ;;  %v950_v44 = vpack.c.bf16 %v10278_v18, %v10279_v60 }
 0x258   : > { %v613_v47 = vpop.xlane.xlu0 %612  ;;  %v824_v48 = vmul.f32 %v6371_v39, %v768_v63  ;;  %v7419_v43 = vadd.f32 %v7281_v56, %v862_v10  ;;  %v778_v18 = vsub.f32 %v7202_v25, %v7373_v20  ;;  %v7424_v60 = vadd.f32 %v7281_v56, %v864_v5 }
 0x259   : > { %v754_v15 = vmax.f32 %v740_v23, 0.0  ;;  %v741_v31 = vsub.f32 %v713_v49, %v727_v7  ;;  %v7416_v17 = vmul.f32 0.00390625, %v613_v47  ;;  %1210 = vmatmul.mubr.bf16.gmra.mrb[4].mxu1 %v950_v44  ;;  %v861_v13 = vmul.f32 %v7264_v24, %v822_v46 }
 0x25a   : > { %10443 = vst [vmem:[#allocation22_spill] sm:$0xff] %v7419_v43  ;;  %v616_v0 = vpop.xlane.xlu1 %615  ;;  %10444 = vst [vmem:[#allocation23_spill] sm:$0xff] %v7424_v60  ;;  %v863_v19 = vmul.f32 %v7264_v24, %v824_v48  ;;  %v10445_v63 = vsub.f32 %v7157_v35, %v7292_v14  ;;  %v10281_v7 = vmax.f32 %v7419_v43, 0.0  ;;  %v10280_v23 = vmax.f32 %v7424_v60, 0.0  ;;  %v6375_v10 = vpop.eup %6374 }
 0x25b   : > { %v796_v28 = vadd.f32 1e-05, %v754_v15  ;;  %v755_v61 = vmax.f32 %v741_v31, 0.0  ;;  %v7433_v58 = vmul.f32 0.00390625, %v616_v0  ;;  %v728_v46 = vmul.f32 %v7416_v17, %v7416_v17 }
 0x25c   : > { %v827_v39 = vmul.f32 %v6373_v54, %v10445_v63  ;;  %v698_v49 = vpop.xlane.xlu0 %697  ;;  %v7440_v5 = vadd.f32 %v7273_v36, %v861_v13  ;;  %v780_v35 = vsub.f32 %v7208_v30, %v7384_v52  ;;  %v781_v48 = vsub.f32 %v7211_v34, %v7384_v52 }
 0x25d   : > { %6380 = vrsqrt.f32 %v796_v28  ;;  %v797_v44 = vadd.f32 1e-05, %v755_v61  ;;  %v714_v47 = vmul.f32 0.00390625, %v698_v49  ;;  %v953_v15 = vpack.c.bf16 %v10280_v23, %v10281_v7 }
 0x25e   : > { %10446 = vst [vmem:[#allocation24_spill] sm:$0xff] %v7440_v5  ;;  %v7451_v31 = vadd.f32 %v7273_v36, %v863_v19  ;;  %v701_v0 = vpop.xlane.xlu1 %700  ;;  %v10300_v13 = vmax.f32 %v7440_v5, 0.0  ;;  %v729_v30 = vmul.f32 %v7433_v58, %v7433_v58  ;;  %v10448_v63 = vsub.f32 %v7163_v45, %v7306_v22 }
 0x25f   : > { %v6377_v28 = vpop.eup %6376  ;;  %6382 = vrsqrt.f32 %v797_v44  ;;  %v742_v61 = vsub.f32 %v714_v47, %v728_v46  ;;  %1219 = vmatprep.mubr.bf16.mxu1 %v953_v15  ;;  %v715_v52 = vmul.f32 0.00390625, %v701_v0  ;;  %v866_v19 = vmul.f32 %v7270_v32, %v827_v39 }
 0x260   : > { %10447 = vst [vmem:[#allocation25_spill] sm:$0xff] %v7451_v31  ;;  %v10299_v34 = vmax.f32 %v7451_v31, 0.0  ;;  %v829_v49 = vmul.f32 %v6375_v10, %v10448_v63  ;;  %v10449_v46 = vsub.f32 %v7154_v33, %v7292_v14  ;;  %v10450_v47 = vsub.f32 %v7160_v38, %v7306_v22 }
 0x261   : > { %v6379_v23 = vpop.eup %6378  ;;  %v756_v7 = vmax.f32 %v742_v61, 0.0  ;;  %v10451_v15 = vsub.f32 %v7181_v1, %v7328_v26  ;;  %v743_v39 = vsub.f32 %v715_v52, %v729_v30  ;;  %v7476_v63 = vadd.f32 %v7281_v56, %v866_v19 }
 0x262   : > { %v826_v44 = vmul.f32 %v6373_v54, %v10449_v46  ;;  %v828_v41 = vmul.f32 %v6375_v10, %v10450_v47  ;;  %v952_v45 = vpack.c.bf16 %v10299_v34, %v10300_v13  ;;  %v868_v61 = vmul.f32 %v7270_v32, %v829_v49 }
 0x263   : > { %v831_v0 = vmul.f32 %v6377_v28, %v10451_v15  ;;  %10452 = vst [vmem:[#allocation26_spill] sm:$0xff] %v7476_v63  ;;  %v798_v33 = vadd.f32 1e-05, %v756_v7  ;;  %v833_v1 = vmul.f32 %v6379_v23, %v777_v37  ;;  %v757_v22 = vmax.f32 %v743_v39, 0.0 }
 0x264   : > { %v865_v14 = vmul.f32 %v7264_v24, %v826_v44  ;;  %v867_v38 = vmul.f32 %v7264_v24, %v828_v41  ;;  %1220 = vmatmul.mubr.bf16.gmra.mrb[8].mxu1 %v952_v45  ;;  %v7484_v54 = vadd.f32 %v7281_v56, %v868_v61  ;;  %v10298_v10 = vmax.f32 %v7476_v63, 0.0 }
 0x265   : > { %v870_v30 = vmul.f32 %v7270_v32, %v831_v0  ;;  %6384 = vrsqrt.f32 %v798_v33  ;;  %v872_v41 = vmul.f32 %v7270_v32, %v833_v1  ;;  %v799_v9 = vadd.f32 1e-05, %v757_v22 }
 0x266   : > { %10453 = vst [vmem:[#allocation27_spill] sm:$0xff] %v7484_v54  ;;  %v7489_v7 = vadd.f32 %v7273_v36, %v865_v14  ;;  %v7492_v52 = vadd.f32 %v7273_v36, %v867_v38  ;;  %v10297_v37 = vmax.f32 %v7484_v54, 0.0  ;;  %v10457_v19 = vsub.f32 %v7178_v62, %v7328_v26 }
 0x267   : > { %v7497_v49 = vadd.f32 %v7281_v56, %v870_v30  ;;  %v6381_v44 = vpop.eup %6380  ;;  %v7505_v0 = vadd.f32 %v7281_v56, %v872_v41  ;;  %v832_v45 = vmul.f32 %v6379_v23, %v776_v51  ;;  %6386 = vrsqrt.f32 %v799_v9 }
 0x268   : > { %10454 = vst [vmem:[#allocation28_spill] sm:$0xff] %v7489_v7  ;;  %10455 = vst [vmem:[#allocation29_spill] sm:$0xff] %v7492_v52  ;;  %v830_v46 = vmul.f32 %v6377_v28, %v10457_v19  ;;  %v10296_v47 = vmax.f32 %v7489_v7, 0.0  ;;  %v10295_v15 = vmax.f32 %v7492_v52, 0.0  ;;  %v955_v39 = vpack.c.bf16 %v10297_v37, %v10298_v10 }
 0x269   : > { %10456 = vst [vmem:[#allocation30_spill] sm:$0xff] %v7497_v49  ;;  %10458 = vst [vmem:[#allocation31_spill] sm:$0xff] %v7505_v0  ;;  %v10294_v62 = vmax.f32 %v7497_v49, 0.0  ;;  %v6383_v28 = vpop.eup %6382  ;;  %v10293_v33 = vmax.f32 %v7505_v0, 0.0  ;;  %v871_v6 = vmul.f32 %v7264_v24, %v832_v45  ;;  %v835_v55 = vmul.f32 %v6381_v44, %v779_v16 }
 0x26a   : > { %v869_v26 = vmul.f32 %v7264_v24, %v830_v46  ;;  %v954_v61 = vpack.c.bf16 %v10295_v15, %v10296_v47  ;;  %1229 = vmatprep.mubr.bf16.mxu1 %v955_v39  ;;  %v837_v23 = vmul.f32 %v6383_v28, %v781_v48  ;;  %v834_v14 = vmul.f32 %v6381_v44, %v778_v18 }
 0x26b   : > { %v836_v38 = vmul.f32 %v6383_v28, %v780_v35  ;;  %v957_v1 = vpack.c.bf16 %v10293_v33, %v10294_v62  ;;  %v7536_v22 = vadd.f32 %v7273_v36, %v871_v6  ;;  %v874_v27 = vmul.f32 %v7270_v32, %v835_v55 }
 0x26c   : > { %v7526_v51 = vadd.f32 %v7273_v36, %v869_v26  ;;  %1230 = vmatmul.mubr.bf16.gmra.mrb[12].mxu1 %v954_v61  ;;  %v876_v16 = vmul.f32 %v7270_v32, %v837_v23  ;;  %v783_v18 = vsub.f32 %v7229_v59, %v7416_v17  ;;  %v873_v41 = vmul.f32 %v7264_v24, %v834_v14 }
 0x26d   : > { %10460 = vst [vmem:[#allocation33_spill] sm:$0xff] %v7536_v22  ;;  %v875_v48 = vmul.f32 %v7264_v24, %v836_v38  ;;  %1239 = vmatprep.mubr.bf16.mxu1 %v957_v1  ;;  %v10291_v25 = vmax.f32 %v7536_v22, 0.0  ;;  %v7543_v20 = vadd.f32 %v7281_v56, %v874_v27  ;;  %v782_v19 = vsub.f32 %v7226_v57, %v7416_v17 }
 0x26e   : > { %10459 = vst [vmem:[#allocation32_spill] sm:$0xff] %v7526_v51  ;;  %v10292_v35 = vmax.f32 %v7526_v51, 0.0  ;;  %v7549_v30 = vadd.f32 %v7281_v56, %v876_v16  ;;  %v784_v26 = vsub.f32 %v7232_v3, %v7433_v58  ;;  %v785_v28 = vsub.f32 %v7235_v8, %v7433_v58 }
 0x26f   : > { %10461 = vst [vmem:[#allocation34_spill] sm:$0xff] %v7543_v20  ;;  %v6385_v9 = vpop.eup %6384  ;;  %v7555_v46 = vadd.f32 %v7273_v36, %v875_v48  ;;  %v10290_v59 = vmax.f32 %v7543_v20, 0.0  ;;  %v7572_v61 = vadd.f32 %v7273_v36, %v873_v41 }
 0x270   : > { %10462 = vst [vmem:[#allocation35_spill] sm:$0xff] %v7549_v30  ;;  %v956_v44 = vpack.c.bf16 %v10291_v25, %v10292_v35  ;;  %v10289_v45 = vmax.f32 %v7549_v30, 0.0  ;;  %v839_v39 = vmul.f32 %v6385_v9, %v783_v18  ;;  %v838_v55 = vmul.f32 %v6385_v9, %v782_v19 }
 0x271   : > { %10463 = vst [vmem:[#allocation36_spill] sm:$0xff] %v7555_v46  ;;  %v6387_v57 = vpop.eup %6386  ;;  %10464 = vst [vmem:[#allocation37_spill] sm:$0xff] %v7572_v61  ;;  %v10288_v3 = vmax.f32 %v7555_v46, 0.0  ;;  %v10287_v1 = vmax.f32 %v7572_v61, 0.0 }
 0x272   : > { %v959_v17 = vpack.c.bf16 %v10289_v45, %v10290_v59  ;;  %v878_v6 = vmul.f32 %v7270_v32, %v839_v39  ;;  %v841_v23 = vmul.f32 %v6387_v57, %v785_v28  ;;  %v840_v14 = vmul.f32 %v6387_v57, %v784_v26  ;;  %v6104_v39 = vld [vmem:[#allocation7 + $0x100] ss:$8 sps:$4 sm:$0xff]   ;;  %v6109_v26 = vld [vmem:[#allocation7 + $0x114] ss:$8 sps:$4 sm:$0xff]   ;;  %v6107_v28 = vld [vmem:[#allocation7 + $0x110] ss:$8 sps:$4 sm:$0xff]  }
 0x273   : > { %v877_v27 = vmul.f32 %v7264_v24, %v838_v55  ;;  %v958_v48 = vpack.c.bf16 %v10288_v3, %v10287_v1  ;;  %v6112_v57 = vld [vmem:[#allocation7 + $0x124] ss:$8 sps:$4 sm:$0xff]   ;;  %v6113_v55 = vld [vmem:[#allocation7 + $0x130] ss:$8 sps:$4 sm:$0xff]   ;;  %v6127_v59 = vld [vmem:[#allocation7 + $0x174] ss:$8 sps:$4 sm:$0xff]  }
 0x274   : > { %1240 = vmatmul.mubr.bf16.gmra.mrb[16].mxu1 %v956_v44  ;;  %v880_v8 = vmul.f32 %v7270_v32, %v841_v23  ;;  %v7578_v58 = vadd.f32 %v7281_v56, %v878_v6  ;;  %v879_v38 = vmul.f32 %v7264_v24, %v840_v14  ;;  %v6115_v6 = vld [vmem:[#allocation7 + $0x134] ss:$8 sps:$4 sm:$0xff]   ;;  %v6118_v23 = vld [vmem:[#allocation7 + $0x144] ss:$8 sps:$4 sm:$0xff]   ;;  %v6116_v14 = vld [vmem:[#allocation7 + $0x140] ss:$8 sps:$4 sm:$0xff]  }
 0x275   : > { %1249 = vmatprep.mubr.bf16.mxu1 %v959_v17  ;;  %v7596_v9 = vadd.f32 %v7273_v36, %v877_v27  ;;  %v6110_v17 = vld [vmem:[#allocation7 + $0x120] ss:$8 sps:$4 sm:$0xff]   ;;  %v6124_v27 = vld [vmem:[#allocation7 + $0x164] ss:$8 sps:$4 sm:$0xff]   ;;  %v6125_v45 = vld [vmem:[#allocation7 + $0x170] ss:$8 sps:$4 sm:$0xff]  }
 0x276   : > { %10465 = vst [vmem:[#allocation38_spill] sm:$0xff] %v7578_v58  ;;  %v7584_v16 = vadd.f32 %v7281_v56, %v880_v8  ;;  %v7591_v18 = vadd.f32 %v7273_v36, %v879_v38  ;;  %v10286_v32 = vmax.f32 %v7578_v58, 0.0  ;;  %v6106_v36 = vld [vmem:[#allocation7 + $0x104] ss:$8 sps:$4 sm:$0xff]   ;;  %v6121_v8 = vld [vmem:[#allocation7 + $0x154] ss:$8 sps:$4 sm:$0xff]  }
 0x277   : > { %10468 = vst [vmem:[#allocation41_spill] sm:$0xff] %v7596_v9  ;;  %v10283_v19 = vmax.f32 %v7596_v9, 0.0  ;;  %1866 = vmatprep.subr.bf16.mxu0 %v6106_v36  ;;  %v6119_v38 = vld [vmem:[#allocation7 + $0x150] ss:$8 sps:$4 sm:$0xff]  }
 0x278   : > { %10466 = vst [vmem:[#allocation39_spill] sm:$0xff] %v7584_v16  ;;  %10467 = vst [vmem:[#allocation40_spill] sm:$0xff] %v7591_v18  ;;  %v10285_v41 = vmax.f32 %v7584_v16, 0.0  ;;  %v10284_v56 = vmax.f32 %v7591_v18, 0.0  ;;  %1867 = vmatpush1.bf16.msra.mxu0 %v6104_v39 }
 0x279   : > { %1868 = vmatprep.subr.bf16.mxu0 %v6109_v26 }
 0x27a   : > { %v961_v24 = vpack.c.bf16 %v10285_v41, %v10286_v32  ;;  %v960_v44 = vpack.c.bf16 %v10284_v56, %v10283_v19 }
 0x27c   : > { %1250 = vmatmul.mubr.bf16.gmra.mrb[20].mxu1 %v958_v48  ;;  %1869 = vmatpush1.bf16.msra.mxu0 %v6107_v28  ;;  %v6122_v48 = vld [vmem:[#allocation7 + $0x160] ss:$8 sps:$4 sm:$0xff]  }
 0x27d   : > { %1259 = vmatprep.mubr.bf16.mxu1 %v961_v24  ;;  %1870 = vmatprep.subr.bf16.mxu0 %v6112_v57  ;;  %v995_v24 = vld [vmem:[#allocation10 + $0x4] ss:$8 sm:$0x3] }
 0x27e   : > { %v7612_v39 = vrot.slane %v995_v24, %v7073_v42 }
 0x280   : > { %1871 = vmatpush1.bf16.msra.mxu0 %v6110_v17 }
 0x281   : > { %1872 = vmatprep.subr.bf16.mxu0 %v6115_v6 }
 0x284   : > { %1260 = vmatmul.mubr.bf16.gmra.mrb[24].mxu1 %v960_v44  ;;  %1873 = vmatpush1.bf16.msra.mxu0 %v6113_v55  ;;  %v7609_v44 = vrot.slane %v995_v24, %v7071_v40 }
 0x285   : > { %1874 = vmatprep.subr.bf16.mxu0 %v6118_v23 }
 0x288   : > { %1875 = vmatpush1.bf16.msra.mxu0 %v6116_v14 }
 0x289   : > { %1876 = vmatprep.subr.bf16.mxu0 %v6121_v8 }
 0x28c   : > { %1877 = vmatpush1.bf16.msra.mxu0 %v6119_v38 }
 0x28d   : > { %1878 = vmatprep.subr.bf16.mxu0 %v6124_v27 }
 0x290   : > { %1879 = vmatpush1.bf16.msra.mxu0 %v6122_v48 }
 0x291   : > { %1880 = vmatprep.subr.bf16.mxu0 %v6127_v59  ;;  %v6128_v59 = vld [vmem:[#allocation7 + $0x180] ss:$8 sps:$4 sm:$0xff]  }
 0x294   : > { %1881 = vmatpush1.bf16.msra.mxu0 %v6125_v45 }
 0x321   : > { %v1201_v36 = vpop.f32.mrb[0].mxu1 }
 0x322   : > { %v7615_v26 = vadd.f32 %v1201_v36, %v7609_v44  ;;  %v1203_v28 = vpop.f32.mrb[1].mxu1 }
 0x323   : > { %v7618_v57 = vadd.f32 %v1203_v28, %v7612_v39  ;;  %v1205_v17 = vpop.f32.mrb[2].mxu1 }
 0x324   : > { %v7621_v6 = vadd.f32 %v1205_v17, %v7609_v44  ;;  %v1207_v55 = vpop.f32.mrb[3].mxu1  ;;  %v1330_v8 = vmul.f32 %v7615_v26, %v7615_v26 }
 0x325   : > { %v7624_v23 = vadd.f32 %v1207_v55, %v7612_v39  ;;  %v1274_v14 = vadd.f32 %v7618_v57, %v7615_v26  ;;  %v1331_v38 = vmul.f32 %v7618_v57, %v7618_v57 }
 0x326   : > { %v1332_v48 = vmul.f32 %v7621_v6, %v7621_v6 }
 0x327   : > { %1275 = vadd.xlane.f32.xlu0 %v1274_v14  ;;  %v1277_v27 = vadd.f32 %v7624_v23, %v7621_v6  ;;  %v1333_v24 = vmul.f32 %v7624_v23, %v7624_v23  ;;  %v1358_v36 = vadd.f32 %v1331_v38, %v1330_v8 }
 0x329   : > { %1278 = vadd.xlane.f32.xlu1 %v1277_v27  ;;  %v1361_v17 = vadd.f32 %v1333_v24, %v1332_v48 }
 0x32b   : > { %1359 = vadd.xlane.f32.xlu0 %v1358_v36 }
 0x32c   : > { %v1211_v28 = vpop.f32.mrb[4].mxu1 }
 0x32d   : > { %v7639_v55 = vadd.f32 %v1211_v28, %v7609_v44  ;;  %v1213_v19 = vpop.f32.mrb[5].mxu1  ;;  %1362 = vadd.xlane.f32.xlu1 %v1361_v17 }
 0x32e   : > { %v7642_v14 = vadd.f32 %v1213_v19, %v7612_v39  ;;  %v1215_v56 = vpop.f32.mrb[6].mxu1 }
 0x32f   : > { %v7645_v41 = vadd.f32 %v1215_v56, %v7609_v44  ;;  %v1217_v32 = vpop.f32.mrb[7].mxu1  ;;  %v1334_v38 = vmul.f32 %v7639_v55, %v7639_v55 }
 0x330   : > { %v7648_v1 = vadd.f32 %v1217_v32, %v7612_v39  ;;  %v1280_v8 = vadd.f32 %v7642_v14, %v7639_v55  ;;  %v1335_v27 = vmul.f32 %v7642_v14, %v7642_v14 }
 0x331   : > { %v1336_v56 = vmul.f32 %v7645_v41, %v7645_v41 }
 0x332   : > { %1281 = vadd.xlane.f32.xlu0 %v1280_v8  ;;  %v1283_v19 = vadd.f32 %v7648_v1, %v7645_v41  ;;  %v1337_v32 = vmul.f32 %v7648_v1, %v7648_v1  ;;  %v1364_v48 = vadd.f32 %v1335_v27, %v1334_v38 }
 0x334   : > { %1284 = vadd.xlane.f32.xlu1 %v1283_v19  ;;  %v1367_v36 = vadd.f32 %v1337_v32, %v1336_v56 }
 0x336   : > { %1365 = vadd.xlane.f32.xlu0 %v1364_v48 }
 0x337   : > { %v1221_v24 = vpop.f32.mrb[8].mxu1 }
 0x338   : > { %v7663_v28 = vadd.f32 %v1221_v24, %v7609_v44  ;;  %v1223_v17 = vpop.f32.mrb[9].mxu1  ;;  %1368 = vadd.xlane.f32.xlu1 %v1367_v36  ;;  %v6130_v36 = vld [vmem:[#allocation7 + $0x184] ss:$8 sps:$4 sm:$0xff]  }
 0x339   : > { %v7666_v8 = vadd.f32 %v1223_v17, %v7612_v39  ;;  %v1225_v3 = vpop.f32.mrb[10].mxu1  ;;  %1882 = vmatprep.subr.bf16.mxu0 %v6130_v36 }
 0x33a   : > { %v7669_v25 = vadd.f32 %v1225_v3, %v7609_v44  ;;  %v1227_v35 = vpop.f32.mrb[11].mxu1  ;;  %v1338_v19 = vmul.f32 %v7663_v28, %v7663_v28  ;;  %1883 = vmatpush1.bf16.msra.mxu0 %v6128_v59  ;;  %v6136_v59 = vld [vmem:[#allocation7 + $0x1a4] ss:$8 sps:$4 sm:$0xff]  }
 0x33b   : > { %v7672_v38 = vadd.f32 %v1227_v35, %v7612_v39  ;;  %v1286_v27 = vadd.f32 %v7666_v8, %v7663_v28  ;;  %v1339_v56 = vmul.f32 %v7666_v8, %v7666_v8 }
 0x33c   : > { %v1340_v32 = vmul.f32 %v7669_v25, %v7669_v25 }
 0x33d   : > { %1287 = vadd.xlane.f32.xlu0 %v1286_v27  ;;  %v1289_v3 = vadd.f32 %v7672_v38, %v7669_v25  ;;  %v1341_v35 = vmul.f32 %v7672_v38, %v7672_v38  ;;  %v1370_v24 = vadd.f32 %v1339_v56, %v1338_v19 }
 0x33f   : > { %1290 = vadd.xlane.f32.xlu1 %v1289_v3  ;;  %v1231_v48 = vpop.f32.mrb[12].mxu1  ;;  %v1373_v62 = vadd.f32 %v1341_v35, %v1340_v32  ;;  %v6133_v32 = vld [vmem:[#allocation7 + $0x194] ss:$8 sps:$4 sm:$0xff]   ;;  %v6131_v35 = vld [vmem:[#allocation7 + $0x190] ss:$8 sps:$4 sm:$0xff]  }
 0x340   : > { %v7687_v17 = vadd.f32 %v1231_v48, %v7609_v44  ;;  %v1233_v33 = vpop.f32.mrb[13].mxu1  ;;  %1884 = vmatprep.subr.bf16.mxu0 %v6133_v32 }
 0x341   : > { %v7690_v45 = vadd.f32 %v1233_v33, %v7612_v39  ;;  %1371 = vadd.xlane.f32.xlu0 %v1370_v24  ;;  %v1235_v27 = vpop.f32.mrb[14].mxu1  ;;  %1885 = vmatpush1.bf16.msra.mxu0 %v6131_v35 }
 0x342   : > { %v7693_v15 = vadd.f32 %v1235_v27, %v7609_v44  ;;  %v1237_v47 = vpop.f32.mrb[15].mxu1  ;;  %v1342_v33 = vmul.f32 %v7687_v17, %v7687_v17  ;;  %1886 = vmatprep.subr.bf16.mxu0 %v6136_v59  ;;  %v6142_v59 = vld [vmem:[#allocation7 + $0x1c4] ss:$8 sps:$4 sm:$0xff]  }
 0x343   : > { %v7696_v19 = vadd.f32 %v1237_v47, %v7612_v39  ;;  %1374 = vadd.xlane.f32.xlu1 %v1373_v62  ;;  %v1292_v56 = vadd.f32 %v7690_v45, %v7687_v17  ;;  %v1343_v3 = vmul.f32 %v7690_v45, %v7690_v45 }
 0x344   : > { %v1344_v47 = vmul.f32 %v7693_v15, %v7693_v15 }
 0x345   : > { %1293 = vadd.xlane.f32.xlu0 %v1292_v56  ;;  %v1295_v48 = vadd.f32 %v7696_v19, %v7693_v15  ;;  %v1345_v62 = vmul.f32 %v7696_v19, %v7696_v19  ;;  %v1376_v36 = vadd.f32 %v1343_v3, %v1342_v33  ;;  %v6134_v56 = vld [vmem:[#allocation7 + $0x1a0] ss:$8 sps:$4 sm:$0xff]  }
 0x346   : > { %1887 = vmatpush1.bf16.msra.mxu0 %v6134_v56 }
 0x347   : > { %1296 = vadd.xlane.f32.xlu1 %v1295_v48  ;;  %v1241_v24 = vpop.f32.mrb[16].mxu1  ;;  %v1379_v13 = vadd.f32 %v1345_v62, %v1344_v47  ;;  %v6139_v48 = vld [vmem:[#allocation7 + $0x1b4] ss:$8 sps:$4 sm:$0xff]   ;;  %v6137_v47 = vld [vmem:[#allocation7 + $0x1b0] ss:$8 sps:$4 sm:$0xff]  }
 0x348   : > { %v7711_v27 = vadd.f32 %v1241_v24, %v7609_v44  ;;  %v1243_v37 = vpop.f32.mrb[17].mxu1  ;;  %1888 = vmatprep.subr.bf16.mxu0 %v6139_v48 }
 0x349   : > { %v7714_v10 = vadd.f32 %v1243_v37, %v7612_v39  ;;  %1377 = vadd.xlane.f32.xlu0 %v1376_v36  ;;  %v1245_v34 = vpop.f32.mrb[18].mxu1 }
 0x34a   : > { %v7717_v9 = vadd.f32 %v1245_v34, %v7609_v44  ;;  %v1247_v32 = vpop.f32.mrb[19].mxu1  ;;  %v1346_v37 = vmul.f32 %v7711_v27, %v7711_v27  ;;  %1889 = vmatpush1.bf16.msra.mxu0 %v6137_v47 }
 0x34b   : > { %v7720_v33 = vadd.f32 %v1247_v32, %v7612_v39  ;;  %1380 = vadd.xlane.f32.xlu1 %v1379_v13  ;;  %v1298_v3 = vadd.f32 %v7714_v10, %v7711_v27  ;;  %v1347_v35 = vmul.f32 %v7714_v10, %v7714_v10  ;;  %1890 = vmatprep.subr.bf16.mxu0 %v6142_v59 }
 0x34c   : > { %v1348_v62 = vmul.f32 %v7717_v9, %v7717_v9 }
 0x34d   : > { %1299 = vadd.xlane.f32.xlu0 %v1298_v3  ;;  %v1301_v34 = vadd.f32 %v7720_v33, %v7717_v9  ;;  %v1349_v13 = vmul.f32 %v7720_v33, %v7720_v33  ;;  %v1382_v36 = vadd.f32 %v1347_v35, %v1346_v37  ;;  %v6140_v3 = vld [vmem:[#allocation7 + $0x1c0] ss:$8 sps:$4 sm:$0xff]  }
 0x34e   : > { %1891 = vmatpush1.bf16.msra.mxu0 %v6140_v3 }
 0x34f   : > { %1302 = vadd.xlane.f32.xlu1 %v1301_v34  ;;  %v1251_v24 = vpop.f32.mrb[20].mxu1  ;;  %v1385_v58 = vadd.f32 %v1349_v13, %v1348_v62  ;;  %v6145_v62 = vld [vmem:[#allocation7 + $0x1d4] ss:$8 sps:$4 sm:$0xff]   ;;  %v6143_v13 = vld [vmem:[#allocation7 + $0x1d0] ss:$8 sps:$4 sm:$0xff]  }
 0x350   : > { %v7735_v56 = vadd.f32 %v1251_v24, %v7609_v44  ;;  %v1253_v32 = vpop.f32.mrb[21].mxu1  ;;  %1892 = vmatprep.subr.bf16.mxu0 %v6145_v62 }
 0x351   : > { %v7738_v18 = vadd.f32 %v1253_v32, %v7612_v39  ;;  %1383 = vadd.xlane.f32.xlu0 %v1382_v36  ;;  %v1255_v16 = vpop.f32.mrb[22].mxu1  ;;  %v6148_v32 = vld [vmem:[#allocation7 + $0x1e4] ss:$8 sps:$4 sm:$0xff]  }
 0x352   : > { %v7741_v61 = vadd.f32 %v1255_v16, %v7609_v44  ;;  %v1257_v48 = vpop.f32.mrb[23].mxu1  ;;  %v1350_v47 = vmul.f32 %v7735_v56, %v7735_v56  ;;  %1893 = vmatpush1.bf16.msra.mxu0 %v6143_v13 }
 0x353   : > { %v7744_v37 = vadd.f32 %v1257_v48, %v7612_v39  ;;  %1386 = vadd.xlane.f32.xlu1 %v1385_v58  ;;  %v1304_v35 = vadd.f32 %v7738_v18, %v7735_v56  ;;  %v1351_v34 = vmul.f32 %v7738_v18, %v7738_v18  ;;  %1894 = vmatprep.subr.bf16.mxu0 %v6148_v32 }
 0x354   : > { %v1352_v24 = vmul.f32 %v7741_v61, %v7741_v61 }
 0x355   : > { %1305 = vadd.xlane.f32.xlu0 %v1304_v35  ;;  %v1307_v16 = vadd.f32 %v7744_v37, %v7741_v61  ;;  %v1353_v58 = vmul.f32 %v7744_v37, %v7744_v37  ;;  %v1388_v59 = vadd.f32 %v1351_v34, %v1350_v47  ;;  %v6146_v35 = vld [vmem:[#allocation7 + $0x1e0] ss:$8 sps:$4 sm:$0xff]  }
 0x356   : > { %1895 = vmatpush1.bf16.msra.mxu0 %v6146_v35 }
 0x357   : > { %1308 = vadd.xlane.f32.xlu1 %v1307_v16  ;;  %v1261_v36 = vpop.f32.mrb[24].mxu1  ;;  %v1391_v20 = vadd.f32 %v1353_v58, %v1352_v24  ;;  %v6151_v24 = vld [vmem:[#allocation7 + $0x1f4] ss:$8 sps:$4 sm:$0xff]   ;;  %v6149_v58 = vld [vmem:[#allocation7 + $0x1f0] ss:$8 sps:$4 sm:$0xff]  }
 0x358   : > { %v7759_v3 = vadd.f32 %v1261_v36, %v7609_v44  ;;  %v1263_v48 = vpop.f32.mrb[25].mxu1  ;;  %1896 = vmatprep.subr.bf16.mxu0 %v6151_v24 }
 0x359   : > { %v7762_v46 = vadd.f32 %v1263_v48, %v7612_v39  ;;  %1389 = vadd.xlane.f32.xlu0 %v1388_v59  ;;  %v1265_v30 = vpop.f32.mrb[26].mxu1 }
 0x35a   : > { %v7765_v22 = vadd.f32 %v1265_v30, %v7609_v44  ;;  %v1267_v62 = vpop.f32.mrb[27].mxu1  ;;  %v1354_v13 = vmul.f32 %v7759_v3, %v7759_v3  ;;  %1897 = vmatpush1.bf16.msra.mxu0 %v6149_v58 }
 0x35b   : > { %v7768_v47 = vadd.f32 %v1267_v62, %v7612_v39  ;;  %1392 = vadd.xlane.f32.xlu1 %v1391_v20  ;;  %v1310_v34 = vadd.f32 %v7762_v46, %v7759_v3  ;;  %v1355_v16 = vmul.f32 %v7762_v46, %v7762_v46 }
 0x35c   : > { %v1356_v44 = vmul.f32 %v7765_v22, %v7765_v22 }
 0x35d   : > { %1311 = vadd.xlane.f32.xlu0 %v1310_v34  ;;  %v1313_v30 = vadd.f32 %v7768_v47, %v7765_v22  ;;  %v1357_v20 = vmul.f32 %v7768_v47, %v7768_v47  ;;  %v1394_v39 = vadd.f32 %v1355_v16, %v1354_v13 }
 0x35f   : > { %1314 = vadd.xlane.f32.xlu1 %v1313_v30  ;;  %v1397_v36 = vadd.f32 %v1357_v20, %v1356_v44 }
 0x361   : > { %1395 = vadd.xlane.f32.xlu0 %v1394_v39 }
 0x363   : > { %1398 = vadd.xlane.f32.xlu1 %v1397_v36 }
 0x3b4   : > { %v1276_v59 = vpop.xlane.xlu0 %1275 }
 0x3b5   : > { %v1316_v32 = vmul.f32 0.00390625, %v1276_v59 }
 0x3b6   : > { %v1279_v48 = vpop.xlane.xlu1 %1278 }
 0x3b7   : > { %v1317_v35 = vmul.f32 0.00390625, %v1279_v48  ;;  %v1414_v34 = vmul.f32 %v1316_v32, %v1316_v32  ;;  %v1271_v48 = vld [vmem:[#allocation10 + $0x5] ss:$8 sm:$0x3] }
 0x3b8   : > { %v1360_v62 = vpop.xlane.xlu0 %1359 }
 0x3b9   : > { %v1400_v51 = vmul.f32 0.00390625, %v1360_v62  ;;  %v1415_v52 = vmul.f32 %v1317_v35, %v1317_v35 }
 0x3ba   : > { %v1363_v0 = vpop.xlane.xlu1 %1362 }
 0x3bb   : > { %v1428_v49 = vsub.f32 %v1400_v51, %v1414_v34  ;;  %v1401_v7 = vmul.f32 0.00390625, %v1363_v0 }
 0x3bd   : > { %v1442_v54 = vmax.f32 %v1428_v49, 0.0  ;;  %v1429_v63 = vsub.f32 %v1401_v7, %v1415_v52 }
 0x3bf   : > { %v1282_v24 = vpop.xlane.xlu0 %1281  ;;  %v1484_v58 = vadd.f32 1e-05, %v1442_v54  ;;  %v1443_v30 = vmax.f32 %v1429_v63, 0.0 }
 0x3c0   : > { %v7782_v13 = vmul.f32 0.00390625, %v1282_v24 }
 0x3c1   : > { %v1285_v16 = vpop.xlane.xlu1 %1284  ;;  %6388 = vrsqrt.f32 %v1484_v58  ;;  %v1485_v44 = vadd.f32 1e-05, %v1443_v30  ;;  %v1456_v58 = vsub.f32 %v7615_v26, %v1316_v32  ;;  %v1457_v30 = vsub.f32 %v7618_v57, %v1316_v32 }
 0x3c2   : > { %v7784_v20 = vmul.f32 0.00390625, %v1285_v16  ;;  %v1416_v36 = vmul.f32 %v7782_v13, %v7782_v13  ;;  %v1459_v57 = vsub.f32 %v7624_v23, %v1317_v35 }
 0x3c3   : > { %v1366_v39 = vpop.xlane.xlu0 %1365  ;;  %6390 = vrsqrt.f32 %v1485_v44 }
 0x3c4   : > { %v1402_v51 = vmul.f32 0.00390625, %v1366_v39  ;;  %v1417_v7 = vmul.f32 %v7784_v20, %v7784_v20 }
 0x3c5   : > { %v1369_v59 = vpop.xlane.xlu1 %1368 }
 0x3c6   : > { %v1430_v0 = vsub.f32 %v1402_v51, %v1416_v36  ;;  %v1403_v54 = vmul.f32 0.00390625, %v1369_v59  ;;  %v1273_v36 = vld [vmem:[#allocation10 + $0x6] ss:$8 sm:$0x3]  ;;  %v7795_v51 = vrot.slane %v1271_v48, %v7071_v40  ;;  %v7798_v59 = vrot.slane %v1271_v48, %v7073_v42 }
 0x3c8   : > { %v1444_v63 = vmax.f32 %v1430_v0, 0.0  ;;  %v1431_v52 = vsub.f32 %v1403_v54, %v1417_v7  ;;  %v1458_v0 = vsub.f32 %v7621_v6, %v1317_v35  ;;  %v7809_v6 = vrot.slane %v1273_v36, %v7071_v40 }
 0x3ca   : > { %v1288_v49 = vpop.xlane.xlu0 %1287  ;;  %v1486_v62 = vadd.f32 1e-05, %v1444_v63  ;;  %v1445_v34 = vmax.f32 %v1431_v52, 0.0 }
 0x3cb   : > { %v7790_v24 = vmul.f32 0.00390625, %v1288_v49  ;;  %v6389_v44 = vpop.eup %6388 }
 0x3cc   : > { %v1291_v16 = vpop.xlane.xlu1 %1290  ;;  %6392 = vrsqrt.f32 %v1486_v62  ;;  %v1487_v39 = vadd.f32 1e-05, %v1445_v34  ;;  %v1512_v7 = vmul.f32 %v6389_v44, %v1456_v58  ;;  %v1513_v26 = vmul.f32 %v6389_v44, %v1457_v30 }
 0x3cd   : > { %v7801_v54 = vmul.f32 0.00390625, %v1291_v16  ;;  %v6391_v52 = vpop.eup %6390  ;;  %v1418_v32 = vmul.f32 %v7790_v24, %v7790_v24  ;;  %v7812_v58 = vrot.slane %v1273_v36, %v7073_v42  ;;  %v1460_v36 = vsub.f32 %v7639_v55, %v7782_v13 }
 0x3ce   : > { %v1372_v63 = vpop.xlane.xlu0 %1371  ;;  %6394 = vrsqrt.f32 %v1487_v39  ;;  %v1514_v62 = vmul.f32 %v6391_v52, %v1458_v0  ;;  %v1515_v44 = vmul.f32 %v6391_v52, %v1459_v57  ;;  %v1552_v23 = vmul.f32 %v7798_v59, %v1513_v26 }
 0x3cf   : > { %v1404_v49 = vmul.f32 0.00390625, %v1372_v63  ;;  %v1419_v48 = vmul.f32 %v7801_v54, %v7801_v54  ;;  %v1551_v39 = vmul.f32 %v7795_v51, %v1512_v7  ;;  %v1462_v7 = vsub.f32 %v7645_v41, %v7784_v20 }
 0x3d0   : > { %v1375_v34 = vpop.xlane.xlu1 %1374  ;;  %v1553_v0 = vmul.f32 %v7795_v51, %v1514_v62  ;;  %v1554_v60 = vmul.f32 %v7798_v59, %v1515_v44  ;;  %v1591_v26 = vadd.f32 %v7812_v58, %v1552_v23 }
 0x3d1   : > { %v1432_v30 = vsub.f32 %v1404_v49, %v1418_v32  ;;  %v1405_v16 = vmul.f32 0.00390625, %v1375_v34  ;;  %v1461_v32 = vsub.f32 %v7642_v14, %v7782_v13  ;;  %v1590_v57 = vadd.f32 %v7809_v6, %v1551_v39 }
 0x3d2   : > { %v1294_v35 = vpop.xlane.xlu0 %1293  ;;  %v1463_v34 = vsub.f32 %v7648_v1, %v7784_v20  ;;  %v1593_v13 = vadd.f32 %v7812_v58, %v1554_v60  ;;  %v1619_v1 = vmax.f32 %v1591_v26, 0.0  ;;  %v1465_v26 = vsub.f32 %v7666_v8, %v7790_v24 }
 0x3d3   : > { %v1446_v63 = vmax.f32 %v1432_v30, 0.0  ;;  %v1433_v31 = vsub.f32 %v1405_v16, %v1419_v48  ;;  %v7817_v5 = vmul.f32 0.00390625, %v1294_v35  ;;  %v1592_v48 = vadd.f32 %v7809_v6, %v1553_v0 }
 0x3d4   : > { %v1297_v52 = vpop.xlane.xlu1 %1296  ;;  %v1621_v20 = vmax.f32 %v1593_v13, 0.0  ;;  %v1618_v39 = vmax.f32 %v1590_v57, 0.0 }
 0x3d5   : > { %v1488_v49 = vadd.f32 1e-05, %v1446_v63  ;;  %v1447_v62 = vmax.f32 %v1433_v31, 0.0  ;;  %v7833_v30 = vmul.f32 0.00390625, %v1297_v52  ;;  %v1420_v41 = vmul.f32 %v7817_v5, %v7817_v5 }
 0x3d6   : > { %v1378_v14 = vpop.xlane.xlu0 %1377  ;;  %v6393_v16 = vpop.eup %6392  ;;  %v1620_v55 = vmax.f32 %v1592_v48, 0.0  ;;  %v1647_v43 = vpack.c.bf16 %v1621_v20, %v1619_v1 }
 0x3d7   : > { %6396 = vrsqrt.f32 %v1488_v49  ;;  %v1489_v44 = vadd.f32 1e-05, %v1447_v62  ;;  %v1406_v31 = vmul.f32 0.00390625, %v1378_v14  ;;  %v1421_v23 = vmul.f32 %v7833_v30, %v7833_v30 }
 0x3d8   : > { %v1381_v35 = vpop.xlane.xlu1 %1380  ;;  %v6395_v0 = vpop.eup %6394  ;;  %v1517_v49 = vmul.f32 %v6393_v16, %v1461_v32  ;;  %v1516_v53 = vmul.f32 %v6393_v16, %v1460_v36  ;;  %v1646_v50 = vpack.c.bf16 %v1620_v55, %v1618_v39  ;;  %1898 = vmatprep.mubr.bf16.mxu0 %v1647_v43  ;;  %v1466_v32 = vsub.f32 %v7669_v25, %v7801_v54 }
 0x3d9   : > { %6398 = vrsqrt.f32 %v1489_v44  ;;  %v1434_v63 = vsub.f32 %v1406_v31, %v1420_v41  ;;  %v1407_v52 = vmul.f32 0.00390625, %v1381_v35  ;;  %v1519_v62 = vmul.f32 %v6395_v0, %v1463_v34 }
 0x3da   : > { %v1300_v60 = vpop.xlane.xlu0 %1299  ;;  %v1556_v57 = vmul.f32 %v7798_v59, %v1517_v49  ;;  %v1518_v48 = vmul.f32 %v6395_v0, %v1462_v7  ;;  %1899 = vmatmul.mubr.bf16.vlgmr.msra.gmra.mrb[28].mxu0 %v1646_v50  ;;  %v1555_v16 = vmul.f32 %v7795_v51, %v1516_v53  ;;  %v1467_v50 = vsub.f32 %v7672_v38, %v7801_v54 }
 0x3db   : > { %v1448_v2 = vmax.f32 %v1434_v63, 0.0  ;;  %v1435_v21 = vsub.f32 %v1407_v52, %v1421_v23  ;;  %v7840_v14 = vmul.f32 0.00390625, %v1300_v60  ;;  %v1558_v44 = vmul.f32 %v7798_v59, %v1519_v62 }
 0x3dc   : > { %v1303_v13 = vpop.xlane.xlu1 %1302  ;;  %v1595_v43 = vadd.f32 %v7812_v58, %v1556_v57  ;;  %v1557_v35 = vmul.f32 %v7795_v51, %v1518_v48  ;;  %v1469_v52 = vsub.f32 %v7690_v45, %v7817_v5  ;;  %v1594_v49 = vadd.f32 %v7809_v6, %v1555_v16 }
 0x3dd   : > { %v1490_v34 = vadd.f32 1e-05, %v1448_v2  ;;  %v1449_v36 = vmax.f32 %v1435_v21, 0.0  ;;  %v7849_v41 = vmul.f32 0.00390625, %v1303_v13  ;;  %v1422_v8 = vmul.f32 %v7840_v14, %v7840_v14 }
 0x3de   : > { %v1384_v55 = vpop.xlane.xlu0 %1383  ;;  %v1597_v31 = vadd.f32 %v7812_v58, %v1558_v44  ;;  %v1468_v21 = vsub.f32 %v7687_v17, %v7817_v5  ;;  %v1623_v1 = vmax.f32 %v1595_v43, 0.0  ;;  %v1596_v38 = vadd.f32 %v7809_v6, %v1557_v35 }
 0x3df   : > { %6400 = vrsqrt.f32 %v1490_v34  ;;  %v1491_v7 = vadd.f32 1e-05, %v1449_v36  ;;  %v1408_v23 = vmul.f32 0.00390625, %v1384_v55  ;;  %v1423_v2 = vmul.f32 %v7849_v41, %v7849_v41 }
 0x3e0   : > { %v1387_v53 = vpop.xlane.xlu1 %1386  ;;  %v1625_v63 = vmax.f32 %v1597_v31, 0.0  ;;  %v1622_v55 = vmax.f32 %v1594_v49, 0.0  ;;  %v1470_v45 = vsub.f32 %v7693_v15, %v7833_v30  ;;  %v1475_v25 = vsub.f32 %v7720_v33, %v7849_v41 }
 0x3e1   : > { %v6397_v20 = vpop.eup %6396  ;;  %6402 = vrsqrt.f32 %v1491_v7  ;;  %v1436_v39 = vsub.f32 %v1408_v23, %v1422_v8  ;;  %v1409_v0 = vmul.f32 0.00390625, %v1387_v53  ;;  %v1624_v8 = vmax.f32 %v1596_v38, 0.0 }
 0x3e2   : > { %v1306_v60 = vpop.xlane.xlu0 %1305  ;;  %v1521_v62 = vmul.f32 %v6397_v20, %v1465_v26  ;;  %v1649_v34 = vpack.c.bf16 %v1625_v63, %v1623_v1  ;;  %v10469_v26 = vsub.f32 %v7663_v28, %v7790_v24  ;;  %v1472_v28 = vsub.f32 %v7711_v27, %v7840_v14 }
 0x3e3   : > { %v6399_v13 = vpop.eup %6398  ;;  %v1450_v57 = vmax.f32 %v1436_v39, 0.0  ;;  %v1437_v44 = vsub.f32 %v1409_v0, %v1423_v2  ;;  %v7866_v48 = vmul.f32 0.00390625, %v1306_v60  ;;  %v1648_v1 = vpack.c.bf16 %v1624_v8, %v1622_v55 }
 0x3e4   : > { %v1309_v36 = vpop.xlane.xlu1 %1308  ;;  %v1523_v43 = vmul.f32 %v6399_v13, %v1467_v50  ;;  %v1560_v31 = vmul.f32 %v7798_v59, %v1521_v62  ;;  %1908 = vmatprep.mubr.bf16.mxu0 %v1649_v34  ;;  %v1520_v23 = vmul.f32 %v6397_v20, %v10469_v26  ;;  %v1471_v60 = vsub.f32 %v7696_v19, %v7833_v30 }
 0x3e5   : > { %v1492_v7 = vadd.f32 1e-05, %v1450_v57  ;;  %v1451_v16 = vmax.f32 %v1437_v44, 0.0  ;;  %v7874_v35 = vmul.f32 0.00390625, %v1309_v36  ;;  %v1424_v2 = vmul.f32 %v7866_v48, %v7866_v48  ;;  %1909 = vmatmul.mubr.bf16.gmra.mrb[32].mxu0 %v1648_v1 }
 0x3e6   : > { %v1390_v53 = vpop.xlane.xlu0 %1389  ;;  %v1562_v50 = vmul.f32 %v7798_v59, %v1523_v43  ;;  %v1599_v63 = vadd.f32 %v7812_v58, %v1560_v31  ;;  %v1473_v24 = vsub.f32 %v7714_v10, %v7840_v14  ;;  %v1522_v55 = vmul.f32 %v6399_v13, %v1466_v32 }
 0x3e7   : > { %6404 = vrsqrt.f32 %v1492_v7  ;;  %v1493_v39 = vadd.f32 1e-05, %v1451_v16  ;;  %v1410_v0 = vmul.f32 0.00390625, %v1390_v53  ;;  %v1425_v57 = vmul.f32 %v7874_v35, %v7874_v35 }
 0x3e8   : > { %v1393_v20 = vpop.xlane.xlu1 %1392  ;;  %v1601_v49 = vadd.f32 %v7812_v58, %v1562_v50  ;;  %v1627_v36 = vmax.f32 %v1599_v63, 0.0  ;;  %v1559_v10 = vmul.f32 %v7795_v51, %v1520_v23  ;;  %v1474_v26 = vsub.f32 %v7717_v9, %v7849_v41 }
 0x3e9   : > { %v6401_v38 = vpop.eup %6400  ;;  %6406 = vrsqrt.f32 %v1493_v39  ;;  %v1438_v62 = vsub.f32 %v1410_v0, %v1424_v2  ;;  %v1411_v44 = vmul.f32 0.00390625, %v1393_v20  ;;  %v1561_v1 = vmul.f32 %v7795_v51, %v1522_v55 }
 0x3ea   : > { %v1312_v34 = vpop.xlane.xlu0 %1311  ;;  %v1629_v19 = vmax.f32 %v1601_v49, 0.0  ;;  %v1525_v16 = vmul.f32 %v6401_v38, %v1469_v52  ;;  %v1598_v50 = vadd.f32 %v7809_v6, %v1559_v10  ;;  %v1524_v0 = vmul.f32 %v6401_v38, %v1468_v21 }
 0x3eb   : > { %v6403_v8 = vpop.eup %6402  ;;  %v1452_v43 = vmax.f32 %v1438_v62, 0.0  ;;  %v1439_v31 = vsub.f32 %v1411_v44, %v1425_v57  ;;  %v7893_v7 = vmul.f32 0.00390625, %v1312_v34  ;;  %v1600_v9 = vadd.f32 %v7809_v6, %v1561_v1 }
 0x3ec   : > { %v1315_v2 = vpop.xlane.xlu1 %1314  ;;  %v1651_v53 = vpack.c.bf16 %v1629_v19, %v1627_v36  ;;  %v1527_v13 = vmul.f32 %v6403_v8, %v1471_v60  ;;  %v1564_v33 = vmul.f32 %v7798_v59, %v1525_v16  ;;  %v1476_v41 = vsub.f32 %v7735_v56, %v7866_v48 }
 0x3ed   : > { %v1494_v54 = vadd.f32 1e-05, %v1452_v43  ;;  %v1453_v32 = vmax.f32 %v1439_v31, 0.0  ;;  %v7901_v23 = vmul.f32 0.00390625, %v1315_v2  ;;  %v1426_v52 = vmul.f32 %v7893_v7, %v7893_v7 }
 0x3ee   : > { %1918 = vmatprep.mubr.bf16.mxu0 %v1651_v53  ;;  %v1396_v39 = vpop.xlane.xlu0 %1395  ;;  %v1626_v60 = vmax.f32 %v1598_v50, 0.0  ;;  %v1628_v49 = vmax.f32 %v1600_v9, 0.0  ;;  %v1566_v5 = vmul.f32 %v7798_v59, %v1527_v13  ;;  %v1603_v21 = vadd.f32 %v7812_v58, %v1564_v33 }
 0x3ef   : > { %6408 = vrsqrt.f32 %v1494_v54  ;;  %v1495_v63 = vadd.f32 1e-05, %v1453_v32  ;;  %v1412_v20 = vmul.f32 0.00390625, %v1396_v39  ;;  %v1427_v62 = vmul.f32 %v7901_v23, %v7901_v23 }
 0x3f0   : > { %v1399_v57 = vpop.xlane.xlu1 %1398  ;;  %v1650_v17 = vpack.c.bf16 %v1628_v49, %v1626_v60  ;;  %v1526_v38 = vmul.f32 %v6403_v8, %v1470_v45  ;;  %v1563_v56 = vmul.f32 %v7795_v51, %v1524_v0  ;;  %v1605_v43 = vadd.f32 %v7812_v58, %v1566_v5 }
 0x3f1   : > { %v6405_v44 = vpop.eup %6404  ;;  %6410 = vrsqrt.f32 %v1495_v63  ;;  %v1440_v34 = vsub.f32 %v1412_v20, %v1426_v52  ;;  %v1413_v36 = vmul.f32 0.00390625, %v1399_v57  ;;  %v1631_v16 = vmax.f32 %v1603_v21, 0.0 }
 0x3f2   : > { %v1529_v31 = vmul.f32 %v6405_v44, %v1473_v24  ;;  %1919 = vmatmul.mubr.bf16.gmra.mrb[36].mxu0 %v1650_v17  ;;  %v1565_v2 = vmul.f32 %v7795_v51, %v1526_v38  ;;  %v1602_v53 = vadd.f32 %v7809_v6, %v1563_v56  ;;  %v1633_v32 = vmax.f32 %v1605_v43, 0.0 }
 0x3f3   : > { %v6407_v19 = vpop.eup %6406  ;;  %v1454_v55 = vmax.f32 %v1440_v34, 0.0  ;;  %v1441_v10 = vsub.f32 %v1413_v36, %v1427_v62  ;;  %v1528_v24 = vmul.f32 %v6405_v44, %v1472_v28  ;;  %v1477_v33 = vsub.f32 %v7738_v18, %v7866_v48 }
 0x3f4   : > { %v1531_v1 = vmul.f32 %v6407_v19, %v1475_v25  ;;  %v1568_v15 = vmul.f32 %v7798_v59, %v1529_v31  ;;  %v1604_v30 = vadd.f32 %v7809_v6, %v1565_v2  ;;  %v1630_v45 = vmax.f32 %v1602_v53, 0.0 }
 0x3f5   : > { %v1496_v50 = vadd.f32 1e-05, %v1454_v55  ;;  %v1455_v54 = vmax.f32 %v1441_v10, 0.0  ;;  %v1653_v52 = vpack.c.bf16 %v1633_v32, %v1631_v16  ;;  %v1530_v0 = vmul.f32 %v6407_v19, %v1474_v26 }
 0x3f6   : > { %v1570_v8 = vmul.f32 %v7798_v59, %v1531_v1  ;;  %v1607_v39 = vadd.f32 %v7812_v58, %v1568_v15  ;;  %v1632_v25 = vmax.f32 %v1604_v30, 0.0  ;;  %v1567_v63 = vmul.f32 %v7795_v51, %v1528_v24 }
 0x3f7   : > { %6412 = vrsqrt.f32 %v1496_v50  ;;  %v1497_v13 = vadd.f32 1e-05, %v1455_v54  ;;  %v1479_v60 = vsub.f32 %v7744_v37, %v7874_v35  ;;  %1928 = vmatprep.mubr.bf16.mxu0 %v1653_v52  ;;  %v1569_v49 = vmul.f32 %v7795_v51, %v1530_v0 }
 0x3f8   : > { %v1609_v9 = vadd.f32 %v7812_v58, %v1570_v8  ;;  %v1635_v27 = vmax.f32 %v1607_v39, 0.0  ;;  %v1652_v14 = vpack.c.bf16 %v1632_v25, %v1630_v45  ;;  %v1606_v62 = vadd.f32 %v7809_v6, %v1567_v63 }
 0x3f9   : > { %v6409_v20 = vpop.eup %6408  ;;  %6414 = vrsqrt.f32 %v1497_v13  ;;  %v1478_v26 = vsub.f32 %v7741_v61, %v7874_v35  ;;  %v1608_v48 = vadd.f32 %v7809_v6, %v1569_v49  ;;  %v1480_v35 = vsub.f32 %v7759_v3, %v7893_v7  ;;  %v6163_v49 = vld [vmem:[#allocation7 + $0x234] ss:$8 sps:$4 sm:$0xff]  }
 0x3fa   : > { %v1637_v28 = vmax.f32 %v1609_v9, 0.0  ;;  %v1533_v44 = vmul.f32 %v6409_v20, %v1477_v33  ;;  %v1532_v34 = vmul.f32 %v6409_v20, %v1476_v41  ;;  %1929 = vmatmul.mubr.bf16.gmra.mrb[40].mxu0 %v1652_v14  ;;  %v1634_v21 = vmax.f32 %v1606_v62, 0.0  ;;  %v6157_v14 = vld [vmem:[#allocation7 + $0x214] ss:$8 sps:$4 sm:$0xff]   ;;  %v6166_v62 = vld [vmem:[#allocation7 + $0x244] ss:$8 sps:$4 sm:$0xff]  }
 0x3fb   : > { %v6411_v57 = vpop.eup %6410  ;;  %v1636_v38 = vmax.f32 %v1608_v48, 0.0  ;;  %v1481_v41 = vsub.f32 %v7762_v46, %v7893_v7  ;;  %v1482_v31 = vsub.f32 %v7765_v22, %v7901_v23  ;;  %v1483_v16 = vsub.f32 %v7768_v47, %v7901_v23  ;;  %v1694_v48 = vld [vmem:[#allocation10 + $0x7] ss:$8 sm:$0x3] }
 0x3fc   : > { %v1655_v18 = vpack.c.bf16 %v1637_v28, %v1635_v27  ;;  %v1535_v37 = vmul.f32 %v6411_v57, %v1479_v60  ;;  %v1572_v36 = vmul.f32 %v7798_v59, %v1533_v44  ;;  %v1534_v5 = vmul.f32 %v6411_v57, %v1478_v26  ;;  %v6152_v60 = vld [vmem:[#allocation7 + $0x200] ss:$8 sps:$4 sm:$0xff]   ;;  %v6154_v27 = vld [vmem:[#allocation7 + $0x204] ss:$8 sps:$4 sm:$0xff]   ;;  %v6169_v26 = vld [vmem:[#allocation7 + $0x254] ss:$8 sps:$4 sm:$0xff]  }
 0x3fd   : > { %v1571_v17 = vmul.f32 %v7795_v51, %v1532_v34  ;;  %v1654_v55 = vpack.c.bf16 %v1636_v38, %v1634_v21  ;;  %2593 = vmatprep.subr.bf16.mxu1 %v6154_v27  ;;  %v6158_v28 = vld [vmem:[#allocation7 + $0x220] ss:$8 sps:$4 sm:$0xff]   ;;  %v6167_v44 = vld [vmem:[#allocation7 + $0x250] ss:$8 sps:$4 sm:$0xff]   ;;  %v6172_v34 = vld [vmem:[#allocation7 + $0x264] ss:$8 sps:$4 sm:$0xff]  }
 0x3fe   : > { %1938 = vmatprep.mubr.bf16.mxu0 %v1655_v18  ;;  %v1574_v56 = vmul.f32 %v7798_v59, %v1535_v37  ;;  %v1611_v19 = vadd.f32 %v7812_v58, %v1572_v36  ;;  %v1573_v61 = vmul.f32 %v7795_v51, %v1534_v5  ;;  %2594 = vmatpush1.bf16.msra.mxu1 %v6152_v60  ;;  %v6164_v57 = vld [vmem:[#allocation7 + $0x240] ss:$8 sps:$4 sm:$0xff]  }
 0x3ff   : > { %v1610_v2 = vadd.f32 %v7809_v6, %v1571_v17  ;;  %2595 = vmatprep.subr.bf16.mxu1 %v6157_v14  ;;  %v6170_v18 = vld [vmem:[#allocation7 + $0x260] ss:$8 sps:$4 sm:$0xff]   ;;  %v7966_v37 = vrot.slane %v1694_v48, %v7071_v40  ;;  %v7969_v36 = vrot.slane %v1694_v48, %v7073_v42 }
 0x400   : > { %v1613_v10 = vadd.f32 %v7812_v58, %v1574_v56  ;;  %v1612_v53 = vadd.f32 %v7809_v6, %v1573_v61  ;;  %v1639_v1 = vmax.f32 %v1611_v19, 0.0 }
 0x401   : > { %v6413_v43 = vpop.eup %6412  ;;  %v1638_v22 = vmax.f32 %v1610_v2, 0.0 }
 0x402   : > { %v1641_v50 = vmax.f32 %v1613_v10, 0.0  ;;  %v1537_v3 = vmul.f32 %v6413_v43, %v1481_v41  ;;  %v1536_v54 = vmul.f32 %v6413_v43, %v1480_v35  ;;  %v1640_v46 = vmax.f32 %v1612_v53, 0.0  ;;  %1939 = vmatmul.mubr.bf16.gmra.mrb[44].mxu0 %v1654_v55 }
 0x403   : > { %v6415_v32 = vpop.eup %6414 }
 0x404   : > { %v1657_v7 = vpack.c.bf16 %v1641_v50, %v1639_v1  ;;  %v1539_v15 = vmul.f32 %v6415_v32, %v1483_v16  ;;  %v1576_v30 = vmul.f32 %v7798_v59, %v1537_v3  ;;  %v1538_v45 = vmul.f32 %v6415_v32, %v1482_v31 }
 0x405   : > { %v1575_v8 = vmul.f32 %v7795_v51, %v1536_v54  ;;  %v1656_v13 = vpack.c.bf16 %v1640_v46, %v1638_v22 }
 0x406   : > { %1948 = vmatprep.mubr.bf16.mxu0 %v1657_v7  ;;  %v1578_v47 = vmul.f32 %v7798_v59, %v1539_v15  ;;  %v1615_v23 = vadd.f32 %v7812_v58, %v1576_v30  ;;  %v1577_v24 = vmul.f32 %v7795_v51, %v1538_v45  ;;  %v6155_v51 = vld [vmem:[#allocation7 + $0x210] ss:$8 sps:$4 sm:$0xff]  }
 0x407   : > { %v1614_v0 = vadd.f32 %v7809_v6, %v1575_v8  ;;  %2596 = vmatpush1.bf16.msra.mxu1 %v6155_v51 }
 0x408   : > { %v1617_v52 = vadd.f32 %v7812_v58, %v1578_v47  ;;  %v1616_v39 = vadd.f32 %v7809_v6, %v1577_v24  ;;  %v1643_v25 = vmax.f32 %v1615_v23, 0.0  ;;  %v6160_v58 = vld [vmem:[#allocation7 + $0x224] ss:$8 sps:$4 sm:$0xff]   ;;  %v6161_v6 = vld [vmem:[#allocation7 + $0x230] ss:$8 sps:$4 sm:$0xff]  }
 0x409   : > { %v1642_v59 = vmax.f32 %v1614_v0, 0.0  ;;  %2597 = vmatprep.subr.bf16.mxu1 %v6160_v58  ;;  %v6175_v0 = vld [vmem:[#allocation7 + $0x274] ss:$8 sps:$4 sm:$0xff]  }
 0x40a   : > { %v1645_v9 = vmax.f32 %v1617_v52, 0.0  ;;  %1949 = vmatmul.mubr.bf16.gmra.mrb[48].mxu0 %v1656_v13  ;;  %v1644_v20 = vmax.f32 %v1616_v39, 0.0 }
 0x40b   : > { %2598 = vmatpush1.bf16.msra.mxu1 %v6158_v28 }
 0x40c   : > { %v1659_v63 = vpack.c.bf16 %v1645_v9, %v1643_v25  ;;  %v1658_v33 = vpack.c.bf16 %v1644_v20, %v1642_v59  ;;  %2599 = vmatprep.subr.bf16.mxu1 %v6163_v49  ;;  %v6173_v9 = vld [vmem:[#allocation7 + $0x270] ss:$8 sps:$4 sm:$0xff]  }
 0x40e   : > { %1958 = vmatprep.mubr.bf16.mxu0 %v1659_v63 }
 0x40f   : > { %2600 = vmatpush1.bf16.msra.mxu1 %v6161_v6 }
 0x410   : > { %2601 = vmatprep.subr.bf16.mxu1 %v6166_v62 }
 0x412   : > { %1959 = vmatmul.mubr.bf16.gmra.mrb[52].mxu0 %v1658_v33 }
 0x413   : > { %2602 = vmatpush1.bf16.msra.mxu1 %v6164_v57 }
 0x414   : > { %2603 = vmatprep.subr.bf16.mxu1 %v6169_v26 }
 0x417   : > { %2604 = vmatpush1.bf16.msra.mxu1 %v6167_v44  ;;  %v6178_v44 = vld [vmem:[#allocation7 + $0x284] ss:$8 sps:$4 sm:$0xff]  }
 0x418   : > { %2605 = vmatprep.subr.bf16.mxu1 %v6172_v34 }
 0x41b   : > { %2606 = vmatpush1.bf16.msra.mxu1 %v6170_v18 }
 0x41c   : > { %2607 = vmatprep.subr.bf16.mxu1 %v6175_v0  ;;  %v6187_v0 = vld [vmem:[#allocation7 + $0x2b4] ss:$8 sps:$4 sm:$0xff]  }
 0x41f   : > { %2608 = vmatpush1.bf16.msra.mxu1 %v6173_v9 }
 0x420   : > { %2609 = vmatprep.subr.bf16.mxu1 %v6178_v44 }
 0x4ad   : > { %v1900_v5 = vpop.f32.mrb[28].mxu0 }
 0x4ae   : > { %v7972_v17 = vadd.f32 %v1900_v5, %v7966_v37  ;;  %v1902_v21 = vpop.f32.mrb[29].mxu0  ;;  %v6176_v5 = vld [vmem:[#allocation7 + $0x280] ss:$8 sps:$4 sm:$0xff]  }
 0x4af   : > { %v7975_v38 = vadd.f32 %v1902_v21, %v7969_v36  ;;  %v1904_v56 = vpop.f32.mrb[30].mxu0  ;;  %2610 = vmatpush1.bf16.msra.mxu1 %v6176_v5 }
 0x4b0   : > { %v7978_v19 = vadd.f32 %v1904_v56, %v7966_v37  ;;  %v1906_v61 = vpop.f32.mrb[31].mxu0  ;;  %v2029_v55 = vmul.f32 %v7972_v17, %v7972_v17 }
 0x4b1   : > { %v7981_v35 = vadd.f32 %v1906_v61, %v7969_v36  ;;  %v1973_v41 = vadd.f32 %v7975_v38, %v7972_v17  ;;  %v2030_v10 = vmul.f32 %v7975_v38, %v7975_v38 }
 0x4b2   : > { %v2031_v31 = vmul.f32 %v7978_v19, %v7978_v19 }
 0x4b3   : > { %1974 = vadd.xlane.f32.xlu0 %v1973_v41  ;;  %v1976_v43 = vadd.f32 %v7981_v35, %v7978_v19  ;;  %v2032_v16 = vmul.f32 %v7981_v35, %v7981_v35  ;;  %v2057_v2 = vadd.f32 %v2030_v10, %v2029_v55 }
 0x4b5   : > { %1977 = vadd.xlane.f32.xlu1 %v1976_v43  ;;  %v2060_v53 = vadd.f32 %v2032_v16, %v2031_v31  ;;  %v6181_v43 = vld [vmem:[#allocation7 + $0x294] ss:$8 sps:$4 sm:$0xff]  }
 0x4b6   : > { %2611 = vmatprep.subr.bf16.mxu1 %v6181_v43  ;;  %v6193_v43 = vld [vmem:[#allocation7 + $0x2d4] ss:$8 sps:$4 sm:$0xff]  }
 0x4b7   : > { %2058 = vadd.xlane.f32.xlu0 %v2057_v2 }
 0x4b8   : > { %v1910_v1 = vpop.f32.mrb[32].mxu0 }
 0x4b9   : > { %v7996_v50 = vadd.f32 %v1910_v1, %v7966_v37  ;;  %v1912_v3 = vpop.f32.mrb[33].mxu0  ;;  %2061 = vadd.xlane.f32.xlu1 %v2060_v53  ;;  %v6179_v53 = vld [vmem:[#allocation7 + $0x290] ss:$8 sps:$4 sm:$0xff]  }
 0x4ba   : > { %v7999_v54 = vadd.f32 %v1912_v3, %v7969_v36  ;;  %v1914_v32 = vpop.f32.mrb[34].mxu0  ;;  %2612 = vmatpush1.bf16.msra.mxu1 %v6179_v53  ;;  %v6191_v53 = vld [vmem:[#allocation7 + $0x2d0] ss:$8 sps:$4 sm:$0xff]  }
 0x4bb   : > { %v8002_v46 = vadd.f32 %v1914_v32, %v7966_v37  ;;  %v1916_v7 = vpop.f32.mrb[35].mxu0  ;;  %v2033_v45 = vmul.f32 %v7996_v50, %v7996_v50 }
 0x4bc   : > { %v8005_v15 = vadd.f32 %v1916_v7, %v7969_v36  ;;  %v1979_v30 = vadd.f32 %v7999_v54, %v7996_v50  ;;  %v2034_v22 = vmul.f32 %v7999_v54, %v7999_v54 }
 0x4bd   : > { %v2035_v23 = vmul.f32 %v8002_v46, %v8002_v46 }
 0x4be   : > { %1980 = vadd.xlane.f32.xlu0 %v1979_v30  ;;  %v1982_v47 = vadd.f32 %v8005_v15, %v8002_v46  ;;  %v2036_v8 = vmul.f32 %v8005_v15, %v8005_v15  ;;  %v2063_v24 = vadd.f32 %v2034_v22, %v2033_v45  ;;  %v6184_v30 = vld [vmem:[#allocation7 + $0x2a4] ss:$8 sps:$4 sm:$0xff]  }
 0x4bf   : > { %2613 = vmatprep.subr.bf16.mxu1 %v6184_v30 }
 0x4c0   : > { %1983 = vadd.xlane.f32.xlu1 %v1982_v47  ;;  %v2066_v13 = vadd.f32 %v2036_v8, %v2035_v23  ;;  %v6182_v23 = vld [vmem:[#allocation7 + $0x2a0] ss:$8 sps:$4 sm:$0xff]  }
 0x4c1   : > { %2614 = vmatpush1.bf16.msra.mxu1 %v6182_v23 }
 0x4c2   : > { %2064 = vadd.xlane.f32.xlu0 %v2063_v24  ;;  %2615 = vmatprep.subr.bf16.mxu1 %v6187_v0 }
 0x4c4   : > { %2067 = vadd.xlane.f32.xlu1 %v2066_v13 }
 0x4c5   : > { %v1920_v52 = vpop.f32.mrb[36].mxu0 }
 0x4c6   : > { %v8020_v39 = vadd.f32 %v1920_v52, %v7966_v37  ;;  %v1922_v25 = vpop.f32.mrb[37].mxu0 }
 0x4c7   : > { %v8023_v63 = vadd.f32 %v1922_v25, %v7969_v36  ;;  %v1924_v20 = vpop.f32.mrb[38].mxu0 }
 0x4c8   : > { %v8026_v59 = vadd.f32 %v1924_v20, %v7966_v37  ;;  %v1926_v33 = vpop.f32.mrb[39].mxu0  ;;  %v2037_v14 = vmul.f32 %v8020_v39, %v8020_v39 }
 0x4c9   : > { %v8029_v60 = vadd.f32 %v1926_v33, %v7969_v36  ;;  %v1985_v27 = vadd.f32 %v8023_v63, %v8020_v39  ;;  %v2038_v51 = vmul.f32 %v8023_v63, %v8023_v63 }
 0x4ca   : > { %v2039_v28 = vmul.f32 %v8026_v59, %v8026_v59 }
 0x4cb   : > { %1986 = vadd.xlane.f32.xlu0 %v1985_v27  ;;  %v1988_v58 = vadd.f32 %v8029_v60, %v8026_v59  ;;  %v2040_v49 = vmul.f32 %v8029_v60, %v8029_v60  ;;  %v2069_v62 = vadd.f32 %v2038_v51, %v2037_v14  ;;  %v6185_v14 = vld [vmem:[#allocation7 + $0x2b0] ss:$8 sps:$4 sm:$0xff]  }
 0x4cc   : > { %2616 = vmatpush1.bf16.msra.mxu1 %v6185_v14  ;;  %v6199_v14 = vld [vmem:[#allocation7 + $0x2f4] ss:$8 sps:$4 sm:$0xff]  }
 0x4cd   : > { %1989 = vadd.xlane.f32.xlu1 %v1988_v58  ;;  %v1930_v6 = vpop.f32.mrb[40].mxu0  ;;  %v2072_v48 = vadd.f32 %v2040_v49, %v2039_v28 }
 0x4ce   : > { %v8044_v57 = vadd.f32 %v1930_v6, %v7966_v37  ;;  %v1932_v26 = vpop.f32.mrb[41].mxu0  ;;  %v6190_v6 = vld [vmem:[#allocation7 + $0x2c4] ss:$8 sps:$4 sm:$0xff]  }
 0x4cf   : > { %v8047_v34 = vadd.f32 %v1932_v26, %v7969_v36  ;;  %2070 = vadd.xlane.f32.xlu0 %v2069_v62  ;;  %v1934_v18 = vpop.f32.mrb[42].mxu0  ;;  %2617 = vmatprep.subr.bf16.mxu1 %v6190_v6 }
 0x4d0   : > { %v8050_v21 = vadd.f32 %v1934_v18, %v7966_v37  ;;  %v1936_v56 = vpop.f32.mrb[43].mxu0  ;;  %v2041_v61 = vmul.f32 %v8044_v57, %v8044_v57  ;;  %v6188_v18 = vld [vmem:[#allocation7 + $0x2c0] ss:$8 sps:$4 sm:$0xff]  }
 0x4d1   : > { %v8055_v41 = vadd.f32 %v1936_v56, %v7969_v36  ;;  %2073 = vadd.xlane.f32.xlu1 %v2072_v48  ;;  %v1991_v55 = vadd.f32 %v8047_v34, %v8044_v57  ;;  %v2042_v10 = vmul.f32 %v8047_v34, %v8047_v34  ;;  %2618 = vmatpush1.bf16.msra.mxu1 %v6188_v18 }
 0x4d2   : > { %v2043_v16 = vmul.f32 %v8050_v21, %v8050_v21  ;;  %2619 = vmatprep.subr.bf16.mxu1 %v6193_v43 }
 0x4d3   : > { %1992 = vadd.xlane.f32.xlu0 %v1991_v55  ;;  %v1994_v31 = vadd.f32 %v8055_v41, %v8050_v21  ;;  %v2044_v2 = vmul.f32 %v8055_v41, %v8055_v41  ;;  %v2075_v3 = vadd.f32 %v2042_v10, %v2041_v61 }
 0x4d5   : > { %1995 = vadd.xlane.f32.xlu1 %v1994_v31  ;;  %v1940_v1 = vpop.f32.mrb[44].mxu0  ;;  %v2078_v47 = vadd.f32 %v2044_v2, %v2043_v16  ;;  %2620 = vmatpush1.bf16.msra.mxu1 %v6191_v53 }
 0x4d6   : > { %v8068_v32 = vadd.f32 %v1940_v1, %v7966_v37  ;;  %v1942_v7 = vpop.f32.mrb[45].mxu0 }
 0x4d7   : > { %v8071_v45 = vadd.f32 %v1942_v7, %v7969_v36  ;;  %2076 = vadd.xlane.f32.xlu0 %v2075_v3  ;;  %v1944_v22 = vpop.f32.mrb[46].mxu0 }
 0x4d8   : > { %v8074_v8 = vadd.f32 %v1944_v22, %v7966_v37  ;;  %v1946_v24 = vpop.f32.mrb[47].mxu0  ;;  %v2045_v13 = vmul.f32 %v8068_v32, %v8068_v32  ;;  %v6196_v22 = vld [vmem:[#allocation7 + $0x2e4] ss:$8 sps:$4 sm:$0xff]  }
 0x4d9   : > { %v8079_v52 = vadd.f32 %v1946_v24, %v7969_v36  ;;  %2079 = vadd.xlane.f32.xlu1 %v2078_v47  ;;  %v1997_v25 = vadd.f32 %v8071_v45, %v8068_v32  ;;  %v2046_v9 = vmul.f32 %v8071_v45, %v8071_v45  ;;  %2621 = vmatprep.subr.bf16.mxu1 %v6196_v22 }
 0x4da   : > { %v2047_v33 = vmul.f32 %v8074_v8, %v8074_v8 }
 0x4db   : > { %1998 = vadd.xlane.f32.xlu0 %v1997_v25  ;;  %v2000_v20 = vadd.f32 %v8079_v52, %v8074_v8  ;;  %v2048_v27 = vmul.f32 %v8079_v52, %v8079_v52  ;;  %v2081_v58 = vadd.f32 %v2046_v9, %v2045_v13  ;;  %v6194_v13 = vld [vmem:[#allocation7 + $0x2e0] ss:$8 sps:$4 sm:$0xff]  }
 0x4dc   : > { %2622 = vmatpush1.bf16.msra.mxu1 %v6194_v13 }
 0x4dd   : > { %2001 = vadd.xlane.f32.xlu1 %v2000_v20  ;;  %v1950_v51 = vpop.f32.mrb[48].mxu0  ;;  %v2084_v44 = vadd.f32 %v2048_v27, %v2047_v33  ;;  %2623 = vmatprep.subr.bf16.mxu1 %v6199_v14 }
 0x4de   : > { %v8092_v28 = vadd.f32 %v1950_v51, %v7966_v37  ;;  %v1952_v49 = vpop.f32.mrb[49].mxu0 }
 0x4df   : > { %v8095_v62 = vadd.f32 %v1952_v49, %v7969_v36  ;;  %2082 = vadd.xlane.f32.xlu0 %v2081_v58  ;;  %v1954_v26 = vpop.f32.mrb[50].mxu0  ;;  %v6197_v58 = vld [vmem:[#allocation7 + $0x2f0] ss:$8 sps:$4 sm:$0xff]  }
 0x4e0   : > { %v8098_v48 = vadd.f32 %v1954_v26, %v7966_v37  ;;  %v1956_v5 = vpop.f32.mrb[51].mxu0  ;;  %v2049_v56 = vmul.f32 %v8092_v28, %v8092_v28  ;;  %2624 = vmatpush1.bf16.msra.mxu1 %v6197_v58  ;;  %v1970_v58 = vld [vmem:[#allocation10 + $0x10] ss:$8 sm:$0x3] }
 0x4e1   : > { %v8103_v61 = vadd.f32 %v1956_v5, %v7969_v36  ;;  %2085 = vadd.xlane.f32.xlu1 %v2084_v44  ;;  %v2003_v55 = vadd.f32 %v8095_v62, %v8092_v28  ;;  %v2050_v10 = vmul.f32 %v8095_v62, %v8095_v62 }
 0x4e2   : > { %v2051_v16 = vmul.f32 %v8098_v48, %v8098_v48 }
 0x4e3   : > { %2004 = vadd.xlane.f32.xlu0 %v2003_v55  ;;  %v2006_v31 = vadd.f32 %v8103_v61, %v8098_v48  ;;  %v2052_v2 = vmul.f32 %v8103_v61, %v8103_v61  ;;  %v2087_v3 = vadd.f32 %v2050_v10, %v2049_v56 }
 0x4e5   : > { %2007 = vadd.xlane.f32.xlu1 %v2006_v31  ;;  %v1960_v1 = vpop.f32.mrb[52].mxu0  ;;  %v2090_v24 = vadd.f32 %v2052_v2, %v2051_v16 }
 0x4e6   : > { %v8116_v7 = vadd.f32 %v1960_v1, %v7966_v37  ;;  %v1962_v30 = vpop.f32.mrb[53].mxu0 }
 0x4e7   : > { %v8119_v47 = vadd.f32 %v1962_v30, %v7969_v36  ;;  %2088 = vadd.xlane.f32.xlu0 %v2087_v3  ;;  %v1964_v23 = vpop.f32.mrb[54].mxu0 }
 0x4e8   : > { %v8122_v25 = vadd.f32 %v1964_v23, %v7966_v37  ;;  %v1966_v9 = vpop.f32.mrb[55].mxu0  ;;  %v2053_v0 = vmul.f32 %v8116_v7, %v8116_v7 }
 0x4e9   : > { %v8127_v20 = vadd.f32 %v1966_v9, %v7969_v36  ;;  %2091 = vadd.xlane.f32.xlu1 %v2090_v24  ;;  %v2009_v33 = vadd.f32 %v8119_v47, %v8116_v7  ;;  %v2054_v27 = vmul.f32 %v8119_v47, %v8119_v47 }
 0x4ea   : > { %v2055_v51 = vmul.f32 %v8122_v25, %v8122_v25 }
 0x4eb   : > { %2010 = vadd.xlane.f32.xlu0 %v2009_v33  ;;  %v2012_v37 = vadd.f32 %v8127_v20, %v8122_v25  ;;  %v2056_v36 = vmul.f32 %v8127_v20, %v8127_v20  ;;  %v2093_v49 = vadd.f32 %v2054_v27, %v2053_v0 }
 0x4ed   : > { %2013 = vadd.xlane.f32.xlu1 %v2012_v37  ;;  %v2096_v6 = vadd.f32 %v2056_v36, %v2055_v51 }
 0x4ef   : > { %2094 = vadd.xlane.f32.xlu0 %v2093_v49 }
 0x4f1   : > { %2097 = vadd.xlane.f32.xlu1 %v2096_v6 }
 0x540   : > { %v1975_v26 = vpop.xlane.xlu0 %1974 }
 0x541   : > { %v2015_v44 = vmul.f32 0.00390625, %v1975_v26  ;;  %v1972_v26 = vld [vmem:[#allocation10 + $0x11] ss:$8 sm:$0x3] }
 0x542   : > { %v1978_v18 = vpop.xlane.xlu1 %1977 }
 0x543   : > { %v2016_v5 = vmul.f32 0.00390625, %v1978_v18  ;;  %v2113_v55 = vmul.f32 %v2015_v44, %v2015_v44  ;;  %v2155_v18 = vsub.f32 %v7972_v17, %v2015_v44 }
 0x544   : > { %v2059_v56 = vpop.xlane.xlu0 %2058 }
 0x545   : > { %v2099_v10 = vmul.f32 0.00390625, %v2059_v56  ;;  %v2114_v16 = vmul.f32 %v2016_v5, %v2016_v5  ;;  %v8149_v56 = vrot.slane %v1970_v58, %v7071_v40 }
 0x546   : > { %v2062_v43 = vpop.xlane.xlu1 %2061 }
 0x547   : > { %v2127_v31 = vsub.f32 %v2099_v10, %v2113_v55  ;;  %v2100_v2 = vmul.f32 0.00390625, %v2062_v43 }
 0x549   : > { %v2141_v53 = vmax.f32 %v2127_v31, 0.0  ;;  %v2128_v1 = vsub.f32 %v2100_v2, %v2114_v16  ;;  %v2156_v31 = vsub.f32 %v7975_v38, %v2015_v44  ;;  %v8153_v2 = vrot.slane %v1970_v58, %v7073_v42 }
 0x54b   : > { %v2183_v3 = vadd.f32 1e-05, %v2141_v53  ;;  %v2142_v30 = vmax.f32 %v2128_v1, 0.0  ;;  %v1981_v22 = vpop.xlane.xlu0 %1980  ;;  %v8156_v53 = vrot.slane %v1972_v26, %v7071_v40  ;;  %v2157_v1 = vsub.f32 %v7978_v19, %v2016_v5 }
 0x54c   : > { %v8139_v23 = vmul.f32 0.00390625, %v1981_v22 }
 0x54d   : > { %6416 = vrsqrt.f32 %v2183_v3  ;;  %v2184_v24 = vadd.f32 1e-05, %v2142_v30  ;;  %v1984_v13 = vpop.xlane.xlu1 %1983 }
 0x54e   : > { %v8141_v9 = vmul.f32 0.00390625, %v1984_v13  ;;  %v2115_v33 = vmul.f32 %v8139_v23, %v8139_v23  ;;  %v2159_v58 = vsub.f32 %v7996_v50, %v8139_v23 }
 0x54f   : > { %6418 = vrsqrt.f32 %v2184_v24  ;;  %v2065_v0 = vpop.xlane.xlu0 %2064  ;;  %v2158_v24 = vsub.f32 %v7981_v35, %v2016_v5 }
 0x550   : > { %v2101_v27 = vmul.f32 0.00390625, %v2065_v0  ;;  %v2116_v51 = vmul.f32 %v8141_v9, %v8141_v9 }
 0x551   : > { %v2068_v14 = vpop.xlane.xlu1 %2067 }
 0x552   : > { %v2129_v37 = vsub.f32 %v2101_v27, %v2115_v33  ;;  %v2102_v36 = vmul.f32 0.00390625, %v2068_v14  ;;  %v8164_v33 = vrot.slane %v1972_v26, %v7073_v42 }
 0x554   : > { %v2143_v49 = vmax.f32 %v2129_v37, 0.0  ;;  %v2130_v6 = vsub.f32 %v2102_v36, %v2116_v51 }
 0x556   : > { %v2185_v55 = vadd.f32 1e-05, %v2143_v49  ;;  %v2144_v10 = vmax.f32 %v2130_v6, 0.0 }
 0x557   : > { %v6417_v43 = vpop.eup %6416 }
 0x558   : > { %v1987_v16 = vpop.xlane.xlu0 %1986  ;;  %v2211_v3 = vmul.f32 %v6417_v43, %v2155_v18  ;;  %v2186_v30 = vadd.f32 1e-05, %v2144_v10  ;;  %6420 = vrsqrt.f32 %v2185_v55  ;;  %v2212_v0 = vmul.f32 %v6417_v43, %v2156_v31 }
 0x559   : > { %v8159_v17 = vmul.f32 0.00390625, %v1987_v16  ;;  %v6419_v22 = vpop.eup %6418  ;;  %v2160_v31 = vsub.f32 %v7999_v54, %v8139_v23  ;;  %v2161_v16 = vsub.f32 %v8002_v46, %v8141_v9  ;;  %v2162_v54 = vsub.f32 %v8005_v15, %v8141_v9 }
 0x55a   : > { %v1990_v13 = vpop.xlane.xlu1 %1989  ;;  %v2250_v38 = vmul.f32 %v8149_v56, %v2211_v3  ;;  %v2213_v44 = vmul.f32 %v6419_v22, %v2157_v1  ;;  %6422 = vrsqrt.f32 %v2186_v30  ;;  %v2214_v37 = vmul.f32 %v6419_v22, %v2158_v24 }
 0x55b   : > { %v8166_v27 = vmul.f32 0.00390625, %v1990_v13  ;;  %v2117_v19 = vmul.f32 %v8159_v17, %v8159_v17  ;;  %v2251_v5 = vmul.f32 %v8153_v2, %v2212_v0  ;;  %v10470_v3 = vmax.f32 %v7326_v12, 0.0 }
 0x55c   : > { %v2071_v14 = vpop.xlane.xlu0 %2070  ;;  %v2252_v51 = vmul.f32 %v8149_v56, %v2213_v44  ;;  %v2289_v36 = vadd.f32 %v8156_v53, %v2250_v38  ;;  %v2253_v26 = vmul.f32 %v8153_v2, %v2214_v37  ;;  %v10471_v0 = vmax.f32 %v7309_v4, 0.0 }
 0x55d   : > { %v2103_v35 = vmul.f32 0.00390625, %v2071_v14  ;;  %v2118_v49 = vmul.f32 %v8166_v27, %v8166_v27  ;;  %v2290_v10 = vadd.f32 %v8164_v33, %v2251_v5  ;;  %v2163_v46 = vsub.f32 %v8020_v39, %v8159_v17 }
 0x55e   : > { %v2074_v6 = vpop.xlane.xlu1 %2073  ;;  %v2291_v43 = vadd.f32 %v8156_v53, %v2252_v51  ;;  %v2292_v50 = vadd.f32 %v8164_v33, %v2253_v26  ;;  %v8187_v30 = vadd.f32 %v2289_v36, %v10470_v3  ;;  %v10472_v44 = vmax.f32 %v7323_v11, 0.0 }
 0x55f   : > { %v2131_v18 = vsub.f32 %v2103_v35, %v2117_v19  ;;  %v2104_v55 = vmul.f32 0.00390625, %v2074_v6  ;;  %v8193_v38 = vadd.f32 %v2290_v10, %v10471_v0  ;;  %v10473_v19 = vmax.f32 %v7331_v29, 0.0 }
 0x560   : > { %v1993_v1 = vpop.xlane.xlu0 %1992  ;;  %v8201_v12 = vadd.f32 %v2292_v50, %v10472_v44  ;;  %v2164_v4 = vsub.f32 %v8023_v63, %v8159_v17  ;;  %v10327_v35 = vmax.f32 %v8187_v30, 0.0  ;;  %v2166_v10 = vsub.f32 %v8029_v60, %v8166_v27 }
 0x561   : > { %v2145_v22 = vmax.f32 %v2131_v18, 0.0  ;;  %v2132_v24 = vsub.f32 %v2104_v55, %v2118_v49  ;;  %v8189_v13 = vmul.f32 0.00390625, %v1993_v1  ;;  %v8205_v14 = vadd.f32 %v2291_v43, %v10473_v19 }
 0x562   : > { %v1996_v23 = vpop.xlane.xlu1 %1995  ;;  %v6421_v15 = vpop.eup %6420  ;;  %v10328_v36 = vmax.f32 %v8193_v38, 0.0  ;;  %v10325_v29 = vmax.f32 %v8201_v12, 0.0  ;;  %v2165_v55 = vsub.f32 %v8026_v59, %v8166_v27 }
 0x563   : > { %v2187_v37 = vadd.f32 1e-05, %v2145_v22  ;;  %v2146_v51 = vmax.f32 %v2132_v24, 0.0  ;;  %v8210_v9 = vmul.f32 0.00390625, %v1996_v23  ;;  %v2119_v5 = vmul.f32 %v8189_v13, %v8189_v13 }
 0x564   : > { %v2077_v11 = vpop.xlane.xlu0 %2076  ;;  %v6423_v49 = vpop.eup %6422  ;;  %v10326_v18 = vmax.f32 %v8205_v14, 0.0  ;;  %v2374_v50 = vpack.c.bf16 %v10325_v29, %v10328_v36  ;;  %v2216_v60 = vmul.f32 %v6421_v15, %v2160_v31  ;;  %v2215_v44 = vmul.f32 %v6421_v15, %v2159_v58  ;;  %v10478_v58 = vld [vmem:[#allocation20_spill] sm:$0xff] }
 0x565   : > { %6424 = vrsqrt.f32 %v2187_v37  ;;  %v2188_v6 = vadd.f32 1e-05, %v2146_v51  ;;  %v2105_v26 = vmul.f32 0.00390625, %v2077_v11  ;;  %v2120_v43 = vmul.f32 %v8210_v9, %v8210_v9 }
 0x566   : > { %v2080_v1 = vpop.xlane.xlu1 %2079  ;;  %v2373_v24 = vpack.c.bf16 %v10326_v18, %v10327_v35  ;;  %2625 = vmatprep.mubr.bf16.mxu1 %v2374_v50  ;;  %v2218_v23 = vmul.f32 %v6423_v49, %v2162_v54  ;;  %v2217_v19 = vmul.f32 %v6423_v49, %v2161_v16  ;;  %v2254_v31 = vmul.f32 %v8149_v56, %v2215_v44  ;;  %v10484_v35 = vld [vmem:[#allocation23_spill] sm:$0xff] }
 0x567   : > { %6426 = vrsqrt.f32 %v2188_v6  ;;  %v2133_v3 = vsub.f32 %v2105_v26, %v2119_v5  ;;  %v2106_v22 = vmul.f32 0.00390625, %v2080_v1  ;;  %v2168_v5 = vsub.f32 %v8047_v34, %v8189_v13 }
 0x568   : > { %v1999_v0 = vpop.xlane.xlu0 %1998  ;;  %2626 = vmatmul.mubr.bf16.vlgmr.msra.gmra.mrb[28].mxu1 %v2373_v24  ;;  %v2255_v26 = vmul.f32 %v8153_v2, %v2216_v60  ;;  %v2257_v1 = vmul.f32 %v8153_v2, %v2218_v23  ;;  %v2256_v15 = vmul.f32 %v8149_v56, %v2217_v19  ;;  %v2293_v60 = vadd.f32 %v8156_v53, %v2254_v31 }
 0x569   : > { %v2147_v51 = vmax.f32 %v2133_v3, 0.0  ;;  %v2134_v11 = vsub.f32 %v2106_v22, %v2120_v43  ;;  %v8233_v29 = vmul.f32 0.00390625, %v1999_v0  ;;  %v10479_v37 = vmax.f32 %v10478_v58, 0.0  ;;  %v10480_v58 = vld [vmem:[#allocation21_spill] sm:$0xff] }
 0x56a   : > { %v2002_v6 = vpop.xlane.xlu1 %2001  ;;  %v2294_v3 = vadd.f32 %v8164_v33, %v2255_v26  ;;  %v2296_v22 = vadd.f32 %v8164_v33, %v2257_v1  ;;  %v2295_v44 = vadd.f32 %v8156_v53, %v2256_v15  ;;  %v10485_v39 = vmax.f32 %v10484_v35, 0.0 }
 0x56b   : > { %v2189_v16 = vadd.f32 1e-05, %v2147_v51  ;;  %v2148_v54 = vmax.f32 %v2134_v11, 0.0  ;;  %v8243_v49 = vmul.f32 0.00390625, %v2002_v6  ;;  %v2121_v43 = vmul.f32 %v8233_v29, %v8233_v29  ;;  %v10474_v11 = vld [vmem:[#allocation18_spill] sm:$0xff] }
 0x56c   : > { %v2083_v50 = vpop.xlane.xlu0 %2082  ;;  %v10475_v6 = vmax.f32 %v10474_v11, 0.0  ;;  %v8269_v23 = vadd.f32 %v2293_v60, %v10479_v37  ;;  %v10481_v37 = vmax.f32 %v10480_v58, 0.0 }
 0x56d   : > { %6428 = vrsqrt.f32 %v2189_v16  ;;  %v2190_v24 = vadd.f32 1e-05, %v2148_v54  ;;  %v2107_v0 = vmul.f32 0.00390625, %v2083_v50  ;;  %v2122_v19 = vmul.f32 %v8243_v49, %v8243_v49  ;;  %v10476_v50 = vld [vmem:[#allocation19_spill] sm:$0xff] }
 0x56e   : > { %v2086_v51 = vpop.xlane.xlu1 %2085  ;;  %v8258_v26 = vadd.f32 %v2294_v3, %v10475_v6  ;;  %v10477_v31 = vmax.f32 %v10476_v50, 0.0  ;;  %v8282_v60 = vadd.f32 %v2295_v44, %v10481_v37  ;;  %v10332_v58 = vmax.f32 %v8269_v23, 0.0 }
 0x56f   : > { %v6425_v1 = vpop.eup %6424  ;;  %6430 = vrsqrt.f32 %v2190_v24  ;;  %v2135_v16 = vsub.f32 %v2107_v0, %v2121_v43  ;;  %v2108_v54 = vmul.f32 0.00390625, %v2086_v51 }
 0x570   : > { %v8262_v18 = vadd.f32 %v2296_v22, %v10477_v31  ;;  %v2005_v36 = vpop.xlane.xlu0 %2004  ;;  %v2220_v3 = vmul.f32 %v6425_v1, %v2164_v4  ;;  %v10330_v15 = vmax.f32 %v8258_v26, 0.0  ;;  %v10331_v44 = vmax.f32 %v8282_v60, 0.0 }
 0x571   : > { %v6427_v43 = vpop.eup %6426  ;;  %v2149_v24 = vmax.f32 %v2135_v16, 0.0  ;;  %v2136_v0 = vsub.f32 %v2108_v54, %v2122_v19  ;;  %v8274_v51 = vmul.f32 0.00390625, %v2005_v36 }
 0x572   : > { %v10329_v22 = vmax.f32 %v8262_v18, 0.0  ;;  %v2008_v6 = vpop.xlane.xlu1 %2007  ;;  %v2222_v50 = vmul.f32 %v6427_v43, %v2166_v10  ;;  %v2259_v36 = vmul.f32 %v8153_v2, %v2220_v3 }
 0x573   : > { %v2191_v4 = vadd.f32 1e-05, %v2149_v24  ;;  %v2150_v19 = vmax.f32 %v2136_v0, 0.0  ;;  %v8287_v16 = vmul.f32 0.00390625, %v2008_v6  ;;  %v2123_v37 = vmul.f32 %v8274_v51, %v8274_v51 }
 0x574   : > { %v2089_v54 = vpop.xlane.xlu0 %2088  ;;  %v2376_v31 = vpack.c.bf16 %v10329_v22, %v10330_v15  ;;  %v2261_v0 = vmul.f32 %v8153_v2, %v2222_v50 }
 0x575   : > { %v2192_v10 = vadd.f32 1e-05, %v2150_v19  ;;  %v2109_v24 = vmul.f32 0.00390625, %v2089_v54  ;;  %6432 = vrsqrt.f32 %v2191_v4  ;;  %v2375_v19 = vpack.c.bf16 %v10331_v44, %v10332_v58 }
 0x576   : > { %v2092_v11 = vpop.xlane.xlu1 %2091  ;;  %2635 = vmatprep.mubr.bf16.mxu1 %v2376_v31  ;;  %v2124_v54 = vmul.f32 %v8287_v16, %v8287_v16  ;;  %v2298_v4 = vadd.f32 %v8164_v33, %v2259_v36  ;;  %v2300_v6 = vadd.f32 %v8164_v33, %v2261_v0  ;;  %v2219_v31 = vmul.f32 %v6425_v1, %v2163_v46 }
 0x577   : > { %v6429_v22 = vpop.eup %6428  ;;  %v2137_v15 = vsub.f32 %v2109_v24, %v2123_v37  ;;  %v2110_v50 = vmul.f32 0.00390625, %v2092_v11  ;;  %6434 = vrsqrt.f32 %v2192_v10  ;;  %2636 = vmatmul.mubr.bf16.gmra.mrb[32].mxu1 %v2375_v19  ;;  %v2221_v44 = vmul.f32 %v6427_v43, %v2165_v55  ;;  %v10482_v11 = vld [vmem:[#allocation22_spill] sm:$0xff] }
 0x578   : > { %v2011_v3 = vpop.xlane.xlu0 %2010  ;;  %v10483_v36 = vmax.f32 %v10482_v11, 0.0  ;;  %v2177_v0 = vsub.f32 %v8098_v48, %v8287_v16  ;;  %v8326_v17 = vadd.f32 %v2300_v6, %v10485_v39  ;;  %v2258_v59 = vmul.f32 %v8149_v56, %v2219_v31 }
 0x579   : > { %v6431_v37 = vpop.eup %6430  ;;  %v2151_v24 = vmax.f32 %v2137_v15, 0.0  ;;  %v2138_v58 = vsub.f32 %v2110_v50, %v2124_v54  ;;  %v8316_v63 = vmul.f32 0.00390625, %v2011_v3  ;;  %v2224_v27 = vmul.f32 %v6429_v22, %v2168_v5 }
 0x57a   : > { %v8320_v10 = vadd.f32 %v2298_v4, %v10483_v36  ;;  %v2014_v19 = vpop.xlane.xlu1 %2013  ;;  %v2260_v1 = vmul.f32 %v8149_v56, %v2221_v44  ;;  %v10486_v43 = vsub.f32 %v8055_v41, %v8210_v9  ;;  %v10333_v50 = vmax.f32 %v8326_v17, 0.0 }
 0x57b   : > { %v2193_v46 = vadd.f32 1e-05, %v2151_v24  ;;  %v2152_v55 = vmax.f32 %v2138_v58, 0.0  ;;  %v8336_v3 = vmul.f32 0.00390625, %v2014_v19  ;;  %v2125_v35 = vmul.f32 %v8316_v63, %v8316_v63 }
 0x57c   : > { %v2226_v15 = vmul.f32 %v6431_v37, %v10486_v43  ;;  %v2095_v6 = vpop.xlane.xlu0 %2094  ;;  %v10352_v54 = vmax.f32 %v8320_v10, 0.0  ;;  %v2297_v58 = vadd.f32 %v8156_v53, %v2258_v59  ;;  %v2178_v44 = vsub.f32 %v8103_v61, %v8287_v16  ;;  %v10487_v61 = vld [vmem:[#allocation24_spill] sm:$0xff] }
 0x57d   : > { %6436 = vrsqrt.f32 %v2193_v46  ;;  %v2194_v34 = vadd.f32 1e-05, %v2152_v55  ;;  %v2111_v5 = vmul.f32 0.00390625, %v2095_v6  ;;  %v2126_v4 = vmul.f32 %v8336_v3, %v8336_v3 }
 0x57e   : > { %v2098_v31 = vpop.xlane.xlu1 %2097  ;;  %v2378_v24 = vpack.c.bf16 %v10333_v50, %v10352_v54  ;;  %v2299_v19 = vadd.f32 %v8156_v53, %v2260_v1  ;;  %v10488_v59 = vmax.f32 %v10487_v61, 0.0  ;;  %v2263_v55 = vmul.f32 %v8153_v2, %v2224_v27 }
 0x57f   : > { %6438 = vrsqrt.f32 %v2194_v34  ;;  %v2139_v11 = vsub.f32 %v2111_v5, %v2125_v35  ;;  %v2112_v36 = vmul.f32 0.00390625, %v2098_v31  ;;  %v6433_v39 = vpop.eup %6432  ;;  %v2265_v43 = vmul.f32 %v8153_v2, %v2226_v15  ;;  %v10490_v35 = vld [vmem:[#allocation25_spill] sm:$0xff] }
 0x580   : > { %2645 = vmatprep.mubr.bf16.mxu1 %v2378_v24  ;;  %v8356_v46 = vadd.f32 %v2297_v58, %v10488_v59  ;;  %v10489_v6 = vsub.f32 %v8044_v57, %v8189_v13  ;;  %v10491_v5 = vmax.f32 %v10490_v35, 0.0  ;;  %v10493_v1 = vsub.f32 %v8050_v21, %v8210_v9  ;;  %v10497_v21 = vld [vmem:[#allocation27_spill] sm:$0xff] }
 0x581   : > { %v2153_v50 = vmax.f32 %v2139_v11, 0.0  ;;  %v2140_v34 = vsub.f32 %v2112_v36, %v2126_v4  ;;  %v6435_v58 = vpop.eup %6434  ;;  %v2302_v27 = vadd.f32 %v8164_v33, %v2263_v55  ;;  %v2304_v15 = vadd.f32 %v8164_v33, %v2265_v43  ;;  %v10494_v36 = vld [vmem:[#allocation26_spill] sm:$0xff] }
 0x582   : > { %v2223_v41 = vmul.f32 %v6429_v22, %v10489_v6  ;;  %v8365_v31 = vadd.f32 %v2299_v19, %v10491_v5  ;;  %v2225_v24 = vmul.f32 %v6431_v37, %v10493_v1  ;;  %v10351_v61 = vmax.f32 %v8356_v46, 0.0  ;;  %v10501_v1 = vld [vmem:[#allocation28_spill] sm:$0xff] }
 0x583   : > { %v2195_v13 = vadd.f32 1e-05, %v2153_v50  ;;  %v2154_v22 = vmax.f32 %v2140_v34, 0.0  ;;  %v10495_v19 = vmax.f32 %v10494_v36, 0.0  ;;  %v10498_v9 = vmax.f32 %v10497_v21, 0.0 }
 0x584   : > { %10492 = vst [vmem:[#allocation18_spill] sm:$0xff] %v8365_v31  ;;  %v2262_v57 = vmul.f32 %v8149_v56, %v2223_v41  ;;  %v10350_v4 = vmax.f32 %v8365_v31, 0.0  ;;  %v2264_v11 = vmul.f32 %v8149_v56, %v2225_v24  ;;  %v10500_v43 = vsub.f32 %v8071_v45, %v8233_v29 }
 0x585   : > { %v8378_v59 = vadd.f32 %v2302_v27, %v10495_v19  ;;  %v8382_v37 = vadd.f32 %v2304_v15, %v10498_v9  ;;  %6440 = vrsqrt.f32 %v2195_v13  ;;  %v2196_v50 = vadd.f32 1e-05, %v2154_v22  ;;  %v10505_v13 = vld [vmem:[#allocation29_spill] sm:$0xff] }
 0x586   : > { %v2301_v55 = vadd.f32 %v8156_v53, %v2262_v57  ;;  %v2228_v41 = vmul.f32 %v6433_v39, %v10500_v43  ;;  %v2377_v6 = vpack.c.bf16 %v10350_v4, %v10351_v61  ;;  %v2303_v34 = vadd.f32 %v8156_v53, %v2264_v11  ;;  %v6230_v4 = vld [vmem:[#allocation7 + $0x3a0] ss:$8 sps:$4 sm:$0xff]  }
 0x587   : > { %10496 = vst [vmem:[#allocation19_spill] sm:$0xff] %v8378_v59  ;;  %10499 = vst [vmem:[#allocation20_spill] sm:$0xff] %v8382_v37  ;;  %v10349_v35 = vmax.f32 %v8378_v59, 0.0  ;;  %v10348_v5 = vmax.f32 %v8382_v37, 0.0  ;;  %v10502_v24 = vmax.f32 %v10501_v1, 0.0  ;;  %v10504_v45 = vsub.f32 %v8079_v52, %v8243_v49  ;;  %v6437_v57 = vpop.eup %6436 }
 0x588   : > { %6442 = vrsqrt.f32 %v2196_v50  ;;  %2646 = vmatmul.mubr.bf16.gmra.mrb[36].mxu1 %v2377_v6  ;;  %v10506_v22 = vmax.f32 %v10505_v13, 0.0  ;;  %v2267_v11 = vmul.f32 %v8153_v2, %v2228_v41  ;;  %v10508_v19 = vsub.f32 %v8068_v32, %v8233_v29 }
 0x589   : > { %v8397_v27 = vadd.f32 %v2301_v55, %v10502_v24  ;;  %v2230_v15 = vmul.f32 %v6435_v58, %v10504_v45  ;;  %v2380_v9 = vpack.c.bf16 %v10348_v5, %v10349_v35  ;;  %v10509_v43 = vsub.f32 %v8074_v8, %v8243_v49  ;;  %v6439_v6 = vpop.eup %6438 }
 0x58a   : > { %v8404_v36 = vadd.f32 %v2303_v34, %v10506_v22  ;;  %v2227_v21 = vmul.f32 %v6433_v39, %v10508_v19  ;;  %v2306_v34 = vadd.f32 %v8164_v33, %v2267_v11  ;;  %v10510_v29 = vsub.f32 %v8095_v62, %v8274_v51  ;;  %v10515_v19 = vld [vmem:[#allocation31_spill] sm:$0xff] }
 0x58b   : > { %10503 = vst [vmem:[#allocation21_spill] sm:$0xff] %v8397_v27  ;;  %v10347_v52 = vmax.f32 %v8397_v27, 0.0  ;;  %v2269_v55 = vmul.f32 %v8153_v2, %v2230_v15  ;;  %v2229_v50 = vmul.f32 %v6435_v58, %v10509_v43  ;;  %2655 = vmatprep.mubr.bf16.mxu1 %v2380_v9  ;;  %v2234_v45 = vmul.f32 %v6439_v6, %v2178_v44  ;;  %v10512_v15 = vld [vmem:[#allocation30_spill] sm:$0xff] }
 0x58c   : > { %10507 = vst [vmem:[#allocation22_spill] sm:$0xff] %v8404_v36  ;;  %v10346_v41 = vmax.f32 %v8404_v36, 0.0  ;;  %v2266_v32 = vmul.f32 %v8149_v56, %v2227_v21  ;;  %v2232_v39 = vmul.f32 %v6437_v57, %v10510_v29  ;;  %v10511_v8 = vsub.f32 %v8092_v28, %v8274_v51 }
 0x58d   : > { %v2308_v1 = vadd.f32 %v8164_v33, %v2269_v55  ;;  %v2268_v24 = vmul.f32 %v8149_v56, %v2229_v50  ;;  %v10513_v13 = vmax.f32 %v10512_v15, 0.0  ;;  %v10516_v21 = vmax.f32 %v10515_v19, 0.0  ;;  %v10518_v55 = vld [vmem:[#allocation32_spill] sm:$0xff]  ;;  %v10527_v19 = vld [vmem:[#allocation35_spill] sm:$0xff] }
 0x58e   : > { %v2231_v49 = vmul.f32 %v6437_v57, %v10511_v8  ;;  %v2379_v58 = vpack.c.bf16 %v10346_v41, %v10347_v52  ;;  %v2305_v62 = vadd.f32 %v8156_v53, %v2266_v32  ;;  %v2271_v11 = vmul.f32 %v8153_v2, %v2232_v39  ;;  %v10521_v39 = vld [vmem:[#allocation33_spill] sm:$0xff] }
 0x58f   : > { %v8436_v22 = vadd.f32 %v2306_v34, %v10513_v13  ;;  %v8442_v44 = vadd.f32 %v2308_v1, %v10516_v21  ;;  %v2307_v28 = vadd.f32 %v8156_v53, %v2268_v24  ;;  %v2273_v51 = vmul.f32 %v8153_v2, %v2234_v45  ;;  %v6441_v16 = vpop.eup %6440 }
 0x590   : > { %v2233_v57 = vmul.f32 %v6439_v6, %v2177_v0  ;;  %v10519_v43 = vmax.f32 %v10518_v55, 0.0  ;;  %v2310_v34 = vadd.f32 %v8164_v33, %v2271_v11  ;;  %v2270_v32 = vmul.f32 %v8149_v56, %v2231_v49  ;;  %2656 = vmatmul.mubr.bf16.gmra.mrb[40].mxu1 %v2379_v58  ;;  %v10524_v49 = vld [vmem:[#allocation34_spill] sm:$0xff] }
 0x591   : > { %10514 = vst [vmem:[#allocation23_spill] sm:$0xff] %v8436_v22  ;;  %10517 = vst [vmem:[#allocation24_spill] sm:$0xff] %v8442_v44  ;;  %v10345_v9 = vmax.f32 %v8436_v22, 0.0  ;;  %v10344_v29 = vmax.f32 %v8442_v44, 0.0  ;;  %v10522_v1 = vmax.f32 %v10521_v39, 0.0  ;;  %v2312_v45 = vadd.f32 %v8164_v33, %v2273_v51 }
 0x592   : > { %v8452_v50 = vadd.f32 %v2305_v62, %v10519_v43  ;;  %v2272_v48 = vmul.f32 %v8149_v56, %v2233_v57  ;;  %v2180_v0 = vsub.f32 %v8119_v47, %v8316_v63  ;;  %v2181_v6 = vsub.f32 %v8122_v25, %v8336_v3 }
 0x593   : > { %v8459_v24 = vadd.f32 %v2307_v28, %v10522_v1  ;;  %v2182_v8 = vsub.f32 %v8127_v20, %v8336_v3  ;;  %v10525_v15 = vmax.f32 %v10524_v49, 0.0  ;;  %v2382_v62 = vpack.c.bf16 %v10344_v29, %v10345_v9  ;;  %v6443_v28 = vpop.eup %6442  ;;  %v10531_v1 = vld [vmem:[#allocation36_spill] sm:$0xff] }
 0x594   : > { %10520 = vst [vmem:[#allocation25_spill] sm:$0xff] %v8452_v50  ;;  %v10528_v47 = vmax.f32 %v10527_v19, 0.0  ;;  %v2311_v25 = vadd.f32 %v8156_v53, %v2272_v48  ;;  %v10343_v20 = vmax.f32 %v8452_v50, 0.0  ;;  %v2309_v3 = vadd.f32 %v8156_v53, %v2270_v32 }
 0x595   : > { %10523 = vst [vmem:[#allocation26_spill] sm:$0xff] %v8459_v24  ;;  %v8471_v13 = vadd.f32 %v2310_v34, %v10525_v15  ;;  %v10342_v11 = vmax.f32 %v8459_v24, 0.0  ;;  %v2236_v58 = vmul.f32 %v6441_v16, %v2180_v0  ;;  %v10530_v51 = vsub.f32 %v8116_v7, %v8316_v63  ;;  %2665 = vmatprep.mubr.bf16.mxu1 %v2382_v62 }
 0x596   : > { %v8480_v21 = vadd.f32 %v2312_v45, %v10528_v47  ;;  %v2238_v34 = vmul.f32 %v6443_v28, %v2182_v8  ;;  %v10532_v45 = vmax.f32 %v10531_v1, 0.0  ;;  %v2237_v0 = vmul.f32 %v6443_v28, %v2181_v6 }
 0x597   : > { %10526 = vst [vmem:[#allocation27_spill] sm:$0xff] %v8471_v13  ;;  %v2235_v57 = vmul.f32 %v6441_v16, %v10530_v51  ;;  %v10341_v55 = vmax.f32 %v8471_v13, 0.0  ;;  %v2381_v39 = vpack.c.bf16 %v10342_v11, %v10343_v20  ;;  %v2275_v32 = vmul.f32 %v8153_v2, %v2236_v58  ;;  %v10534_v16 = vld [vmem:[#allocation37_spill] sm:$0xff] }
 0x598   : > { %10529 = vst [vmem:[#allocation28_spill] sm:$0xff] %v8480_v21  ;;  %v10340_v43 = vmax.f32 %v8480_v21, 0.0  ;;  %v8496_v48 = vadd.f32 %v2311_v25, %v10532_v45  ;;  %v2277_v63 = vmul.f32 %v8153_v2, %v2238_v34  ;;  %v10535_v8 = vmax.f32 %v10534_v16, 0.0  ;;  %v10537_v25 = vld [vmem:[#allocation38_spill] sm:$0xff]  ;;  %v10543_v45 = vld [vmem:[#allocation40_spill] sm:$0xff] }
 0x599   : > { %v2314_v15 = vadd.f32 %v8164_v33, %v2275_v32  ;;  %v2274_v62 = vmul.f32 %v8149_v56, %v2235_v57  ;;  %v2276_v19 = vmul.f32 %v8149_v56, %v2237_v0  ;;  %2666 = vmatmul.mubr.bf16.gmra.mrb[44].mxu1 %v2381_v39  ;;  %v10538_v28 = vmax.f32 %v10537_v25, 0.0  ;;  %v6205_v25 = vld [vmem:[#allocation7 + $0x314] ss:$8 sps:$4 sm:$0xff]  }
 0x59a   : > { %10533 = vst [vmem:[#allocation29_spill] sm:$0xff] %v8496_v48  ;;  %v2384_v7 = vpack.c.bf16 %v10340_v43, %v10341_v55  ;;  %v8506_v49 = vadd.f32 %v2309_v3, %v10535_v8  ;;  %v2316_v47 = vadd.f32 %v8164_v33, %v2277_v63  ;;  %v10338_v6 = vmax.f32 %v8496_v48, 0.0  ;;  %v10540_v3 = vld [vmem:[#allocation39_spill] sm:$0xff]  ;;  %v10546_v63 = vld [vmem:[#allocation41_spill] sm:$0xff] }
 0x59b   : > { %v8515_v58 = vadd.f32 %v2314_v15, %v10538_v28  ;;  %v2315_v2 = vadd.f32 %v8156_v53, %v2276_v19  ;;  %v10541_v51 = vmax.f32 %v10540_v3, 0.0  ;;  %v2313_v56 = vadd.f32 %v8156_v53, %v2274_v62  ;;  %v6200_v19 = vld [vmem:[#allocation7 + $0x300] ss:$8 sps:$4 sm:$0xff]   ;;  %v6203_v28 = vld [vmem:[#allocation7 + $0x310] ss:$8 sps:$4 sm:$0xff]  }
 0x59c   : > { %10536 = vst [vmem:[#allocation30_spill] sm:$0xff] %v8506_v49  ;;  %2675 = vmatprep.mubr.bf16.mxu1 %v2384_v7  ;;  %v10339_v57 = vmax.f32 %v8506_v49, 0.0  ;;  %v10544_v32 = vmax.f32 %v10543_v45, 0.0  ;;  %v10547_v53 = vmax.f32 %v10546_v63, 0.0  ;;  %v6206_v3 = vld [vmem:[#allocation7 + $0x320] ss:$8 sps:$4 sm:$0xff]  }
 0x59d   : > { %10539 = vst [vmem:[#allocation31_spill] sm:$0xff] %v8515_v58  ;;  %v8520_v34 = vadd.f32 %v2316_v47, %v10541_v51  ;;  %v10337_v33 = vmax.f32 %v8515_v58, 0.0  ;;  %v6202_v47 = vld [vmem:[#allocation7 + $0x304] ss:$8 sps:$4 sm:$0xff]   ;;  %v6211_v51 = vld [vmem:[#allocation7 + $0x334] ss:$8 sps:$4 sm:$0xff]  }
 0x59e   : > { %v2383_v1 = vpack.c.bf16 %v10338_v6, %v10339_v57  ;;  %v8532_v0 = vadd.f32 %v2315_v2, %v10544_v32  ;;  %v8540_v16 = vadd.f32 %v2313_v56, %v10547_v53  ;;  %3292 = vmatprep.subr.bf16.mxu0 %v6202_v47  ;;  %v6208_v2 = vld [vmem:[#allocation7 + $0x324] ss:$8 sps:$4 sm:$0xff]   ;;  %v6209_v56 = vld [vmem:[#allocation7 + $0x330] ss:$8 sps:$4 sm:$0xff]   ;;  %v6212_v45 = vld [vmem:[#allocation7 + $0x340] ss:$8 sps:$4 sm:$0xff]  }
 0x59f   : > { %10542 = vst [vmem:[#allocation32_spill] sm:$0xff] %v8520_v34  ;;  %v10336_v39 = vmax.f32 %v8520_v34, 0.0  ;;  %3293 = vmatpush1.bf16.msra.mxu0 %v6200_v19  ;;  %v6217_v32 = vld [vmem:[#allocation7 + $0x354] ss:$8 sps:$4 sm:$0xff]   ;;  %v6220_v63 = vld [vmem:[#allocation7 + $0x364] ss:$8 sps:$4 sm:$0xff]  }
 0x5a0   : > { %10545 = vst [vmem:[#allocation33_spill] sm:$0xff] %v8532_v0  ;;  %10548 = vst [vmem:[#allocation34_spill] sm:$0xff] %v8540_v16  ;;  %v10335_v8 = vmax.f32 %v8532_v0, 0.0  ;;  %v10334_v15 = vmax.f32 %v8540_v16, 0.0  ;;  %3294 = vmatprep.subr.bf16.mxu0 %v6205_v25  ;;  %v6218_v53 = vld [vmem:[#allocation7 + $0x360] ss:$8 sps:$4 sm:$0xff]  }
 0x5a1   : > { %v2386_v7 = vpack.c.bf16 %v10336_v39, %v10337_v33  ;;  %2676 = vmatmul.mubr.bf16.gmra.mrb[48].mxu1 %v2383_v1  ;;  %v6214_v1 = vld [vmem:[#allocation7 + $0x344] ss:$8 sps:$4 sm:$0xff]   ;;  %v6236_v0 = vld [vmem:[#allocation7 + $0x3c0] ss:$8 sps:$4 sm:$0xff]  }
 0x5a2   : > { %v2385_v62 = vpack.c.bf16 %v10335_v8, %v10334_v15  ;;  %v6242_v49 = vld [vmem:[#allocation7 + $0x3e0] ss:$8 sps:$4 sm:$0xff]  }
 0x5a3   : > { %2685 = vmatprep.mubr.bf16.mxu1 %v2386_v7  ;;  %3295 = vmatpush1.bf16.msra.mxu0 %v6203_v28  ;;  %v6215_v7 = vld [vmem:[#allocation7 + $0x350] ss:$8 sps:$4 sm:$0xff]  }
 0x5a4   : > { %3296 = vmatprep.subr.bf16.mxu0 %v6208_v2 }
 0x5a7   : > { %3297 = vmatpush1.bf16.msra.mxu0 %v6206_v3 }
 0x5a8   : > { %3298 = vmatprep.subr.bf16.mxu0 %v6211_v51 }
 0x5a9   : > { %2686 = vmatmul.mubr.bf16.gmra.mrb[52].mxu1 %v2385_v62  ;;  %v2421_v62 = vld [vmem:[#allocation10 + $0x12] ss:$8 sm:$0x3] }
 0x5aa   : > { %v8549_v19 = vrot.slane %v2421_v62, %v7071_v40  ;;  %v8552_v47 = vrot.slane %v2421_v62, %v7073_v42 }
 0x5ab   : > { %3299 = vmatpush1.bf16.msra.mxu0 %v6209_v56 }
 0x5ac   : > { %3300 = vmatprep.subr.bf16.mxu0 %v6214_v1 }
 0x5af   : > { %3301 = vmatpush1.bf16.msra.mxu0 %v6212_v45 }
 0x5b0   : > { %3302 = vmatprep.subr.bf16.mxu0 %v6217_v32 }
 0x5b3   : > { %3303 = vmatpush1.bf16.msra.mxu0 %v6215_v7 }
 0x5b4   : > { %3304 = vmatprep.subr.bf16.mxu0 %v6220_v63 }
 0x5b7   : > { %3305 = vmatpush1.bf16.msra.mxu0 %v6218_v53 }
 0x63b   : > { %v2627_v25 = vpop.f32.mrb[28].mxu1 }
 0x63c   : > { %v8555_v28 = vadd.f32 %v2627_v25, %v8549_v19  ;;  %v2629_v2 = vpop.f32.mrb[29].mxu1 }
 0x63d   : > { %v8558_v3 = vadd.f32 %v2629_v2, %v8552_v47  ;;  %v2631_v51 = vpop.f32.mrb[30].mxu1 }
 0x63e   : > { %v8561_v56 = vadd.f32 %v2631_v51, %v8549_v19  ;;  %v2633_v1 = vpop.f32.mrb[31].mxu1  ;;  %v2756_v7 = vmul.f32 %v8555_v28, %v8555_v28 }
 0x63f   : > { %v8564_v45 = vadd.f32 %v2633_v1, %v8552_v47  ;;  %v2700_v32 = vadd.f32 %v8558_v3, %v8555_v28  ;;  %v2757_v63 = vmul.f32 %v8558_v3, %v8558_v3 }
 0x640   : > { %v2758_v62 = vmul.f32 %v8561_v56, %v8561_v56 }
 0x641   : > { %2701 = vadd.xlane.f32.xlu0 %v2700_v32  ;;  %v2703_v53 = vadd.f32 %v8564_v45, %v8561_v56  ;;  %v2759_v25 = vmul.f32 %v8564_v45, %v8564_v45  ;;  %v2784_v2 = vadd.f32 %v2757_v63, %v2756_v7 }
 0x643   : > { %2704 = vadd.xlane.f32.xlu1 %v2703_v53  ;;  %v2787_v51 = vadd.f32 %v2759_v25, %v2758_v62  ;;  %v6221_v62 = vld [vmem:[#allocation7 + $0x370] ss:$8 sps:$4 sm:$0xff]   ;;  %v6223_v25 = vld [vmem:[#allocation7 + $0x374] ss:$8 sps:$4 sm:$0xff]  }
 0x644   : > { %3306 = vmatprep.subr.bf16.mxu0 %v6223_v25  ;;  %v6226_v25 = vld [vmem:[#allocation7 + $0x384] ss:$8 sps:$4 sm:$0xff]  }
 0x645   : > { %2785 = vadd.xlane.f32.xlu0 %v2784_v2  ;;  %3307 = vmatpush1.bf16.msra.mxu0 %v6221_v62 }
 0x646   : > { %3308 = vmatprep.subr.bf16.mxu0 %v6226_v25 }
 0x647   : > { %2788 = vadd.xlane.f32.xlu1 %v2787_v51 }
 0x64a   : > { %v2637_v1 = vpop.f32.mrb[32].mxu1 }
 0x64b   : > { %v8579_v15 = vadd.f32 %v2637_v1, %v8549_v19  ;;  %v2639_v8 = vpop.f32.mrb[33].mxu1 }
 0x64c   : > { %v8582_v32 = vadd.f32 %v2639_v8, %v8552_v47  ;;  %v2641_v39 = vpop.f32.mrb[34].mxu1 }
 0x64d   : > { %v8585_v33 = vadd.f32 %v2641_v39, %v8549_v19  ;;  %v2643_v6 = vpop.f32.mrb[35].mxu1  ;;  %v2760_v63 = vmul.f32 %v8579_v15, %v8579_v15 }
 0x64e   : > { %v8588_v57 = vadd.f32 %v2643_v6, %v8552_v47  ;;  %v2706_v7 = vadd.f32 %v8582_v32, %v8579_v15  ;;  %v2761_v53 = vmul.f32 %v8582_v32, %v8582_v32 }
 0x64f   : > { %v2762_v39 = vmul.f32 %v8585_v33, %v8585_v33 }
 0x650   : > { %2707 = vadd.xlane.f32.xlu0 %v2706_v7  ;;  %v2709_v8 = vadd.f32 %v8588_v57, %v8585_v33  ;;  %v2763_v6 = vmul.f32 %v8588_v57, %v8588_v57  ;;  %v2790_v2 = vadd.f32 %v2761_v53, %v2760_v63 }
 0x652   : > { %2710 = vadd.xlane.f32.xlu1 %v2709_v8  ;;  %v2793_v51 = vadd.f32 %v2763_v6, %v2762_v39 }
 0x654   : > { %2791 = vadd.xlane.f32.xlu0 %v2790_v2 }
 0x656   : > { %2794 = vadd.xlane.f32.xlu1 %v2793_v51 }
 0x65b   : > { %v2647_v1 = vpop.f32.mrb[36].mxu1 }
 0x65c   : > { %v8603_v7 = vadd.f32 %v2647_v1, %v8549_v19  ;;  %v2649_v43 = vpop.f32.mrb[37].mxu1  ;;  %v6224_v1 = vld [vmem:[#allocation7 + $0x380] ss:$8 sps:$4 sm:$0xff]  }
 0x65d   : > { %v8606_v55 = vadd.f32 %v2649_v43, %v8552_v47  ;;  %v2651_v11 = vpop.f32.mrb[38].mxu1  ;;  %3309 = vmatpush1.bf16.msra.mxu0 %v6224_v1 }
 0x65e   : > { %v8609_v20 = vadd.f32 %v2651_v11, %v8549_v19  ;;  %v2653_v29 = vpop.f32.mrb[39].mxu1  ;;  %v2764_v8 = vmul.f32 %v8603_v7, %v8603_v7 }
 0x65f   : > { %v8612_v63 = vadd.f32 %v2653_v29, %v8552_v47  ;;  %v2712_v53 = vadd.f32 %v8606_v55, %v8603_v7  ;;  %v2765_v39 = vmul.f32 %v8606_v55, %v8606_v55 }
 0x660   : > { %v2766_v11 = vmul.f32 %v8609_v20, %v8609_v20 }
 0x661   : > { %2713 = vadd.xlane.f32.xlu0 %v2712_v53  ;;  %v2715_v43 = vadd.f32 %v8612_v63, %v8609_v20  ;;  %v2767_v29 = vmul.f32 %v8612_v63, %v8612_v63  ;;  %v2796_v62 = vadd.f32 %v2765_v39, %v2764_v8 }
 0x663   : > { %2716 = vadd.xlane.f32.xlu1 %v2715_v43  ;;  %v2657_v6 = vpop.f32.mrb[40].mxu1  ;;  %v2799_v41 = vadd.f32 %v2767_v29, %v2766_v11  ;;  %v6229_v11 = vld [vmem:[#allocation7 + $0x394] ss:$8 sps:$4 sm:$0xff]   ;;  %v6227_v29 = vld [vmem:[#allocation7 + $0x390] ss:$8 sps:$4 sm:$0xff]  }
 0x664   : > { %v8627_v2 = vadd.f32 %v2657_v6, %v8549_v19  ;;  %v2659_v51 = vpop.f32.mrb[41].mxu1  ;;  %3310 = vmatprep.subr.bf16.mxu0 %v6229_v11 }
 0x665   : > { %v8630_v53 = vadd.f32 %v2659_v51, %v8552_v47  ;;  %2797 = vadd.xlane.f32.xlu0 %v2796_v62  ;;  %v2661_v9 = vpop.f32.mrb[42].mxu1  ;;  %3311 = vmatpush1.bf16.msra.mxu0 %v6227_v29  ;;  %v6232_v51 = vld [vmem:[#allocation7 + $0x3a4] ss:$8 sps:$4 sm:$0xff]  }
 0x666   : > { %v8633_v52 = vadd.f32 %v2661_v9, %v8549_v19  ;;  %v2663_v5 = vpop.f32.mrb[43].mxu1  ;;  %v2768_v8 = vmul.f32 %v8627_v2, %v8627_v2  ;;  %3312 = vmatprep.subr.bf16.mxu0 %v6232_v51  ;;  %v6238_v51 = vld [vmem:[#allocation7 + $0x3c4] ss:$8 sps:$4 sm:$0xff]  }
 0x667   : > { %v2769_v39 = vmul.f32 %v8630_v53, %v8630_v53  ;;  %v8640_v43 = vadd.f32 %v2663_v5, %v8552_v47  ;;  %2800 = vadd.xlane.f32.xlu1 %v2799_v41  ;;  %v2718_v6 = vadd.f32 %v8630_v53, %v8627_v2 }
 0x668   : > { %v2770_v9 = vmul.f32 %v8633_v52, %v8633_v52 }
 0x669   : > { %v2771_v62 = vmul.f32 %v8640_v43, %v8640_v43  ;;  %2719 = vadd.xlane.f32.xlu0 %v2718_v6  ;;  %v2721_v25 = vadd.f32 %v8640_v43, %v8633_v52  ;;  %v2802_v41 = vadd.f32 %v2769_v39, %v2768_v8  ;;  %3313 = vmatpush1.bf16.msra.mxu0 %v6230_v4 }
 0x66b   : > { %2722 = vadd.xlane.f32.xlu1 %v2721_v25  ;;  %v2805_v6 = vadd.f32 %v2771_v62, %v2770_v9  ;;  %v6235_v9 = vld [vmem:[#allocation7 + $0x3b4] ss:$8 sps:$4 sm:$0xff]   ;;  %v6233_v62 = vld [vmem:[#allocation7 + $0x3b0] ss:$8 sps:$4 sm:$0xff]  }
 0x66c   : > { %v2667_v5 = vpop.f32.mrb[44].mxu1  ;;  %3314 = vmatprep.subr.bf16.mxu0 %v6235_v9 }
 0x66d   : > { %v8651_v1 = vadd.f32 %v2667_v5, %v8549_v19  ;;  %v2669_v35 = vpop.f32.mrb[45].mxu1  ;;  %2803 = vadd.xlane.f32.xlu0 %v2802_v41  ;;  %3315 = vmatpush1.bf16.msra.mxu0 %v6233_v62 }
 0x66e   : > { %v8654_v61 = vadd.f32 %v2669_v35, %v8552_v47  ;;  %v2671_v54 = vpop.f32.mrb[46].mxu1  ;;  %3316 = vmatprep.subr.bf16.mxu0 %v6238_v51 }
 0x66f   : > { %v8657_v16 = vadd.f32 %v2671_v54, %v8549_v19  ;;  %v2673_v11 = vpop.f32.mrb[47].mxu1  ;;  %v2772_v8 = vmul.f32 %v8651_v1, %v8651_v1  ;;  %2806 = vadd.xlane.f32.xlu1 %v2805_v6 }
 0x670   : > { %v2773_v39 = vmul.f32 %v8654_v61, %v8654_v61  ;;  %v8664_v29 = vadd.f32 %v2673_v11, %v8552_v47  ;;  %v2724_v35 = vadd.f32 %v8654_v61, %v8651_v1 }
 0x671   : > { %v2774_v54 = vmul.f32 %v8657_v16, %v8657_v16  ;;  %3317 = vmatpush1.bf16.msra.mxu0 %v6236_v0 }
 0x672   : > { %v2775_v4 = vmul.f32 %v8664_v29, %v8664_v29  ;;  %2725 = vadd.xlane.f32.xlu0 %v2724_v35  ;;  %v2727_v25 = vadd.f32 %v8664_v29, %v8657_v16  ;;  %v2808_v41 = vadd.f32 %v2773_v39, %v2772_v8 }
 0x674   : > { %2728 = vadd.xlane.f32.xlu1 %v2727_v25  ;;  %v2677_v5 = vpop.f32.mrb[48].mxu1  ;;  %v2811_v35 = vadd.f32 %v2775_v4, %v2774_v54  ;;  %v6241_v54 = vld [vmem:[#allocation7 + $0x3d4] ss:$8 sps:$4 sm:$0xff]   ;;  %v6239_v4 = vld [vmem:[#allocation7 + $0x3d0] ss:$8 sps:$4 sm:$0xff]  }
 0x675   : > { %v8675_v6 = vadd.f32 %v2677_v5, %v8549_v19  ;;  %v2679_v11 = vpop.f32.mrb[49].mxu1  ;;  %3318 = vmatprep.subr.bf16.mxu0 %v6241_v54 }
 0x676   : > { %v8678_v34 = vadd.f32 %v2679_v11, %v8552_v47  ;;  %2809 = vadd.xlane.f32.xlu0 %v2808_v41  ;;  %v2681_v58 = vpop.f32.mrb[50].mxu1  ;;  %3319 = vmatpush1.bf16.msra.mxu0 %v6239_v4  ;;  %v6244_v11 = vld [vmem:[#allocation7 + $0x3e4] ss:$8 sps:$4 sm:$0xff]  }
 0x677   : > { %v8681_v48 = vadd.f32 %v2681_v58, %v8549_v19  ;;  %v2683_v9 = vpop.f32.mrb[51].mxu1  ;;  %v2776_v8 = vmul.f32 %v8675_v6, %v8675_v6  ;;  %3320 = vmatprep.subr.bf16.mxu0 %v6244_v11 }
 0x678   : > { %v2777_v39 = vmul.f32 %v8678_v34, %v8678_v34  ;;  %v8688_v62 = vadd.f32 %v2683_v9, %v8552_v47  ;;  %2812 = vadd.xlane.f32.xlu1 %v2811_v35  ;;  %v2730_v25 = vadd.f32 %v8678_v34, %v8675_v6 }
 0x679   : > { %v2778_v58 = vmul.f32 %v8681_v48, %v8681_v48 }
 0x67a   : > { %v2779_v0 = vmul.f32 %v8688_v62, %v8688_v62  ;;  %2731 = vadd.xlane.f32.xlu0 %v2730_v25  ;;  %v2733_v5 = vadd.f32 %v8688_v62, %v8681_v48  ;;  %v2814_v51 = vadd.f32 %v2777_v39, %v2776_v8  ;;  %3321 = vmatpush1.bf16.msra.mxu0 %v6242_v49 }
 0x67c   : > { %2734 = vadd.xlane.f32.xlu1 %v2733_v5  ;;  %v2687_v41 = vpop.f32.mrb[52].mxu1  ;;  %v2817_v25 = vadd.f32 %v2779_v0, %v2778_v58  ;;  %v6247_v58 = vld [vmem:[#allocation7 + $0x3f4] ss:$8 sps:$4 sm:$0xff]   ;;  %v6245_v0 = vld [vmem:[#allocation7 + $0x3f0] ss:$8 sps:$4 sm:$0xff]  }
 0x67d   : > { %v8699_v35 = vadd.f32 %v2687_v41, %v8549_v19  ;;  %v2689_v9 = vpop.f32.mrb[53].mxu1  ;;  %3322 = vmatprep.subr.bf16.mxu0 %v6247_v58 }
 0x67e   : > { %v8702_v21 = vadd.f32 %v2689_v9, %v8552_v47  ;;  %2815 = vadd.xlane.f32.xlu0 %v2814_v51  ;;  %v2691_v13 = vpop.f32.mrb[54].mxu1  ;;  %3323 = vmatpush1.bf16.msra.mxu0 %v6245_v0 }
 0x67f   : > { %v8705_v24 = vadd.f32 %v2691_v13, %v8549_v19  ;;  %v2693_v54 = vpop.f32.mrb[55].mxu1  ;;  %v2780_v8 = vmul.f32 %v8699_v35, %v8699_v35 }
 0x680   : > { %v2781_v39 = vmul.f32 %v8702_v21, %v8702_v21  ;;  %v8712_v4 = vadd.f32 %v2693_v54, %v8552_v47  ;;  %2818 = vadd.xlane.f32.xlu1 %v2817_v25  ;;  %v2736_v5 = vadd.f32 %v8702_v21, %v8699_v35 }
 0x681   : > { %v2782_v13 = vmul.f32 %v8705_v24, %v8705_v24 }
 0x682   : > { %v2783_v49 = vmul.f32 %v8712_v4, %v8712_v4  ;;  %2737 = vadd.xlane.f32.xlu0 %v2736_v5  ;;  %v2739_v19 = vadd.f32 %v8712_v4, %v8705_v24  ;;  %v2820_v47 = vadd.f32 %v2781_v39, %v2780_v8 }
 0x684   : > { %2740 = vadd.xlane.f32.xlu1 %v2739_v19  ;;  %v2823_v41 = vadd.f32 %v2783_v49, %v2782_v13 }
 0x686   : > { %2821 = vadd.xlane.f32.xlu0 %v2820_v47 }
 0x688   : > { %2824 = vadd.xlane.f32.xlu1 %v2823_v41 }
 0x6ce   : > { %v2702_v51 = vpop.xlane.xlu0 %2701 }
 0x6cf   : > { %v2742_v11 = vmul.f32 0.00390625, %v2702_v51 }
 0x6d0   : > { %v2705_v9 = vpop.xlane.xlu1 %2704 }
 0x6d1   : > { %v2743_v25 = vmul.f32 0.00390625, %v2705_v9  ;;  %v2840_v50 = vmul.f32 %v2742_v11, %v2742_v11  ;;  %v2699_v9 = vld [vmem:[#allocation10 + $0x14] ss:$8 sm:$0x3] }
 0x6d2   : > { %v2786_v54 = vpop.xlane.xlu0 %2785 }
 0x6d3   : > { %v2826_v44 = vmul.f32 0.00390625, %v2786_v54  ;;  %v2841_v5 = vmul.f32 %v2743_v25, %v2743_v25 }
 0x6d4   : > { %v2789_v22 = vpop.xlane.xlu1 %2788 }
 0x6d5   : > { %v2854_v36 = vsub.f32 %v2826_v44, %v2840_v50  ;;  %v2827_v27 = vmul.f32 0.00390625, %v2789_v22  ;;  %v2697_v50 = vld [vmem:[#allocation10 + $0x13] ss:$8 sm:$0x3] }
 0x6d7   : > { %v2868_v37 = vmax.f32 %v2854_v36, 0.0  ;;  %v2855_v59 = vsub.f32 %v2827_v27, %v2841_v5  ;;  %v2882_v36 = vsub.f32 %v8555_v28, %v2742_v11  ;;  %v2884_v5 = vsub.f32 %v8561_v56, %v2743_v25 }
 0x6d9   : > { %v2910_v58 = vadd.f32 1e-05, %v2868_v37  ;;  %v2869_v0 = vmax.f32 %v2855_v59, 0.0  ;;  %v2883_v59 = vsub.f32 %v8558_v3, %v2742_v11 }
 0x6db   : > { %6444 = vrsqrt.f32 %v2910_v58  ;;  %v2911_v8 = vadd.f32 1e-05, %v2869_v0  ;;  %v2885_v58 = vsub.f32 %v8564_v45, %v2743_v25  ;;  %v8735_v0 = vrot.slane %v2697_v50, %v7071_v40 }
 0x6dd   : > { %6446 = vrsqrt.f32 %v2911_v8  ;;  %v2708_v39 = vpop.xlane.xlu0 %2707  ;;  %v8738_v8 = vrot.slane %v2697_v50, %v7073_v42 }
 0x6de   : > { %v8722_v13 = vmul.f32 0.00390625, %v2708_v39 }
 0x6df   : > { %v2711_v49 = vpop.xlane.xlu1 %2710 }
 0x6e0   : > { %v8724_v19 = vmul.f32 0.00390625, %v2711_v49  ;;  %v2842_v41 = vmul.f32 %v8722_v13, %v8722_v13 }
 0x6e1   : > { %v2792_v47 = vpop.xlane.xlu0 %2791 }
 0x6e2   : > { %v2828_v44 = vmul.f32 0.00390625, %v2792_v47  ;;  %v2843_v22 = vmul.f32 %v8724_v19, %v8724_v19  ;;  %v8741_v47 = vrot.slane %v2699_v9, %v7071_v40 }
 0x6e3   : > { %v2795_v27 = vpop.xlane.xlu1 %2794 }
 0x6e4   : > { %v2856_v37 = vsub.f32 %v2828_v44, %v2842_v41  ;;  %v2829_v51 = vmul.f32 0.00390625, %v2795_v27  ;;  %v8744_v41 = vrot.slane %v2699_v9, %v7073_v42 }
 0x6e5   : > { %v6445_v54 = vpop.eup %6444 }
 0x6e6   : > { %v2938_v28 = vmul.f32 %v6445_v54, %v2882_v36  ;;  %v2870_v39 = vmax.f32 %v2856_v37, 0.0  ;;  %v2857_v3 = vsub.f32 %v2829_v51, %v2843_v22  ;;  %v2939_v11 = vmul.f32 %v6445_v54, %v2883_v59 }
 0x6e7   : > { %v6447_v49 = vpop.eup %6446 }
 0x6e8   : > { %v2940_v56 = vmul.f32 %v6447_v49, %v2884_v5  ;;  %v2912_v44 = vadd.f32 1e-05, %v2870_v39  ;;  %v2871_v45 = vmax.f32 %v2857_v3, 0.0  ;;  %v2941_v25 = vmul.f32 %v6447_v49, %v2885_v58 }
 0x6e9   : > { %v2978_v27 = vmul.f32 %v8738_v8, %v2939_v11  ;;  %v2977_v50 = vmul.f32 %v8735_v0, %v2938_v28 }
 0x6ea   : > { %6448 = vrsqrt.f32 %v2912_v44  ;;  %v2913_v36 = vadd.f32 1e-05, %v2871_v45  ;;  %v2980_v37 = vmul.f32 %v8738_v8, %v2941_v25  ;;  %v2979_v59 = vmul.f32 %v8735_v0, %v2940_v56 }
 0x6eb   : > { %v3017_v22 = vadd.f32 %v8744_v41, %v2978_v27  ;;  %v3016_v51 = vadd.f32 %v8741_v47, %v2977_v50 }
 0x6ec   : > { %6450 = vrsqrt.f32 %v2913_v36  ;;  %v3019_v54 = vadd.f32 %v8744_v41, %v2980_v37  ;;  %v3018_v5 = vadd.f32 %v8741_v47, %v2979_v59  ;;  %v2887_v37 = vsub.f32 %v8582_v32, %v8722_v13 }
 0x6ed   : > { %v3045_v28 = vmax.f32 %v3017_v22, 0.0  ;;  %v3044_v11 = vmax.f32 %v3016_v51, 0.0  ;;  %v2889_v32 = vsub.f32 %v8588_v57, %v8724_v19 }
 0x6ee   : > { %v2714_v9 = vpop.xlane.xlu0 %2713  ;;  %v3047_v3 = vmax.f32 %v3019_v54, 0.0  ;;  %v3046_v49 = vmax.f32 %v3018_v5, 0.0  ;;  %v2886_v54 = vsub.f32 %v8579_v15, %v8722_v13 }
 0x6ef   : > { %v8754_v58 = vmul.f32 0.00390625, %v2714_v9 }
 0x6f0   : > { %v2717_v39 = vpop.xlane.xlu1 %2716  ;;  %v3073_v45 = vpack.c.bf16 %v3047_v3, %v3045_v28  ;;  %v3072_v25 = vpack.c.bf16 %v3046_v49, %v3044_v11 }
 0x6f1   : > { %v8756_v44 = vmul.f32 0.00390625, %v2717_v39  ;;  %v2844_v27 = vmul.f32 %v8754_v58, %v8754_v58 }
 0x6f2   : > { %v2798_v56 = vpop.xlane.xlu0 %2797  ;;  %3324 = vmatprep.mubr.bf16.mxu0 %v3073_v45  ;;  %v2888_v45 = vsub.f32 %v8585_v33, %v8724_v19 }
 0x6f3   : > { %v2830_v50 = vmul.f32 0.00390625, %v2798_v56  ;;  %v2845_v22 = vmul.f32 %v8756_v44, %v8756_v44  ;;  %3325 = vmatmul.mubr.bf16.vlgmr.msra.gmra.mrb[56].mxu0 %v3072_v25 }
 0x6f4   : > { %v2801_v36 = vpop.xlane.xlu1 %2800  ;;  %v6449_v9 = vpop.eup %6448 }
 0x6f5   : > { %v2858_v59 = vsub.f32 %v2830_v50, %v2844_v27  ;;  %v2831_v51 = vmul.f32 0.00390625, %v2801_v36  ;;  %v2943_v11 = vmul.f32 %v6449_v9, %v2887_v37  ;;  %v2942_v50 = vmul.f32 %v6449_v9, %v2886_v54 }
 0x6f6   : > { %v2720_v5 = vpop.xlane.xlu0 %2719  ;;  %v6451_v49 = vpop.eup %6450 }
 0x6f7   : > { %v2872_v39 = vmax.f32 %v2858_v59, 0.0  ;;  %v2859_v28 = vsub.f32 %v2831_v51, %v2845_v22  ;;  %v8766_v3 = vmul.f32 0.00390625, %v2720_v5  ;;  %v2945_v59 = vmul.f32 %v6451_v49, %v2889_v32 }
 0x6f8   : > { %v2723_v56 = vpop.xlane.xlu1 %2722  ;;  %v2982_v37 = vmul.f32 %v8738_v8, %v2943_v11  ;;  %v2944_v57 = vmul.f32 %v6451_v49, %v2888_v45  ;;  %v2981_v11 = vmul.f32 %v8735_v0, %v2942_v50 }
 0x6f9   : > { %v2914_v27 = vadd.f32 1e-05, %v2872_v39  ;;  %v2873_v25 = vmax.f32 %v2859_v28, 0.0  ;;  %v8772_v36 = vmul.f32 0.00390625, %v2723_v56  ;;  %v2846_v15 = vmul.f32 %v8766_v3, %v8766_v3 }
 0x6fa   : > { %v2804_v13 = vpop.xlane.xlu0 %2803  ;;  %v2984_v19 = vmul.f32 %v8738_v8, %v2945_v59  ;;  %v3021_v39 = vadd.f32 %v8744_v41, %v2982_v37  ;;  %v2983_v56 = vmul.f32 %v8735_v0, %v2944_v57  ;;  %v3020_v59 = vadd.f32 %v8741_v47, %v2981_v11 }
 0x6fb   : > { %6452 = vrsqrt.f32 %v2914_v27  ;;  %v2915_v22 = vadd.f32 1e-05, %v2873_v25  ;;  %v2832_v51 = vmul.f32 0.00390625, %v2804_v13  ;;  %v2847_v5 = vmul.f32 %v8772_v36, %v8772_v36 }
 0x6fc   : > { %v2807_v33 = vpop.xlane.xlu1 %2806  ;;  %v3023_v32 = vadd.f32 %v8744_v41, %v2984_v19  ;;  %v3049_v13 = vmax.f32 %v3021_v39, 0.0  ;;  %v3048_v19 = vmax.f32 %v3020_v59, 0.0  ;;  %v2890_v39 = vsub.f32 %v8603_v7, %v8754_v58 }
 0x6fd   : > { %6454 = vrsqrt.f32 %v2915_v22  ;;  %v2860_v9 = vsub.f32 %v2832_v51, %v2846_v15  ;;  %v2833_v54 = vmul.f32 0.00390625, %v2807_v33  ;;  %v3022_v15 = vadd.f32 %v8741_v47, %v2983_v56 }
 0x6fe   : > { %v3051_v31 = vmax.f32 %v3023_v32, 0.0  ;;  %v2892_v32 = vsub.f32 %v8609_v20, %v8756_v44  ;;  %v2894_v7 = vsub.f32 %v8627_v2, %v8766_v3 }
 0x6ff   : > { %v2726_v28 = vpop.xlane.xlu0 %2725  ;;  %v2874_v27 = vmax.f32 %v2860_v9, 0.0  ;;  %v2861_v49 = vsub.f32 %v2833_v54, %v2847_v5  ;;  %v3050_v54 = vmax.f32 %v3022_v15, 0.0  ;;  %v2895_v15 = vsub.f32 %v8630_v53, %v8766_v3 }
 0x700   : > { %v8784_v45 = vmul.f32 0.00390625, %v2726_v28  ;;  %v3075_v57 = vpack.c.bf16 %v3051_v31, %v3049_v13  ;;  %v2891_v28 = vsub.f32 %v8606_v55, %v8754_v58  ;;  %v2893_v13 = vsub.f32 %v8612_v63, %v8756_v44 }
 0x701   : > { %v2729_v25 = vpop.xlane.xlu1 %2728  ;;  %v2916_v22 = vadd.f32 1e-05, %v2874_v27  ;;  %v2875_v37 = vmax.f32 %v2861_v49, 0.0 }
 0x702   : > { %v8788_v51 = vmul.f32 0.00390625, %v2729_v25  ;;  %v2848_v50 = vmul.f32 %v8784_v45, %v8784_v45  ;;  %3334 = vmatprep.mubr.bf16.mxu0 %v3075_v57  ;;  %v3074_v25 = vpack.c.bf16 %v3050_v54, %v3048_v19  ;;  %v2897_v19 = vsub.f32 %v8640_v43, %v8772_v36 }
 0x703   : > { %v2810_v33 = vpop.xlane.xlu0 %2809  ;;  %6456 = vrsqrt.f32 %v2916_v22  ;;  %v2917_v5 = vadd.f32 1e-05, %v2875_v37  ;;  %v2898_v43 = vsub.f32 %v8651_v1, %v8784_v45 }
 0x704   : > { %v2834_v9 = vmul.f32 0.00390625, %v2810_v33  ;;  %v2849_v11 = vmul.f32 %v8788_v51, %v8788_v51  ;;  %3335 = vmatmul.mubr.bf16.gmra.mrb[60].mxu0 %v3074_v25 }
 0x705   : > { %v2813_v56 = vpop.xlane.xlu1 %2812  ;;  %v6453_v31 = vpop.eup %6452  ;;  %6458 = vrsqrt.f32 %v2917_v5 }
 0x706   : > { %v2862_v27 = vsub.f32 %v2834_v9, %v2848_v50  ;;  %v2835_v49 = vmul.f32 0.00390625, %v2813_v56  ;;  %v2947_v58 = vmul.f32 %v6453_v31, %v2891_v28  ;;  %v2946_v59 = vmul.f32 %v6453_v31, %v2890_v39 }
 0x707   : > { %v2732_v55 = vpop.xlane.xlu0 %2731  ;;  %v6455_v20 = vpop.eup %6454  ;;  %v2896_v50 = vsub.f32 %v8633_v52, %v8772_v36 }
 0x708   : > { %v2876_v22 = vmax.f32 %v2862_v27, 0.0  ;;  %v2863_v37 = vsub.f32 %v2835_v49, %v2849_v11  ;;  %v8806_v33 = vmul.f32 0.00390625, %v2732_v55  ;;  %v2949_v63 = vmul.f32 %v6455_v20, %v2893_v13 }
 0x709   : > { %v2735_v57 = vpop.xlane.xlu1 %2734  ;;  %v2986_v44 = vmul.f32 %v8738_v8, %v2947_v58  ;;  %v2948_v2 = vmul.f32 %v6455_v20, %v2892_v32  ;;  %v2985_v53 = vmul.f32 %v8735_v0, %v2946_v59  ;;  %v2899_v27 = vsub.f32 %v8654_v61, %v8784_v45 }
 0x70a   : > { %v2918_v5 = vadd.f32 1e-05, %v2876_v22  ;;  %v2877_v9 = vmax.f32 %v2863_v37, 0.0  ;;  %v8814_v3 = vmul.f32 0.00390625, %v2735_v57  ;;  %v2850_v54 = vmul.f32 %v8806_v33, %v8806_v33 }
 0x70b   : > { %v2816_v39 = vpop.xlane.xlu0 %2815  ;;  %v2988_v28 = vmul.f32 %v8738_v8, %v2949_v63  ;;  %v3025_v11 = vadd.f32 %v8744_v41, %v2986_v44  ;;  %v2987_v31 = vmul.f32 %v8735_v0, %v2948_v2  ;;  %v3024_v57 = vadd.f32 %v8741_v47, %v2985_v53 }
 0x70c   : > { %6460 = vrsqrt.f32 %v2918_v5  ;;  %v2919_v56 = vadd.f32 1e-05, %v2877_v9  ;;  %v2836_v32 = vmul.f32 0.00390625, %v2816_v39  ;;  %v2851_v49 = vmul.f32 %v8814_v3, %v8814_v3 }
 0x70d   : > { %v2819_v25 = vpop.xlane.xlu1 %2818  ;;  %v3027_v13 = vadd.f32 %v8744_v41, %v2988_v28  ;;  %v6457_v55 = vpop.eup %6456  ;;  %v3053_v20 = vmax.f32 %v3025_v11, 0.0  ;;  %v3026_v1 = vadd.f32 %v8741_v47, %v2987_v31  ;;  %v2900_v61 = vsub.f32 %v8657_v16, %v8788_v51 }
 0x70e   : > { %6462 = vrsqrt.f32 %v2919_v56  ;;  %v2864_v58 = vsub.f32 %v2836_v32, %v2850_v54  ;;  %v2837_v59 = vmul.f32 0.00390625, %v2819_v25  ;;  %v2951_v63 = vmul.f32 %v6457_v55, %v2895_v15 }
 0x70f   : > { %v2738_v22 = vpop.xlane.xlu0 %2737  ;;  %v3055_v37 = vmax.f32 %v3027_v13, 0.0  ;;  %v6459_v44 = vpop.eup %6458  ;;  %v3052_v54 = vmax.f32 %v3024_v57, 0.0  ;;  %v3054_v28 = vmax.f32 %v3026_v1, 0.0  ;;  %v2901_v56 = vsub.f32 %v8664_v29, %v8788_v51 }
 0x710   : > { %v2878_v45 = vmax.f32 %v2864_v58, 0.0  ;;  %v2865_v2 = vsub.f32 %v2837_v59, %v2851_v49  ;;  %v8832_v5 = vmul.f32 0.00390625, %v2738_v22  ;;  %v2953_v11 = vmul.f32 %v6459_v44, %v2897_v19 }
 0x711   : > { %v2741_v9 = vpop.xlane.xlu1 %2740  ;;  %v3077_v39 = vpack.c.bf16 %v3055_v37, %v3053_v20  ;;  %v2950_v31 = vmul.f32 %v6457_v55, %v2894_v7  ;;  %v3076_v25 = vpack.c.bf16 %v3054_v28, %v3052_v54  ;;  %v2990_v13 = vmul.f32 %v8738_v8, %v2951_v63 }
 0x712   : > { %v2920_v53 = vadd.f32 1e-05, %v2878_v45  ;;  %v2879_v32 = vmax.f32 %v2865_v2, 0.0  ;;  %v8836_v15 = vmul.f32 0.00390625, %v2741_v9  ;;  %v2852_v16 = vmul.f32 %v8832_v5, %v8832_v5 }
 0x713   : > { %3344 = vmatprep.mubr.bf16.mxu0 %v3077_v39  ;;  %v2822_v49 = vpop.xlane.xlu0 %2821  ;;  %v2992_v19 = vmul.f32 %v8738_v8, %v2953_v11  ;;  %v2902_v29 = vsub.f32 %v8675_v6, %v8806_v33  ;;  %v2903_v51 = vsub.f32 %v8678_v34, %v8806_v33  ;;  %v3029_v20 = vadd.f32 %v8744_v41, %v2990_v13 }
 0x714   : > { %6464 = vrsqrt.f32 %v2920_v53  ;;  %v2921_v58 = vadd.f32 1e-05, %v2879_v32  ;;  %v2838_v59 = vmul.f32 0.00390625, %v2822_v49  ;;  %3345 = vmatmul.mubr.bf16.gmra.mrb[64].mxu0 %v3076_v25  ;;  %v2853_v7 = vmul.f32 %v8836_v15, %v8836_v15 }
 0x715   : > { %v2825_v55 = vpop.xlane.xlu1 %2824  ;;  %v3031_v1 = vadd.f32 %v8744_v41, %v2992_v19  ;;  %v3057_v63 = vmax.f32 %v3029_v20, 0.0  ;;  %v2952_v6 = vmul.f32 %v6459_v44, %v2896_v50  ;;  %v2989_v34 = vmul.f32 %v8735_v0, %v2950_v31 }
 0x716   : > { %v6461_v22 = vpop.eup %6460  ;;  %6466 = vrsqrt.f32 %v2921_v58  ;;  %v2866_v37 = vsub.f32 %v2838_v59, %v2852_v16  ;;  %v2839_v57 = vmul.f32 0.00390625, %v2825_v55  ;;  %v2904_v36 = vsub.f32 %v8681_v48, %v8814_v3 }
 0x717   : > { %v2955_v33 = vmul.f32 %v6461_v22, %v2899_v27  ;;  %v3059_v39 = vmax.f32 %v3031_v1, 0.0  ;;  %v2954_v54 = vmul.f32 %v6461_v22, %v2898_v43  ;;  %v2991_v28 = vmul.f32 %v8735_v0, %v2952_v6 }
 0x718   : > { %v6463_v45 = vpop.eup %6462  ;;  %v2880_v2 = vmax.f32 %v2866_v37, 0.0  ;;  %v2867_v9 = vsub.f32 %v2839_v57, %v2853_v7  ;;  %v3028_v11 = vadd.f32 %v8741_v47, %v2989_v34  ;;  %v2905_v13 = vsub.f32 %v8688_v62, %v8814_v3 }
 0x719   : > { %v2957_v53 = vmul.f32 %v6463_v45, %v2901_v56  ;;  %v2994_v32 = vmul.f32 %v8738_v8, %v2955_v33  ;;  %v3079_v25 = vpack.c.bf16 %v3059_v39, %v3057_v63  ;;  %v2956_v52 = vmul.f32 %v6463_v45, %v2900_v61 }
 0x71a   : > { %v2922_v16 = vadd.f32 1e-05, %v2880_v2  ;;  %v2881_v49 = vmax.f32 %v2867_v9, 0.0  ;;  %v3030_v50 = vadd.f32 %v8741_v47, %v2991_v28  ;;  %v2993_v56 = vmul.f32 %v8735_v0, %v2954_v54 }
 0x71b   : > { %v2996_v27 = vmul.f32 %v8738_v8, %v2957_v53  ;;  %v3033_v43 = vadd.f32 %v8744_v41, %v2994_v32  ;;  %3354 = vmatprep.mubr.bf16.mxu0 %v3079_v25  ;;  %v2995_v31 = vmul.f32 %v8735_v0, %v2956_v52  ;;  %v3056_v61 = vmax.f32 %v3028_v11, 0.0 }
 0x71c   : > { %6468 = vrsqrt.f32 %v2922_v16  ;;  %v2923_v44 = vadd.f32 1e-05, %v2881_v49  ;;  %v3058_v58 = vmax.f32 %v3030_v50, 0.0  ;;  %v3032_v7 = vadd.f32 %v8741_v47, %v2993_v56 }
 0x71d   : > { %v3035_v48 = vadd.f32 %v8744_v41, %v2996_v27  ;;  %v3061_v19 = vmax.f32 %v3033_v43, 0.0  ;;  %v3034_v55 = vadd.f32 %v8741_v47, %v2995_v31  ;;  %v2909_v32 = vsub.f32 %v8712_v4, %v8836_v15 }
 0x71e   : > { %v6465_v59 = vpop.eup %6464  ;;  %6470 = vrsqrt.f32 %v2923_v44  ;;  %v3078_v20 = vpack.c.bf16 %v3058_v58, %v3056_v61  ;;  %v3060_v45 = vmax.f32 %v3032_v7, 0.0 }
 0x71f   : > { %v3063_v22 = vmax.f32 %v3035_v48, 0.0  ;;  %v2959_v37 = vmul.f32 %v6465_v59, %v2903_v51  ;;  %v2958_v57 = vmul.f32 %v6465_v59, %v2902_v29  ;;  %v3062_v63 = vmax.f32 %v3034_v55, 0.0 }
 0x720   : > { %v6467_v1 = vpop.eup %6466  ;;  %3355 = vmatmul.mubr.bf16.gmra.mrb[68].mxu0 %v3078_v20  ;;  %v2906_v29 = vsub.f32 %v8699_v35, %v8832_v5  ;;  %v2907_v51 = vsub.f32 %v8702_v21, %v8832_v5  ;;  %v2908_v35 = vsub.f32 %v8705_v24, %v8836_v15 }
 0x721   : > { %v3081_v6 = vpack.c.bf16 %v3063_v22, %v3061_v19  ;;  %v2961_v62 = vmul.f32 %v6467_v1, %v2905_v13  ;;  %v2998_v3 = vmul.f32 %v8738_v8, %v2959_v37  ;;  %v2960_v34 = vmul.f32 %v6467_v1, %v2904_v36  ;;  %v6250_v37 = vld [vmem:[#allocation7 + $0x404] ss:$8 sps:$4 sm:$0xff]  }
 0x722   : > { %v2997_v33 = vmul.f32 %v8735_v0, %v2958_v57  ;;  %v3080_v54 = vpack.c.bf16 %v3062_v63, %v3060_v45  ;;  %v6253_v57 = vld [vmem:[#allocation7 + $0x414] ss:$8 sps:$4 sm:$0xff]   ;;  %4019 = vmatprep.subr.bf16.mxu1 %v6250_v37  ;;  %v6256_v1 = vld [vmem:[#allocation7 + $0x424] ss:$8 sps:$4 sm:$0xff]   ;;  %v6257_v63 = vld [vmem:[#allocation7 + $0x430] ss:$8 sps:$4 sm:$0xff]  }
 0x723   : > { %3364 = vmatprep.mubr.bf16.mxu0 %v3081_v6  ;;  %v3000_v2 = vmul.f32 %v8738_v8, %v2961_v62  ;;  %v3037_v9 = vadd.f32 %v8744_v41, %v2998_v3  ;;  %v2999_v39 = vmul.f32 %v8735_v0, %v2960_v34  ;;  %v6262_v6 = vld [vmem:[#allocation7 + $0x444] ss:$8 sps:$4 sm:$0xff]   ;;  %v6260_v62 = vld [vmem:[#allocation7 + $0x440] ss:$8 sps:$4 sm:$0xff]   ;;  %v6265_v3 = vld [vmem:[#allocation7 + $0x454] ss:$8 sps:$4 sm:$0xff]  }
 0x724   : > { %v3036_v16 = vadd.f32 %v8741_v47, %v2997_v33  ;;  %v6263_v34 = vld [vmem:[#allocation7 + $0x450] ss:$8 sps:$4 sm:$0xff]   ;;  %v6268_v33 = vld [vmem:[#allocation7 + $0x464] ss:$8 sps:$4 sm:$0xff]   ;;  %v6266_v45 = vld [vmem:[#allocation7 + $0x460] ss:$8 sps:$4 sm:$0xff]  }
 0x725   : > { %v3039_v28 = vadd.f32 %v8744_v41, %v3000_v2  ;;  %v3038_v11 = vadd.f32 %v8741_v47, %v2999_v39  ;;  %v3065_v49 = vmax.f32 %v3037_v9, 0.0  ;;  %v3120_v2 = vld [vmem:[#allocation10 + $0x15] ss:$8 sm:$0x3] }
 0x726   : > { %v6469_v53 = vpop.eup %6468  ;;  %v3064_v4 = vmax.f32 %v3036_v16, 0.0  ;;  %v8894_v9 = vrot.slane %v3120_v2, %v7071_v40  ;;  %v8897_v39 = vrot.slane %v3120_v2, %v7073_v42 }
 0x727   : > { %v3067_v25 = vmax.f32 %v3039_v28, 0.0  ;;  %v2963_v52 = vmul.f32 %v6469_v53, %v2907_v51  ;;  %v2962_v36 = vmul.f32 %v6469_v53, %v2906_v29  ;;  %v3066_v5 = vmax.f32 %v3038_v11, 0.0 }
 0x728   : > { %v6471_v50 = vpop.eup %6470  ;;  %3365 = vmatmul.mubr.bf16.gmra.mrb[72].mxu0 %v3080_v54 }
 0x729   : > { %v3083_v21 = vpack.c.bf16 %v3067_v25, %v3065_v49  ;;  %v2965_v27 = vmul.f32 %v6471_v50, %v2909_v32  ;;  %v3002_v43 = vmul.f32 %v8738_v8, %v2963_v52  ;;  %v2964_v44 = vmul.f32 %v6471_v50, %v2908_v35 }
 0x72a   : > { %v3001_v56 = vmul.f32 %v8735_v0, %v2962_v36  ;;  %v3082_v24 = vpack.c.bf16 %v3066_v5, %v3064_v4 }
 0x72b   : > { %3374 = vmatprep.mubr.bf16.mxu0 %v3083_v21  ;;  %v3004_v31 = vmul.f32 %v8738_v8, %v2965_v27  ;;  %v3041_v13 = vadd.f32 %v8744_v41, %v3002_v43  ;;  %v3003_v61 = vmul.f32 %v8735_v0, %v2964_v44  ;;  %v6248_v8 = vld [vmem:[#allocation7 + $0x400] ss:$8 sps:$4 sm:$0xff]   ;;  %v6251_v0 = vld [vmem:[#allocation7 + $0x410] ss:$8 sps:$4 sm:$0xff]  }
 0x72c   : > { %v3040_v58 = vadd.f32 %v8741_v47, %v3001_v56  ;;  %4020 = vmatpush1.bf16.msra.mxu1 %v6248_v8 }
 0x72d   : > { %v3043_v15 = vadd.f32 %v8744_v41, %v3004_v31  ;;  %v3042_v48 = vadd.f32 %v8741_v47, %v3003_v61  ;;  %v3069_v59 = vmax.f32 %v3041_v13, 0.0  ;;  %4021 = vmatprep.subr.bf16.mxu1 %v6253_v57  ;;  %v6254_v41 = vld [vmem:[#allocation7 + $0x420] ss:$8 sps:$4 sm:$0xff]   ;;  %v6259_v47 = vld [vmem:[#allocation7 + $0x434] ss:$8 sps:$4 sm:$0xff]  }
 0x72e   : > { %v3068_v7 = vmax.f32 %v3040_v58, 0.0 }
 0x72f   : > { %v3071_v19 = vmax.f32 %v3043_v15, 0.0  ;;  %v3070_v55 = vmax.f32 %v3042_v48, 0.0 }
 0x730   : > { %3375 = vmatmul.mubr.bf16.gmra.mrb[76].mxu0 %v3082_v24  ;;  %4022 = vmatpush1.bf16.msra.mxu1 %v6251_v0 }
 0x731   : > { %v3085_v20 = vpack.c.bf16 %v3071_v19, %v3069_v59  ;;  %v3084_v22 = vpack.c.bf16 %v3070_v55, %v3068_v7  ;;  %4023 = vmatprep.subr.bf16.mxu1 %v6256_v1  ;;  %v6269_v7 = vld [vmem:[#allocation7 + $0x470] ss:$8 sps:$4 sm:$0xff]   ;;  %v6271_v55 = vld [vmem:[#allocation7 + $0x474] ss:$8 sps:$4 sm:$0xff]  }
 0x733   : > { %3384 = vmatprep.mubr.bf16.mxu0 %v3085_v20 }
 0x734   : > { %4024 = vmatpush1.bf16.msra.mxu1 %v6254_v41 }
 0x735   : > { %4025 = vmatprep.subr.bf16.mxu1 %v6259_v47 }
 0x738   : > { %3385 = vmatmul.mubr.bf16.gmra.mrb[80].mxu0 %v3084_v22  ;;  %4026 = vmatpush1.bf16.msra.mxu1 %v6257_v63 }
 0x739   : > { %4027 = vmatprep.subr.bf16.mxu1 %v6262_v6 }
 0x73c   : > { %4028 = vmatpush1.bf16.msra.mxu1 %v6260_v62 }
 0x73d   : > { %4029 = vmatprep.subr.bf16.mxu1 %v6265_v3 }
 0x740   : > { %4030 = vmatpush1.bf16.msra.mxu1 %v6263_v34 }
 0x741   : > { %4031 = vmatprep.subr.bf16.mxu1 %v6268_v33 }
 0x744   : > { %4032 = vmatpush1.bf16.msra.mxu1 %v6266_v45 }
 0x745   : > { %4033 = vmatprep.subr.bf16.mxu1 %v6271_v55  ;;  %v6278_v55 = vld [vmem:[#allocation7 + $0x4a0] ss:$8 sps:$4 sm:$0xff]  }
 0x748   : > { %4034 = vmatpush1.bf16.msra.mxu1 %v6269_v7 }
 0x7c6   : > { %v3326_v29 = vpop.f32.mrb[56].mxu0 }
 0x7c7   : > { %v8900_v51 = vadd.f32 %v3326_v29, %v8894_v9  ;;  %v3328_v54 = vpop.f32.mrb[57].mxu0 }
 0x7c8   : > { %v8903_v28 = vadd.f32 %v3328_v54, %v8897_v39  ;;  %v3330_v11 = vpop.f32.mrb[58].mxu0 }
 0x7c9   : > { %v8906_v53 = vadd.f32 %v3330_v11, %v8894_v9  ;;  %v3332_v32 = vpop.f32.mrb[59].mxu0  ;;  %v3455_v16 = vmul.f32 %v8900_v51, %v8900_v51 }
 0x7ca   : > { %v3456_v49 = vmul.f32 %v8903_v28, %v8903_v28  ;;  %v8913_v25 = vadd.f32 %v3332_v32, %v8897_v39  ;;  %v3399_v52 = vadd.f32 %v8903_v28, %v8900_v51 }
 0x7cb   : > { %v3457_v36 = vmul.f32 %v8906_v53, %v8906_v53 }
 0x7cc   : > { %v3458_v50 = vmul.f32 %v8913_v25, %v8913_v25  ;;  %3400 = vadd.xlane.f32.xlu0 %v3399_v52  ;;  %v3402_v35 = vadd.f32 %v8913_v25, %v8906_v53  ;;  %v3483_v21 = vadd.f32 %v3456_v49, %v3455_v16  ;;  %v6274_v16 = vld [vmem:[#allocation7 + $0x484] ss:$8 sps:$4 sm:$0xff]  }
 0x7cd   : > { %4035 = vmatprep.subr.bf16.mxu1 %v6274_v16 }
 0x7ce   : > { %3403 = vadd.xlane.f32.xlu1 %v3402_v35  ;;  %v3486_v5 = vadd.f32 %v3458_v50, %v3457_v36  ;;  %v6272_v36 = vld [vmem:[#allocation7 + $0x480] ss:$8 sps:$4 sm:$0xff]  }
 0x7cf   : > { %4036 = vmatpush1.bf16.msra.mxu1 %v6272_v36 }
 0x7d0   : > { %3484 = vadd.xlane.f32.xlu0 %v3483_v21 }
 0x7d2   : > { %3487 = vadd.xlane.f32.xlu1 %v3486_v5 }
 0x7d7   : > { %v3336_v27 = vpop.f32.mrb[60].mxu0 }
 0x7d8   : > { %v8924_v43 = vadd.f32 %v3336_v27, %v8894_v9  ;;  %v3338_v44 = vpop.f32.mrb[61].mxu0 }
 0x7d9   : > { %v8927_v56 = vadd.f32 %v3338_v44, %v8897_v39  ;;  %v3340_v4 = vpop.f32.mrb[62].mxu0 }
 0x7da   : > { %v8930_v31 = vadd.f32 %v3340_v4, %v8894_v9  ;;  %v3342_v13 = vpop.f32.mrb[63].mxu0  ;;  %v3459_v61 = vmul.f32 %v8924_v43, %v8924_v43  ;;  %v6275_v4 = vld [vmem:[#allocation7 + $0x490] ss:$8 sps:$4 sm:$0xff]  }
 0x7db   : > { %v3460_v58 = vmul.f32 %v8927_v56, %v8927_v56  ;;  %v8937_v24 = vadd.f32 %v3342_v13, %v8897_v39  ;;  %v3405_v15 = vadd.f32 %v8927_v56, %v8924_v43  ;;  %v6277_v13 = vld [vmem:[#allocation7 + $0x494] ss:$8 sps:$4 sm:$0xff]  }
 0x7dc   : > { %v3461_v48 = vmul.f32 %v8930_v31, %v8930_v31  ;;  %4037 = vmatprep.subr.bf16.mxu1 %v6277_v13 }
 0x7dd   : > { %v3462_v59 = vmul.f32 %v8937_v24, %v8937_v24  ;;  %3406 = vadd.xlane.f32.xlu0 %v3405_v15  ;;  %v3408_v19 = vadd.f32 %v8937_v24, %v8930_v31  ;;  %v3489_v20 = vadd.f32 %v3460_v58, %v3459_v61  ;;  %4038 = vmatpush1.bf16.msra.mxu1 %v6275_v4  ;;  %v6284_v4 = vld [vmem:[#allocation7 + $0x4c0] ss:$8 sps:$4 sm:$0xff]  }
 0x7df   : > { %3409 = vadd.xlane.f32.xlu1 %v3408_v19  ;;  %v3492_v22 = vadd.f32 %v3462_v59, %v3461_v48 }
 0x7e1   : > { %3490 = vadd.xlane.f32.xlu0 %v3489_v20  ;;  %v6280_v20 = vld [vmem:[#allocation7 + $0x4a4] ss:$8 sps:$4 sm:$0xff]  }
 0x7e2   : > { %4039 = vmatprep.subr.bf16.mxu1 %v6280_v20 }
 0x7e3   : > { %3493 = vadd.xlane.f32.xlu1 %v3492_v22  ;;  %4040 = vmatpush1.bf16.msra.mxu1 %v6278_v55 }
 0x7e7   : > { %v3346_v8 = vpop.f32.mrb[64].mxu0 }
 0x7e8   : > { %v8948_v37 = vadd.f32 %v3346_v8, %v8894_v9  ;;  %v3348_v57 = vpop.f32.mrb[65].mxu0 }
 0x7e9   : > { %v8951_v0 = vadd.f32 %v3348_v57, %v8897_v39  ;;  %v3350_v1 = vpop.f32.mrb[66].mxu0 }
 0x7ea   : > { %v8954_v41 = vadd.f32 %v3350_v1, %v8894_v9  ;;  %v3352_v47 = vpop.f32.mrb[67].mxu0  ;;  %v3463_v63 = vmul.f32 %v8948_v37, %v8948_v37 }
 0x7eb   : > { %v3464_v6 = vmul.f32 %v8951_v0, %v8951_v0  ;;  %v8961_v62 = vadd.f32 %v3352_v47, %v8897_v39  ;;  %v3411_v3 = vadd.f32 %v8951_v0, %v8948_v37 }
 0x7ec   : > { %v3465_v34 = vmul.f32 %v8954_v41, %v8954_v41 }
 0x7ed   : > { %v3466_v33 = vmul.f32 %v8961_v62, %v8961_v62  ;;  %3412 = vadd.xlane.f32.xlu0 %v3411_v3  ;;  %v3414_v45 = vadd.f32 %v8961_v62, %v8954_v41  ;;  %v3495_v2 = vadd.f32 %v3464_v6, %v3463_v63 }
 0x7ef   : > { %3415 = vadd.xlane.f32.xlu1 %v3414_v45  ;;  %v3498_v29 = vadd.f32 %v3466_v33, %v3465_v34  ;;  %v6281_v33 = vld [vmem:[#allocation7 + $0x4b0] ss:$8 sps:$4 sm:$0xff]   ;;  %v6283_v45 = vld [vmem:[#allocation7 + $0x4b4] ss:$8 sps:$4 sm:$0xff]  }
 0x7f0   : > { %4041 = vmatprep.subr.bf16.mxu1 %v6283_v45 }
 0x7f1   : > { %3496 = vadd.xlane.f32.xlu0 %v3495_v2  ;;  %4042 = vmatpush1.bf16.msra.mxu1 %v6281_v33  ;;  %v6292_v33 = vld [vmem:[#allocation7 + $0x4e4] ss:$8 sps:$4 sm:$0xff]  }
 0x7f3   : > { %v3356_v54 = vpop.f32.mrb[68].mxu0  ;;  %3499 = vadd.xlane.f32.xlu1 %v3498_v29 }
 0x7f4   : > { %v8972_v11 = vadd.f32 %v3356_v54, %v8894_v9  ;;  %v3358_v32 = vpop.f32.mrb[69].mxu0 }
 0x7f5   : > { %v8975_v49 = vadd.f32 %v3358_v32, %v8897_v39  ;;  %v3360_v52 = vpop.f32.mrb[70].mxu0 }
 0x7f6   : > { %v8978_v50 = vadd.f32 %v3360_v52, %v8894_v9  ;;  %v3362_v35 = vpop.f32.mrb[71].mxu0  ;;  %v3467_v21 = vmul.f32 %v8972_v11, %v8972_v11 }
 0x7f7   : > { %v3468_v5 = vmul.f32 %v8975_v49, %v8975_v49  ;;  %v8985_v27 = vadd.f32 %v3362_v35, %v8897_v39  ;;  %v3417_v44 = vadd.f32 %v8975_v49, %v8972_v11  ;;  %v6286_v35 = vld [vmem:[#allocation7 + $0x4c4] ss:$8 sps:$4 sm:$0xff]  }
 0x7f8   : > { %v3469_v61 = vmul.f32 %v8978_v50, %v8978_v50  ;;  %4043 = vmatprep.subr.bf16.mxu1 %v6286_v35 }
 0x7f9   : > { %v3470_v58 = vmul.f32 %v8985_v27, %v8985_v27  ;;  %3418 = vadd.xlane.f32.xlu0 %v3417_v44  ;;  %v3420_v15 = vadd.f32 %v8985_v27, %v8978_v50  ;;  %v3501_v59 = vadd.f32 %v3468_v5, %v3467_v21  ;;  %4044 = vmatpush1.bf16.msra.mxu1 %v6284_v4  ;;  %v6295_v4 = vld [vmem:[#allocation7 + $0x4f4] ss:$8 sps:$4 sm:$0xff]  }
 0x7fb   : > { %3421 = vadd.xlane.f32.xlu1 %v3420_v15  ;;  %v3366_v48 = vpop.f32.mrb[72].mxu0  ;;  %v3504_v57 = vadd.f32 %v3470_v58, %v3469_v61 }
 0x7fc   : > { %v8996_v19 = vadd.f32 %v3366_v48, %v8894_v9  ;;  %v3368_v7 = vpop.f32.mrb[73].mxu0 }
 0x7fd   : > { %v8999_v22 = vadd.f32 %v3368_v7, %v8897_v39  ;;  %3502 = vadd.xlane.f32.xlu0 %v3501_v59  ;;  %v3370_v8 = vpop.f32.mrb[74].mxu0  ;;  %v6289_v7 = vld [vmem:[#allocation7 + $0x4d4] ss:$8 sps:$4 sm:$0xff]  }
 0x7fe   : > { %v3471_v1 = vmul.f32 %v8996_v19, %v8996_v19  ;;  %v9004_v47 = vadd.f32 %v3370_v8, %v8894_v9  ;;  %v3372_v63 = vpop.f32.mrb[75].mxu0  ;;  %4045 = vmatprep.subr.bf16.mxu1 %v6289_v7 }
 0x7ff   : > { %v3472_v6 = vmul.f32 %v8999_v22, %v8999_v22  ;;  %v9009_v3 = vadd.f32 %v3372_v63, %v8897_v39  ;;  %3505 = vadd.xlane.f32.xlu1 %v3504_v57  ;;  %v3423_v34 = vadd.f32 %v8999_v22, %v8996_v19  ;;  %v6287_v57 = vld [vmem:[#allocation7 + $0x4d0] ss:$8 sps:$4 sm:$0xff]  }
 0x800   : > { %v3473_v2 = vmul.f32 %v9004_v47, %v9004_v47  ;;  %4046 = vmatpush1.bf16.msra.mxu1 %v6287_v57 }
 0x801   : > { %v3474_v29 = vmul.f32 %v9009_v3, %v9009_v3  ;;  %3424 = vadd.xlane.f32.xlu0 %v3423_v34  ;;  %v3426_v54 = vadd.f32 %v9009_v3, %v9004_v47  ;;  %v3507_v16 = vadd.f32 %v3472_v6, %v3471_v1  ;;  %4047 = vmatprep.subr.bf16.mxu1 %v6292_v33 }
 0x803   : > { %3427 = vadd.xlane.f32.xlu1 %v3426_v54  ;;  %v3376_v32 = vpop.f32.mrb[76].mxu0  ;;  %v3510_v44 = vadd.f32 %v3474_v29, %v3473_v2  ;;  %v6290_v54 = vld [vmem:[#allocation7 + $0x4e0] ss:$8 sps:$4 sm:$0xff]  }
 0x804   : > { %v9020_v52 = vadd.f32 %v3376_v32, %v8894_v9  ;;  %v3378_v36 = vpop.f32.mrb[77].mxu0  ;;  %4048 = vmatpush1.bf16.msra.mxu1 %v6290_v54 }
 0x805   : > { %v9023_v21 = vadd.f32 %v3378_v36, %v8897_v39  ;;  %3508 = vadd.xlane.f32.xlu0 %v3507_v16  ;;  %v3380_v5 = vpop.f32.mrb[78].mxu0  ;;  %4049 = vmatprep.subr.bf16.mxu1 %v6295_v4 }
 0x806   : > { %v3475_v13 = vmul.f32 %v9020_v52, %v9020_v52  ;;  %v9028_v61 = vadd.f32 %v3380_v5, %v8894_v9  ;;  %v3382_v58 = vpop.f32.mrb[79].mxu0 }
 0x807   : > { %v3476_v15 = vmul.f32 %v9023_v21, %v9023_v21  ;;  %v9033_v48 = vadd.f32 %v3382_v58, %v8897_v39  ;;  %3511 = vadd.xlane.f32.xlu1 %v3510_v44  ;;  %v3429_v59 = vadd.f32 %v9023_v21, %v9020_v52 }
 0x808   : > { %v3477_v55 = vmul.f32 %v9028_v61, %v9028_v61 }
 0x809   : > { %v3478_v20 = vmul.f32 %v9033_v48, %v9033_v48  ;;  %3430 = vadd.xlane.f32.xlu0 %v3429_v59  ;;  %v3432_v8 = vadd.f32 %v9033_v48, %v9028_v61  ;;  %v3513_v63 = vadd.f32 %v3476_v15, %v3475_v13  ;;  %v6293_v15 = vld [vmem:[#allocation7 + $0x4f0] ss:$8 sps:$4 sm:$0xff]  }
 0x80a   : > { %4050 = vmatpush1.bf16.msra.mxu1 %v6293_v15  ;;  %v3398_v15 = vld [vmem:[#allocation10 + $0x17] ss:$8 sm:$0x3] }
 0x80b   : > { %3433 = vadd.xlane.f32.xlu1 %v3432_v8  ;;  %v3386_v1 = vpop.f32.mrb[80].mxu0  ;;  %v3516_v29 = vadd.f32 %v3478_v20, %v3477_v55 }
 0x80c   : > { %v9044_v6 = vadd.f32 %v3386_v1, %v8894_v9  ;;  %v3388_v34 = vpop.f32.mrb[81].mxu0 }
 0x80d   : > { %v9047_v45 = vadd.f32 %v3388_v34, %v8897_v39  ;;  %3514 = vadd.xlane.f32.xlu0 %v3513_v63  ;;  %v3390_v2 = vpop.f32.mrb[82].mxu0 }
 0x80e   : > { %v3479_v32 = vmul.f32 %v9044_v6, %v9044_v6  ;;  %v9052_v16 = vadd.f32 %v3390_v2, %v8894_v9  ;;  %v3392_v36 = vpop.f32.mrb[83].mxu0 }
 0x80f   : > { %v3480_v35 = vmul.f32 %v9047_v45, %v9047_v45  ;;  %v9057_v5 = vadd.f32 %v3392_v36, %v8897_v39  ;;  %3517 = vadd.xlane.f32.xlu1 %v3516_v29  ;;  %v3435_v44 = vadd.f32 %v9047_v45, %v9044_v6 }
 0x810   : > { %v3481_v13 = vmul.f32 %v9052_v16, %v9052_v16 }
 0x811   : > { %v3482_v9 = vmul.f32 %v9057_v5, %v9057_v5  ;;  %3436 = vadd.xlane.f32.xlu0 %v3435_v44  ;;  %v3438_v58 = vadd.f32 %v9057_v5, %v9052_v16  ;;  %v3519_v39 = vadd.f32 %v3480_v35, %v3479_v32 }
 0x813   : > { %3439 = vadd.xlane.f32.xlu1 %v3438_v58  ;;  %v3522_v59 = vadd.f32 %v3482_v9, %v3481_v13  ;;  %v3396_v13 = vld [vmem:[#allocation10 + $0x16] ss:$8 sm:$0x3] }
 0x815   : > { %3520 = vadd.xlane.f32.xlu0 %v3519_v39 }
 0x817   : > { %3523 = vadd.xlane.f32.xlu1 %v3522_v59 }
 0x859   : > { %v3401_v7 = vpop.xlane.xlu0 %3400 }
 0x85a   : > { %v3441_v55 = vmul.f32 0.00390625, %v3401_v7 }
 0x85b   : > { %v3404_v20 = vpop.xlane.xlu1 %3403 }
 0x85c   : > { %v3442_v8 = vmul.f32 0.00390625, %v3404_v20  ;;  %v3539_v1 = vmul.f32 %v3441_v55, %v3441_v55  ;;  %v3581_v59 = vsub.f32 %v8900_v51, %v3441_v55  ;;  %v3582_v7 = vsub.f32 %v8903_v28, %v3441_v55 }
 0x85d   : > { %v3485_v57 = vpop.xlane.xlu0 %3484  ;;  %v9074_v20 = vrot.slane %v3396_v13, %v7071_v40 }
 0x85e   : > { %v3525_v63 = vmul.f32 0.00390625, %v3485_v57  ;;  %v3540_v2 = vmul.f32 %v3442_v8, %v3442_v8  ;;  %v3583_v51 = vsub.f32 %v8906_v53, %v3442_v8  ;;  %v3584_v28 = vsub.f32 %v8913_v25, %v3442_v8 }
 0x85f   : > { %v3488_v34 = vpop.xlane.xlu1 %3487 }
 0x860   : > { %v3553_v33 = vsub.f32 %v3525_v63, %v3539_v1  ;;  %v3526_v29 = vmul.f32 0.00390625, %v3488_v34  ;;  %v9077_v1 = vrot.slane %v3396_v13, %v7073_v42 }
 0x862   : > { %v3567_v54 = vmax.f32 %v3553_v33, 0.0  ;;  %v3554_v36 = vsub.f32 %v3526_v29, %v3540_v2  ;;  %v9082_v2 = vrot.slane %v3398_v15, %v7071_v40  ;;  %v9085_v29 = vrot.slane %v3398_v15, %v7073_v42 }
 0x864   : > { %v3609_v44 = vadd.f32 1e-05, %v3567_v54  ;;  %v3568_v4 = vmax.f32 %v3554_v36, 0.0 }
 0x866   : > { %6472 = vrsqrt.f32 %v3609_v44  ;;  %v3610_v32 = vadd.f32 1e-05, %v3568_v4 }
 0x868   : > { %6474 = vrsqrt.f32 %v3610_v32 }
 0x86a   : > { %v3407_v35 = vpop.xlane.xlu0 %3406 }
 0x86b   : > { %v9067_v9 = vmul.f32 0.00390625, %v3407_v35 }
 0x86c   : > { %v3410_v58 = vpop.xlane.xlu1 %3409 }
 0x86d   : > { %v9069_v39 = vmul.f32 0.00390625, %v3410_v58  ;;  %v3541_v34 = vmul.f32 %v9067_v9, %v9067_v9 }
 0x86e   : > { %v3491_v57 = vpop.xlane.xlu0 %3490 }
 0x86f   : > { %v3527_v33 = vmul.f32 0.00390625, %v3491_v57  ;;  %v3542_v32 = vmul.f32 %v9069_v39, %v9069_v39 }
 0x870   : > { %v6473_v63 = vpop.eup %6472  ;;  %v3494_v54 = vpop.xlane.xlu1 %3493 }
 0x871   : > { %v3637_v55 = vmul.f32 %v6473_v63, %v3581_v59  ;;  %v3638_v36 = vmul.f32 %v6473_v63, %v3582_v7  ;;  %v3555_v4 = vsub.f32 %v3527_v33, %v3541_v34  ;;  %v3528_v35 = vmul.f32 0.00390625, %v3494_v54 }
 0x872   : > { %v6475_v44 = vpop.eup %6474 }
 0x873   : > { %v3676_v13 = vmul.f32 %v9074_v20, %v3637_v55  ;;  %v3639_v58 = vmul.f32 %v6475_v44, %v3583_v51  ;;  %v3640_v57 = vmul.f32 %v6475_v44, %v3584_v28  ;;  %v3677_v15 = vmul.f32 %v9077_v1, %v3638_v36 }
 0x874   : > { %v3569_v42 = vmax.f32 %v3555_v4, 0.0  ;;  %v3556_v40 = vsub.f32 %v3528_v35, %v3542_v32  ;;  %v10549_v55 = vmax.f32 %v8193_v38, 0.0  ;;  %v10550_v36 = vmax.f32 %v8187_v30, 0.0 }
 0x875   : > { %v3678_v53 = vmul.f32 %v9074_v20, %v3639_v58  ;;  %v3679_v25 = vmul.f32 %v9077_v1, %v3640_v57  ;;  %v3716_v8 = vadd.f32 %v9085_v29, %v3677_v15  ;;  %v3715_v59 = vadd.f32 %v9082_v2, %v3676_v13 }
 0x876   : > { %v3611_v7 = vadd.f32 1e-05, %v3569_v42  ;;  %v3570_v63 = vmax.f32 %v3556_v40, 0.0  ;;  %v10551_v42 = vmax.f32 %v8201_v12, 0.0  ;;  %v10552_v32 = vmax.f32 %v8205_v14, 0.0 }
 0x877   : > { %v3718_v34 = vadd.f32 %v9085_v29, %v3679_v25  ;;  %v3717_v33 = vadd.f32 %v9082_v2, %v3678_v53  ;;  %v9101_v54 = vadd.f32 %v3716_v8, %v10549_v55  ;;  %v9105_v44 = vadd.f32 %v3715_v59, %v10550_v36 }
 0x878   : > { %6476 = vrsqrt.f32 %v3611_v7  ;;  %v3612_v51 = vadd.f32 1e-05, %v3570_v63 }
 0x879   : > { %v9111_v40 = vadd.f32 %v3718_v34, %v10551_v42  ;;  %v9115_v35 = vadd.f32 %v3717_v33, %v10552_v32  ;;  %v10400_v57 = vmax.f32 %v9101_v54, 0.0  ;;  %v10401_v15 = vmax.f32 %v9105_v44, 0.0 }
 0x87a   : > { %v3413_v28 = vpop.xlane.xlu0 %3412  ;;  %6478 = vrsqrt.f32 %v3612_v51  ;;  %v3585_v33 = vsub.f32 %v8924_v43, %v9067_v9  ;;  %v3586_v51 = vsub.f32 %v8927_v56, %v9067_v9  ;;  %v3588_v42 = vsub.f32 %v8937_v24, %v9069_v39 }
 0x87b   : > { %v9107_v4 = vmul.f32 0.00390625, %v3413_v28  ;;  %v10374_v30 = vmax.f32 %v9111_v40, 0.0  ;;  %v10399_v53 = vmax.f32 %v9115_v35, 0.0 }
 0x87c   : > { %v3416_v13 = vpop.xlane.xlu1 %3415 }
 0x87d   : > { %v9117_v58 = vmul.f32 0.00390625, %v3416_v13  ;;  %v3543_v12 = vmul.f32 %v9107_v4, %v9107_v4  ;;  %v3800_v8 = vpack.c.bf16 %v10374_v30, %v10400_v57  ;;  %v3799_v59 = vpack.c.bf16 %v10399_v53, %v10401_v15  ;;  %v6329_v57 = vld [vmem:[#allocation7 + $0x5b0] ss:$8 sps:$4 sm:$0xff]   ;;  %v6331_v15 = vld [vmem:[#allocation7 + $0x5b4] ss:$8 sps:$4 sm:$0xff]  }
 0x87e   : > { %v3497_v38 = vpop.xlane.xlu0 %3496 }
 0x87f   : > { %v3529_v25 = vmul.f32 0.00390625, %v3497_v38  ;;  %v3544_v63 = vmul.f32 %v9117_v58, %v9117_v58  ;;  %4051 = vmatprep.mubr.bf16.mxu1 %v3800_v8 }
 0x880   : > { %v3500_v14 = vpop.xlane.xlu1 %3499  ;;  %4052 = vmatmul.mubr.bf16.vlgmr.msra.gmra.mrb[56].mxu1 %v3799_v59 }
 0x881   : > { %v3557_v7 = vsub.f32 %v3529_v25, %v3543_v12  ;;  %v3530_v34 = vmul.f32 0.00390625, %v3500_v14  ;;  %v3587_v14 = vsub.f32 %v8930_v31, %v9069_v39 }
 0x882   : > { %v6477_v36 = vpop.eup %6476 }
 0x883   : > { %v3571_v28 = vmax.f32 %v3557_v7, 0.0  ;;  %v3558_v55 = vsub.f32 %v3530_v34, %v3544_v63  ;;  %v3642_v38 = vmul.f32 %v6477_v36, %v3586_v51  ;;  %v3641_v12 = vmul.f32 %v6477_v36, %v3585_v33 }
 0x884   : > { %v6479_v25 = vpop.eup %6478 }
 0x885   : > { %v3613_v32 = vadd.f32 1e-05, %v3571_v28  ;;  %v3572_v13 = vmax.f32 %v3558_v55, 0.0  ;;  %v3644_v56 = vmul.f32 %v6479_v25, %v3588_v42  ;;  %v3681_v59 = vmul.f32 %v9077_v1, %v3642_v38 }
 0x886   : > { %v3419_v8 = vpop.xlane.xlu0 %3418  ;;  %v3643_v7 = vmul.f32 %v6479_v25, %v3587_v14  ;;  %v3680_v24 = vmul.f32 %v9074_v20, %v3641_v12  ;;  %v10553_v42 = vmax.f32 %v8258_v26, 0.0  ;;  %v10556_v26 = vmax.f32 %v8282_v60, 0.0 }
 0x887   : > { %6480 = vrsqrt.f32 %v3613_v32  ;;  %v3614_v43 = vadd.f32 1e-05, %v3572_v13  ;;  %v9143_v30 = vmul.f32 0.00390625, %v3419_v8  ;;  %v3683_v33 = vmul.f32 %v9077_v1, %v3644_v56 }
 0x888   : > { %v3422_v9 = vpop.xlane.xlu1 %3421  ;;  %v3720_v31 = vadd.f32 %v9085_v29, %v3681_v59  ;;  %v3682_v39 = vmul.f32 %v9074_v20, %v3643_v7  ;;  %v3719_v13 = vadd.f32 %v9082_v2, %v3680_v24  ;;  %v3592_v60 = vsub.f32 %v8961_v62, %v9117_v58 }
 0x889   : > { %6482 = vrsqrt.f32 %v3614_v43  ;;  %v9147_v63 = vmul.f32 0.00390625, %v3422_v9  ;;  %v3545_v51 = vmul.f32 %v9143_v30, %v9143_v30  ;;  %v3722_v36 = vadd.f32 %v9085_v29, %v3683_v33 }
 0x88a   : > { %v3503_v34 = vpop.xlane.xlu0 %3502  ;;  %v9157_v32 = vadd.f32 %v3720_v31, %v10553_v42  ;;  %v3721_v38 = vadd.f32 %v9082_v2, %v3682_v39  ;;  %v10554_v43 = vmax.f32 %v8262_v18, 0.0  ;;  %v10555_v9 = vmax.f32 %v8269_v23, 0.0 }
 0x88b   : > { %v3531_v28 = vmul.f32 0.00390625, %v3503_v34  ;;  %v3546_v25 = vmul.f32 %v9147_v63, %v9147_v63 }
 0x88c   : > { %v3506_v55 = vpop.xlane.xlu1 %3505  ;;  %v9165_v56 = vadd.f32 %v3722_v36, %v10554_v43  ;;  %v9169_v59 = vadd.f32 %v3719_v13, %v10555_v9  ;;  %v9173_v7 = vadd.f32 %v3721_v38, %v10556_v26  ;;  %v10398_v39 = vmax.f32 %v9157_v32, 0.0 }
 0x88d   : > { %v3559_v12 = vsub.f32 %v3531_v28, %v3545_v51  ;;  %v3532_v14 = vmul.f32 0.00390625, %v3506_v55  ;;  %v3590_v55 = vsub.f32 %v8951_v0, %v9107_v4  ;;  %v3589_v9 = vsub.f32 %v8948_v37, %v9107_v4 }
 0x88e   : > { %v3425_v8 = vpop.xlane.xlu0 %3424  ;;  %v10375_v51 = vmax.f32 %v9165_v56, 0.0  ;;  %v10377_v18 = vmax.f32 %v9169_v59, 0.0  ;;  %v10376_v28 = vmax.f32 %v9173_v7, 0.0  ;;  %v3591_v26 = vsub.f32 %v8954_v41, %v9117_v58 }
 0x88f   : > { %v3573_v24 = vmax.f32 %v3559_v12, 0.0  ;;  %v3560_v34 = vsub.f32 %v3532_v14, %v3546_v25  ;;  %v9175_v33 = vmul.f32 0.00390625, %v3425_v8 }
 0x890   : > { %v3428_v31 = vpop.xlane.xlu1 %3427  ;;  %v3802_v25 = vpack.c.bf16 %v10375_v51, %v10398_v39  ;;  %v3801_v0 = vpack.c.bf16 %v10376_v28, %v10377_v18 }
 0x891   : > { %v6481_v23 = vpop.eup %6480  ;;  %v3615_v36 = vadd.f32 1e-05, %v3573_v24  ;;  %v3574_v42 = vmax.f32 %v3560_v34, 0.0  ;;  %v9185_v13 = vmul.f32 0.00390625, %v3428_v31  ;;  %v3547_v38 = vmul.f32 %v9175_v33, %v9175_v33 }
 0x892   : > { %v3509_v12 = vpop.xlane.xlu0 %3508  ;;  %v3646_v43 = vmul.f32 %v6481_v23, %v3590_v55  ;;  %4061 = vmatprep.mubr.bf16.mxu1 %v3802_v25  ;;  %v3593_v55 = vsub.f32 %v8972_v11, %v9143_v30  ;;  %v3645_v4 = vmul.f32 %v6481_v23, %v3589_v9  ;;  %v3595_v25 = vsub.f32 %v8978_v50, %v9147_v63 }
 0x893   : > { %v6483_v14 = vpop.eup %6482  ;;  %6484 = vrsqrt.f32 %v3615_v36  ;;  %v3616_v62 = vadd.f32 1e-05, %v3574_v42  ;;  %v3533_v8 = vmul.f32 0.00390625, %v3509_v12  ;;  %v3548_v24 = vmul.f32 %v9185_v13, %v9185_v13  ;;  %4062 = vmatmul.mubr.bf16.gmra.mrb[60].mxu1 %v3801_v0 }
 0x894   : > { %v3512_v34 = vpop.xlane.xlu1 %3511  ;;  %v3648_v31 = vmul.f32 %v6483_v14, %v3592_v60  ;;  %v3685_v36 = vmul.f32 %v9077_v1, %v3646_v43  ;;  %v3647_v41 = vmul.f32 %v6483_v14, %v3591_v26  ;;  %v3596_v23 = vsub.f32 %v8985_v27, %v9147_v63 }
 0x895   : > { %6486 = vrsqrt.f32 %v3616_v62  ;;  %v3561_v51 = vsub.f32 %v3533_v8, %v3547_v38  ;;  %v3534_v28 = vmul.f32 0.00390625, %v3512_v34  ;;  %v3594_v38 = vsub.f32 %v8975_v49, %v9143_v30 }
 0x896   : > { %v3431_v42 = vpop.xlane.xlu0 %3430  ;;  %v3687_v37 = vmul.f32 %v9077_v1, %v3648_v31  ;;  %v3724_v60 = vadd.f32 %v9085_v29, %v3685_v36  ;;  %v3684_v62 = vmul.f32 %v9074_v20, %v3645_v4  ;;  %v3686_v14 = vmul.f32 %v9074_v20, %v3647_v41 }
 0x897   : > { %v3575_v58 = vmax.f32 %v3561_v51, 0.0  ;;  %v3562_v12 = vsub.f32 %v3534_v28, %v3548_v24  ;;  %v9207_v18 = vmul.f32 0.00390625, %v3431_v42  ;;  %v10557_v43 = vmax.f32 %v8320_v10, 0.0 }
 0x898   : > { %v3434_v0 = vpop.xlane.xlu1 %3433  ;;  %v3726_v11 = vadd.f32 %v9085_v29, %v3687_v37  ;;  %v10558_v26 = vmax.f32 %v8326_v17, 0.0  ;;  %v3723_v31 = vadd.f32 %v9082_v2, %v3684_v62  ;;  %v3597_v36 = vsub.f32 %v8996_v19, %v9175_v33 }
 0x899   : > { %v3617_v51 = vadd.f32 1e-05, %v3575_v58  ;;  %v3576_v28 = vmax.f32 %v3562_v12, 0.0  ;;  %v9219_v8 = vmul.f32 0.00390625, %v3434_v0  ;;  %v3549_v49 = vmul.f32 %v9207_v18, %v9207_v18 }
 0x89a   : > { %v3515_v30 = vpop.xlane.xlu0 %3514  ;;  %v9225_v9 = vadd.f32 %v3724_v60, %v10557_v43  ;;  %v9229_v24 = vadd.f32 %v3726_v11, %v10558_v26  ;;  %v3598_v42 = vsub.f32 %v8999_v22, %v9175_v33  ;;  %v3599_v60 = vsub.f32 %v9004_v47, %v9185_v13 }
 0x89b   : > { %6488 = vrsqrt.f32 %v3617_v51  ;;  %v3618_v27 = vadd.f32 1e-05, %v3576_v28  ;;  %v3535_v34 = vmul.f32 0.00390625, %v3515_v30  ;;  %v3550_v10 = vmul.f32 %v9219_v8, %v9219_v8 }
 0x89c   : > { %10559 = vst [vmem:[#allocation35_spill] sm:$0xff] %v9229_v24  ;;  %v3518_v37 = vpop.xlane.xlu1 %3517  ;;  %v10397_v4 = vmax.f32 %v9225_v9, 0.0  ;;  %v10396_v12 = vmax.f32 %v9229_v24, 0.0  ;;  %v3725_v19 = vadd.f32 %v9082_v2, %v3686_v14  ;;  %v10560_v22 = vmax.f32 %v8356_v46, 0.0  ;;  %v10562_v14 = vld [vmem:[#allocation18_spill] sm:$0xff] }
 0x89d   : > { %v6485_v17 = vpop.eup %6484  ;;  %6490 = vrsqrt.f32 %v3618_v27  ;;  %v3563_v41 = vsub.f32 %v3535_v34, %v3549_v49  ;;  %v3536_v58 = vmul.f32 0.00390625, %v3518_v37  ;;  %v3600_v47 = vsub.f32 %v9009_v3, %v9185_v13 }
 0x89e   : > { %v3437_v0 = vpop.xlane.xlu0 %3436  ;;  %v9245_v33 = vadd.f32 %v3723_v31, %v10560_v22  ;;  %v3650_v11 = vmul.f32 %v6485_v17, %v3594_v38  ;;  %v3804_v49 = vpack.c.bf16 %v10396_v12, %v10397_v4  ;;  %v10563_v26 = vmax.f32 %v10562_v14, 0.0 }
 0x89f   : > { %v6487_v62 = vpop.eup %6486  ;;  %v3577_v51 = vmax.f32 %v3563_v41, 0.0  ;;  %v3564_v28 = vsub.f32 %v3536_v58, %v3550_v10  ;;  %v9247_v30 = vmul.f32 0.00390625, %v3437_v0  ;;  %v3649_v37 = vmul.f32 %v6485_v17, %v3593_v55 }
 0x8a0   : > { %10561 = vst [vmem:[#allocation36_spill] sm:$0xff] %v9245_v33  ;;  %v3440_v43 = vpop.xlane.xlu1 %3439  ;;  %v9257_v46 = vadd.f32 %v3725_v19, %v10563_v26  ;;  %v3652_v27 = vmul.f32 %v6487_v62, %v3596_v23  ;;  %v3689_v38 = vmul.f32 %v9077_v1, %v3650_v11  ;;  %4071 = vmatprep.mubr.bf16.mxu1 %v3804_v49  ;;  %v10395_v10 = vmax.f32 %v9245_v33, 0.0 }
 0x8a1   : > { %v3619_v34 = vadd.f32 1e-05, %v3577_v51  ;;  %v3578_v31 = vmax.f32 %v3564_v28, 0.0  ;;  %v9261_v41 = vmul.f32 0.00390625, %v3440_v43  ;;  %v3551_v58 = vmul.f32 %v9247_v30, %v9247_v30 }
 0x8a2   : > { %10564 = vst [vmem:[#allocation37_spill] sm:$0xff] %v9257_v46  ;;  %v3521_v3 = vpop.xlane.xlu0 %3520  ;;  %v10378_v13 = vmax.f32 %v9257_v46, 0.0  ;;  %v3691_v0 = vmul.f32 %v9077_v1, %v3652_v27  ;;  %v3728_v22 = vadd.f32 %v9085_v29, %v3689_v38  ;;  %v3601_v11 = vsub.f32 %v9020_v52, %v9207_v18  ;;  %v10565_v52 = vld [vmem:[#allocation19_spill] sm:$0xff] }
 0x8a3   : > { %6492 = vrsqrt.f32 %v3619_v34  ;;  %v3620_v23 = vadd.f32 1e-05, %v3578_v31  ;;  %v3537_v19 = vmul.f32 0.00390625, %v3521_v3  ;;  %v3602_v55 = vsub.f32 %v9023_v21, %v9207_v18 }
 0x8a4   : > { %v3552_v17 = vmul.f32 %v9261_v41, %v9261_v41  ;;  %v3524_v51 = vpop.xlane.xlu1 %3523  ;;  %v3803_v28 = vpack.c.bf16 %v10378_v13, %v10395_v10  ;;  %v3730_v26 = vadd.f32 %v9085_v29, %v3691_v0  ;;  %v10566_v27 = vmax.f32 %v10565_v52, 0.0 }
 0x8a5   : > { %v6489_v49 = vpop.eup %6488  ;;  %6494 = vrsqrt.f32 %v3620_v23  ;;  %v3565_v43 = vsub.f32 %v3537_v19, %v3551_v58  ;;  %v3538_v14 = vmul.f32 0.00390625, %v3524_v51  ;;  %v3651_v21 = vmul.f32 %v6487_v62, %v3595_v25  ;;  %v10568_v23 = vld [vmem:[#allocation20_spill] sm:$0xff] }
 0x8a6   : > { %4072 = vmatmul.mubr.bf16.gmra.mrb[64].mxu1 %v3803_v28  ;;  %v9281_v38 = vadd.f32 %v3728_v22, %v10566_v27  ;;  %v3688_v18 = vmul.f32 %v9074_v20, %v3649_v37  ;;  %v3654_v34 = vmul.f32 %v6489_v49, %v3598_v42  ;;  %v10569_v58 = vmax.f32 %v10568_v23, 0.0  ;;  %v10571_v37 = vld [vmem:[#allocation21_spill] sm:$0xff]  ;;  %v10574_v27 = vld [vmem:[#allocation22_spill] sm:$0xff]  ;;  %v10577_v23 = vld [vmem:[#allocation23_spill] sm:$0xff] }
 0x8a7   : > { %v6491_v31 = vpop.eup %6490  ;;  %v3579_v3 = vmax.f32 %v3565_v43, 0.0  ;;  %v3566_v13 = vsub.f32 %v3538_v14, %v3552_v17  ;;  %v3653_v0 = vmul.f32 %v6489_v49, %v3597_v36  ;;  %v3690_v22 = vmul.f32 %v9074_v20, %v3651_v21 }
 0x8a8   : > { %10567 = vst [vmem:[#allocation38_spill] sm:$0xff] %v9281_v38  ;;  %v9289_v19 = vadd.f32 %v3730_v26, %v10569_v58  ;;  %v10394_v51 = vmax.f32 %v9281_v38, 0.0  ;;  %v3727_v28 = vadd.f32 %v9082_v2, %v3688_v18  ;;  %v3656_v52 = vmul.f32 %v6491_v31, %v3600_v47 }
 0x8a9   : > { %v3621_v50 = vadd.f32 1e-05, %v3579_v3  ;;  %v3580_v63 = vmax.f32 %v3566_v13, 0.0  ;;  %v3693_v42 = vmul.f32 %v9077_v1, %v3654_v34  ;;  %v3729_v62 = vadd.f32 %v9082_v2, %v3690_v22 }
 0x8aa   : > { %10570 = vst [vmem:[#allocation39_spill] sm:$0xff] %v9289_v19  ;;  %v10393_v25 = vmax.f32 %v9289_v19, 0.0  ;;  %v10572_v17 = vmax.f32 %v10571_v37, 0.0  ;;  %v3695_v36 = vmul.f32 %v9077_v1, %v3656_v52  ;;  %v3655_v49 = vmul.f32 %v6491_v31, %v3599_v60  ;;  %v10580_v52 = vld [vmem:[#allocation24_spill] sm:$0xff] }
 0x8ab   : > { %6496 = vrsqrt.f32 %v3621_v50  ;;  %v3622_v14 = vadd.f32 1e-05, %v3580_v63  ;;  %v3732_v13 = vadd.f32 %v9085_v29, %v3693_v42  ;;  %v3604_v26 = vsub.f32 %v9033_v48, %v9219_v8 }
 0x8ac   : > { %v9299_v43 = vadd.f32 %v3727_v28, %v10572_v17  ;;  %v3806_v47 = vpack.c.bf16 %v10393_v25, %v10394_v51  ;;  %v10575_v21 = vmax.f32 %v10574_v27, 0.0  ;;  %v3734_v34 = vadd.f32 %v9085_v29, %v3695_v36 }
 0x8ad   : > { %v3692_v60 = vmul.f32 %v9074_v20, %v3653_v0  ;;  %v6493_v31 = vpop.eup %6492  ;;  %6498 = vrsqrt.f32 %v3622_v14  ;;  %v10578_v58 = vmax.f32 %v10577_v23, 0.0  ;;  %v3694_v28 = vmul.f32 %v9074_v20, %v3655_v49 }
 0x8ae   : > { %10573 = vst [vmem:[#allocation40_spill] sm:$0xff] %v9299_v43  ;;  %v9311_v18 = vadd.f32 %v3729_v62, %v10575_v21  ;;  %4081 = vmatprep.mubr.bf16.mxu1 %v3806_v47  ;;  %v10392_v3 = vmax.f32 %v9299_v43, 0.0  ;;  %v10581_v50 = vmax.f32 %v10580_v52, 0.0  ;;  %v3658_v0 = vmul.f32 %v6493_v31, %v3602_v55 }
 0x8af   : > { %v9318_v22 = vadd.f32 %v3732_v13, %v10578_v58  ;;  %v3731_v42 = vadd.f32 %v9082_v2, %v3692_v60  ;;  %v6495_v62 = vpop.eup %6494  ;;  %v3603_v37 = vsub.f32 %v9028_v61, %v9219_v8  ;;  %v3733_v36 = vadd.f32 %v9082_v2, %v3694_v28  ;;  %v10583_v13 = vld [vmem:[#allocation25_spill] sm:$0xff] }
 0x8b0   : > { %10576 = vst [vmem:[#allocation41_spill] sm:$0xff] %v9311_v18  ;;  %v10391_v48 = vmax.f32 %v9311_v18, 0.0  ;;  %v9324_v63 = vadd.f32 %v3734_v34, %v10581_v50  ;;  %v3657_v14 = vmul.f32 %v6493_v31, %v3601_v11  ;;  %v10584_v27 = vmax.f32 %v10583_v13, 0.0  ;;  %v10586_v34 = vld [vmem:[#allocation26_spill] sm:$0xff]  ;;  %v10589_v13 = vld [vmem:[#allocation27_spill] sm:$0xff] }
 0x8b1   : > { %10579 = vst [vmem:[#allocation18_spill] sm:$0xff] %v9318_v22  ;;  %v10390_v17 = vmax.f32 %v9318_v22, 0.0  ;;  %v3660_v55 = vmul.f32 %v6495_v62, %v3604_v26  ;;  %v10587_v60 = vmax.f32 %v10586_v34, 0.0  ;;  %v3697_v8 = vmul.f32 %v9077_v1, %v3658_v0 }
 0x8b2   : > { %10582 = vst [vmem:[#allocation19_spill] sm:$0xff] %v9324_v63  ;;  %v3805_v49 = vpack.c.bf16 %v10391_v48, %v10392_v3  ;;  %v10389_v47 = vmax.f32 %v9324_v63, 0.0  ;;  %v9338_v21 = vadd.f32 %v3731_v42, %v10584_v27  ;;  %v3659_v23 = vmul.f32 %v6495_v62, %v3603_v37 }
 0x8b3   : > { %v9342_v61 = vadd.f32 %v3733_v36, %v10587_v60  ;;  %v3696_v11 = vmul.f32 %v9074_v20, %v3657_v14  ;;  %v3699_v58 = vmul.f32 %v9077_v1, %v3660_v55  ;;  %v3736_v26 = vadd.f32 %v9085_v29, %v3697_v8 }
 0x8b4   : > { %10585 = vst [vmem:[#allocation20_spill] sm:$0xff] %v9338_v21  ;;  %4082 = vmatmul.mubr.bf16.gmra.mrb[68].mxu1 %v3805_v49  ;;  %v3808_v31 = vpack.c.bf16 %v10389_v47, %v10390_v17  ;;  %v3698_v52 = vmul.f32 %v9074_v20, %v3659_v23  ;;  %v3605_v42 = vsub.f32 %v9044_v6, %v9247_v30  ;;  %v10388_v62 = vmax.f32 %v9338_v21, 0.0 }
 0x8b5   : > { %10588 = vst [vmem:[#allocation21_spill] sm:$0xff] %v9342_v61  ;;  %v10387_v28 = vmax.f32 %v9342_v61, 0.0  ;;  %v3735_v50 = vadd.f32 %v9082_v2, %v3696_v11  ;;  %v3606_v0 = vsub.f32 %v9047_v45, %v9247_v30  ;;  %v3738_v37 = vadd.f32 %v9085_v29, %v3699_v58  ;;  %v6497_v36 = vpop.eup %6496  ;;  %v10592_v30 = vld [vmem:[#allocation28_spill] sm:$0xff]  ;;  %v10598_v58 = vld [vmem:[#allocation29_spill] sm:$0xff] }
 0x8b6   : > { %4091 = vmatprep.mubr.bf16.mxu1 %v3808_v31  ;;  %v3607_v14 = vsub.f32 %v9052_v16, %v9261_v41  ;;  %v3608_v49 = vsub.f32 %v9057_v5, %v9261_v41  ;;  %v10590_v27 = vmax.f32 %v10589_v13, 0.0  ;;  %v3737_v6 = vadd.f32 %v9082_v2, %v3698_v52  ;;  %v10595_v41 = vld [vmem:[#allocation30_spill] sm:$0xff] }
 0x8b7   : > { %v3807_v45 = vpack.c.bf16 %v10387_v28, %v10388_v62  ;;  %v10593_v34 = vmax.f32 %v10592_v30, 0.0  ;;  %v3662_v8 = vmul.f32 %v6497_v36, %v3606_v0  ;;  %v3661_v16 = vmul.f32 %v6497_v36, %v3605_v42  ;;  %v6499_v23 = vpop.eup %6498 }
 0x8b8   : > { %v9367_v55 = vadd.f32 %v3736_v26, %v10590_v27  ;;  %v10596_v11 = vmax.f32 %v10595_v41, 0.0  ;;  %v10599_v26 = vmax.f32 %v10598_v58, 0.0  ;;  %v3664_v27 = vmul.f32 %v6499_v23, %v3608_v49 }
 0x8b9   : > { %v9376_v60 = vadd.f32 %v3738_v37, %v10593_v34  ;;  %v3701_v30 = vmul.f32 %v9077_v1, %v3662_v8  ;;  %v3663_v37 = vmul.f32 %v6499_v23, %v3607_v14  ;;  %v3700_v42 = vmul.f32 %v9074_v20, %v3661_v16  ;;  %v10601_v8 = vld [vmem:[#allocation31_spill] sm:$0xff] }
 0x8ba   : > { %10591 = vst [vmem:[#allocation22_spill] sm:$0xff] %v9367_v55  ;;  %v10386_v5 = vmax.f32 %v9367_v55, 0.0  ;;  %v9381_v31 = vadd.f32 %v3735_v50, %v10596_v11  ;;  %v9385_v52 = vadd.f32 %v3737_v6, %v10599_v26  ;;  %v3703_v36 = vmul.f32 %v9077_v1, %v3664_v27  ;;  %v10604_v11 = vld [vmem:[#allocation32_spill] sm:$0xff]  ;;  %v10607_v26 = vld [vmem:[#allocation33_spill] sm:$0xff] }
 0x8bb   : > { %10594 = vst [vmem:[#allocation23_spill] sm:$0xff] %v9376_v60  ;;  %v10385_v13 = vmax.f32 %v9376_v60, 0.0  ;;  %v3740_v6 = vadd.f32 %v9085_v29, %v3701_v30  ;;  %v3702_v34 = vmul.f32 %v9074_v20, %v3663_v37  ;;  %v10602_v23 = vmax.f32 %v10601_v8, 0.0  ;;  %v6296_v8 = vld [vmem:[#allocation7 + $0x500] ss:$8 sps:$4 sm:$0xff]  }
 0x8bc   : > { %10597 = vst [vmem:[#allocation24_spill] sm:$0xff] %v9381_v31  ;;  %10600 = vst [vmem:[#allocation25_spill] sm:$0xff] %v9385_v52  ;;  %v10383_v0 = vmax.f32 %v9385_v52, 0.0  ;;  %4092 = vmatmul.mubr.bf16.gmra.mrb[72].mxu1 %v3807_v45  ;;  %v10384_v49 = vmax.f32 %v9381_v31, 0.0  ;;  %v3742_v14 = vadd.f32 %v9085_v29, %v3703_v36  ;;  %v3739_v45 = vadd.f32 %v9082_v2, %v3700_v42  ;;  %v10610_v42 = vld [vmem:[#allocation34_spill] sm:$0xff] }
 0x8bd   : > { %v3810_v50 = vpack.c.bf16 %v10385_v13, %v10386_v5  ;;  %v9402_v16 = vadd.f32 %v3740_v6, %v10602_v23  ;;  %v3741_v41 = vadd.f32 %v9082_v2, %v3702_v34  ;;  %v10605_v20 = vmax.f32 %v10604_v11, 0.0  ;;  %v6298_v23 = vld [vmem:[#allocation7 + $0x504] ss:$8 sps:$4 sm:$0xff]   ;;  %v6302_v11 = vld [vmem:[#allocation7 + $0x520] ss:$8 sps:$4 sm:$0xff]  }
 0x8be   : > { %v3809_v1 = vpack.c.bf16 %v10383_v0, %v10384_v49  ;;  %v10608_v27 = vmax.f32 %v10607_v26, 0.0  ;;  %4718 = vmatprep.subr.bf16.mxu0 %v6298_v23  ;;  %v6305_v26 = vld [vmem:[#allocation7 + $0x530] ss:$8 sps:$4 sm:$0xff]   ;;  %v3847_v23 = vld [vmem:[#allocation10 + $0x20] ss:$8 sm:$0x3] }
 0x8bf   : > { %4101 = vmatprep.mubr.bf16.mxu1 %v3810_v50  ;;  %10603 = vst [vmem:[#allocation26_spill] sm:$0xff] %v9402_v16  ;;  %v9412_v58 = vadd.f32 %v3742_v14, %v10605_v20  ;;  %v10382_v30 = vmax.f32 %v9402_v16, 0.0  ;;  %v10611_v50 = vmax.f32 %v10610_v42, 0.0  ;;  %4719 = vmatpush1.bf16.msra.mxu0 %v6296_v8  ;;  %v6307_v20 = vld [vmem:[#allocation7 + $0x534] ss:$8 sps:$4 sm:$0xff]  }
 0x8c0   : > { %v9416_v29 = vadd.f32 %v3741_v41, %v10608_v27  ;;  %v6299_v41 = vld [vmem:[#allocation7 + $0x510] ss:$8 sps:$4 sm:$0xff]   ;;  %v6310_v27 = vld [vmem:[#allocation7 + $0x544] ss:$8 sps:$4 sm:$0xff]   ;;  %v6308_v42 = vld [vmem:[#allocation7 + $0x540] ss:$8 sps:$4 sm:$0xff]  }
 0x8c1   : > { %10606 = vst [vmem:[#allocation27_spill] sm:$0xff] %v9412_v58  ;;  %v10381_v37 = vmax.f32 %v9412_v58, 0.0  ;;  %v9422_v2 = vadd.f32 %v3739_v45, %v10611_v50  ;;  %v6301_v45 = vld [vmem:[#allocation7 + $0x514] ss:$8 sps:$4 sm:$0xff]   ;;  %v6314_v8 = vld [vmem:[#allocation7 + $0x560] ss:$8 sps:$4 sm:$0xff]  }
 0x8c2   : > { %10609 = vst [vmem:[#allocation28_spill] sm:$0xff] %v9416_v29  ;;  %v10380_v6 = vmax.f32 %v9416_v29, 0.0  ;;  %4720 = vmatprep.subr.bf16.mxu0 %v6301_v45  ;;  %v6313_v50 = vld [vmem:[#allocation7 + $0x554] ss:$8 sps:$4 sm:$0xff]  }
 0x8c3   : > { %10612 = vst [vmem:[#allocation30_spill] sm:$0xff] %v9422_v2  ;;  %v3812_v36 = vpack.c.bf16 %v10381_v37, %v10382_v30  ;;  %v10379_v34 = vmax.f32 %v9422_v2, 0.0  ;;  %4721 = vmatpush1.bf16.msra.mxu0 %v6299_v41  ;;  %v10613_v45 = vld [vmem:[#allocation16_spill] sm:$0xff] }
 0x8c4   : > { %4102 = vmatmul.mubr.bf16.gmra.mrb[76].mxu1 %v3809_v1  ;;  %v6304_v1 = vld [vmem:[#allocation7 + $0x524] ss:$8 sps:$4 sm:$0xff]   ;;  %v9435_v41 = vrot.slane %v3847_v23, %v10613_v45 }
 0x8c5   : > { %4111 = vmatprep.mubr.bf16.mxu1 %v3812_v36  ;;  %v3811_v14 = vpack.c.bf16 %v10380_v6, %v10379_v34  ;;  %4722 = vmatprep.subr.bf16.mxu0 %v6304_v1  ;;  %v6311_v36 = vld [vmem:[#allocation7 + $0x550] ss:$8 sps:$4 sm:$0xff]  }
 0x8c6   : > { %v10614_v1 = vld [vmem:[#allocation17_spill] sm:$0xff] }
 0x8c7   : > { %4723 = vmatpush1.bf16.msra.mxu0 %v6302_v11  ;;  %v9438_v11 = vrot.slane %v3847_v23, %v10614_v1 }
 0x8c8   : > { %4724 = vmatprep.subr.bf16.mxu0 %v6307_v20 }
 0x8cb   : > { %4725 = vmatpush1.bf16.msra.mxu0 %v6305_v26 }
 0x8cc   : > { %4112 = vmatmul.mubr.bf16.gmra.mrb[80].mxu1 %v3811_v14  ;;  %4726 = vmatprep.subr.bf16.mxu0 %v6310_v27  ;;  %v6316_v14 = vld [vmem:[#allocation7 + $0x564] ss:$8 sps:$4 sm:$0xff]  }
 0x8cf   : > { %4727 = vmatpush1.bf16.msra.mxu0 %v6308_v42 }
 0x8d0   : > { %4728 = vmatprep.subr.bf16.mxu0 %v6313_v50 }
 0x8d3   : > { %4729 = vmatpush1.bf16.msra.mxu0 %v6311_v36 }
 0x8d4   : > { %4730 = vmatprep.subr.bf16.mxu0 %v6316_v14 }
 0x8d7   : > { %4731 = vmatpush1.bf16.msra.mxu0 %v6314_v8 }
 0x953   : > { %v4053_v20 = vpop.f32.mrb[56].mxu1 }
 0x954   : > { %v9441_v26 = vadd.f32 %v4053_v20, %v9435_v41  ;;  %v4055_v27 = vpop.f32.mrb[57].mxu1 }
 0x955   : > { %v9444_v42 = vadd.f32 %v4055_v27, %v9438_v11  ;;  %v4057_v50 = vpop.f32.mrb[58].mxu1 }
 0x956   : > { %v9447_v36 = vadd.f32 %v4057_v50, %v9435_v41  ;;  %v4059_v14 = vpop.f32.mrb[59].mxu1  ;;  %v4182_v8 = vmul.f32 %v9441_v26, %v9441_v26 }
 0x957   : > { %v4183_v23 = vmul.f32 %v9444_v42, %v9444_v42  ;;  %v9454_v34 = vadd.f32 %v4059_v14, %v9438_v11  ;;  %v4126_v20 = vadd.f32 %v9444_v42, %v9441_v26 }
 0x958   : > { %v4184_v27 = vmul.f32 %v9447_v36, %v9447_v36 }
 0x959   : > { %v4185_v50 = vmul.f32 %v9454_v34, %v9454_v34  ;;  %4127 = vadd.xlane.f32.xlu0 %v4126_v20  ;;  %v4129_v6 = vadd.f32 %v9454_v34, %v9447_v36  ;;  %v4210_v37 = vadd.f32 %v4183_v23, %v4182_v8  ;;  %v6317_v23 = vld [vmem:[#allocation7 + $0x570] ss:$8 sps:$4 sm:$0xff]  }
 0x95b   : > { %4130 = vadd.xlane.f32.xlu1 %v4129_v6  ;;  %v4213_v30 = vadd.f32 %v4185_v50, %v4184_v27 }
 0x95d   : > { %4211 = vadd.xlane.f32.xlu0 %v4210_v37 }
 0x95f   : > { %4214 = vadd.xlane.f32.xlu1 %v4213_v30 }
 0x966   : > { %v4063_v14 = vpop.f32.mrb[60].mxu1 }
 0x967   : > { %v9465_v0 = vadd.f32 %v4063_v14, %v9435_v41  ;;  %v4065_v49 = vpop.f32.mrb[61].mxu1 }
 0x968   : > { %v9468_v13 = vadd.f32 %v4065_v49, %v9438_v11  ;;  %v4067_v5 = vpop.f32.mrb[62].mxu1  ;;  %v6319_v49 = vld [vmem:[#allocation7 + $0x574] ss:$8 sps:$4 sm:$0xff]  }
 0x969   : > { %v9471_v28 = vadd.f32 %v4067_v5, %v9435_v41  ;;  %v4069_v20 = vpop.f32.mrb[63].mxu1  ;;  %v4186_v6 = vmul.f32 %v9465_v0, %v9465_v0  ;;  %4732 = vmatprep.subr.bf16.mxu0 %v6319_v49 }
 0x96a   : > { %v4187_v37 = vmul.f32 %v9468_v13, %v9468_v13  ;;  %v9478_v30 = vadd.f32 %v4069_v20, %v9438_v11  ;;  %v4132_v8 = vadd.f32 %v9468_v13, %v9465_v0  ;;  %4733 = vmatpush1.bf16.msra.mxu0 %v6317_v23 }
 0x96b   : > { %v4188_v27 = vmul.f32 %v9471_v28, %v9471_v28 }
 0x96c   : > { %v4189_v5 = vmul.f32 %v9478_v30, %v9478_v30  ;;  %4133 = vadd.xlane.f32.xlu0 %v4132_v8  ;;  %v4135_v50 = vadd.f32 %v9478_v30, %v9471_v28  ;;  %v4216_v14 = vadd.f32 %v4187_v37, %v4186_v6 }
 0x96e   : > { %4136 = vadd.xlane.f32.xlu1 %v4135_v50  ;;  %v4219_v20 = vadd.f32 %v4189_v5, %v4188_v27  ;;  %v6320_v5 = vld [vmem:[#allocation7 + $0x580] ss:$8 sps:$4 sm:$0xff]   ;;  %v6322_v50 = vld [vmem:[#allocation7 + $0x584] ss:$8 sps:$4 sm:$0xff]  }
 0x96f   : > { %4734 = vmatprep.subr.bf16.mxu0 %v6322_v50 }
 0x970   : > { %4217 = vadd.xlane.f32.xlu0 %v4216_v14  ;;  %v6325_v14 = vld [vmem:[#allocation7 + $0x594] ss:$8 sps:$4 sm:$0xff]   ;;  %4735 = vmatpush1.bf16.msra.mxu0 %v6320_v5 }
 0x971   : > { %4736 = vmatprep.subr.bf16.mxu0 %v6325_v14 }
 0x972   : > { %4220 = vadd.xlane.f32.xlu1 %v4219_v20  ;;  %v6323_v20 = vld [vmem:[#allocation7 + $0x590] ss:$8 sps:$4 sm:$0xff]  }
 0x974   : > { %4737 = vmatpush1.bf16.msra.mxu0 %v6323_v20 }
 0x979   : > { %v4073_v62 = vpop.f32.mrb[64].mxu1 }
 0x97a   : > { %v9489_v47 = vadd.f32 %v4073_v62, %v9435_v41  ;;  %v4075_v17 = vpop.f32.mrb[65].mxu1 }
 0x97b   : > { %v9492_v48 = vadd.f32 %v4075_v17, %v9438_v11  ;;  %v4077_v3 = vpop.f32.mrb[66].mxu1 }
 0x97c   : > { %v9495_v8 = vadd.f32 %v4077_v3, %v9435_v41  ;;  %v4079_v25 = vpop.f32.mrb[67].mxu1  ;;  %v4190_v23 = vmul.f32 %v9489_v47, %v9489_v47 }
 0x97d   : > { %v4191_v6 = vmul.f32 %v9492_v48, %v9492_v48  ;;  %v9502_v37 = vadd.f32 %v4079_v25, %v9438_v11  ;;  %v4138_v62 = vadd.f32 %v9492_v48, %v9489_v47 }
 0x97e   : > { %v4192_v17 = vmul.f32 %v9495_v8, %v9495_v8 }
 0x97f   : > { %v4193_v3 = vmul.f32 %v9502_v37, %v9502_v37  ;;  %4139 = vadd.xlane.f32.xlu0 %v4138_v62  ;;  %v4141_v49 = vadd.f32 %v9502_v37, %v9495_v8  ;;  %v4222_v27 = vadd.f32 %v4191_v6, %v4190_v23 }
 0x981   : > { %4142 = vadd.xlane.f32.xlu1 %v4141_v49  ;;  %v4225_v25 = vadd.f32 %v4193_v3, %v4192_v17  ;;  %v6326_v17 = vld [vmem:[#allocation7 + $0x5a0] ss:$8 sps:$4 sm:$0xff]   ;;  %v6328_v3 = vld [vmem:[#allocation7 + $0x5a4] ss:$8 sps:$4 sm:$0xff]  }
 0x982   : > { %4738 = vmatprep.subr.bf16.mxu0 %v6328_v3 }
 0x983   : > { %4223 = vadd.xlane.f32.xlu0 %v4222_v27  ;;  %4739 = vmatpush1.bf16.msra.mxu0 %v6326_v17 }
 0x984   : > { %4740 = vmatprep.subr.bf16.mxu0 %v6331_v15 }
 0x985   : > { %4226 = vadd.xlane.f32.xlu1 %v4225_v25 }
 0x987   : > { %v4083_v51 = vpop.f32.mrb[68].mxu1  ;;  %4741 = vmatpush1.bf16.msra.mxu0 %v6329_v57 }
 0x988   : > { %v9513_v10 = vadd.f32 %v4083_v51, %v9435_v41  ;;  %v4085_v62 = vpop.f32.mrb[69].mxu1 }
 0x989   : > { %v9516_v12 = vadd.f32 %v4085_v62, %v9438_v11  ;;  %v4087_v49 = vpop.f32.mrb[70].mxu1 }
 0x98a   : > { %v9519_v23 = vadd.f32 %v4087_v49, %v9435_v41  ;;  %v4089_v6 = vpop.f32.mrb[71].mxu1  ;;  %v4194_v27 = vmul.f32 %v9513_v10, %v9513_v10 }
 0x98b   : > { %v4195_v5 = vmul.f32 %v9516_v12, %v9516_v12  ;;  %v9526_v51 = vadd.f32 %v4089_v6, %v9438_v11  ;;  %v4144_v50 = vadd.f32 %v9516_v12, %v9513_v10 }
 0x98c   : > { %v4196_v25 = vmul.f32 %v9519_v23, %v9519_v23 }
 0x98d   : > { %v4197_v14 = vmul.f32 %v9526_v51, %v9526_v51  ;;  %4145 = vadd.xlane.f32.xlu0 %v4144_v50  ;;  %v4147_v20 = vadd.f32 %v9526_v51, %v9519_v23  ;;  %v4228_v49 = vadd.f32 %v4195_v5, %v4194_v27 }
 0x98f   : > { %4148 = vadd.xlane.f32.xlu1 %v4147_v20  ;;  %v4093_v62 = vpop.f32.mrb[72].mxu1  ;;  %v4231_v53 = vadd.f32 %v4197_v14, %v4196_v25 }
 0x990   : > { %v9537_v6 = vadd.f32 %v4093_v62, %v9435_v41  ;;  %v4095_v4 = vpop.f32.mrb[73].mxu1  ;;  %v6334_v62 = vld [vmem:[#allocation7 + $0x5c4] ss:$8 sps:$4 sm:$0xff]  }
 0x991   : > { %v9540_v3 = vadd.f32 %v4095_v4, %v9438_v11  ;;  %4229 = vadd.xlane.f32.xlu0 %v4228_v49  ;;  %v4097_v39 = vpop.f32.mrb[74].mxu1  ;;  %4742 = vmatprep.subr.bf16.mxu0 %v6334_v62 }
 0x992   : > { %v4198_v50 = vmul.f32 %v9537_v6, %v9537_v6  ;;  %v9545_v17 = vadd.f32 %v4097_v39, %v9435_v41  ;;  %v4099_v20 = vpop.f32.mrb[75].mxu1 }
 0x993   : > { %v4199_v27 = vmul.f32 %v9540_v3, %v9540_v3  ;;  %v9550_v5 = vadd.f32 %v4099_v20, %v9438_v11  ;;  %4232 = vadd.xlane.f32.xlu1 %v4231_v53  ;;  %v4150_v4 = vadd.f32 %v9540_v3, %v9537_v6  ;;  %v6332_v53 = vld [vmem:[#allocation7 + $0x5c0] ss:$8 sps:$4 sm:$0xff]  }
 0x994   : > { %v4200_v25 = vmul.f32 %v9545_v17, %v9545_v17  ;;  %4743 = vmatpush1.bf16.msra.mxu0 %v6332_v53  ;;  %v6340_v53 = vld [vmem:[#allocation7 + $0x5e4] ss:$8 sps:$4 sm:$0xff]  }
 0x995   : > { %v4201_v39 = vmul.f32 %v9550_v5, %v9550_v5  ;;  %4151 = vadd.xlane.f32.xlu0 %v4150_v4  ;;  %v4153_v14 = vadd.f32 %v9550_v5, %v9545_v17  ;;  %v4234_v20 = vadd.f32 %v4199_v27, %v4198_v50 }
 0x997   : > { %4154 = vadd.xlane.f32.xlu1 %v4153_v14  ;;  %v4103_v49 = vpop.f32.mrb[76].mxu1  ;;  %v4237_v58 = vadd.f32 %v4201_v39, %v4200_v25  ;;  %v6337_v14 = vld [vmem:[#allocation7 + $0x5d4] ss:$8 sps:$4 sm:$0xff]   ;;  %v6335_v25 = vld [vmem:[#allocation7 + $0x5d0] ss:$8 sps:$4 sm:$0xff]  }
 0x998   : > { %v9561_v2 = vadd.f32 %v4103_v49, %v9435_v41  ;;  %v4105_v15 = vpop.f32.mrb[77].mxu1  ;;  %4744 = vmatprep.subr.bf16.mxu0 %v6337_v14 }
 0x999   : > { %v9564_v57 = vadd.f32 %v4105_v15, %v9438_v11  ;;  %4235 = vadd.xlane.f32.xlu0 %v4234_v20  ;;  %v4107_v29 = vpop.f32.mrb[78].mxu1  ;;  %4745 = vmatpush1.bf16.msra.mxu0 %v6335_v25  ;;  %v6338_v15 = vld [vmem:[#allocation7 + $0x5e0] ss:$8 sps:$4 sm:$0xff]  }
 0x99a   : > { %v9567_v4 = vadd.f32 %v4107_v29, %v9435_v41  ;;  %v4109_v16 = vpop.f32.mrb[79].mxu1  ;;  %v4202_v50 = vmul.f32 %v9561_v2, %v9561_v2  ;;  %4746 = vmatprep.subr.bf16.mxu0 %v6340_v53 }
 0x99b   : > { %v4203_v27 = vmul.f32 %v9564_v57, %v9564_v57  ;;  %v9574_v62 = vadd.f32 %v4109_v16, %v9438_v11  ;;  %4238 = vadd.xlane.f32.xlu1 %v4237_v58  ;;  %v4156_v49 = vadd.f32 %v9564_v57, %v9561_v2 }
 0x99c   : > { %v4204_v29 = vmul.f32 %v9567_v4, %v9567_v4 }
 0x99d   : > { %v4205_v39 = vmul.f32 %v9574_v62, %v9574_v62  ;;  %4157 = vadd.xlane.f32.xlu0 %v4156_v49  ;;  %v4159_v20 = vadd.f32 %v9574_v62, %v9567_v4  ;;  %v4240_v58 = vadd.f32 %v4203_v27, %v4202_v50  ;;  %4747 = vmatpush1.bf16.msra.mxu0 %v6338_v15 }
 0x99f   : > { %4160 = vadd.xlane.f32.xlu1 %v4159_v20  ;;  %v4113_v16 = vpop.f32.mrb[80].mxu1  ;;  %v4243_v49 = vadd.f32 %v4205_v39, %v4204_v29  ;;  %v6343_v20 = vld [vmem:[#allocation7 + $0x5f4] ss:$8 sps:$4 sm:$0xff]   ;;  %v6341_v29 = vld [vmem:[#allocation7 + $0x5f0] ss:$8 sps:$4 sm:$0xff]  }
 0x9a0   : > { %v9585_v52 = vadd.f32 %v4113_v16, %v9435_v41  ;;  %v4115_v14 = vpop.f32.mrb[81].mxu1  ;;  %4748 = vmatprep.subr.bf16.mxu0 %v6343_v20 }
 0x9a1   : > { %v9588_v31 = vadd.f32 %v4115_v14, %v9438_v11  ;;  %4241 = vadd.xlane.f32.xlu0 %v4240_v58  ;;  %v4117_v60 = vpop.f32.mrb[82].mxu1  ;;  %4749 = vmatpush1.bf16.msra.mxu0 %v6341_v29 }
 0x9a2   : > { %v9591_v55 = vadd.f32 %v4117_v60, %v9435_v41  ;;  %v4119_v25 = vpop.f32.mrb[83].mxu1  ;;  %v4206_v50 = vmul.f32 %v9585_v52, %v9585_v52 }
 0x9a3   : > { %v4207_v27 = vmul.f32 %v9588_v31, %v9588_v31  ;;  %v9598_v53 = vadd.f32 %v4119_v25, %v9438_v11  ;;  %4244 = vadd.xlane.f32.xlu1 %v4243_v49  ;;  %v4162_v16 = vadd.f32 %v9588_v31, %v9585_v52 }
 0x9a4   : > { %v4208_v60 = vmul.f32 %v9591_v55, %v9591_v55 }
 0x9a5   : > { %v4209_v41 = vmul.f32 %v9598_v53, %v9598_v53  ;;  %4163 = vadd.xlane.f32.xlu0 %v4162_v16  ;;  %v4165_v39 = vadd.f32 %v9598_v53, %v9591_v55  ;;  %v4246_v11 = vadd.f32 %v4207_v27, %v4206_v50 }
 0x9a7   : > { %4166 = vadd.xlane.f32.xlu1 %v4165_v39  ;;  %v4249_v58 = vadd.f32 %v4209_v41, %v4208_v60  ;;  %v4123_v41 = vld [vmem:[#allocation10 + $0x21] ss:$8 sm:$0x3] }
 0x9a9   : > { %4247 = vadd.xlane.f32.xlu0 %v4246_v11  ;;  %v4125_v11 = vld [vmem:[#allocation10 + $0x22] ss:$8 sm:$0x3] }
 0x9ab   : > { %4250 = vadd.xlane.f32.xlu1 %v4249_v58 }
 0x9e6   : > { %v4128_v15 = vpop.xlane.xlu0 %4127 }
 0x9e7   : > { %v4168_v14 = vmul.f32 0.00390625, %v4128_v15 }
 0x9e8   : > { %v4131_v49 = vpop.xlane.xlu1 %4130 }
 0x9e9   : > { %v4169_v25 = vmul.f32 0.00390625, %v4131_v49  ;;  %v4266_v61 = vmul.f32 %v4168_v14, %v4168_v14  ;;  %v4308_v15 = vsub.f32 %v9441_v26, %v4168_v14  ;;  %v9626_v49 = vrot.slane %v4125_v11, %v10614_v1 }
 0x9ea   : > { %v4212_v20 = vpop.xlane.xlu0 %4211 }
 0x9eb   : > { %v4252_v21 = vmul.f32 0.00390625, %v4212_v20  ;;  %v4267_v18 = vmul.f32 %v4169_v25, %v4169_v25  ;;  %v4310_v26 = vsub.f32 %v9447_v36, %v4169_v25 }
 0x9ec   : > { %v4215_v63 = vpop.xlane.xlu1 %4214 }
 0x9ed   : > { %v4280_v22 = vsub.f32 %v4252_v21, %v4266_v61  ;;  %v4253_v16 = vmul.f32 0.00390625, %v4215_v63  ;;  %v4309_v21 = vsub.f32 %v9444_v42, %v4168_v14  ;;  %v9623_v61 = vrot.slane %v4125_v11, %v10613_v45 }
 0x9ee   : > { %v4311_v42 = vsub.f32 %v9454_v34, %v4169_v25 }
 0x9ef   : > { %v4294_v43 = vmax.f32 %v4280_v22, 0.0  ;;  %v4281_v19 = vsub.f32 %v4253_v16, %v4267_v18  ;;  %v9615_v18 = vrot.slane %v4123_v41, %v10613_v45 }
 0x9f1   : > { %v4336_v38 = vadd.f32 1e-05, %v4294_v43  ;;  %v4295_v29 = vmax.f32 %v4281_v19, 0.0 }
 0x9f3   : > { %6500 = vrsqrt.f32 %v4336_v38  ;;  %v4337_v50 = vadd.f32 1e-05, %v4295_v29  ;;  %v9618_v38 = vrot.slane %v4123_v41, %v10614_v1 }
 0x9f5   : > { %6502 = vrsqrt.f32 %v4337_v50 }
 0x9f9   : > { %v4134_v27 = vpop.xlane.xlu0 %4133 }
 0x9fa   : > { %v9608_v60 = vmul.f32 0.00390625, %v4134_v27 }
 0x9fb   : > { %v4137_v39 = vpop.xlane.xlu1 %4136 }
 0x9fc   : > { %v9610_v58 = vmul.f32 0.00390625, %v4137_v39  ;;  %v4268_v43 = vmul.f32 %v9608_v60, %v9608_v60 }
 0x9fd   : > { %v4218_v63 = vpop.xlane.xlu0 %4217  ;;  %v6501_v19 = vpop.eup %6500 }
 0x9fe   : > { %v4254_v22 = vmul.f32 0.00390625, %v4218_v63  ;;  %v4364_v14 = vmul.f32 %v6501_v19, %v4308_v15  ;;  %v4365_v16 = vmul.f32 %v6501_v19, %v4309_v21  ;;  %v4269_v27 = vmul.f32 %v9610_v58, %v9610_v58 }
 0x9ff   : > { %v4221_v20 = vpop.xlane.xlu1 %4220  ;;  %v6503_v29 = vpop.eup %6502 }
 0xa00   : > { %v4282_v50 = vsub.f32 %v4254_v22, %v4268_v43  ;;  %v4255_v41 = vmul.f32 0.00390625, %v4221_v20  ;;  %v4366_v39 = vmul.f32 %v6503_v29, %v4310_v26  ;;  %v4367_v63 = vmul.f32 %v6503_v29, %v4311_v42 }
 0xa01   : > { %v4404_v46 = vmul.f32 %v9618_v38, %v4365_v16  ;;  %v4403_v11 = vmul.f32 %v9615_v18, %v4364_v14 }
 0xa02   : > { %v4296_v33 = vmax.f32 %v4282_v50, 0.0  ;;  %v4283_v24 = vsub.f32 %v4255_v41, %v4269_v27  ;;  %v4406_v36 = vmul.f32 %v9618_v38, %v4367_v63  ;;  %v4405_v25 = vmul.f32 %v9615_v18, %v4366_v39 }
 0xa03   : > { %v4443_v34 = vadd.f32 %v9626_v49, %v4404_v46  ;;  %v4442_v15 = vadd.f32 %v9623_v61, %v4403_v11  ;;  %v4312_v39 = vsub.f32 %v9465_v0, %v9608_v60  ;;  %v4313_v63 = vsub.f32 %v9468_v13, %v9608_v60 }
 0xa04   : > { %v4338_v21 = vadd.f32 1e-05, %v4296_v33  ;;  %v4297_v19 = vmax.f32 %v4283_v24, 0.0  ;;  %v4445_v43 = vadd.f32 %v9626_v49, %v4406_v36  ;;  %v4444_v22 = vadd.f32 %v9623_v61, %v4405_v25 }
 0xa05   : > { %v4471_v42 = vmax.f32 %v4443_v34, 0.0  ;;  %v4470_v20 = vmax.f32 %v4442_v15, 0.0  ;;  %v4315_v25 = vsub.f32 %v9478_v30, %v9610_v58  ;;  %v4314_v13 = vsub.f32 %v9471_v28, %v9610_v58 }
 0xa06   : > { %6504 = vrsqrt.f32 %v4338_v21  ;;  %v4339_v26 = vadd.f32 1e-05, %v4297_v19  ;;  %v4473_v14 = vmax.f32 %v4445_v43, 0.0  ;;  %v4472_v16 = vmax.f32 %v4444_v22, 0.0 }
 0xa08   : > { %6506 = vrsqrt.f32 %v4339_v26  ;;  %v4499_v29 = vpack.c.bf16 %v4473_v14, %v4471_v42  ;;  %v4498_v50 = vpack.c.bf16 %v4472_v16, %v4470_v20 }
 0xa0a   : > { %4750 = vmatprep.mubr.bf16.mxu0 %v4499_v29 }
 0xa0b   : > { %4751 = vmatmul.mubr.bf16.vlgmr.msra.gmra.mrb[84].mxu0 %v4498_v50 }
 0xa0c   : > { %v4140_v46 = vpop.xlane.xlu0 %4139 }
 0xa0d   : > { %v9640_v27 = vmul.f32 0.00390625, %v4140_v46 }
 0xa0e   : > { %v4143_v41 = vpop.xlane.xlu1 %4142 }
 0xa0f   : > { %v9642_v24 = vmul.f32 0.00390625, %v4143_v41  ;;  %v4270_v11 = vmul.f32 %v9640_v27, %v9640_v27 }
 0xa10   : > { %v4224_v33 = vpop.xlane.xlu0 %4223  ;;  %v6505_v34 = vpop.eup %6504 }
 0xa11   : > { %v4256_v36 = vmul.f32 0.00390625, %v4224_v33  ;;  %v4271_v15 = vmul.f32 %v9642_v24, %v9642_v24  ;;  %v4369_v22 = vmul.f32 %v6505_v34, %v4313_v63  ;;  %v4368_v26 = vmul.f32 %v6505_v34, %v4312_v39 }
 0xa12   : > { %v4227_v21 = vpop.xlane.xlu1 %4226  ;;  %v6507_v0 = vpop.eup %6506 }
 0xa13   : > { %v4284_v19 = vsub.f32 %v4256_v36, %v4270_v11  ;;  %v4257_v43 = vmul.f32 0.00390625, %v4227_v21  ;;  %v4371_v14 = vmul.f32 %v6507_v0, %v4315_v25  ;;  %v4408_v20 = vmul.f32 %v9618_v38, %v4369_v22 }
 0xa14   : > { %v4370_v16 = vmul.f32 %v6507_v0, %v4314_v13  ;;  %v4407_v30 = vmul.f32 %v9615_v18, %v4368_v26 }
 0xa15   : > { %v4298_v60 = vmax.f32 %v4284_v19, 0.0  ;;  %v4285_v42 = vsub.f32 %v4257_v43, %v4271_v15  ;;  %v4410_v46 = vmul.f32 %v9618_v38, %v4371_v14  ;;  %v4447_v33 = vadd.f32 %v9626_v49, %v4408_v20 }
 0xa16   : > { %v4409_v39 = vmul.f32 %v9615_v18, %v4370_v16  ;;  %v4446_v63 = vadd.f32 %v9623_v61, %v4407_v30 }
 0xa17   : > { %v4340_v29 = vadd.f32 1e-05, %v4298_v60  ;;  %v4299_v50 = vmax.f32 %v4285_v42, 0.0  ;;  %v4449_v11 = vadd.f32 %v9626_v49, %v4410_v46  ;;  %v4475_v21 = vmax.f32 %v4447_v33, 0.0 }
 0xa18   : > { %v4448_v34 = vadd.f32 %v9623_v61, %v4409_v39  ;;  %v4474_v43 = vmax.f32 %v4446_v63, 0.0  ;;  %v4317_v33 = vsub.f32 %v9492_v48, %v9640_v27  ;;  %v4318_v48 = vsub.f32 %v9495_v8, %v9642_v24 }
 0xa19   : > { %6508 = vrsqrt.f32 %v4340_v29  ;;  %v4341_v28 = vadd.f32 1e-05, %v4299_v50  ;;  %v4477_v19 = vmax.f32 %v4449_v11, 0.0 }
 0xa1a   : > { %v4146_v41 = vpop.xlane.xlu0 %4145  ;;  %v4476_v22 = vmax.f32 %v4448_v34, 0.0 }
 0xa1b   : > { %v9662_v58 = vmul.f32 0.00390625, %v4146_v41  ;;  %6510 = vrsqrt.f32 %v4341_v28  ;;  %v4501_v60 = vpack.c.bf16 %v4477_v19, %v4475_v21  ;;  %v4316_v41 = vsub.f32 %v9489_v47, %v9640_v27 }
 0xa1c   : > { %v4149_v36 = vpop.xlane.xlu1 %4148  ;;  %v4500_v42 = vpack.c.bf16 %v4476_v22, %v4474_v43 }
 0xa1d   : > { %v9666_v25 = vmul.f32 0.00390625, %v4149_v36  ;;  %v4272_v26 = vmul.f32 %v9662_v58, %v9662_v58  ;;  %4760 = vmatprep.mubr.bf16.mxu0 %v4501_v60  ;;  %v4319_v36 = vsub.f32 %v9502_v37, %v9642_v24 }
 0xa1e   : > { %v4230_v15 = vpop.xlane.xlu0 %4229  ;;  %4761 = vmatmul.mubr.bf16.gmra.mrb[88].mxu0 %v4500_v42 }
 0xa1f   : > { %v4258_v0 = vmul.f32 0.00390625, %v4230_v15  ;;  %v4273_v20 = vmul.f32 %v9666_v25, %v9666_v25 }
 0xa20   : > { %v4233_v13 = vpop.xlane.xlu1 %4232 }
 0xa21   : > { %v4286_v14 = vsub.f32 %v4258_v0, %v4272_v26  ;;  %v4259_v16 = vmul.f32 0.00390625, %v4233_v13 }
 0xa22   : > { %v4152_v30 = vpop.xlane.xlu0 %4151 }
 0xa23   : > { %v4300_v29 = vmax.f32 %v4286_v14, 0.0  ;;  %v4287_v50 = vsub.f32 %v4259_v16, %v4273_v20  ;;  %v9672_v46 = vmul.f32 0.00390625, %v4152_v30  ;;  %v6509_v63 = vpop.eup %6508 }
 0xa24   : > { %v4155_v39 = vpop.xlane.xlu1 %4154  ;;  %v4373_v21 = vmul.f32 %v6509_v63, %v4317_v33  ;;  %v4372_v19 = vmul.f32 %v6509_v63, %v4316_v41 }
 0xa25   : > { %v4342_v28 = vadd.f32 1e-05, %v4300_v29  ;;  %v4301_v11 = vmax.f32 %v4287_v50, 0.0  ;;  %v9680_v34 = vmul.f32 0.00390625, %v4155_v39  ;;  %v6511_v43 = vpop.eup %6510  ;;  %v4274_v47 = vmul.f32 %v9672_v46, %v9672_v46 }
 0xa26   : > { %v4236_v15 = vpop.xlane.xlu0 %4235  ;;  %v4375_v37 = vmul.f32 %v6511_v43, %v4319_v36  ;;  %v4412_v42 = vmul.f32 %v9618_v38, %v4373_v21  ;;  %v4374_v16 = vmul.f32 %v6511_v43, %v4318_v48  ;;  %v4411_v30 = vmul.f32 %v9615_v18, %v4372_v19 }
 0xa27   : > { %6512 = vrsqrt.f32 %v4342_v28  ;;  %v4343_v22 = vadd.f32 1e-05, %v4301_v11  ;;  %v4260_v26 = vmul.f32 0.00390625, %v4236_v15  ;;  %v4275_v27 = vmul.f32 %v9680_v34, %v9680_v34 }
 0xa28   : > { %v4239_v0 = vpop.xlane.xlu1 %4238  ;;  %v4414_v20 = vmul.f32 %v9618_v38, %v4375_v37  ;;  %v4451_v8 = vadd.f32 %v9626_v49, %v4412_v42  ;;  %v4413_v39 = vmul.f32 %v9615_v18, %v4374_v16  ;;  %v4450_v11 = vadd.f32 %v9623_v61, %v4411_v30 }
 0xa29   : > { %6514 = vrsqrt.f32 %v4343_v22  ;;  %v4288_v13 = vsub.f32 %v4260_v26, %v4274_v47  ;;  %v4261_v60 = vmul.f32 0.00390625, %v4239_v0  ;;  %v4320_v48 = vsub.f32 %v9513_v10, %v9662_v58 }
 0xa2a   : > { %v4158_v14 = vpop.xlane.xlu0 %4157  ;;  %v4453_v33 = vadd.f32 %v9626_v49, %v4414_v20  ;;  %v4479_v19 = vmax.f32 %v4451_v8, 0.0  ;;  %v4452_v26 = vadd.f32 %v9623_v61, %v4413_v39  ;;  %v4322_v0 = vsub.f32 %v9519_v23, %v9666_v25 }
 0xa2b   : > { %v4302_v29 = vmax.f32 %v4288_v13, 0.0  ;;  %v4289_v50 = vsub.f32 %v4261_v60, %v4275_v27  ;;  %v9691_v41 = vmul.f32 0.00390625, %v4158_v14  ;;  %v4321_v27 = vsub.f32 %v9516_v12, %v9662_v58 }
 0xa2c   : > { %v4161_v24 = vpop.xlane.xlu1 %4160  ;;  %v4481_v43 = vmax.f32 %v4453_v33, 0.0  ;;  %v4323_v16 = vsub.f32 %v9526_v51, %v9666_v25  ;;  %v4478_v10 = vmax.f32 %v4450_v11, 0.0 }
 0xa2d   : > { %v4344_v63 = vadd.f32 1e-05, %v4302_v29  ;;  %v4303_v28 = vmax.f32 %v4289_v50, 0.0  ;;  %v9697_v36 = vmul.f32 0.00390625, %v4161_v24  ;;  %v4276_v15 = vmul.f32 %v9691_v41, %v9691_v41 }
 0xa2e   : > { %v4242_v21 = vpop.xlane.xlu0 %4241  ;;  %v4503_v13 = vpack.c.bf16 %v4481_v43, %v4479_v19  ;;  %v4480_v29 = vmax.f32 %v4452_v26, 0.0 }
 0xa2f   : > { %6516 = vrsqrt.f32 %v4344_v63  ;;  %v4345_v22 = vadd.f32 1e-05, %v4303_v28  ;;  %v4262_v47 = vmul.f32 0.00390625, %v4242_v21  ;;  %v4277_v14 = vmul.f32 %v9697_v36, %v9697_v36 }
 0xa30   : > { %v4245_v37 = vpop.xlane.xlu1 %4244  ;;  %4770 = vmatprep.mubr.bf16.mxu0 %v4503_v13  ;;  %v4502_v39 = vpack.c.bf16 %v4480_v29, %v4478_v10 }
 0xa31   : > { %v6513_v60 = vpop.eup %6512  ;;  %6518 = vrsqrt.f32 %v4345_v22  ;;  %v4290_v42 = vsub.f32 %v4262_v47, %v4276_v15  ;;  %v4263_v20 = vmul.f32 0.00390625, %v4245_v37  ;;  %v4324_v15 = vsub.f32 %v9537_v6, %v9672_v46 }
 0xa32   : > { %v4164_v30 = vpop.xlane.xlu0 %4163  ;;  %v4377_v12 = vmul.f32 %v6513_v60, %v4321_v27  ;;  %v4376_v24 = vmul.f32 %v6513_v60, %v4320_v48  ;;  %4771 = vmatmul.mubr.bf16.gmra.mrb[92].mxu0 %v4502_v39  ;;  %v4325_v6 = vsub.f32 %v9540_v3, %v9672_v46 }
 0xa33   : > { %v6515_v58 = vpop.eup %6514  ;;  %v4304_v50 = vmax.f32 %v4290_v42, 0.0  ;;  %v4291_v23 = vsub.f32 %v4263_v20, %v4277_v14  ;;  %v9712_v8 = vmul.f32 0.00390625, %v4164_v30 }
 0xa34   : > { %v4167_v33 = vpop.xlane.xlu1 %4166  ;;  %v4379_v63 = vmul.f32 %v6515_v58, %v4323_v16  ;;  %v4416_v28 = vmul.f32 %v9618_v38, %v4377_v12  ;;  %v4378_v21 = vmul.f32 %v6515_v58, %v4322_v0  ;;  %v4415_v27 = vmul.f32 %v9615_v18, %v4376_v24 }
 0xa35   : > { %v4346_v51 = vadd.f32 1e-05, %v4304_v50  ;;  %v4305_v25 = vmax.f32 %v4291_v23, 0.0  ;;  %v9717_v11 = vmul.f32 0.00390625, %v4167_v33  ;;  %v4278_v19 = vmul.f32 %v9712_v8, %v9712_v8 }
 0xa36   : > { %v4248_v43 = vpop.xlane.xlu0 %4247  ;;  %v4418_v22 = vmul.f32 %v9618_v38, %v4379_v63  ;;  %v4455_v47 = vadd.f32 %v9626_v49, %v4416_v28  ;;  %v4327_v0 = vsub.f32 %v9550_v5, %v9680_v34  ;;  %v4417_v10 = vmul.f32 %v9615_v18, %v4378_v21 }
 0xa37   : > { %6520 = vrsqrt.f32 %v4346_v51  ;;  %v4347_v26 = vadd.f32 1e-05, %v4305_v25  ;;  %v4264_v48 = vmul.f32 0.00390625, %v4248_v43  ;;  %v4279_v37 = vmul.f32 %v9717_v11, %v9717_v11 }
 0xa38   : > { %v4251_v13 = vpop.xlane.xlu1 %4250  ;;  %v4457_v60 = vadd.f32 %v9626_v49, %v4418_v22  ;;  %v4483_v16 = vmax.f32 %v4455_v47, 0.0  ;;  %v4454_v29 = vadd.f32 %v9623_v61, %v4415_v27  ;;  %v4326_v5 = vsub.f32 %v9545_v17, %v9680_v34 }
 0xa39   : > { %v6517_v42 = vpop.eup %6516  ;;  %6522 = vrsqrt.f32 %v4347_v26  ;;  %v4292_v14 = vsub.f32 %v4264_v48, %v4278_v19  ;;  %v4265_v20 = vmul.f32 0.00390625, %v4251_v13  ;;  %v4328_v23 = vsub.f32 %v9561_v2, %v9691_v41 }
 0xa3a   : > { %v4485_v30 = vmax.f32 %v4457_v60, 0.0  ;;  %v4381_v3 = vmul.f32 %v6517_v42, %v4325_v6  ;;  %v4380_v50 = vmul.f32 %v6517_v42, %v4324_v15  ;;  %v4456_v33 = vadd.f32 %v9623_v61, %v4417_v10 }
 0xa3b   : > { %v6519_v46 = vpop.eup %6518  ;;  %v4306_v12 = vmax.f32 %v4292_v14, 0.0  ;;  %v4293_v58 = vsub.f32 %v4265_v20, %v4279_v37  ;;  %v4482_v21 = vmax.f32 %v4454_v29, 0.0  ;;  %v4329_v22 = vsub.f32 %v9564_v57, %v9691_v41 }
 0xa3c   : > { %v4505_v24 = vpack.c.bf16 %v4485_v30, %v4483_v16  ;;  %v4383_v39 = vmul.f32 %v6519_v46, %v4327_v0  ;;  %v4420_v51 = vmul.f32 %v9618_v38, %v4381_v3  ;;  %v4382_v25 = vmul.f32 %v6519_v46, %v4326_v5 }
 0xa3d   : > { %v4348_v63 = vadd.f32 1e-05, %v4306_v12  ;;  %v4307_v28 = vmax.f32 %v4293_v58, 0.0  ;;  %v4484_v19 = vmax.f32 %v4456_v33, 0.0  ;;  %v4419_v34 = vmul.f32 %v9615_v18, %v4380_v50 }
 0xa3e   : > { %4780 = vmatprep.mubr.bf16.mxu0 %v4505_v24  ;;  %v4422_v17 = vmul.f32 %v9618_v38, %v4383_v39  ;;  %v4459_v2 = vadd.f32 %v9626_v49, %v4420_v51  ;;  %v4421_v43 = vmul.f32 %v9615_v18, %v4382_v25  ;;  %v4330_v6 = vsub.f32 %v9567_v4, %v9697_v36 }
 0xa3f   : > { %6524 = vrsqrt.f32 %v4348_v63  ;;  %v4349_v15 = vadd.f32 1e-05, %v4307_v28  ;;  %v4504_v47 = vpack.c.bf16 %v4484_v19, %v4482_v21  ;;  %v4458_v48 = vadd.f32 %v9623_v61, %v4419_v34 }
 0xa40   : > { %v4461_v26 = vadd.f32 %v9626_v49, %v4422_v17  ;;  %v4331_v0 = vsub.f32 %v9574_v62, %v9697_v36  ;;  %v4460_v37 = vadd.f32 %v9623_v61, %v4421_v43  ;;  %v4487_v13 = vmax.f32 %v4459_v2, 0.0 }
 0xa41   : > { %v6521_v27 = vpop.eup %6520  ;;  %6526 = vrsqrt.f32 %v4349_v15  ;;  %4781 = vmatmul.mubr.bf16.gmra.mrb[96].mxu0 %v4504_v47  ;;  %v4486_v14 = vmax.f32 %v4458_v48, 0.0  ;;  %v4332_v5 = vsub.f32 %v9585_v52, %v9712_v8  ;;  %v4333_v12 = vsub.f32 %v9588_v31, %v9712_v8 }
 0xa42   : > { %v4489_v60 = vmax.f32 %v4461_v26, 0.0  ;;  %v4385_v42 = vmul.f32 %v6521_v27, %v4329_v22  ;;  %v4384_v57 = vmul.f32 %v6521_v27, %v4328_v23  ;;  %v4488_v20 = vmax.f32 %v4460_v37, 0.0 }
 0xa43   : > { %v6523_v41 = vpop.eup %6522  ;;  %v4335_v33 = vsub.f32 %v9598_v53, %v9717_v11  ;;  %v4334_v31 = vsub.f32 %v9591_v55, %v9717_v11 }
 0xa44   : > { %v4507_v16 = vpack.c.bf16 %v4489_v60, %v4487_v13  ;;  %v4387_v30 = vmul.f32 %v6523_v41, %v4331_v0  ;;  %v4424_v10 = vmul.f32 %v9618_v38, %v4385_v42  ;;  %v4386_v29 = vmul.f32 %v6523_v41, %v4330_v6  ;;  %v6345_v13 = vld [vmem:[#allocation8] sm:$0xff]   ;;  %v6346_v60 = vld [vmem:[#allocation8 + $0x48] sm:$0xff]  }
 0xa45   : > { %v4423_v4 = vmul.f32 %v9615_v18, %v4384_v57  ;;  %v4506_v62 = vpack.c.bf16 %v4488_v20, %v4486_v14 }
 0xa46   : > { %4790 = vmatprep.mubr.bf16.mxu0 %v4507_v16  ;;  %v4426_v36 = vmul.f32 %v9618_v38, %v4387_v30  ;;  %v4463_v3 = vadd.f32 %v9626_v49, %v4424_v10  ;;  %v4425_v46 = vmul.f32 %v9615_v18, %v4386_v29 }
 0xa47   : > { %v4462_v50 = vadd.f32 %v9623_v61, %v4423_v4 }
 0xa48   : > { %v4465_v58 = vadd.f32 %v9626_v49, %v4426_v36  ;;  %v4464_v23 = vadd.f32 %v9623_v61, %v4425_v46  ;;  %v4491_v39 = vmax.f32 %v4463_v3, 0.0 }
 0xa49   : > { %v6525_v24 = vpop.eup %6524  ;;  %4791 = vmatmul.mubr.bf16.gmra.mrb[100].mxu0 %v4506_v62  ;;  %v4490_v21 = vmax.f32 %v4462_v50, 0.0 }
 0xa4a   : > { %v4493_v63 = vmax.f32 %v4465_v58, 0.0  ;;  %v4492_v28 = vmax.f32 %v4464_v23, 0.0  ;;  %v4389_v51 = vmul.f32 %v6525_v24, %v4333_v12  ;;  %v4388_v25 = vmul.f32 %v6525_v24, %v4332_v5 }
 0xa4b   : > { %v6527_v52 = vpop.eup %6526 }
 0xa4c   : > { %v4509_v8 = vpack.c.bf16 %v4493_v63, %v4491_v39  ;;  %v4391_v19 = vmul.f32 %v6527_v52, %v4335_v33  ;;  %v4428_v17 = vmul.f32 %v9618_v38, %v4389_v51  ;;  %v4390_v34 = vmul.f32 %v6527_v52, %v4334_v31 }
 0xa4d   : > { %v4427_v15 = vmul.f32 %v9615_v18, %v4388_v25  ;;  %v4508_v53 = vpack.c.bf16 %v4492_v28, %v4490_v21 }
 0xa4e   : > { %4800 = vmatprep.mubr.bf16.mxu0 %v4509_v8  ;;  %v4430_v2 = vmul.f32 %v9618_v38, %v4391_v19  ;;  %v4467_v43 = vadd.f32 %v9626_v49, %v4428_v17  ;;  %v4429_v22 = vmul.f32 %v9615_v18, %v4390_v34  ;;  %v6344_v38 = vld [vmem:[#allocation8 + $0x40] sm:$0xff]   ;;  %v6347_v18 = vld [vmem:[#allocation8 + $0x8] sm:$0xff]   ;;  %v6348_v8 = vld [vmem:[#allocation8 + $0x50] sm:$0xff]  }
 0xa4f   : > { %v4466_v55 = vadd.f32 %v9623_v61, %v4427_v15  ;;  %5910 = vmatprep.subr.bf16.mxu1 %v6344_v38  ;;  %5852 = vmatprep.subr.bf16.mxu0 %v6344_v38 }
 0xa50   : > { %v4469_v47 = vadd.f32 %v9626_v49, %v4430_v2  ;;  %v4468_v11 = vadd.f32 %v9623_v61, %v4429_v22  ;;  %v4495_v26 = vmax.f32 %v4467_v43, 0.0  ;;  %5918 = vmatpush3.bf16.msra.mxu1 %v6345_v13  ;;  %5853 = vmatpush3.bf16.msra.mxu0 %v6345_v13  ;;  %v4546_v61 = vld [vmem:[#allocation10 + $0x23] ss:$8 sm:$0x3]  ;;  %v6349_v13 = vld [vmem:[#allocation8 + $0x10] sm:$0xff]  }
 0xa51   : > { %4801 = vmatmul.mubr.bf16.gmra.mrb[104].mxu0 %v4508_v53  ;;  %v4494_v0 = vmax.f32 %v4466_v55, 0.0  ;;  %5911 = vmatprep.subr.bf16.mxu1 %v6346_v60  ;;  %v9777_v49 = vrot.slane %v4546_v61, %v10613_v45  ;;  %v9780_v42 = vrot.slane %v4546_v61, %v10614_v1  ;;  %v6351_v61 = vld [vmem:[#allocation8 + $0x18] sm:$0xff]  }
 0xa52   : > { %v4497_v48 = vmax.f32 %v4469_v47, 0.0  ;;  %v4496_v27 = vmax.f32 %v4468_v11, 0.0  ;;  %5854 = vmatprep.subr.bf16.mxu0 %v6346_v60 }
 0xa54   : > { %v4511_v6 = vpack.c.bf16 %v4497_v48, %v4495_v26  ;;  %v4510_v37 = vpack.c.bf16 %v4496_v27, %v4494_v0  ;;  %5919 = vmatpush3.bf16.msra.mxu1 %v6347_v18  ;;  %5855 = vmatpush3.bf16.msra.mxu0 %v6347_v18  ;;  %v6350_v18 = vld [vmem:[#allocation8 + $0x58] sm:$0xff]  }
 0xa55   : > { %5912 = vmatprep.subr.bf16.mxu1 %v6348_v8  ;;  %5856 = vmatprep.subr.bf16.mxu0 %v6348_v8 }
 0xa56   : > { %4810 = vmatprep.mubr.bf16.mxu0 %v4511_v6 }
 0xa58   : > { %5920 = vmatpush3.bf16.msra.mxu1 %v6349_v13  ;;  %5857 = vmatpush3.bf16.msra.mxu0 %v6349_v13 }
 0xa59   : > { %4811 = vmatmul.mubr.bf16.gmra.mrb[108].mxu0 %v4510_v37  ;;  %5913 = vmatprep.subr.bf16.mxu1 %v6350_v18 }
 0xa5a   : > { %5858 = vmatprep.subr.bf16.mxu0 %v6350_v18 }
 0xa5c   : > { %5921 = vmatpush3.bf16.msra.mxu1 %v6351_v61  ;;  %5859 = vmatpush3.bf16.msra.mxu0 %v6351_v61 }
 0xade   : > { %v4752_v57 = vpop.f32.mrb[84].mxu0 }
 0xadf   : > { %v9783_v41 = vadd.f32 %v4752_v57, %v9777_v49  ;;  %v4754_v14 = vpop.f32.mrb[85].mxu0 }
 0xae0   : > { %v9786_v20 = vadd.f32 %v4754_v14, %v9780_v42  ;;  %v4756_v16 = vpop.f32.mrb[86].mxu0 }
 0xae1   : > { %v9789_v30 = vadd.f32 %v4756_v16, %v9777_v49  ;;  %v4758_v10 = vpop.f32.mrb[87].mxu0  ;;  %v4881_v29 = vmul.f32 %v9783_v41, %v9783_v41 }
 0xae2   : > { %v4882_v4 = vmul.f32 %v9786_v20, %v9786_v20  ;;  %v9796_v62 = vadd.f32 %v4758_v10, %v9780_v42  ;;  %v4825_v36 = vadd.f32 %v9786_v20, %v9783_v41 }
 0xae3   : > { %v4883_v3 = vmul.f32 %v9789_v30, %v9789_v30 }
 0xae4   : > { %v4884_v46 = vmul.f32 %v9796_v62, %v9796_v62  ;;  %4826 = vadd.xlane.f32.xlu0 %v4825_v36  ;;  %v4828_v5 = vadd.f32 %v9796_v62, %v9789_v30  ;;  %v4909_v12 = vadd.f32 %v4882_v4, %v4881_v29 }
 0xae6   : > { %4829 = vadd.xlane.f32.xlu1 %v4828_v5  ;;  %v4912_v58 = vadd.f32 %v4884_v46, %v4883_v3 }
 0xae8   : > { %4910 = vadd.xlane.f32.xlu0 %v4909_v12 }
 0xaea   : > { %4913 = vadd.xlane.f32.xlu1 %v4912_v58 }
 0xaf1   : > { %v4762_v50 = vpop.f32.mrb[88].mxu0 }
 0xaf2   : > { %v9807_v23 = vadd.f32 %v4762_v50, %v9777_v49  ;;  %v4764_v24 = vpop.f32.mrb[89].mxu0 }
 0xaf3   : > { %v9810_v33 = vadd.f32 %v4764_v24, %v9780_v42  ;;  %v4766_v39 = vpop.f32.mrb[90].mxu0 }
 0xaf4   : > { %v9813_v63 = vadd.f32 %v4766_v39, %v9777_v49  ;;  %v4768_v28 = vpop.f32.mrb[91].mxu0  ;;  %v4885_v51 = vmul.f32 %v9807_v23, %v9807_v23 }
 0xaf5   : > { %v4886_v25 = vmul.f32 %v9810_v33, %v9810_v33  ;;  %v9820_v52 = vadd.f32 %v4768_v28, %v9780_v42  ;;  %v4831_v31 = vadd.f32 %v9810_v33, %v9807_v23 }
 0xaf6   : > { %v4887_v21 = vmul.f32 %v9813_v63, %v9813_v63 }
 0xaf7   : > { %v4888_v19 = vmul.f32 %v9820_v52, %v9820_v52  ;;  %4832 = vadd.xlane.f32.xlu0 %v4831_v31  ;;  %v4834_v17 = vadd.f32 %v9820_v52, %v9813_v63  ;;  %v4915_v34 = vadd.f32 %v4886_v25, %v4885_v51 }
 0xaf9   : > { %4835 = vadd.xlane.f32.xlu1 %v4834_v17  ;;  %v4918_v15 = vadd.f32 %v4888_v19, %v4887_v21 }
 0xafb   : > { %4916 = vadd.xlane.f32.xlu0 %v4915_v34 }
 0xafd   : > { %4919 = vadd.xlane.f32.xlu1 %v4918_v15 }
 0xb05   : > { %v4772_v53 = vpop.f32.mrb[92].mxu0 }
 0xb06   : > { %v9831_v2 = vadd.f32 %v4772_v53, %v9777_v49  ;;  %v4774_v43 = vpop.f32.mrb[93].mxu0 }
 0xb07   : > { %v9834_v22 = vadd.f32 %v4774_v43, %v9780_v42  ;;  %v4776_v47 = vpop.f32.mrb[94].mxu0 }
 0xb08   : > { %v9837_v55 = vadd.f32 %v4776_v47, %v9777_v49  ;;  %v4778_v11 = vpop.f32.mrb[95].mxu0  ;;  %v4889_v26 = vmul.f32 %v9831_v2, %v9831_v2 }
 0xb09   : > { %v4890_v48 = vmul.f32 %v9834_v22, %v9834_v22  ;;  %v9844_v27 = vadd.f32 %v4778_v11, %v9780_v42  ;;  %v4837_v6 = vadd.f32 %v9834_v22, %v9831_v2 }
 0xb0a   : > { %v4891_v0 = vmul.f32 %v9837_v55, %v9837_v55 }
 0xb0b   : > { %v4892_v37 = vmul.f32 %v9844_v27, %v9844_v27  ;;  %4838 = vadd.xlane.f32.xlu0 %v4837_v6  ;;  %v4840_v38 = vadd.f32 %v9844_v27, %v9837_v55  ;;  %v4921_v60 = vadd.f32 %v4890_v48, %v4889_v26 }
 0xb0d   : > { %4841 = vadd.xlane.f32.xlu1 %v4840_v38  ;;  %v4924_v57 = vadd.f32 %v4892_v37, %v4891_v0  ;;  %v6352_v37 = vld [vmem:[#allocation8 + $0x60] sm:$0xff]  }
 0xb0e   : > { %v6353_v38 = vld [vmem:[#allocation8 + $0x20] sm:$0xff]   ;;  %5914 = vmatprep.subr.bf16.mxu1 %v6352_v37  ;;  %5860 = vmatprep.subr.bf16.mxu0 %v6352_v37 }
 0xb0f   : > { %4922 = vadd.xlane.f32.xlu0 %v4921_v60  ;;  %5922 = vmatpush3.bf16.msra.mxu1 %v6353_v38 }
 0xb10   : > { %5861 = vmatpush3.bf16.msra.mxu0 %v6353_v38 }
 0xb11   : > { %4925 = vadd.xlane.f32.xlu1 %v4924_v57 }
 0xb14   : > { %v4782_v14 = vpop.f32.mrb[96].mxu0 }
 0xb15   : > { %v9855_v16 = vadd.f32 %v4782_v14, %v9777_v49  ;;  %v4784_v10 = vpop.f32.mrb[97].mxu0 }
 0xb16   : > { %v9858_v29 = vadd.f32 %v4784_v10, %v9780_v42  ;;  %v4786_v4 = vpop.f32.mrb[98].mxu0 }
 0xb17   : > { %v9861_v36 = vadd.f32 %v4786_v4, %v9777_v49  ;;  %v4788_v3 = vpop.f32.mrb[99].mxu0  ;;  %v4893_v46 = vmul.f32 %v9855_v16, %v9855_v16 }
 0xb18   : > { %v4894_v5 = vmul.f32 %v9858_v29, %v9858_v29  ;;  %v9868_v12 = vadd.f32 %v4788_v3, %v9780_v42  ;;  %v4843_v58 = vadd.f32 %v9858_v29, %v9855_v16 }
 0xb19   : > { %v4895_v50 = vmul.f32 %v9861_v36, %v9861_v36 }
 0xb1a   : > { %v4896_v24 = vmul.f32 %v9868_v12, %v9868_v12  ;;  %4844 = vadd.xlane.f32.xlu0 %v4843_v58  ;;  %v4846_v39 = vadd.f32 %v9868_v12, %v9861_v36  ;;  %v4927_v51 = vadd.f32 %v4894_v5, %v4893_v46  ;;  %v6354_v58 = vld [vmem:[#allocation8 + $0x68] sm:$0xff]  }
 0xb1b   : > { %5915 = vmatprep.subr.bf16.mxu1 %v6354_v58  ;;  %5862 = vmatprep.subr.bf16.mxu0 %v6354_v58 }
 0xb1c   : > { %4847 = vadd.xlane.f32.xlu1 %v4846_v39  ;;  %v4792_v28 = vpop.f32.mrb[100].mxu0  ;;  %v4930_v19 = vadd.f32 %v4896_v24, %v4895_v50 }
 0xb1d   : > { %v9879_v25 = vadd.f32 %v4792_v28, %v9777_v49  ;;  %v4794_v31 = vpop.f32.mrb[101].mxu0  ;;  %v6355_v28 = vld [vmem:[#allocation8 + $0x28] sm:$0xff]  }
 0xb1e   : > { %v9882_v8 = vadd.f32 %v4794_v31, %v9780_v42  ;;  %4928 = vadd.xlane.f32.xlu0 %v4927_v51  ;;  %v4796_v21 = vpop.f32.mrb[102].mxu0  ;;  %5923 = vmatpush3.bf16.msra.mxu1 %v6355_v28 }
 0xb1f   : > { %v9885_v17 = vadd.f32 %v4796_v21, %v9777_v49  ;;  %v4798_v34 = vpop.f32.mrb[103].mxu0  ;;  %v4897_v15 = vmul.f32 %v9879_v25, %v9879_v25  ;;  %5863 = vmatpush3.bf16.msra.mxu0 %v6355_v28 }
 0xb20   : > { %v4898_v53 = vmul.f32 %v9882_v8, %v9882_v8  ;;  %v9892_v43 = vadd.f32 %v4798_v34, %v9780_v42  ;;  %4931 = vadd.xlane.f32.xlu1 %v4930_v19  ;;  %v4849_v47 = vadd.f32 %v9882_v8, %v9879_v25  ;;  %v6356_v34 = vld [vmem:[#allocation8 + $0x70] sm:$0xff]  }
 0xb21   : > { %v4899_v11 = vmul.f32 %v9885_v17, %v9885_v17  ;;  %5864 = vmatprep.subr.bf16.mxu0 %v6356_v34  ;;  %5916 = vmatprep.subr.bf16.mxu1 %v6356_v34 }
 0xb22   : > { %v4900_v26 = vmul.f32 %v9892_v43, %v9892_v43  ;;  %4850 = vadd.xlane.f32.xlu0 %v4849_v47  ;;  %v4852_v48 = vadd.f32 %v9892_v43, %v9885_v17  ;;  %v4933_v0 = vadd.f32 %v4898_v53, %v4897_v15 }
 0xb24   : > { %4853 = vadd.xlane.f32.xlu1 %v4852_v48  ;;  %v4802_v6 = vpop.f32.mrb[104].mxu0  ;;  %v4936_v57 = vadd.f32 %v4900_v26, %v4899_v11  ;;  %v6357_v11 = vld [vmem:[#allocation8 + $0x30] sm:$0xff]  }
 0xb25   : > { %v9903_v13 = vadd.f32 %v4802_v6, %v9777_v49  ;;  %v4804_v60 = vpop.f32.mrb[105].mxu0  ;;  %5924 = vmatpush3.bf16.msra.mxu1 %v6357_v11  ;;  %5865 = vmatpush3.bf16.msra.mxu0 %v6357_v11 }
 0xb26   : > { %v9906_v18 = vadd.f32 %v4804_v60, %v9780_v42  ;;  %4934 = vadd.xlane.f32.xlu0 %v4933_v0  ;;  %v4806_v61 = vpop.f32.mrb[106].mxu0  ;;  %v6358_v60 = vld [vmem:[#allocation8 + $0x78] sm:$0xff]  }
 0xb27   : > { %v4901_v14 = vmul.f32 %v9903_v13, %v9903_v13  ;;  %v9911_v10 = vadd.f32 %v4806_v61, %v9777_v49  ;;  %v4808_v4 = vpop.f32.mrb[107].mxu0  ;;  %5866 = vmatprep.subr.bf16.mxu0 %v6358_v60  ;;  %5917 = vmatprep.subr.bf16.mxu1 %v6358_v60 }
 0xb28   : > { %v4902_v3 = vmul.f32 %v9906_v18, %v9906_v18  ;;  %v9916_v46 = vadd.f32 %v4808_v4, %v9780_v42  ;;  %4937 = vadd.xlane.f32.xlu1 %v4936_v57  ;;  %v4855_v5 = vadd.f32 %v9906_v18, %v9903_v13 }
 0xb29   : > { %v4903_v50 = vmul.f32 %v9911_v10, %v9911_v10 }
 0xb2a   : > { %v4904_v24 = vmul.f32 %v9916_v46, %v9916_v46  ;;  %4856 = vadd.xlane.f32.xlu0 %v4855_v5  ;;  %v4858_v39 = vadd.f32 %v9916_v46, %v9911_v10  ;;  %v4939_v31 = vadd.f32 %v4902_v3, %v4901_v14  ;;  %v6359_v14 = vld [vmem:[#allocation8 + $0x38] sm:$0xff]  }
 0xb2b   : > { %5925 = vmatpush3.bf16.msra.mxu1 %v6359_v14  ;;  %5867 = vmatpush3.bf16.msra.mxu0 %v6359_v14 }
 0xb2c   : > { %4859 = vadd.xlane.f32.xlu1 %v4858_v39  ;;  %v4812_v51 = vpop.f32.mrb[108].mxu0  ;;  %v4942_v47 = vadd.f32 %v4904_v24, %v4903_v50 }
 0xb2d   : > { %v9927_v21 = vadd.f32 %v4812_v51, %v9777_v49  ;;  %v4814_v19 = vpop.f32.mrb[109].mxu0 }
 0xb2e   : > { %v9930_v15 = vadd.f32 %v4814_v19, %v9780_v42  ;;  %4940 = vadd.xlane.f32.xlu0 %v4939_v31  ;;  %v4816_v53 = vpop.f32.mrb[110].mxu0 }
 0xb2f   : > { %v4905_v26 = vmul.f32 %v9927_v21, %v9927_v21  ;;  %v9935_v48 = vadd.f32 %v4816_v53, %v9777_v49  ;;  %v4818_v6 = vpop.f32.mrb[111].mxu0 }
 0xb30   : > { %v4906_v0 = vmul.f32 %v9930_v15, %v9930_v15  ;;  %v9940_v37 = vadd.f32 %v4818_v6, %v9780_v42  ;;  %4943 = vadd.xlane.f32.xlu1 %v4942_v47  ;;  %v4861_v38 = vadd.f32 %v9930_v15, %v9927_v21 }
 0xb31   : > { %v4907_v49 = vmul.f32 %v9935_v48, %v9935_v48 }
 0xb32   : > { %v4908_v61 = vmul.f32 %v9940_v37, %v9940_v37  ;;  %4862 = vadd.xlane.f32.xlu0 %v4861_v38  ;;  %v4864_v57 = vadd.f32 %v9940_v37, %v9935_v48  ;;  %v4945_v42 = vadd.f32 %v4906_v0, %v4905_v26  ;;  %v4822_v0 = vld [vmem:[#allocation10 + $0x24] ss:$8 sm:$0x3] }
 0xb33   : > { %v9954_v14 = vrot.slane %v4822_v0, %v10613_v45 }
 0xb34   : > { %4865 = vadd.xlane.f32.xlu1 %v4864_v57  ;;  %v4948_v4 = vadd.f32 %v4908_v61, %v4907_v49  ;;  %v4824_v49 = vld [vmem:[#allocation10 + $0x25] ss:$8 sm:$0x3] }
 0xb36   : > { %4946 = vadd.xlane.f32.xlu0 %v4945_v42 }
 0xb38   : > { %4949 = vadd.xlane.f32.xlu1 %v4948_v4 }
 0xb71   : > { %v4827_v3 = vpop.xlane.xlu0 %4826 }
 0xb72   : > { %v4867_v5 = vmul.f32 0.00390625, %v4827_v3 }
 0xb73   : > { %v4830_v58 = vpop.xlane.xlu1 %4829 }
 0xb74   : > { %v4868_v50 = vmul.f32 0.00390625, %v4830_v58  ;;  %v4965_v39 = vmul.f32 %v4867_v5, %v4867_v5  ;;  %v5007_v57 = vsub.f32 %v9783_v41, %v4867_v5  ;;  %v5008_v3 = vsub.f32 %v9786_v20, %v4867_v5 }
 0xb75   : > { %v4911_v24 = vpop.xlane.xlu0 %4910 }
 0xb76   : > { %v4951_v28 = vmul.f32 0.00390625, %v4911_v24  ;;  %v4966_v19 = vmul.f32 %v4868_v50, %v4868_v50  ;;  %v9960_v24 = vrot.slane %v4822_v0, %v10614_v1 }
 0xb77   : > { %v4914_v51 = vpop.xlane.xlu1 %4913 }
 0xb78   : > { %v4979_v31 = vsub.f32 %v4951_v28, %v4965_v39  ;;  %v4952_v34 = vmul.f32 0.00390625, %v4914_v51  ;;  %v9963_v39 = vrot.slane %v4824_v49, %v10613_v45  ;;  %v5009_v28 = vsub.f32 %v9789_v30, %v4868_v50 }
 0xb7a   : > { %v4993_v53 = vmax.f32 %v4979_v31, 0.0  ;;  %v4980_v47 = vsub.f32 %v4952_v34, %v4966_v19  ;;  %v5010_v34 = vsub.f32 %v9796_v62, %v4868_v50 }
 0xb7c   : > { %v5035_v11 = vadd.f32 1e-05, %v4993_v53  ;;  %v4994_v26 = vmax.f32 %v4980_v47, 0.0  ;;  %v9972_v47 = vrot.slane %v4824_v49, %v10614_v1 }
 0xb7e   : > { %6528 = vrsqrt.f32 %v5035_v11  ;;  %v5036_v6 = vadd.f32 1e-05, %v4994_v26 }
 0xb80   : > { %6530 = vrsqrt.f32 %v5036_v6 }
 0xb84   : > { %v4833_v38 = vpop.xlane.xlu0 %4832 }
 0xb85   : > { %v9950_v60 = vmul.f32 0.00390625, %v4833_v38 }
 0xb86   : > { %v4836_v61 = vpop.xlane.xlu1 %4835 }
 0xb87   : > { %v9956_v42 = vmul.f32 0.00390625, %v4836_v61  ;;  %v4967_v41 = vmul.f32 %v9950_v60, %v9950_v60 }
 0xb88   : > { %v6529_v4 = vpop.eup %6528  ;;  %v4917_v58 = vpop.xlane.xlu0 %4916 }
 0xb89   : > { %v5063_v51 = vmul.f32 %v6529_v4, %v5007_v57  ;;  %v4953_v31 = vmul.f32 0.00390625, %v4917_v58  ;;  %v4968_v20 = vmul.f32 %v9956_v42, %v9956_v42  ;;  %v5064_v53 = vmul.f32 %v6529_v4, %v5008_v3 }
 0xb8a   : > { %v6531_v19 = vpop.eup %6530  ;;  %v4920_v5 = vpop.xlane.xlu1 %4919 }
 0xb8b   : > { %v5102_v11 = vmul.f32 %v9954_v14, %v5063_v51  ;;  %v5065_v26 = vmul.f32 %v6531_v19, %v5009_v28  ;;  %v4981_v30 = vsub.f32 %v4953_v31, %v4967_v41  ;;  %v4954_v6 = vmul.f32 0.00390625, %v4920_v5 }
 0xb8c   : > { %v5066_v0 = vmul.f32 %v6531_v19, %v5010_v34  ;;  %v5103_v38 = vmul.f32 %v9960_v24, %v5064_v53  ;;  %v10615_v28 = vmax.f32 %v9105_v44, 0.0  ;;  %v10616_v31 = vmax.f32 %v9101_v54, 0.0 }
 0xb8d   : > { %v5104_v61 = vmul.f32 %v9954_v14, %v5065_v26  ;;  %v4995_v57 = vmax.f32 %v4981_v30, 0.0  ;;  %v4982_v62 = vsub.f32 %v4954_v6, %v4968_v20  ;;  %v5141_v50 = vadd.f32 %v9963_v39, %v5102_v11 }
 0xb8e   : > { %v5105_v58 = vmul.f32 %v9960_v24, %v5066_v0  ;;  %v5142_v4 = vadd.f32 %v9972_v47, %v5103_v38  ;;  %v10617_v20 = vmax.f32 %v9115_v35, 0.0  ;;  %v10618_v53 = vmax.f32 %v9111_v40, 0.0 }
 0xb8f   : > { %v5037_v1 = vadd.f32 1e-05, %v4995_v57  ;;  %v4996_v49 = vmax.f32 %v4982_v62, 0.0  ;;  %v5143_v3 = vadd.f32 %v9963_v39, %v5104_v61  ;;  %v5169_v51 = vadd.f32 %v5141_v50, %v10615_v28 }
 0xb90   : > { %v5144_v41 = vadd.f32 %v9972_v47, %v5105_v58  ;;  %v5170_v19 = vadd.f32 %v5142_v4, %v10616_v31  ;;  %v5011_v35 = vsub.f32 %v9807_v23, %v9950_v60  ;;  %v5012_v50 = vsub.f32 %v9810_v33, %v9950_v60 }
 0xb91   : > { %6532 = vrsqrt.f32 %v5037_v1  ;;  %v5038_v34 = vadd.f32 1e-05, %v4996_v49  ;;  %v5171_v5 = vadd.f32 %v5143_v3, %v10617_v20  ;;  %v5197_v26 = vmax.f32 %v5169_v51, 0.0 }
 0xb92   : > { %v5172_v11 = vadd.f32 %v5144_v41, %v10618_v53  ;;  %v5198_v6 = vmax.f32 %v5170_v19, 0.0  ;;  %v5013_v4 = vsub.f32 %v9813_v63, %v9956_v42  ;;  %v5014_v51 = vsub.f32 %v9820_v52, %v9956_v42 }
 0xb93   : > { %6534 = vrsqrt.f32 %v5038_v34  ;;  %v5199_v30 = vmax.f32 %v5171_v5, 0.0 }
 0xb94   : > { %v5200_v0 = vmax.f32 %v5172_v11, 0.0 }
 0xb95   : > { %v5225_v44 = vpack.c.bf16 %v5199_v30, %v5197_v26 }
 0xb96   : > { %v5226_v38 = vpack.c.bf16 %v5200_v0, %v5198_v6 }
 0xb98   : > { %v4839_v61 = vpop.xlane.xlu0 %4838  ;;  %5407 = vmatprep.mubr.bf16.mxu0 %v5226_v38 }
 0xb99   : > { %v9990_v57 = vmul.f32 0.00390625, %v4839_v61  ;;  %5408 = vmatmul.mubr.bf16.vlgmr.msra.gmra.mrb[112].mxu0 %v5225_v44  ;;  %v10619_v61 = vmax.f32 %v9157_v32, 0.0 }
 0xb9a   : > { %v4842_v54 = vpop.xlane.xlu1 %4841 }
 0xb9b   : > { %v9994_v62 = vmul.f32 0.00390625, %v4842_v54  ;;  %v6533_v40 = vpop.eup %6532  ;;  %v4969_v49 = vmul.f32 %v9990_v57, %v9990_v57 }
 0xb9c   : > { %v4923_v58 = vpop.xlane.xlu0 %4922  ;;  %v5067_v1 = vmul.f32 %v6533_v40, %v5011_v35  ;;  %v5068_v31 = vmul.f32 %v6533_v40, %v5012_v50  ;;  %v10620_v35 = vmax.f32 %v9169_v59, 0.0 }
 0xb9d   : > { %v4955_v3 = vmul.f32 0.00390625, %v4923_v58  ;;  %v6535_v28 = vpop.eup %6534  ;;  %v4970_v23 = vmul.f32 %v9994_v62, %v9994_v62 }
 0xb9e   : > { %v4926_v41 = vpop.xlane.xlu1 %4925  ;;  %v5106_v33 = vmul.f32 %v9954_v14, %v5067_v1  ;;  %v5069_v60 = vmul.f32 %v6535_v28, %v5013_v4  ;;  %v5070_v63 = vmul.f32 %v6535_v28, %v5014_v51  ;;  %v5107_v20 = vmul.f32 %v9960_v24, %v5068_v31 }
 0xb9f   : > { %v4983_v19 = vsub.f32 %v4955_v3, %v4969_v49  ;;  %v4956_v34 = vmul.f32 0.00390625, %v4926_v41  ;;  %v10621_v4 = vmax.f32 %v9173_v7, 0.0  ;;  %v10622_v3 = vmax.f32 %v9165_v56, 0.0 }
 0xba0   : > { %v5108_v5 = vmul.f32 %v9954_v14, %v5069_v60  ;;  %v5145_v26 = vadd.f32 %v9963_v39, %v5106_v33  ;;  %v5109_v52 = vmul.f32 %v9960_v24, %v5070_v63  ;;  %v5146_v42 = vadd.f32 %v9972_v47, %v5107_v20 }
 0xba1   : > { %v4997_v53 = vmax.f32 %v4983_v19, 0.0  ;;  %v4984_v11 = vsub.f32 %v4956_v34, %v4970_v23 }
 0xba2   : > { %v5147_v0 = vadd.f32 %v9963_v39, %v5108_v5  ;;  %v5148_v38 = vadd.f32 %v9972_v47, %v5109_v52  ;;  %v5174_v54 = vadd.f32 %v5146_v42, %v10619_v61  ;;  %v5173_v40 = vadd.f32 %v5145_v26, %v10620_v35 }
 0xba3   : > { %v5039_v30 = vadd.f32 1e-05, %v4997_v53  ;;  %v4998_v6 = vmax.f32 %v4984_v11, 0.0  ;;  %v5015_v52 = vsub.f32 %v9831_v2, %v9990_v57  ;;  %v5016_v42 = vsub.f32 %v9834_v22, %v9990_v57 }
 0xba4   : > { %v5175_v1 = vadd.f32 %v5147_v0, %v10621_v4  ;;  %v5176_v28 = vadd.f32 %v5148_v38, %v10622_v3  ;;  %v5202_v32 = vmax.f32 %v5174_v54, 0.0  ;;  %v5201_v31 = vmax.f32 %v5173_v40, 0.0 }
 0xba5   : > { %6536 = vrsqrt.f32 %v5039_v30  ;;  %v5040_v50 = vadd.f32 1e-05, %v4998_v6  ;;  %v5018_v38 = vsub.f32 %v9844_v27, %v9994_v62  ;;  %v5017_v22 = vsub.f32 %v9837_v55, %v9994_v62 }
 0xba6   : > { %v5204_v41 = vmax.f32 %v5176_v28, 0.0  ;;  %v5203_v59 = vmax.f32 %v5175_v1, 0.0 }
 0xba7   : > { %v4845_v44 = vpop.xlane.xlu0 %4844  ;;  %6538 = vrsqrt.f32 %v5040_v50 }
 0xba8   : > { %v10018_v58 = vmul.f32 0.00390625, %v4845_v44  ;;  %v5228_v34 = vpack.c.bf16 %v5204_v41, %v5202_v32  ;;  %v5227_v7 = vpack.c.bf16 %v5203_v59, %v5201_v31 }
 0xba9   : > { %v4848_v49 = vpop.xlane.xlu1 %4847 }
 0xbaa   : > { %v10024_v51 = vmul.f32 0.00390625, %v4848_v49  ;;  %v4971_v33 = vmul.f32 %v10018_v58, %v10018_v58  ;;  %5415 = vmatprep.mubr.bf16.mxu1 %v5228_v34  ;;  %v5019_v32 = vsub.f32 %v9855_v16, %v10018_v58  ;;  %v5020_v34 = vsub.f32 %v9858_v29, %v10018_v58 }
 0xbab   : > { %v4929_v23 = vpop.xlane.xlu0 %4928  ;;  %5416 = vmatmul.mubr.bf16.vlgmr.msra.gmra.mrb[84].mxu1 %v5227_v7 }
 0xbac   : > { %v4957_v60 = vmul.f32 0.00390625, %v4929_v23  ;;  %v4972_v56 = vmul.f32 %v10024_v51, %v10024_v51  ;;  %v5021_v7 = vsub.f32 %v9861_v36, %v10024_v51 }
 0xbad   : > { %v4932_v19 = vpop.xlane.xlu1 %4931 }
 0xbae   : > { %v4985_v63 = vsub.f32 %v4957_v60, %v4971_v33  ;;  %v4958_v20 = vmul.f32 0.00390625, %v4932_v19 }
 0xbaf   : > { %v4851_v5 = vpop.xlane.xlu0 %4850  ;;  %v6537_v6 = vpop.eup %6536 }
 0xbb0   : > { %v4999_v53 = vmax.f32 %v4985_v63, 0.0  ;;  %v4986_v11 = vsub.f32 %v4958_v20, %v4972_v56  ;;  %v10030_v26 = vmul.f32 0.00390625, %v4851_v5  ;;  %v5072_v35 = vmul.f32 %v6537_v6, %v5016_v42 }
 0xbb1   : > { %v4854_v30 = vpop.xlane.xlu1 %4853  ;;  %v5071_v40 = vmul.f32 %v6537_v6, %v5015_v52  ;;  %v6539_v50 = vpop.eup %6538  ;;  %v5022_v20 = vsub.f32 %v9868_v12, %v10024_v51  ;;  %v10623_v42 = vmax.f32 %v9225_v9, 0.0  ;;  %v10624_v6 = vld [vmem:[#allocation35_spill] sm:$0xff] }
 0xbb2   : > { %v5041_v0 = vadd.f32 1e-05, %v4999_v53  ;;  %v5000_v44 = vmax.f32 %v4986_v11, 0.0  ;;  %v10038_v61 = vmul.f32 0.00390625, %v4854_v30  ;;  %v4973_v2 = vmul.f32 %v10030_v26, %v10030_v26 }
 0xbb3   : > { %v4935_v54 = vpop.xlane.xlu0 %4934  ;;  %v5074_v27 = vmul.f32 %v6539_v50, %v5018_v38  ;;  %v5111_v23 = vmul.f32 %v9960_v24, %v5072_v35  ;;  %v5073_v59 = vmul.f32 %v6539_v50, %v5017_v22  ;;  %v5110_v33 = vmul.f32 %v9954_v14, %v5071_v40 }
 0xbb4   : > { %6540 = vrsqrt.f32 %v5041_v0  ;;  %v5042_v4 = vadd.f32 1e-05, %v5000_v44  ;;  %v4959_v1 = vmul.f32 0.00390625, %v4935_v54  ;;  %v4974_v57 = vmul.f32 %v10038_v61, %v10038_v61 }
 0xbb5   : > { %v4938_v49 = vpop.xlane.xlu1 %4937  ;;  %v5113_v31 = vmul.f32 %v9960_v24, %v5074_v27  ;;  %v5150_v19 = vadd.f32 %v9972_v47, %v5111_v23  ;;  %v5112_v56 = vmul.f32 %v9954_v14, %v5073_v59  ;;  %v5149_v11 = vadd.f32 %v9963_v39, %v5110_v33  ;;  %v10628_v23 = vld [vmem:[#allocation37_spill] sm:$0xff] }
 0xbb6   : > { %6542 = vrsqrt.f32 %v5042_v4  ;;  %v4987_v3 = vsub.f32 %v4959_v1, %v4973_v2  ;;  %v4960_v28 = vmul.f32 0.00390625, %v4938_v49  ;;  %v10625_v0 = vmax.f32 %v10624_v6, 0.0 }
 0xbb7   : > { %v4857_v41 = vpop.xlane.xlu0 %4856  ;;  %v5152_v16 = vadd.f32 %v9972_v47, %v5113_v31  ;;  %v5178_v30 = vadd.f32 %v5150_v19, %v10623_v42  ;;  %v5151_v12 = vadd.f32 %v9963_v39, %v5112_v56  ;;  %v5023_v35 = vsub.f32 %v9879_v25, %v10030_v26 }
 0xbb8   : > { %v5001_v55 = vmax.f32 %v4987_v3, 0.0  ;;  %v4988_v62 = vsub.f32 %v4960_v28, %v4974_v57  ;;  %v10051_v60 = vmul.f32 0.00390625, %v4857_v41  ;;  %v5024_v40 = vsub.f32 %v9882_v8, %v10030_v26  ;;  %v10626_v3 = vld [vmem:[#allocation36_spill] sm:$0xff] }
 0xbb9   : > { %v4860_v63 = vpop.xlane.xlu1 %4859  ;;  %v5180_v44 = vadd.f32 %v5152_v16, %v10625_v0  ;;  %v5206_v9 = vmax.f32 %v5178_v30, 0.0  ;;  %v5025_v49 = vsub.f32 %v9885_v17, %v10038_v61  ;;  %v10627_v28 = vmax.f32 %v10626_v3, 0.0 }
 0xbba   : > { %v5043_v5 = vadd.f32 1e-05, %v5001_v55  ;;  %v5002_v53 = vmax.f32 %v4988_v62, 0.0  ;;  %v10063_v52 = vmul.f32 0.00390625, %v4860_v63  ;;  %v4975_v29 = vmul.f32 %v10051_v60, %v10051_v60 }
 0xbbb   : > { %v4941_v58 = vpop.xlane.xlu0 %4940  ;;  %v5208_v57 = vmax.f32 %v5180_v44, 0.0  ;;  %v5177_v25 = vadd.f32 %v5149_v11, %v10627_v28  ;;  %v10629_v41 = vmax.f32 %v10628_v23, 0.0 }
 0xbbc   : > { %6544 = vrsqrt.f32 %v5043_v5  ;;  %v5044_v38 = vadd.f32 1e-05, %v5002_v53  ;;  %v4961_v54 = vmul.f32 0.00390625, %v4941_v58  ;;  %v4976_v50 = vmul.f32 %v10063_v52, %v10063_v52 }
 0xbbd   : > { %v4944_v4 = vpop.xlane.xlu1 %4943  ;;  %v5179_v8 = vadd.f32 %v5151_v12, %v10629_v41  ;;  %v5230_v62 = vpack.c.bf16 %v5208_v57, %v5206_v9  ;;  %v5205_v63 = vmax.f32 %v5177_v25, 0.0  ;;  %v5026_v5 = vsub.f32 %v9892_v43, %v10038_v61  ;;  %v10630_v9 = vld [vmem:[#allocation38_spill] sm:$0xff] }
 0xbbe   : > { %v6541_v2 = vpop.eup %6540  ;;  %6546 = vrsqrt.f32 %v5044_v38  ;;  %v4989_v1 = vsub.f32 %v4961_v54, %v4975_v29  ;;  %v4962_v22 = vmul.f32 0.00390625, %v4944_v4  ;;  %v5027_v43 = vsub.f32 %v9903_v13, %v10051_v60 }
 0xbbf   : > { %v4863_v27 = vpop.xlane.xlu0 %4862  ;;  %v5076_v26 = vmul.f32 %v6541_v2, %v5020_v34  ;;  %v5207_v16 = vmax.f32 %v5179_v8, 0.0  ;;  %5423 = vmatprep.mubr.bf16.mxu1 %v5230_v62  ;;  %v5075_v29 = vmul.f32 %v6541_v2, %v5019_v32  ;;  %v5028_v61 = vsub.f32 %v9906_v18, %v10051_v60 }
 0xbc0   : > { %v6543_v31 = vpop.eup %6542  ;;  %v5003_v59 = vmax.f32 %v4989_v1, 0.0  ;;  %v4990_v33 = vsub.f32 %v4962_v22, %v4976_v50  ;;  %v10084_v55 = vmul.f32 0.00390625, %v4863_v27  ;;  %v10631_v2 = vmax.f32 %v10630_v9, 0.0  ;;  %v10632_v22 = vld [vmem:[#allocation39_spill] sm:$0xff] }
 0xbc1   : > { %v4866_v19 = vpop.xlane.xlu1 %4865  ;;  %v5078_v56 = vmul.f32 %v6543_v31, %v5022_v20  ;;  %v5115_v17 = vmul.f32 %v9960_v24, %v5076_v26  ;;  %v5229_v30 = vpack.c.bf16 %v5207_v16, %v5205_v63  ;;  %v10633_v57 = vmax.f32 %v10632_v22, 0.0  ;;  %v10642_v22 = vld [vmem:[#allocation20_spill] sm:$0xff] }
 0xbc2   : > { %v5045_v53 = vadd.f32 1e-05, %v5003_v59  ;;  %v5004_v11 = vmax.f32 %v4990_v33, 0.0  ;;  %v10089_v34 = vmul.f32 0.00390625, %v4866_v19  ;;  %v4977_v58 = vmul.f32 %v10084_v55, %v10084_v55 }
 0xbc3   : > { %v4947_v42 = vpop.xlane.xlu0 %4946  ;;  %v5117_v6 = vmul.f32 %v9960_v24, %v5078_v56  ;;  %v5154_v44 = vadd.f32 %v9972_v47, %v5115_v17  ;;  %5424 = vmatmul.mubr.bf16.gmra.mrb[88].mxu1 %v5229_v30  ;;  %v5077_v18 = vmul.f32 %v6543_v31, %v5021_v7  ;;  %v5114_v60 = vmul.f32 %v9954_v14, %v5075_v29 }
 0xbc4   : > { %6548 = vrsqrt.f32 %v5045_v53  ;;  %v5046_v20 = vadd.f32 1e-05, %v5004_v11  ;;  %v4963_v0 = vmul.f32 0.00390625, %v4947_v42  ;;  %v4978_v32 = vmul.f32 %v10089_v34, %v10089_v34  ;;  %v10636_v11 = vld [vmem:[#allocation41_spill] sm:$0xff] }
 0xbc5   : > { %v4950_v38 = vpop.xlane.xlu1 %4949  ;;  %v5156_v54 = vadd.f32 %v9972_v47, %v5117_v6  ;;  %v5182_v1 = vadd.f32 %v5154_v44, %v10631_v2  ;;  %v5116_v26 = vmul.f32 %v9954_v14, %v5077_v18  ;;  %v5153_v59 = vadd.f32 %v9963_v39, %v5114_v60 }
 0xbc6   : > { %v6545_v12 = vpop.eup %6544  ;;  %6550 = vrsqrt.f32 %v5046_v20  ;;  %v4991_v50 = vsub.f32 %v4963_v0, %v4977_v58  ;;  %v4964_v4 = vmul.f32 0.00390625, %v4950_v38  ;;  %v10638_v20 = vld [vmem:[#allocation18_spill] sm:$0xff]  ;;  %v5029_v2 = vsub.f32 %v9911_v10, %v10063_v52 }
 0xbc7   : > { %v5184_v13 = vadd.f32 %v5156_v54, %v10633_v57  ;;  %v5080_v27 = vmul.f32 %v6545_v12, %v5024_v40  ;;  %v5210_v23 = vmax.f32 %v5182_v1, 0.0  ;;  %v5079_v41 = vmul.f32 %v6545_v12, %v5023_v35  ;;  %v10634_v40 = vld [vmem:[#allocation40_spill] sm:$0xff]  ;;  %v10640_v54 = vld [vmem:[#allocation19_spill] sm:$0xff] }
 0xbc8   : > { %v6547_v3 = vpop.eup %6546  ;;  %v5005_v28 = vmax.f32 %v4991_v50, 0.0  ;;  %v4992_v25 = vsub.f32 %v4964_v4, %v4978_v32  ;;  %v5155_v7 = vadd.f32 %v9963_v39, %v5116_v26  ;;  %v10635_v31 = vmax.f32 %v10634_v40, 0.0 }
 0xbc9   : > { %v5212_v8 = vmax.f32 %v5184_v13, 0.0  ;;  %v5082_v33 = vmul.f32 %v6547_v3, %v5026_v5  ;;  %v5119_v63 = vmul.f32 %v9960_v24, %v5080_v27  ;;  %v5081_v36 = vmul.f32 %v6547_v3, %v5025_v49  ;;  %v10644_v3 = vld [vmem:[#allocation21_spill] sm:$0xff] }
 0xbca   : > { %v5047_v62 = vadd.f32 1e-05, %v5005_v28  ;;  %v5006_v19 = vmax.f32 %v4992_v25, 0.0  ;;  %v5181_v16 = vadd.f32 %v5153_v59, %v10635_v31  ;;  %v5118_v53 = vmul.f32 %v9954_v14, %v5079_v41  ;;  %v10646_v31 = vld [vmem:[#allocation22_spill] sm:$0xff] }
 0xbcb   : > { %v5232_v51 = vpack.c.bf16 %v5212_v8, %v5210_v23  ;;  %v5121_v56 = vmul.f32 %v9960_v24, %v5082_v33  ;;  %v5158_v17 = vadd.f32 %v9972_v47, %v5119_v63  ;;  %v5030_v5 = vsub.f32 %v9916_v46, %v10063_v52 }
 0xbcc   : > { %6552 = vrsqrt.f32 %v5047_v62  ;;  %v5048_v35 = vadd.f32 1e-05, %v5006_v19  ;;  %v10637_v49 = vmax.f32 %v10636_v11, 0.0  ;;  %v5120_v42 = vmul.f32 %v9954_v14, %v5081_v36 }
 0xbcd   : > { %5431 = vmatprep.mubr.bf16.mxu1 %v5232_v51  ;;  %v5160_v58 = vadd.f32 %v9972_v47, %v5121_v56  ;;  %v5209_v6 = vmax.f32 %v5181_v16, 0.0  ;;  %v10639_v0 = vmax.f32 %v10638_v20, 0.0  ;;  %v5157_v32 = vadd.f32 %v9963_v39, %v5118_v53 }
 0xbce   : > { %v5183_v29 = vadd.f32 %v5155_v7, %v10637_v49  ;;  %v6549_v30 = vpop.eup %6548  ;;  %6554 = vrsqrt.f32 %v5048_v35  ;;  %v10641_v12 = vmax.f32 %v10640_v54, 0.0  ;;  %v5159_v50 = vadd.f32 %v9963_v39, %v5120_v42 }
 0xbcf   : > { %v5186_v44 = vadd.f32 %v5158_v17, %v10639_v0  ;;  %v5084_v4 = vmul.f32 %v6549_v30, %v5028_v61  ;;  %v10643_v57 = vmax.f32 %v10642_v22, 0.0  ;;  %v5083_v18 = vmul.f32 %v6549_v30, %v5027_v43  ;;  %v10648_v17 = vld [vmem:[#allocation23_spill] sm:$0xff] }
 0xbd0   : > { %v5211_v38 = vmax.f32 %v5183_v29, 0.0  ;;  %v5188_v46 = vadd.f32 %v5160_v58, %v10641_v12  ;;  %v6551_v9 = vpop.eup %6550  ;;  %v10645_v28 = vmax.f32 %v10644_v3, 0.0  ;;  %v5031_v62 = vsub.f32 %v9927_v21, %v10084_v55  ;;  %v10650_v29 = vld [vmem:[#allocation24_spill] sm:$0xff] }
 0xbd1   : > { %v5214_v1 = vmax.f32 %v5186_v44, 0.0  ;;  %v5185_v13 = vadd.f32 %v5157_v32, %v10643_v57  ;;  %v5086_v23 = vmul.f32 %v6551_v9, %v5030_v5  ;;  %v5123_v41 = vmul.f32 %v9960_v24, %v5084_v4 }
 0xbd2   : > { %v5231_v60 = vpack.c.bf16 %v5211_v38, %v5209_v6  ;;  %v5216_v27 = vmax.f32 %v5188_v46, 0.0  ;;  %v5187_v25 = vadd.f32 %v5159_v50, %v10645_v28  ;;  %v5085_v8 = vmul.f32 %v6551_v9, %v5029_v2  ;;  %v10654_v9 = vld [vmem:[#allocation26_spill] sm:$0xff] }
 0xbd3   : > { %v5122_v61 = vmul.f32 %v9954_v14, %v5083_v18  ;;  %v5125_v10 = vmul.f32 %v9960_v24, %v5086_v23  ;;  %v5162_v52 = vadd.f32 %v9972_v47, %v5123_v41  ;;  %v5032_v19 = vsub.f32 %v9930_v15, %v10084_v55  ;;  %v10656_v18 = vld [vmem:[#allocation27_spill] sm:$0xff]  ;;  %v10660_v23 = vld [vmem:[#allocation30_spill] sm:$0xff] }
 0xbd4   : > { %5432 = vmatmul.mubr.bf16.gmra.mrb[92].mxu1 %v5231_v60  ;;  %v5234_v26 = vpack.c.bf16 %v5216_v27, %v5214_v1  ;;  %v5215_v59 = vmax.f32 %v5187_v25, 0.0  ;;  %v5124_v43 = vmul.f32 %v9954_v14, %v5085_v8  ;;  %v5213_v63 = vmax.f32 %v5185_v13, 0.0  ;;  %v10658_v27 = vld [vmem:[#allocation28_spill] sm:$0xff] }
 0xbd5   : > { %v5161_v33 = vadd.f32 %v9963_v39, %v5122_v61  ;;  %v5164_v36 = vadd.f32 %v9972_v47, %v5125_v10  ;;  %v5033_v7 = vsub.f32 %v9935_v48, %v10089_v34  ;;  %v5034_v40 = vsub.f32 %v9940_v37, %v10089_v34  ;;  %v10652_v48 = vld [vmem:[#allocation25_spill] sm:$0xff] }
 0xbd6   : > { %5439 = vmatprep.mubr.bf16.mxu1 %v5234_v26  ;;  %v6553_v51 = vpop.eup %6552  ;;  %v10647_v16 = vmax.f32 %v10646_v31, 0.0  ;;  %v5163_v35 = vadd.f32 %v9963_v39, %v5124_v43  ;;  %v5233_v21 = vpack.c.bf16 %v5215_v59, %v5213_v63  ;;  %v10649_v53 = vmax.f32 %v10648_v17, 0.0 }
 0xbd7   : > { %v5088_v55 = vmul.f32 %v6553_v51, %v5032_v19  ;;  %v5087_v5 = vmul.f32 %v6553_v51, %v5031_v62  ;;  %v10651_v58 = vmax.f32 %v10650_v29, 0.0  ;;  %v10653_v30 = vmax.f32 %v10652_v48, 0.0 }
 0xbd8   : > { %v5190_v56 = vadd.f32 %v5162_v52, %v10647_v16  ;;  %v5192_v15 = vadd.f32 %v5164_v36, %v10649_v53  ;;  %v6555_v11 = vpop.eup %6554  ;;  %v10655_v2 = vmax.f32 %v10654_v9, 0.0  ;;  %v10657_v60 = vmax.f32 %v10656_v18, 0.0 }
 0xbd9   : > { %v5189_v42 = vadd.f32 %v5161_v33, %v10651_v58  ;;  %v5191_v6 = vadd.f32 %v5163_v35, %v10653_v30  ;;  %v5090_v34 = vmul.f32 %v6555_v11, %v5034_v40  ;;  %v5127_v20 = vmul.f32 %v9960_v24, %v5088_v55 }
 0xbda   : > { %v5218_v49 = vmax.f32 %v5190_v56, 0.0  ;;  %v5220_v37 = vmax.f32 %v5192_v15, 0.0  ;;  %v5089_v0 = vmul.f32 %v6555_v11, %v5033_v7  ;;  %v5126_v32 = vmul.f32 %v9954_v14, %v5087_v5 }
 0xbdb   : > { %v5219_v44 = vmax.f32 %v5191_v6, 0.0  ;;  %v5129_v54 = vmul.f32 %v9960_v24, %v5090_v34  ;;  %v5166_v12 = vadd.f32 %v9972_v47, %v5127_v20  ;;  %v5217_v50 = vmax.f32 %v5189_v42, 0.0 }
 0xbdc   : > { %5440 = vmatmul.mubr.bf16.gmra.mrb[96].mxu1 %v5233_v21  ;;  %v5236_v38 = vpack.c.bf16 %v5220_v37, %v5218_v49  ;;  %v5128_v46 = vmul.f32 %v9954_v14, %v5089_v0  ;;  %v5165_v22 = vadd.f32 %v9963_v39, %v5126_v32  ;;  %v10659_v3 = vmax.f32 %v10658_v27, 0.0 }
 0xbdd   : > { %v5168_v4 = vadd.f32 %v9972_v47, %v5129_v54  ;;  %v5194_v1 = vadd.f32 %v5166_v12, %v10655_v2  ;;  %v5235_v13 = vpack.c.bf16 %v5219_v44, %v5217_v50  ;;  %v10661_v41 = vmax.f32 %v10660_v23, 0.0 }
 0xbde   : > { %5447 = vmatprep.mubr.bf16.mxu1 %v5236_v38  ;;  %v5167_v57 = vadd.f32 %v9963_v39, %v5128_v46  ;;  %v5272_v39 = vld [vmem:[#allocation10 + $0x3] ss:$8 sm:$0x3] }
 0xbdf   : > { %v5196_v24 = vadd.f32 %v5168_v4, %v10657_v60  ;;  %v5222_v14 = vmax.f32 %v5194_v1, 0.0  ;;  %v5193_v47 = vadd.f32 %v5165_v22, %v10661_v41  ;;  %v10179_v52 = vrot.slane %v5272_v39, %v10613_v45 }
 0xbe0   : > { %v5195_v28 = vadd.f32 %v5167_v57, %v10659_v3 }
 0xbe1   : > { %v5224_v25 = vmax.f32 %v5196_v24, 0.0  ;;  %v5221_v26 = vmax.f32 %v5193_v47, 0.0 }
 0xbe2   : > { %v5223_v61 = vmax.f32 %v5195_v28, 0.0 }
 0xbe3   : > { %v5238_v8 = vpack.c.bf16 %v5224_v25, %v5222_v14 }
 0xbe4   : > { %5448 = vmatmul.mubr.bf16.gmra.mrb[100].mxu1 %v5235_v13  ;;  %v5237_v59 = vpack.c.bf16 %v5223_v61, %v5221_v26 }
 0xbe5   : > { %5455 = vmatprep.mubr.bf16.mxu1 %v5238_v8 }
 0xbec   : > { %5456 = vmatmul.mubr.bf16.gmra.mrb[104].mxu1 %v5237_v59 }
 0xc6c   : > { %v5868_v10 = vpop.f32.mrb[112].mxu0 }
 0xc6d   : > { %v5869_v43 = vpop.f32.mrb[113].mxu0 }
 0xc6e   : > { %v5870_v33 = vadd.f32 %v5869_v43, %v5868_v10  ;;  %v5871_v62 = vpop.f32.mrb[114].mxu0 }
 0xc6f   : > { %v5872_v19 = vpop.f32.mrb[115].mxu0 }
 0xc70   : > { %v5410_v63 = vadd.f32 %v5870_v33, %v10179_v52  ;;  %v5873_v36 = vadd.f32 %v5872_v19, %v5871_v62 }
 0xc72   : > { %5464 = vst [vmem:[%s10182_s26] sm:$0xff] %v5410_v63  ;;  %v5413_v51 = vadd.f32 %v5873_v36, %v10179_v52 }
 0xc74   : > { %5465 = vst [vmem:[%s10182_s26 + $0x8] sm:$0xff] %v5413_v51 }
 0xc7e   : > { %v5874_v7 = vpop.f32.mrb[84].mxu1 }
 0xc7f   : > { %v5875_v45 = vpop.f32.mrb[85].mxu1 }
 0xc80   : > { %v5876_v40 = vadd.f32 %v5875_v45, %v5874_v7  ;;  %v5877_v31 = vpop.f32.mrb[86].mxu1 }
 0xc81   : > { %v5878_v16 = vpop.f32.mrb[87].mxu1 }
 0xc82   : > { %v5418_v56 = vadd.f32 %v5876_v40, %v10179_v52  ;;  %v5879_v35 = vadd.f32 %v5878_v16, %v5877_v31 }
 0xc84   : > { %5466 = vst [vmem:[%s10182_s26 + $0x10] sm:$0xff] %v5418_v56  ;;  %v5421_v21 = vadd.f32 %v5879_v35, %v10179_v52 }
 0xc86   : > { %5467 = vst [vmem:[%s10182_s26 + $0x18] sm:$0xff] %v5421_v21 }
 0xc96   : > { %v5880_v17 = vpop.f32.mrb[88].mxu1 }
 0xc97   : > { %v5881_v53 = vpop.f32.mrb[89].mxu1 }
 0xc98   : > { %v5882_v15 = vadd.f32 %v5881_v53, %v5880_v17  ;;  %v5883_v55 = vpop.f32.mrb[90].mxu1 }
 0xc99   : > { %v5884_v5 = vpop.f32.mrb[91].mxu1 }
 0xc9a   : > { %v5426_v11 = vadd.f32 %v5882_v15, %v10179_v52  ;;  %v5885_v49 = vadd.f32 %v5884_v5, %v5883_v55 }
 0xc9c   : > { %5468 = vst [vmem:[%s10182_s26 + $0x20] sm:$0xff] %v5426_v11  ;;  %v5429_v29 = vadd.f32 %v5885_v49, %v10179_v52 }
 0xc9e   : > { %5469 = vst [vmem:[%s10182_s26 + $0x28] sm:$0xff] %v5429_v29 }
 0xca7   : > { %v5886_v58 = vpop.f32.mrb[92].mxu1 }
 0xca8   : > { %v5887_v42 = vpop.f32.mrb[93].mxu1 }
 0xca9   : > { %v5888_v48 = vadd.f32 %v5887_v42, %v5886_v58  ;;  %v5889_v30 = vpop.f32.mrb[94].mxu1 }
 0xcaa   : > { %v5890_v6 = vpop.f32.mrb[95].mxu1 }
 0xcab   : > { %v5434_v37 = vadd.f32 %v5888_v48, %v10179_v52  ;;  %v5891_v34 = vadd.f32 %v5890_v6, %v5889_v30 }
 0xcad   : > { %5470 = vst [vmem:[%s10182_s26 + $0x30] sm:$0xff] %v5434_v37  ;;  %v5437_v20 = vadd.f32 %v5891_v34, %v10179_v52 }
 0xcaf   : > { %5471 = vst [vmem:[%s10182_s26 + $0x38] sm:$0xff] %v5437_v20  ;;  %v5892_v0 = vpop.f32.mrb[96].mxu1 }
 0xcb0   : > { %v5893_v44 = vpop.f32.mrb[97].mxu1 }
 0xcb1   : > { %v5894_v32 = vadd.f32 %v5893_v44, %v5892_v0  ;;  %v5895_v38 = vpop.f32.mrb[98].mxu1 }
 0xcb2   : > { %v5896_v54 = vpop.f32.mrb[99].mxu1 }
 0xcb3   : > { %v5442_v12 = vadd.f32 %v5894_v32, %v10179_v52  ;;  %v5897_v46 = vadd.f32 %v5896_v54, %v5895_v38 }
 0xcb5   : > { %5472 = vst [vmem:[%s10182_s26 + $0x40] sm:$0xff] %v5442_v12  ;;  %v5445_v50 = vadd.f32 %v5897_v46, %v10179_v52 }
 0xcb7   : > { %5473 = vst [vmem:[%s10182_s26 + $0x48] sm:$0xff] %v5445_v50  ;;  %v5898_v4 = vpop.f32.mrb[100].mxu1 }
 0xcb8   : > { %v5899_v9 = vpop.f32.mrb[101].mxu1 }
 0xcb9   : > { %v5900_v2 = vadd.f32 %v5899_v9, %v5898_v4  ;;  %v5901_v1 = vpop.f32.mrb[102].mxu1 }
 0xcba   : > { %v5902_v22 = vpop.f32.mrb[103].mxu1 }
 0xcbb   : > { %v5450_v57 = vadd.f32 %v5900_v2, %v10179_v52  ;;  %v5903_v13 = vadd.f32 %v5902_v22, %v5901_v1 }
 0xcbd   : > { %5474 = vst [vmem:[%s10182_s26 + $0x50] sm:$0xff] %v5450_v57  ;;  %v5453_v18 = vadd.f32 %v5903_v13, %v10179_v52 }
 0xcbf   : > { %5475 = vst [vmem:[%s10182_s26 + $0x58] sm:$0xff] %v5453_v18  ;;  %v5904_v60 = vpop.f32.mrb[104].mxu1 }
 0xcc0   : > { %v5905_v24 = vpop.f32.mrb[105].mxu1 }
 0xcc1   : > { %v5906_v27 = vadd.f32 %v5905_v24, %v5904_v60  ;;  %v5907_v3 = vpop.f32.mrb[106].mxu1 }
 0xcc2   : > { %v5908_v28 = vpop.f32.mrb[107].mxu1 }
 0xcc3   : > { %v5458_v14 = vadd.f32 %v5906_v27, %v10179_v52  ;;  %v5909_v25 = vadd.f32 %v5908_v28, %v5907_v3 }
 0xcc5   : > { %5476 = vst [vmem:[%s10182_s26 + $0x60] sm:$0xff] %v5458_v14  ;;  %v5461_v23 = vadd.f32 %v5909_v25, %v10179_v52 }
 0xcc7   : > { %5477 = vst [vmem:[%s10182_s26 + $0x68] sm:$0xff] %v5461_v23 }
 0xcc8   : > { %6711 = shalt.err (!%p6708_p13)
}
 0xcc9   : > { %s6712_s10 = scalar_lea.hbm %s10213_s30, 1792  ;;  %s6716_s17 = scalar_lea.hbm %s10267_s5, 3584 }
 0xcca   : > { %p6713_p9 = scmp.ne.s32.totalorder %s10213_s30, %s6712_s10  ;;  %p6717_p6 = scmp.lt.u32.totalorder %s10213_s30, %s10267_s5 }
 0xccb   : > { %p6718_p4 = scmp.lt.u32.totalorder %s6716_s17, %s6712_s10  ;;  %p6720_p10 = scmp.lt.u32.totalorder %s6712_s10, %s10213_s30 }
 0xccc   : > { %p6714_p0 = pnand %p6713_p9, %p6994_p3 }
 0xccd   : > { %p6719_p8 = por %p6718_p4, %p6717_p6 }
 0xcce   : > { %p6715_p11 = pneg %p6714_p0 }
 0xccf   : > { %p6721_p5 = por %p6720_p10, %p6719_p8 }
 0xcd1   : > { %p6722_p7 = pnand %p6721_p5, %p6715_p11 }
 0xcd3   : > { %6725 = shalt.err (!%p6722_p7)
}
 0xcd4   : > { %s6787_s15 = smov 128   ;;  %s6788_s7 = smov 8  }
 0xcd5   : > { %5947 = dma.vmem_to_hbm [thread:$0]  (%p6994_p3), %s10215_s6, 1792, %s10213_s30, %s5479_s22, %s6787_s15, %s6787_s15, %s6788_s7  }
 0xcd6 PF: > { %s5507_s16 = sand.u32 1, %s6760_s18   ;;  %p10662_p12 = scmp.ne.s32.totalorder %s10422_s25, 0 }
 0xcd7   : > { %p10663_p1 = scmp.ge.s32.totalorder %s6772_s21, 2  ;;  %s5508_s29 = scalar_lea.sflag [#allocation4], %s5507_s16 }
 0xcd9   : > { %p5967_p2 = pnand %p10663_p1, %p10662_p12 }
 0xcdb   : > { %6755 = dma.done.wait (!%p5967_p2), %s5508_s29, 1792  }
 0xcdc   : > { %6757 = vsyncadd (!%p5967_p2), %s5508_s29, 4294965504  ;;  %p20_p13 = scmp.ge.s32.totalorder %s6981_s8, 4   ;;  %s10664_s18 = smov %s6764_s19 }
 0xcdd   : > { %s10665_s19 = smov %s6768_s20  ;;  %s10666_s20 = smov %s6990_s13 }
 0xcde   : > { %s10667_s21 = smov %s6981_s8  ;;  %22 = sbr.rel (!%p20_p13) target bundleno = 7 (0x7), region = 127 }
 0xce5   :  { %5513 = vsyncpa [#allocation3], 1 }
 0xce6   :  { %5515 = vsyncpa [#allocation3 + $0x1], 1 }
 0xce7   :  { %5516 = vsyncpa [#allocation6], 1 }
 0xce8   :  { %5517 = vsyncpa [#allocation9], 1 }
 0xce9   :  { %5518 = vsyncpa [#allocation4], 1 }
 0xcea   :  { %5520 = vsyncpa [#allocation4 + $0x1], 1 }

</bundles_post_ra>
